<compile_context>
chip_gen: v6e
topology: v6e:2x2x1
jax: 0.10.0
libtpu: 0.0.40
codegen_flags: <defaults>
</compile_context>

<pallas_src>
import functools

import jax
import jax.numpy as jnp
from jax.experimental import pallas as pl
from jax.experimental.pallas import tpu as pltpu


# ------------------------------- kernel --------------------------------------

def _conv3x3_taps(pad_ref, w_ref, H, W):
    """3x3 conv (on an already zero-padded VMEM tile) as 9 shifted matmuls.

    pad_ref: (H+2, W+2, Ci) f32 VMEM scratch; w_ref: (9, Ci, Co) bf16,
    tap index = kh*3 + kw.  Slices are static and stay inside the VMEM tile,
    so only small per-tile relayouts are materialized (not full-feature-map
    copies as in the previous unfused version).  Accumulation in fp32.
    """
    Ci = pad_ref.shape[-1]
    Co = w_ref.shape[-1]
    acc = jnp.zeros((H * W, Co), jnp.float32)
    for kh in range(3):
        for kw in range(3):
            xs = pad_ref[kh:kh + H, kw:kw + W, :].reshape(H * W, Ci)
            acc = acc + jnp.dot(xs.astype(w_ref.dtype),      # bf16 into the MXU
                                w_ref[kh * 3 + kw],
                                preferred_element_type=jnp.float32)
    return acc


def _mgd_fused_kernel(s_ref, t_ref, m_ref,
                      wa_ref, ba_ref, w1_ref, b1_ref, w2_ref, b2_ref,
                      out_ref, pad1_ref, pad2_ref, *, H, W):
    # Per grid step: one batch image.
    #   s_ref : (1, H, W, 128) bf16   student features
    #   t_ref : (1, H, W, 256) f32    teacher features
    #   m_ref : (1, H*W, 1)   f32     random binary spatial mask
    #   wa/ba : (128,256) bf16 / (1,256) f32      align 1x1 conv
    #   w1/b1 : (9,256,256) bf16 / (1,256) f32    generation conv1 (3x3, pad 1)
    #   w2/b2 : (9,256,256) bf16 / (1,256) f32    generation conv2 (3x3, pad 1)
    #   out   : (1, 8, 128) f32       per-batch partial MSE sum (broadcast)
    #   pad1/pad2: (H+2, W+2, 256) f32 VMEM scratch (fused zero padding)
    HW = H * W
    Cs = s_ref.shape[-1]
    Ct = wa_ref.shape[-1]

    # ---- stage A: 1x1 align conv fused with the random spatial mask ---------
    xs = s_ref[0].reshape(HW, Cs)                                   # bf16
    y = jnp.dot(xs, wa_ref[...], preferred_element_type=jnp.float32)
    y = (y + ba_ref[...]) * m_ref[0]                                # fp32 VPU, lane-broadcast mask

    # ---- stage B: conv3x3 (padding=1) + ReLU, padding fused in VMEM ---------
    pad1_ref[...] = jnp.zeros_like(pad1_ref)
    pad1_ref[1:H + 1, 1:W + 1, :] = y.reshape(H, W, Ct)
    acc1 = _conv3x3_taps(pad1_ref, w1_ref, H, W)
    y1 = jnp.maximum(acc1 + b1_ref[...], 0.0)                       # fp32 ReLU

    # ---- stage C: conv3x3 (padding=1) + MSE partial sum ---------------------
    pad2_ref[...] = jnp.zeros_like(pad2_ref)
    pad2_ref[1:H + 1, 1:W + 1, :] = y1.reshape(H, W, Ct)
    acc2 = _conv3x3_taps(pad2_ref, w2_ref, H, W)
    new_fea = acc2 + b2_ref[...]

    diff = new_fea - t_ref[0].reshape(HW, Ct)                       # fp32
    partial = jnp.sum(diff * diff)
    out_ref[...] = jnp.full(out_ref.shape, partial, jnp.float32)    # lane-dense store


# ------------------------------ forward (glue) --------------------------------

@jax.jit
def criterion_mgd(preds_S, preds_T, params, lambda_mgd, mask_key):
    """preds_S: (N, 128, H, W) NCHW; preds_T: (N, 256, H, W) NCHW -> scalar loss."""
    N, Cs, H, W = preds_S.shape
    Ct = preds_T.shape[1]
    HW = H * W

    # Layout plumbing: NCHW -> NHWC so channels sit on the 128-lane axis.
    # (Could be removed entirely if the caller supplies NHWC features.)
    s_nhwc = jnp.transpose(preds_S, (0, 2, 3, 1)).astype(jnp.bfloat16)
    t_nhwc = jnp.transpose(preds_T, (0, 2, 3, 1)).astype(jnp.float32)

    # Random spatial mask: keep (=1) where U[0,1) <= 1 - lambda_mgd.
    mat = jax.random.uniform(mask_key, (N, H, W), jnp.float32)
    mask = jnp.where(mat > 1.0 - lambda_mgd, 0.0, 1.0).reshape(N, HW, 1)

    # bf16 weights for the MXU; fp32 biases (element-wise path stays fp32).
    wa = params["w_align"].astype(jnp.bfloat16)
    w1 = params["w1"].astype(jnp.bfloat16)
    w2 = params["w2"].astype(jnp.bfloat16)
    ba, b1, b2 = params["b_align"], params["b1"], params["b2"]

    kern = functools.partial(_mgd_fused_kernel, H=H, W=W)

    flops = 2 * N * HW * Cs * Ct + 2 * (9 * 2 * N * HW * Ct * Ct)
    bytes_accessed = (
        N * HW * Cs * 2           # student (bf16)
        + N * HW * Ct * 4         # teacher (f32)
        + N * HW * 4              # mask
        + (Cs * Ct + 2 * 9 * Ct * Ct) * 2 + 3 * Ct * 4   # weights + biases
        + N * 8 * 128 * 4)        # per-batch partial losses

    parts = pl.pallas_call(
        kern,
        out_shape=jax.ShapeDtypeStruct((N, 8, 128), jnp.float32),
        grid_spec=pltpu.PrefetchScalarGridSpec(
            num_scalar_prefetch=0,
            grid=(N,),
            in_specs=[
                pl.BlockSpec((1, H, W, Cs), lambda n: (n, 0, 0, 0)),   # student
                pl.BlockSpec((1, H, W, Ct), lambda n: (n, 0, 0, 0)),   # teacher
                pl.BlockSpec((1, HW, 1), lambda n: (n, 0, 0)),         # mask
                pl.BlockSpec((Cs, Ct), lambda n: (0, 0)),              # w_align (resident)
                pl.BlockSpec((1, Ct), lambda n: (0, 0)),               # b_align
                pl.BlockSpec((9, Ct, Ct), lambda n: (0, 0, 0)),        # w1
                pl.BlockSpec((1, Ct), lambda n: (0, 0)),               # b1
                pl.BlockSpec((9, Ct, Ct), lambda n: (0, 0, 0)),        # w2
                pl.BlockSpec((1, Ct), lambda n: (0, 0)),               # b2
            ],
            out_specs=pl.BlockSpec((1, 8, 128), lambda n: (n, 0, 0)),
            scratch_shapes=[
                pltpu.VMEM((H + 2, W + 2, Ct), jnp.float32),   # padded masked features
                pltpu.VMEM((H + 2, W + 2, Ct), jnp.float32),   # padded conv1 output
            ],
        ),
        compiler_params=pltpu.CompilerParams(
            dimension_semantics=("parallel",),        # use both TCs on v7x
            vmem_limit_bytes=32 * 1024 * 1024,
        ),
        cost_estimate=pl.CostEstimate(
            flops=flops, transcendentals=0, bytes_accessed=bytes_accessed),
    )(s_nhwc, t_nhwc, mask, wa, ba, w1, b1, w2, b2)

    # Tiny cross-batch reduction + MSELoss(reduction='sum') / N normalization.
    return jnp.sum(parts[:, 0, 0]) / N


def init_params(key):
    # Deterministic init mimicking PyTorch Conv2d defaults: U(-1/sqrt(fan_in), 1/sqrt(fan_in)).
    # NOTE: conv weights use (9, Cin, Cout) with tap index kh*3 + kw; loading real
    # PyTorch Conv2d weights (Cout, Cin, kh, kw) requires transposing accordingly.
    k1, k2, k3, k4, k5, k6 = jax.random.split(key, 6)

    def u(k, shape, fan_in):
        bound = 1.0 / (fan_in ** 0.5)
        return jax.random.uniform(k, shape, jnp.float32, -bound, bound)

    return dict(
        w_align=u(k1, (128, 256), 128.0),          # Conv2d(128, 256, k=1)
        b_align=u(k2, (1, 256), 128.0),
        w1=u(k3, (9, 256, 256), 256.0 * 9),        # Conv2d(256, 256, k=3, p=1)
        b1=u(k4, (1, 256), 256.0 * 9),
        w2=u(k5, (9, 256, 256), 256.0 * 9),        # Conv2d(256, 256, k=3, p=1)
        b2=u(k6, (1, 256), 256.0 * 9),
    )


if __name__ == "__main__":
    key = jax.random.PRNGKey(0)
    kp, ks, kt, km = jax.random.split(key, 4)

    N, H, W = 2, 8, 8          # small spatial; channel dims fixed by the module (128 -> 256)
    lambda_mgd = 0.65

    params = init_params(kp)
    preds_S = jax.random.normal(ks, (N, 128, H, W), jnp.float32)
    preds_T = jax.random.normal(kt, (N, 256, H, W), jnp.float32)

    loss = criterion_mgd(preds_S, preds_T, params, lambda_mgd, km)
    jax.block_until_ready(loss)
    print("KERNEL_OK")
</pallas_src>

<mosaic_0001>
module attributes {stable_mosaic.version = 11 : i64} {
  func.func @_mgd_fused_kernel(%arg0: i32, %arg1: memref<1x8x8x128xbf16, #tpu.memory_space<vmem>>, %arg2: memref<1x8x8x256xf32, #tpu.memory_space<vmem>>, %arg3: memref<1x64x1xf32, #tpu.memory_space<vmem>>, %arg4: memref<128x256xbf16, #tpu.memory_space<vmem>>, %arg5: memref<1x256xf32, #tpu.memory_space<vmem>>, %arg6: memref<9x256x256xbf16, #tpu.memory_space<vmem>>, %arg7: memref<1x256xf32, #tpu.memory_space<vmem>>, %arg8: memref<9x256x256xbf16, #tpu.memory_space<vmem>>, %arg9: memref<1x256xf32, #tpu.memory_space<vmem>>, %arg10: memref<1x8x128xf32, #tpu.memory_space<vmem>>, %arg11: memref<10x10x256xf32, #tpu.memory_space<vmem>>, %arg12: memref<10x10x256xf32, #tpu.memory_space<vmem>>) attributes {dimension_semantics = [#tpu.dimension_semantics<parallel>], iteration_bounds = array<i64: 2>, scalar_prefetch = 0 : i64, scratch_operands = 2 : i64, tpu.core_type = #tpu.core_type<tc>, window_params = [{transform_indices = @transform_0, window_bounds = array<i64: 1, 8, 8, 128>}, {transform_indices = @transform_1, window_bounds = array<i64: 1, 8, 8, 256>}, {transform_indices = @transform_2, window_bounds = array<i64: 1, 64, 1>}, {pipeline_mode = #tpu.pipeline_mode<synchronous>, transform_indices = @transform_3, window_bounds = array<i64: 128, 256>}, {pipeline_mode = #tpu.pipeline_mode<synchronous>, transform_indices = @transform_4, window_bounds = array<i64: 1, 256>}, {pipeline_mode = #tpu.pipeline_mode<synchronous>, transform_indices = @transform_5, window_bounds = array<i64: 9, 256, 256>}, {pipeline_mode = #tpu.pipeline_mode<synchronous>, transform_indices = @transform_6, window_bounds = array<i64: 1, 256>}, {pipeline_mode = #tpu.pipeline_mode<synchronous>, transform_indices = @transform_7, window_bounds = array<i64: 9, 256, 256>}, {pipeline_mode = #tpu.pipeline_mode<synchronous>, transform_indices = @transform_8, window_bounds = array<i64: 1, 256>}, {transform_indices = @transform_9, window_bounds = array<i64: 1, 8, 128>}]} {
    %c0 = arith.constant 0 : index
    %c0_0 = arith.constant 0 : index
    %c0_1 = arith.constant 0 : index
    %c0_2 = arith.constant 0 : index
    %0 = vector.load %arg1[%c0, %c0_0, %c0_1, %c0_2] : memref<1x8x8x128xbf16, #tpu.memory_space<vmem>>, vector<1x8x8x128xbf16>
    %1 = vector.shape_cast %0 : vector<1x8x8x128xbf16> to vector<8x8x128xbf16>
    %2 = vector.shape_cast %1 : vector<8x8x128xbf16> to vector<64x128xbf16>
    %c0_3 = arith.constant 0 : index
    %c0_4 = arith.constant 0 : index
    %3 = vector.load %arg4[%c0_3, %c0_4] : memref<128x256xbf16, #tpu.memory_space<vmem>>, vector<128x256xbf16>
    %cst = arith.constant dense<0.000000e+00> : vector<64x256xf32>
    %4 = tpu.matmul %2, %3, %cst {dimension_numbers = #tpu.dot_dimension_numbers<[1], [0], [0], [1], [0, 0, 1, 1], [], []>} : vector<64x128xbf16>, vector<128x256xbf16>, vector<64x256xf32> -> vector<64x256xf32>
    %c0_5 = arith.constant 0 : index
    %c0_6 = arith.constant 0 : index
    %5 = vector.load %arg5[%c0_5, %c0_6] : memref<1x256xf32, #tpu.memory_space<vmem>>, vector<1x256xf32>
    %6 = vector.broadcast %5 : vector<1x256xf32> to vector<64x256xf32>
    %7 = arith.addf %4, %6 : vector<64x256xf32>
    %c0_7 = arith.constant 0 : index
    %c0_8 = arith.constant 0 : index
    %c0_9 = arith.constant 0 : index
    %8 = vector.load %arg3[%c0_7, %c0_8, %c0_9] : memref<1x64x1xf32, #tpu.memory_space<vmem>>, vector<1x64x1xf32>
    %9 = vector.shape_cast %8 : vector<1x64x1xf32> to vector<64x1xf32>
    %10 = vector.broadcast %9 : vector<64x1xf32> to vector<64x256xf32>
    %11 = arith.mulf %7, %10 : vector<64x256xf32>
    %cst_10 = arith.constant 0.000000e+00 : f32
    %12 = vector.broadcast %cst_10 : f32 to vector<10x10x256xf32>
    %c0_11 = arith.constant 0 : index
    %c0_12 = arith.constant 0 : index
    %c0_13 = arith.constant 0 : index
    %13 = vector.load %arg11[%c0_11, %c0_12, %c0_13] : memref<10x10x256xf32, #tpu.memory_space<vmem>>, vector<10x10x256xf32>
    tpu.vector_store %arg11[%c0_11, %c0_12, %c0_13], %12 {strides = array<i32>} : memref<10x10x256xf32, #tpu.memory_space<vmem>>, vector<10x10x256xf32>,
    %14 = vector.shape_cast %11 : vector<64x256xf32> to vector<8x8x256xf32>
    %c1 = arith.constant 1 : index
    %c1_14 = arith.constant 1 : index
    %c0_15 = arith.constant 0 : index
    %15 = vector.load %arg11[%c1, %c1_14, %c0_15] : memref<10x10x256xf32, #tpu.memory_space<vmem>>, vector<8x8x256xf32>
    tpu.vector_store %arg11[%c1, %c1_14, %c0_15], %14 {strides = array<i32>} : memref<10x10x256xf32, #tpu.memory_space<vmem>>, vector<8x8x256xf32>,
    %cst_16 = arith.constant 0.000000e+00 : f32
    %16 = vector.broadcast %cst_16 : f32 to vector<64x256xf32>
    %c0_17 = arith.constant 0 : index
    %c0_18 = arith.constant 0 : index
    %c0_19 = arith.constant 0 : index
    %17 = vector.load %arg11[%c0_17, %c0_18, %c0_19] : memref<10x10x256xf32, #tpu.memory_space<vmem>>, vector<8x8x256xf32>
    %18 = vector.shape_cast %17 : vector<8x8x256xf32> to vector<64x256xf32>
    %19 = arith.truncf %18 : vector<64x256xf32> to vector<64x256xbf16>
    %c0_20 = arith.constant 0 : index
    %c0_21 = arith.constant 0 : index
    %c0_22 = arith.constant 0 : index
    %20 = vector.load %arg6[%c0_20, %c0_21, %c0_22] : memref<9x256x256xbf16, #tpu.memory_space<vmem>>, vector<1x256x256xbf16>
    %21 = vector.shape_cast %20 : vector<1x256x256xbf16> to vector<256x256xbf16>
    %cst_23 = arith.constant dense<0.000000e+00> : vector<64x256xf32>
    %22 = tpu.matmul %19, %21, %cst_23 {dimension_numbers = #tpu.dot_dimension_numbers<[1], [0], [0], [1], [0, 0, 1, 1], [], []>} : vector<64x256xbf16>, vector<256x256xbf16>, vector<64x256xf32> -> vector<64x256xf32>
    %23 = arith.addf %16, %22 : vector<64x256xf32>
    %c0_24 = arith.constant 0 : index
    %c1_25 = arith.constant 1 : index
    %c0_26 = arith.constant 0 : index
    %24 = vector.load %arg11[%c0_24, %c1_25, %c0_26] : memref<10x10x256xf32, #tpu.memory_space<vmem>>, vector<8x8x256xf32>
    %25 = vector.shape_cast %24 : vector<8x8x256xf32> to vector<64x256xf32>
    %26 = arith.truncf %25 : vector<64x256xf32> to vector<64x256xbf16>
    %c1_27 = arith.constant 1 : index
    %c0_28 = arith.constant 0 : index
    %c0_29 = arith.constant 0 : index
    %27 = vector.load %arg6[%c1_27, %c0_28, %c0_29] : memref<9x256x256xbf16, #tpu.memory_space<vmem>>, vector<1x256x256xbf16>
    %28 = vector.shape_cast %27 : vector<1x256x256xbf16> to vector<256x256xbf16>
    %cst_30 = arith.constant dense<0.000000e+00> : vector<64x256xf32>
    %29 = tpu.matmul %26, %28, %cst_30 {dimension_numbers = #tpu.dot_dimension_numbers<[1], [0], [0], [1], [0, 0, 1, 1], [], []>} : vector<64x256xbf16>, vector<256x256xbf16>, vector<64x256xf32> -> vector<64x256xf32>
    %30 = arith.addf %23, %29 : vector<64x256xf32>
    %c0_31 = arith.constant 0 : index
    %c2 = arith.constant 2 : index
    %c0_32 = arith.constant 0 : index
    %31 = vector.load %arg11[%c0_31, %c2, %c0_32] : memref<10x10x256xf32, #tpu.memory_space<vmem>>, vector<8x8x256xf32>
    %32 = vector.shape_cast %31 : vector<8x8x256xf32> to vector<64x256xf32>
    %33 = arith.truncf %32 : vector<64x256xf32> to vector<64x256xbf16>
    %c2_33 = arith.constant 2 : index
    %c0_34 = arith.constant 0 : index
    %c0_35 = arith.constant 0 : index
    %34 = vector.load %arg6[%c2_33, %c0_34, %c0_35] : memref<9x256x256xbf16, #tpu.memory_space<vmem>>, vector<1x256x256xbf16>
    %35 = vector.shape_cast %34 : vector<1x256x256xbf16> to vector<256x256xbf16>
    %cst_36 = arith.constant dense<0.000000e+00> : vector<64x256xf32>
    %36 = tpu.matmul %33, %35, %cst_36 {dimension_numbers = #tpu.dot_dimension_numbers<[1], [0], [0], [1], [0, 0, 1, 1], [], []>} : vector<64x256xbf16>, vector<256x256xbf16>, vector<64x256xf32> -> vector<64x256xf32>
    %37 = arith.addf %30, %36 : vector<64x256xf32>
    %c1_37 = arith.constant 1 : index
    %c0_38 = arith.constant 0 : index
    %c0_39 = arith.constant 0 : index
    %38 = vector.load %arg11[%c1_37, %c0_38, %c0_39] : memref<10x10x256xf32, #tpu.memory_space<vmem>>, vector<8x8x256xf32>
    %39 = vector.shape_cast %38 : vector<8x8x256xf32> to vector<64x256xf32>
    %40 = arith.truncf %39 : vector<64x256xf32> to vector<64x256xbf16>
    %c3 = arith.constant 3 : index
    %c0_40 = arith.constant 0 : index
    %c0_41 = arith.constant 0 : index
    %41 = vector.load %arg6[%c3, %c0_40, %c0_41] : memref<9x256x256xbf16, #tpu.memory_space<vmem>>, vector<1x256x256xbf16>
    %42 = vector.shape_cast %41 : vector<1x256x256xbf16> to vector<256x256xbf16>
    %cst_42 = arith.constant dense<0.000000e+00> : vector<64x256xf32>
    %43 = tpu.matmul %40, %42, %cst_42 {dimension_numbers = #tpu.dot_dimension_numbers<[1], [0], [0], [1], [0, 0, 1, 1], [], []>} : vector<64x256xbf16>, vector<256x256xbf16>, vector<64x256xf32> -> vector<64x256xf32>
    %44 = arith.addf %37, %43 : vector<64x256xf32>
    %c1_43 = arith.constant 1 : index
    %c1_44 = arith.constant 1 : index
    %c0_45 = arith.constant 0 : index
    %45 = vector.load %arg11[%c1_43, %c1_44, %c0_45] : memref<10x10x256xf32, #tpu.memory_space<vmem>>, vector<8x8x256xf32>
    %46 = vector.shape_cast %45 : vector<8x8x256xf32> to vector<64x256xf32>
    %47 = arith.truncf %46 : vector<64x256xf32> to vector<64x256xbf16>
    %c4 = arith.constant 4 : index
    %c0_46 = arith.constant 0 : index
    %c0_47 = arith.constant 0 : index
    %48 = vector.load %arg6[%c4, %c0_46, %c0_47] : memref<9x256x256xbf16, #tpu.memory_space<vmem>>, vector<1x256x256xbf16>
    %49 = vector.shape_cast %48 : vector<1x256x256xbf16> to vector<256x256xbf16>
    %cst_48 = arith.constant dense<0.000000e+00> : vector<64x256xf32>
    %50 = tpu.matmul %47, %49, %cst_48 {dimension_numbers = #tpu.dot_dimension_numbers<[1], [0], [0], [1], [0, 0, 1, 1], [], []>} : vector<64x256xbf16>, vector<256x256xbf16>, vector<64x256xf32> -> vector<64x256xf32>
    %51 = arith.addf %44, %50 : vector<64x256xf32>
    %c1_49 = arith.constant 1 : index
    %c2_50 = arith.constant 2 : index
    %c0_51 = arith.constant 0 : index
    %52 = vector.load %arg11[%c1_49, %c2_50, %c0_51] : memref<10x10x256xf32, #tpu.memory_space<vmem>>, vector<8x8x256xf32>
    %53 = vector.shape_cast %52 : vector<8x8x256xf32> to vector<64x256xf32>
    %54 = arith.truncf %53 : vector<64x256xf32> to vector<64x256xbf16>
    %c5 = arith.constant 5 : index
    %c0_52 = arith.constant 0 : index
    %c0_53 = arith.constant 0 : index
    %55 = vector.load %arg6[%c5, %c0_52, %c0_53] : memref<9x256x256xbf16, #tpu.memory_space<vmem>>, vector<1x256x256xbf16>
    %56 = vector.shape_cast %55 : vector<1x256x256xbf16> to vector<256x256xbf16>
    %cst_54 = arith.constant dense<0.000000e+00> : vector<64x256xf32>
    %57 = tpu.matmul %54, %56, %cst_54 {dimension_numbers = #tpu.dot_dimension_numbers<[1], [0], [0], [1], [0, 0, 1, 1], [], []>} : vector<64x256xbf16>, vector<256x256xbf16>, vector<64x256xf32> -> vector<64x256xf32>
    %58 = arith.addf %51, %57 : vector<64x256xf32>
    %c2_55 = arith.constant 2 : index
    %c0_56 = arith.constant 0 : index
    %c0_57 = arith.constant 0 : index
    %59 = vector.load %arg11[%c2_55, %c0_56, %c0_57] : memref<10x10x256xf32, #tpu.memory_space<vmem>>, vector<8x8x256xf32>
    %60 = vector.shape_cast %59 : vector<8x8x256xf32> to vector<64x256xf32>
    %61 = arith.truncf %60 : vector<64x256xf32> to vector<64x256xbf16>
    %c6 = arith.constant 6 : index
    %c0_58 = arith.constant 0 : index
    %c0_59 = arith.constant 0 : index
    %62 = vector.load %arg6[%c6, %c0_58, %c0_59] : memref<9x256x256xbf16, #tpu.memory_space<vmem>>, vector<1x256x256xbf16>
    %63 = vector.shape_cast %62 : vector<1x256x256xbf16> to vector<256x256xbf16>
    %cst_60 = arith.constant dense<0.000000e+00> : vector<64x256xf32>
    %64 = tpu.matmul %61, %63, %cst_60 {dimension_numbers = #tpu.dot_dimension_numbers<[1], [0], [0], [1], [0, 0, 1, 1], [], []>} : vector<64x256xbf16>, vector<256x256xbf16>, vector<64x256xf32> -> vector<64x256xf32>
    %65 = arith.addf %58, %64 : vector<64x256xf32>
    %c2_61 = arith.constant 2 : index
    %c1_62 = arith.constant 1 : index
    %c0_63 = arith.constant 0 : index
    %66 = vector.load %arg11[%c2_61, %c1_62, %c0_63] : memref<10x10x256xf32, #tpu.memory_space<vmem>>, vector<8x8x256xf32>
    %67 = vector.shape_cast %66 : vector<8x8x256xf32> to vector<64x256xf32>
    %68 = arith.truncf %67 : vector<64x256xf32> to vector<64x256xbf16>
    %c7 = arith.constant 7 : index
    %c0_64 = arith.constant 0 : index
    %c0_65 = arith.constant 0 : index
    %69 = vector.load %arg6[%c7, %c0_64, %c0_65] : memref<9x256x256xbf16, #tpu.memory_space<vmem>>, vector<1x256x256xbf16>
    %70 = vector.shape_cast %69 : vector<1x256x256xbf16> to vector<256x256xbf16>
    %cst_66 = arith.constant dense<0.000000e+00> : vector<64x256xf32>
    %71 = tpu.matmul %68, %70, %cst_66 {dimension_numbers = #tpu.dot_dimension_numbers<[1], [0], [0], [1], [0, 0, 1, 1], [], []>} : vector<64x256xbf16>, vector<256x256xbf16>, vector<64x256xf32> -> vector<64x256xf32>
    %72 = arith.addf %65, %71 : vector<64x256xf32>
    %c2_67 = arith.constant 2 : index
    %c2_68 = arith.constant 2 : index
    %c0_69 = arith.constant 0 : index
    %73 = vector.load %arg11[%c2_67, %c2_68, %c0_69] : memref<10x10x256xf32, #tpu.memory_space<vmem>>, vector<8x8x256xf32>
    %74 = vector.shape_cast %73 : vector<8x8x256xf32> to vector<64x256xf32>
    %75 = arith.truncf %74 : vector<64x256xf32> to vector<64x256xbf16>
    %c8 = arith.constant 8 : index
    %c0_70 = arith.constant 0 : index
    %c0_71 = arith.constant 0 : index
    %76 = vector.load %arg6[%c8, %c0_70, %c0_71] : memref<9x256x256xbf16, #tpu.memory_space<vmem>>, vector<1x256x256xbf16>
    %77 = vector.shape_cast %76 : vector<1x256x256xbf16> to vector<256x256xbf16>
    %cst_72 = arith.constant dense<0.000000e+00> : vector<64x256xf32>
    %78 = tpu.matmul %75, %77, %cst_72 {dimension_numbers = #tpu.dot_dimension_numbers<[1], [0], [0], [1], [0, 0, 1, 1], [], []>} : vector<64x256xbf16>, vector<256x256xbf16>, vector<64x256xf32> -> vector<64x256xf32>
    %79 = arith.addf %72, %78 : vector<64x256xf32>
    %c0_73 = arith.constant 0 : index
    %c0_74 = arith.constant 0 : index
    %80 = vector.load %arg7[%c0_73, %c0_74] : memref<1x256xf32, #tpu.memory_space<vmem>>, vector<1x256xf32>
    %81 = vector.broadcast %80 : vector<1x256xf32> to vector<64x256xf32>
    %82 = arith.addf %79, %81 : vector<64x256xf32>
    %cst_75 = arith.constant 0.000000e+00 : f32
    %83 = vector.broadcast %cst_75 : f32 to vector<64x256xf32>
    %84 = arith.maximumf %82, %83 : vector<64x256xf32>
    %cst_76 = arith.constant 0.000000e+00 : f32
    %85 = vector.broadcast %cst_76 : f32 to vector<10x10x256xf32>
    %c0_77 = arith.constant 0 : index
    %c0_78 = arith.constant 0 : index
    %c0_79 = arith.constant 0 : index
    %86 = vector.load %arg12[%c0_77, %c0_78, %c0_79] : memref<10x10x256xf32, #tpu.memory_space<vmem>>, vector<10x10x256xf32>
    tpu.vector_store %arg12[%c0_77, %c0_78, %c0_79], %85 {strides = array<i32>} : memref<10x10x256xf32, #tpu.memory_space<vmem>>, vector<10x10x256xf32>,
    %87 = vector.shape_cast %84 : vector<64x256xf32> to vector<8x8x256xf32>
    %c1_80 = arith.constant 1 : index
    %c1_81 = arith.constant 1 : index
    %c0_82 = arith.constant 0 : index
    %88 = vector.load %arg12[%c1_80, %c1_81, %c0_82] : memref<10x10x256xf32, #tpu.memory_space<vmem>>, vector<8x8x256xf32>
    tpu.vector_store %arg12[%c1_80, %c1_81, %c0_82], %87 {strides = array<i32>} : memref<10x10x256xf32, #tpu.memory_space<vmem>>, vector<8x8x256xf32>,
    %cst_83 = arith.constant 0.000000e+00 : f32
    %89 = vector.broadcast %cst_83 : f32 to vector<64x256xf32>
    %c0_84 = arith.constant 0 : index
    %c0_85 = arith.constant 0 : index
    %c0_86 = arith.constant 0 : index
    %90 = vector.load %arg12[%c0_84, %c0_85, %c0_86] : memref<10x10x256xf32, #tpu.memory_space<vmem>>, vector<8x8x256xf32>
    %91 = vector.shape_cast %90 : vector<8x8x256xf32> to vector<64x256xf32>
    %92 = arith.truncf %91 : vector<64x256xf32> to vector<64x256xbf16>
    %c0_87 = arith.constant 0 : index
    %c0_88 = arith.constant 0 : index
    %c0_89 = arith.constant 0 : index
    %93 = vector.load %arg8[%c0_87, %c0_88, %c0_89] : memref<9x256x256xbf16, #tpu.memory_space<vmem>>, vector<1x256x256xbf16>
    %94 = vector.shape_cast %93 : vector<1x256x256xbf16> to vector<256x256xbf16>
    %cst_90 = arith.constant dense<0.000000e+00> : vector<64x256xf32>
    %95 = tpu.matmul %92, %94, %cst_90 {dimension_numbers = #tpu.dot_dimension_numbers<[1], [0], [0], [1], [0, 0, 1, 1], [], []>} : vector<64x256xbf16>, vector<256x256xbf16>, vector<64x256xf32> -> vector<64x256xf32>
    %96 = arith.addf %89, %95 : vector<64x256xf32>
    %c0_91 = arith.constant 0 : index
    %c1_92 = arith.constant 1 : index
    %c0_93 = arith.constant 0 : index
    %97 = vector.load %arg12[%c0_91, %c1_92, %c0_93] : memref<10x10x256xf32, #tpu.memory_space<vmem>>, vector<8x8x256xf32>
    %98 = vector.shape_cast %97 : vector<8x8x256xf32> to vector<64x256xf32>
    %99 = arith.truncf %98 : vector<64x256xf32> to vector<64x256xbf16>
    %c1_94 = arith.constant 1 : index
    %c0_95 = arith.constant 0 : index
    %c0_96 = arith.constant 0 : index
    %100 = vector.load %arg8[%c1_94, %c0_95, %c0_96] : memref<9x256x256xbf16, #tpu.memory_space<vmem>>, vector<1x256x256xbf16>
    %101 = vector.shape_cast %100 : vector<1x256x256xbf16> to vector<256x256xbf16>
    %cst_97 = arith.constant dense<0.000000e+00> : vector<64x256xf32>
    %102 = tpu.matmul %99, %101, %cst_97 {dimension_numbers = #tpu.dot_dimension_numbers<[1], [0], [0], [1], [0, 0, 1, 1], [], []>} : vector<64x256xbf16>, vector<256x256xbf16>, vector<64x256xf32> -> vector<64x256xf32>
    %103 = arith.addf %96, %102 : vector<64x256xf32>
    %c0_98 = arith.constant 0 : index
    %c2_99 = arith.constant 2 : index
    %c0_100 = arith.constant 0 : index
    %104 = vector.load %arg12[%c0_98, %c2_99, %c0_100] : memref<10x10x256xf32, #tpu.memory_space<vmem>>, vector<8x8x256xf32>
    %105 = vector.shape_cast %104 : vector<8x8x256xf32> to vector<64x256xf32>
    %106 = arith.truncf %105 : vector<64x256xf32> to vector<64x256xbf16>
    %c2_101 = arith.constant 2 : index
    %c0_102 = arith.constant 0 : index
    %c0_103 = arith.constant 0 : index
    %107 = vector.load %arg8[%c2_101, %c0_102, %c0_103] : memref<9x256x256xbf16, #tpu.memory_space<vmem>>, vector<1x256x256xbf16>
    %108 = vector.shape_cast %107 : vector<1x256x256xbf16> to vector<256x256xbf16>
    %cst_104 = arith.constant dense<0.000000e+00> : vector<64x256xf32>
    %109 = tpu.matmul %106, %108, %cst_104 {dimension_numbers = #tpu.dot_dimension_numbers<[1], [0], [0], [1], [0, 0, 1, 1], [], []>} : vector<64x256xbf16>, vector<256x256xbf16>, vector<64x256xf32> -> vector<64x256xf32>
    %110 = arith.addf %103, %109 : vector<64x256xf32>
    %c1_105 = arith.constant 1 : index
    %c0_106 = arith.constant 0 : index
    %c0_107 = arith.constant 0 : index
    %111 = vector.load %arg12[%c1_105, %c0_106, %c0_107] : memref<10x10x256xf32, #tpu.memory_space<vmem>>, vector<8x8x256xf32>
    %112 = vector.shape_cast %111 : vector<8x8x256xf32> to vector<64x256xf32>
    %113 = arith.truncf %112 : vector<64x256xf32> to vector<64x256xbf16>
    %c3_108 = arith.constant 3 : index
    %c0_109 = arith.constant 0 : index
    %c0_110 = arith.constant 0 : index
    %114 = vector.load %arg8[%c3_108, %c0_109, %c0_110] : memref<9x256x256xbf16, #tpu.memory_space<vmem>>, vector<1x256x256xbf16>
    %115 = vector.shape_cast %114 : vector<1x256x256xbf16> to vector<256x256xbf16>
    %cst_111 = arith.constant dense<0.000000e+00> : vector<64x256xf32>
    %116 = tpu.matmul %113, %115, %cst_111 {dimension_numbers = #tpu.dot_dimension_numbers<[1], [0], [0], [1], [0, 0, 1, 1], [], []>} : vector<64x256xbf16>, vector<256x256xbf16>, vector<64x256xf32> -> vector<64x256xf32>
    %117 = arith.addf %110, %116 : vector<64x256xf32>
    %c1_112 = arith.constant 1 : index
    %c1_113 = arith.constant 1 : index
    %c0_114 = arith.constant 0 : index
    %118 = vector.load %arg12[%c1_112, %c1_113, %c0_114] : memref<10x10x256xf32, #tpu.memory_space<vmem>>, vector<8x8x256xf32>
    %119 = vector.shape_cast %118 : vector<8x8x256xf32> to vector<64x256xf32>
    %120 = arith.truncf %119 : vector<64x256xf32> to vector<64x256xbf16>
    %c4_115 = arith.constant 4 : index
    %c0_116 = arith.constant 0 : index
    %c0_117 = arith.constant 0 : index
    %121 = vector.load %arg8[%c4_115, %c0_116, %c0_117] : memref<9x256x256xbf16, #tpu.memory_space<vmem>>, vector<1x256x256xbf16>
    %122 = vector.shape_cast %121 : vector<1x256x256xbf16> to vector<256x256xbf16>
    %cst_118 = arith.constant dense<0.000000e+00> : vector<64x256xf32>
    %123 = tpu.matmul %120, %122, %cst_118 {dimension_numbers = #tpu.dot_dimension_numbers<[1], [0], [0], [1], [0, 0, 1, 1], [], []>} : vector<64x256xbf16>, vector<256x256xbf16>, vector<64x256xf32> -> vector<64x256xf32>
    %124 = arith.addf %117, %123 : vector<64x256xf32>
    %c1_119 = arith.constant 1 : index
    %c2_120 = arith.constant 2 : index
    %c0_121 = arith.constant 0 : index
    %125 = vector.load %arg12[%c1_119, %c2_120, %c0_121] : memref<10x10x256xf32, #tpu.memory_space<vmem>>, vector<8x8x256xf32>
    %126 = vector.shape_cast %125 : vector<8x8x256xf32> to vector<64x256xf32>
    %127 = arith.truncf %126 : vector<64x256xf32> to vector<64x256xbf16>
    %c5_122 = arith.constant 5 : index
    %c0_123 = arith.constant 0 : index
    %c0_124 = arith.constant 0 : index
    %128 = vector.load %arg8[%c5_122, %c0_123, %c0_124] : memref<9x256x256xbf16, #tpu.memory_space<vmem>>, vector<1x256x256xbf16>
    %129 = vector.shape_cast %128 : vector<1x256x256xbf16> to vector<256x256xbf16>
    %cst_125 = arith.constant dense<0.000000e+00> : vector<64x256xf32>
    %130 = tpu.matmul %127, %129, %cst_125 {dimension_numbers = #tpu.dot_dimension_numbers<[1], [0], [0], [1], [0, 0, 1, 1], [], []>} : vector<64x256xbf16>, vector<256x256xbf16>, vector<64x256xf32> -> vector<64x256xf32>
    %131 = arith.addf %124, %130 : vector<64x256xf32>
    %c2_126 = arith.constant 2 : index
    %c0_127 = arith.constant 0 : index
    %c0_128 = arith.constant 0 : index
    %132 = vector.load %arg12[%c2_126, %c0_127, %c0_128] : memref<10x10x256xf32, #tpu.memory_space<vmem>>, vector<8x8x256xf32>
    %133 = vector.shape_cast %132 : vector<8x8x256xf32> to vector<64x256xf32>
    %134 = arith.truncf %133 : vector<64x256xf32> to vector<64x256xbf16>
    %c6_129 = arith.constant 6 : index
    %c0_130 = arith.constant 0 : index
    %c0_131 = arith.constant 0 : index
    %135 = vector.load %arg8[%c6_129, %c0_130, %c0_131] : memref<9x256x256xbf16, #tpu.memory_space<vmem>>, vector<1x256x256xbf16>
    %136 = vector.shape_cast %135 : vector<1x256x256xbf16> to vector<256x256xbf16>
    %cst_132 = arith.constant dense<0.000000e+00> : vector<64x256xf32>
    %137 = tpu.matmul %134, %136, %cst_132 {dimension_numbers = #tpu.dot_dimension_numbers<[1], [0], [0], [1], [0, 0, 1, 1], [], []>} : vector<64x256xbf16>, vector<256x256xbf16>, vector<64x256xf32> -> vector<64x256xf32>
    %138 = arith.addf %131, %137 : vector<64x256xf32>
    %c2_133 = arith.constant 2 : index
    %c1_134 = arith.constant 1 : index
    %c0_135 = arith.constant 0 : index
    %139 = vector.load %arg12[%c2_133, %c1_134, %c0_135] : memref<10x10x256xf32, #tpu.memory_space<vmem>>, vector<8x8x256xf32>
    %140 = vector.shape_cast %139 : vector<8x8x256xf32> to vector<64x256xf32>
    %141 = arith.truncf %140 : vector<64x256xf32> to vector<64x256xbf16>
    %c7_136 = arith.constant 7 : index
    %c0_137 = arith.constant 0 : index
    %c0_138 = arith.constant 0 : index
    %142 = vector.load %arg8[%c7_136, %c0_137, %c0_138] : memref<9x256x256xbf16, #tpu.memory_space<vmem>>, vector<1x256x256xbf16>
    %143 = vector.shape_cast %142 : vector<1x256x256xbf16> to vector<256x256xbf16>
    %cst_139 = arith.constant dense<0.000000e+00> : vector<64x256xf32>
    %144 = tpu.matmul %141, %143, %cst_139 {dimension_numbers = #tpu.dot_dimension_numbers<[1], [0], [0], [1], [0, 0, 1, 1], [], []>} : vector<64x256xbf16>, vector<256x256xbf16>, vector<64x256xf32> -> vector<64x256xf32>
    %145 = arith.addf %138, %144 : vector<64x256xf32>
    %c2_140 = arith.constant 2 : index
    %c2_141 = arith.constant 2 : index
    %c0_142 = arith.constant 0 : index
    %146 = vector.load %arg12[%c2_140, %c2_141, %c0_142] : memref<10x10x256xf32, #tpu.memory_space<vmem>>, vector<8x8x256xf32>
    %147 = vector.shape_cast %146 : vector<8x8x256xf32> to vector<64x256xf32>
    %148 = arith.truncf %147 : vector<64x256xf32> to vector<64x256xbf16>
    %c8_143 = arith.constant 8 : index
    %c0_144 = arith.constant 0 : index
    %c0_145 = arith.constant 0 : index
    %149 = vector.load %arg8[%c8_143, %c0_144, %c0_145] : memref<9x256x256xbf16, #tpu.memory_space<vmem>>, vector<1x256x256xbf16>
    %150 = vector.shape_cast %149 : vector<1x256x256xbf16> to vector<256x256xbf16>
    %cst_146 = arith.constant dense<0.000000e+00> : vector<64x256xf32>
    %151 = tpu.matmul %148, %150, %cst_146 {dimension_numbers = #tpu.dot_dimension_numbers<[1], [0], [0], [1], [0, 0, 1, 1], [], []>} : vector<64x256xbf16>, vector<256x256xbf16>, vector<64x256xf32> -> vector<64x256xf32>
    %152 = arith.addf %145, %151 : vector<64x256xf32>
    %c0_147 = arith.constant 0 : index
    %c0_148 = arith.constant 0 : index
    %153 = vector.load %arg9[%c0_147, %c0_148] : memref<1x256xf32, #tpu.memory_space<vmem>>, vector<1x256xf32>
    %154 = vector.broadcast %153 : vector<1x256xf32> to vector<64x256xf32>
    %155 = arith.addf %152, %154 : vector<64x256xf32>
    %c0_149 = arith.constant 0 : index
    %c0_150 = arith.constant 0 : index
    %c0_151 = arith.constant 0 : index
    %c0_152 = arith.constant 0 : index
    %156 = vector.load %arg2[%c0_149, %c0_150, %c0_151, %c0_152] : memref<1x8x8x256xf32, #tpu.memory_space<vmem>>, vector<1x8x8x256xf32>
    %157 = vector.shape_cast %156 : vector<1x8x8x256xf32> to vector<8x8x256xf32>
    %158 = vector.shape_cast %157 : vector<8x8x256xf32> to vector<64x256xf32>
    %159 = arith.subf %155, %158 : vector<64x256xf32>
    %160 = arith.mulf %159, %159 : vector<64x256xf32>
    %161 = vector.shape_cast %160 : vector<64x256xf32> to vector<1x64x256xf32>
    %cst_153 = arith.constant dense<0.000000e+00> : vector<1xf32>
    %162 = vector.multi_reduction <add>, %161, %cst_153 [1, 2] : vector<1x64x256xf32> to vector<1xf32>
    %163 = vector.shape_cast %162 : vector<1xf32> to vector<1x1x1xf32>
    %164 = vector.extract %163[0, 0, 0] : f32 from vector<1x1x1xf32>
    %165 = vector.broadcast %164 : f32 to vector<1x8x128xf32>
    %c0_154 = arith.constant 0 : index
    %c0_155 = arith.constant 0 : index
    %c0_156 = arith.constant 0 : index
    %166 = vector.load %arg10[%c0_154, %c0_155, %c0_156] : memref<1x8x128xf32, #tpu.memory_space<vmem>>, vector<1x8x128xf32>
    tpu.vector_store %arg10[%c0_154, %c0_155, %c0_156], %165 {strides = array<i32>} : memref<1x8x128xf32, #tpu.memory_space<vmem>>, vector<1x8x128xf32>,
    return
  }
  func.func @transform_0(%arg0: i32) -> (i32, i32, i32, i32) {
    %c0_i32 = arith.constant 0 : i32
    %c0_i32_0 = arith.constant 0 : i32
    %c0_i32_1 = arith.constant 0 : i32
    %c0_i32_2 = arith.constant 0 : i32
    return %arg0, %c0_i32, %c0_i32_0, %c0_i32_1 : i32, i32, i32, i32
  }
  func.func @transform_1(%arg0: i32) -> (i32, i32, i32, i32) {
    %c0_i32 = arith.constant 0 : i32
    %c0_i32_0 = arith.constant 0 : i32
    %c0_i32_1 = arith.constant 0 : i32
    %c0_i32_2 = arith.constant 0 : i32
    return %arg0, %c0_i32, %c0_i32_0, %c0_i32_1 : i32, i32, i32, i32
  }
  func.func @transform_2(%arg0: i32) -> (i32, i32, i32) {
    %c0_i32 = arith.constant 0 : i32
    %c0_i32_0 = arith.constant 0 : i32
    %c0_i32_1 = arith.constant 0 : i32
    return %arg0, %c0_i32, %c0_i32_0 : i32, i32, i32
  }
  func.func @transform_3(%arg0: i32) -> (i32, i32) {
    %c0_i32 = arith.constant 0 : i32
    %c0_i32_0 = arith.constant 0 : i32
    %c0_i32_1 = arith.constant 0 : i32
    return %c0_i32, %c0_i32_0 : i32, i32
  }
  func.func @transform_4(%arg0: i32) -> (i32, i32) {
    %c0_i32 = arith.constant 0 : i32
    %c0_i32_0 = arith.constant 0 : i32
    %c0_i32_1 = arith.constant 0 : i32
    return %c0_i32, %c0_i32_0 : i32, i32
  }
  func.func @transform_5(%arg0: i32) -> (i32, i32, i32) {
    %c0_i32 = arith.constant 0 : i32
    %c0_i32_0 = arith.constant 0 : i32
    %c0_i32_1 = arith.constant 0 : i32
    %c0_i32_2 = arith.constant 0 : i32
    return %c0_i32, %c0_i32_0, %c0_i32_1 : i32, i32, i32
  }
  func.func @transform_6(%arg0: i32) -> (i32, i32) {
    %c0_i32 = arith.constant 0 : i32
    %c0_i32_0 = arith.constant 0 : i32
    %c0_i32_1 = arith.constant 0 : i32
    return %c0_i32, %c0_i32_0 : i32, i32
  }
  func.func @transform_7(%arg0: i32) -> (i32, i32, i32) {
    %c0_i32 = arith.constant 0 : i32
    %c0_i32_0 = arith.constant 0 : i32
    %c0_i32_1 = arith.constant 0 : i32
    %c0_i32_2 = arith.constant 0 : i32
    return %c0_i32, %c0_i32_0, %c0_i32_1 : i32, i32, i32
  }
  func.func @transform_8(%arg0: i32) -> (i32, i32) {
    %c0_i32 = arith.constant 0 : i32
    %c0_i32_0 = arith.constant 0 : i32
    %c0_i32_1 = arith.constant 0 : i32
    return %c0_i32, %c0_i32_0 : i32, i32
  }
  func.func @transform_9(%arg0: i32) -> (i32, i32, i32) {
    %c0_i32 = arith.constant 0 : i32
    %c0_i32_0 = arith.constant 0 : i32
    %c0_i32_1 = arith.constant 0 : i32
    return %arg0, %c0_i32, %c0_i32_0 : i32, i32, i32
  }
}

</mosaic_0001>

<bundles_post_ra>
// kernel: criterion_mgd.1
= control target key start
LH: loop header
LB: loop body
LE: loop exit
PB: predicated region body
PF: predicated region fallthrough
CT: control target
= control target key end

     0   :  { %s9998_s30 = smov 0   ;;  %s13102_s0 = inlined_call_operand.vmem [shape: bf16[2,8,8,128], index: 0, kind: input, shape index: {}]   ;;  %s13103_s1 = inlined_call_operand.vmem [shape: f32[2,8,8,256], index: 1, kind: input, shape index: {}]   ;;  %s13104_s2 = inlined_call_operand.vmem [shape: f32[2,64,1], index: 2, kind: input, shape index: {}]   ;;  %s13105_s3 = inlined_call_operand.vmem [shape: bf16[128,256], index: 3, kind: input, shape index: {}]   ;;  %s13106_s4 = inlined_call_operand.vmem [shape: f32[1,256], index: 4, kind: input, shape index: {}]   ;;  %s13107_s5 = inlined_call_operand.vmem [shape: bf16[9,256,256], index: 5, kind: input, shape index: {}]   ;;  %s13108_s6 = inlined_call_operand.vmem [shape: f32[1,256], index: 6, kind: input, shape index: {}]   ;;  %s13109_s7 = inlined_call_operand.vmem [shape: bf16[9,256,256], index: 7, kind: input, shape index: {}]   ;;  %s13110_s8 = inlined_call_operand.vmem [shape: f32[1,256], index: 8, kind: input, shape index: {}]   ;;  %s13111_s9 = inlined_call_operand.vmem [shape: f32[2,8,128], index: 9, kind: output, shape index: {}]  }
   0x1 LB: > { %s7904_s10 = sadd.s32 4294967295, %s9944_s30   ;;  %p7908_p0 = scmp.ge.s32.totalorder %s9944_s30, 1  ;;  %s9944_s30 = sphi %s9998_s30, %s19_s30  }
   0x2   : > { %p307_p1 = scmp.lt.s32.totalorder %s9944_s30, 3 }
   0x4   : > { %p308_p2 = pnand %p7908_p0, %p307_p1 }
   0x6   : > { %311 = sbr.rel (%p308_p2) target bundleno = 1437 (0x59d), region = 56 }
   0xb   : > { %v9043_v0 = vld [vmem:[%s13105_s3 + $0x74] ss:$8 sps:$4 sm:$0xff]   ;;  %p352_p3 = scmp.lt.s32.totalorder %s7904_s10, 1  ;;  %v9045_v1 = vld [vmem:[%s13105_s3 + $0x70] ss:$8 sps:$4 sm:$0xff]   ;;  %v9946_v2 = vmov 0  }
   0xc   : > { %544 = vmatprep.mubr.bf16.mxu0 %v9946_v2  ;;  %9041 = vset.pattern.permute.xlu0 %v9946_v2  ;;  %v9046_v3 = vld [vmem:[%s13105_s3 + $0x64] ss:$8 sps:$4 sm:$0xff]   ;;  %v9048_v4 = vld [vmem:[%s13105_s3 + $0x60] ss:$8 sps:$4 sm:$0xff]   ;;  %v9049_v5 = vld [vmem:[%s13105_s3 + $0x54] ss:$8 sps:$4 sm:$0xff]  }
   0xd   : > { %512 = vmatprep.subr.bf16.mxu0 %v9043_v0  ;;  %s13247_s10 = smov (!%p352_p3, %s7904_s10), 1  ;;  %9042 = vset.pattern.permute.xlu1 %v9946_v2  ;;  %v9051_v6 = vld [vmem:[%s13105_s3 + $0x50] ss:$8 sps:$4 sm:$0xff]   ;;  %v9052_v7 = vld [vmem:[%s13105_s3 + $0x44] ss:$8 sps:$4 sm:$0xff]   ;;  %vm890_vm0 = vcmask 1046528  }
   0xe   : > { %513 = vmatpush1.bf16.msra.mxu0 %v9045_v1  ;;  %s9026_s21 = sshll.u32 %s13247_s10, 5  ;;  %s9028_s26 = sshll.u32 %s13247_s10, 6  ;;  %v9054_v8 = vld [vmem:[%s13105_s3 + $0x40] ss:$8 sps:$4 sm:$0xff]   ;;  %v9055_v9 = vld [vmem:[%s13105_s3 + $0x34] ss:$8 sps:$4 sm:$0xff]  }
   0xf   : > { %514 = vmatprep.subr.bf16.mxu0 %v9046_v3  ;;  %s10037_s29 = scalar_lea.vmem %s13102_s0, %s9026_s21  ;;  %s10045_s15 = scalar_lea.vmem %s13104_s2, %s9028_s26  ;;  %v9057_v11 = vld [vmem:[%s13105_s3 + $0x30] ss:$8 sps:$4 sm:$0xff]   ;;  %v9058_v12 = vld [vmem:[%s13105_s3 + $0x24] ss:$8 sps:$4 sm:$0xff]   ;;  %v9060_v15 = vld [vmem:[%s13105_s3 + $0x20] ss:$8 sps:$4 sm:$0xff]  }
  0x10   : > { %v585_v10 = vld [vmem:[%s10045_s15] sm:$0xff]  ;;  %v586_v13 = vld [vmem:[%s10045_s15 + $0x8] sm:$0xff]  ;;  %v587_v14 = vld [vmem:[%s10045_s15 + $0x10] sm:$0xff]  ;;  %vm1526_vm1 = vcmask 1045504   ;;  %s9027_s14 = sshll.u32 %s13247_s10, 7  ;;  %s7915_s21 = sshll.u32 %s13247_s10, 3 }
  0x11   : > { %595 = vperm.xlu0 %9041, %v585_v10   ;;  %605 = vperm.xlu1 %9042, %v587_v14   ;;  %v9061_v16 = vld [vmem:[%s13105_s3 + $0x14] ss:$8 sps:$4 sm:$0xff]   ;;  %v9076_v19 = vld [vmem:[%s13107_s5 + $0x170] ss:$8 sps:$4 sm:$0xff]   ;;  %v589_v20 = vld [vmem:[%s10045_s15 + $0x20] sm:$0xff]  ;;  %s13001_s20 = scalar_lea.vmem %s13103_s1, %s9027_s14  ;;  %s370_s24 = scalar_lea.vmem %s13111_s9, %s7915_s21 }
  0x12   : > { %515 = vmatpush1.bf16.msra.mxu0 %v9048_v4  ;;  %v588_v17 = vld [vmem:[%s10045_s15 + $0x18] sm:$0xff]  ;;  %v590_v22 = vld [vmem:[%s10045_s15 + $0x28] sm:$0xff]  ;;  %v591_v26 = vld [vmem:[%s10045_s15 + $0x30] sm:$0xff] }
  0x13   : > { %516 = vmatprep.subr.bf16.mxu0 %v9049_v5  ;;  %v9074_v18 = vld [vmem:[%s13107_s5 + $0x174] ss:$8 sps:$4 sm:$0xff]   ;;  %v9063_v21 = vld [vmem:[%s13105_s3 + $0x10] ss:$8 sps:$4 sm:$0xff]   ;;  %v9080_v23 = vld [vmem:[%s13107_s5 + $0x164] ss:$8 sps:$4 sm:$0xff]  }
  0x14   : > { %1156 = vmatprep.subr.bf16.mxu1 %v9074_v18  ;;  %v9082_v24 = vld [vmem:[%s13107_s5 + $0x160] ss:$8 sps:$4 sm:$0xff]   ;;  %v9064_v25 = vld [vmem:[%s13105_s3 + $0x4] ss:$8 sps:$4 sm:$0xff]   ;;  %v9086_v27 = vld [vmem:[%s13107_s5 + $0x154] ss:$8 sps:$4 sm:$0xff]  }
  0x15   : > { %600 = vperm.xlu0 %9041, %v586_v13   ;;  %610 = vperm.xlu1 %9042, %v588_v17   ;;  %v592_v28 = vld [vmem:[%s10045_s15 + $0x38] sm:$0xff]  ;;  %v9066_v30 = vld [vmem:[%s13105_s3] ss:$8 sps:$4 sm:$0xff]   ;;  %v9092_v31 = vld [vmem:[%s13107_s5 + $0x144] ss:$8 sps:$4 sm:$0xff]  }
  0x16   : > { %517 = vmatpush1.bf16.msra.mxu0 %v9051_v6  ;;  %1157 = vmatpush1.bf16.msra.mxu1 %v9076_v19  ;;  %v9088_v29 = vld [vmem:[%s13107_s5 + $0x150] ss:$8 sps:$4 sm:$0xff]   ;;  %v9073_v32 = vld [vmem:[%s13107_s5 + $0x74] ss:$8 sps:$4 sm:$0xff]   ;;  %v9067_v33 = vld [vmem:[%s10037_s29] sm:$0xff]  }
  0x17   : > { %518 = vmatprep.subr.bf16.mxu0 %v9052_v7  ;;  %1158 = vmatprep.subr.bf16.mxu1 %v9080_v23  ;;  %v9094_v34 = vld [vmem:[%s13107_s5 + $0x140] ss:$8 sps:$4 sm:$0xff]   ;;  %v9071_v35 = vld [vmem:[%s13107_s5 + $0x70] ss:$8 sps:$4 sm:$0xff]   ;;  %v9079_v36 = vld [vmem:[%s13107_s5 + $0x64] ss:$8 sps:$4 sm:$0xff]  }
  0x18   : > { %v9098_v37 = vld [vmem:[%s13107_s5 + $0x134] ss:$8 sps:$4 sm:$0xff]   ;;  %v9100_v38 = vld [vmem:[%s13107_s5 + $0x130] ss:$8 sps:$4 sm:$0xff]   ;;  %v9077_v39 = vld [vmem:[%s13107_s5 + $0x60] ss:$8 sps:$4 sm:$0xff]  }
  0x19   : > { %615 = vperm.xlu0 %9041, %v589_v20   ;;  %620 = vperm.xlu1 %9042, %v590_v22   ;;  %v9104_v40 = vld [vmem:[%s13107_s5 + $0x124] ss:$8 sps:$4 sm:$0xff]   ;;  %v9085_v41 = vld [vmem:[%s13107_s5 + $0x54] ss:$8 sps:$4 sm:$0xff]   ;;  %v9106_v43 = vld [vmem:[%s13107_s5 + $0x120] ss:$8 sps:$4 sm:$0xff]  }
  0x1a   : > { %519 = vmatpush1.bf16.msra.mxu0 %v9054_v8  ;;  %1159 = vmatpush1.bf16.msra.mxu1 %v9082_v24  ;;  %v9068_v42 = vld [vmem:[%s10037_s29 + $0x8] sm:$0xff]   ;;  %v9083_v44 = vld [vmem:[%s13107_s5 + $0x50] ss:$8 sps:$4 sm:$0xff]   ;;  %v9110_v46 = vld [vmem:[%s13107_s5 + $0x114] ss:$8 sps:$4 sm:$0xff]  }
  0x1b   : > { %520 = vmatprep.subr.bf16.mxu0 %v9055_v9  ;;  %1160 = vmatprep.subr.bf16.mxu1 %v9086_v27  ;;  %v9091_v45 = vld [vmem:[%s13107_s5 + $0x44] ss:$8 sps:$4 sm:$0xff]   ;;  %v9112_v47 = vld [vmem:[%s13107_s5 + $0x110] ss:$8 sps:$4 sm:$0xff]   ;;  %v9089_v48 = vld [vmem:[%s13107_s5 + $0x40] ss:$8 sps:$4 sm:$0xff]  }
  0x1c   : > { %v9116_v49 = vld [vmem:[%s13107_s5 + $0x104] ss:$8 sps:$4 sm:$0xff]   ;;  %v9097_v50 = vld [vmem:[%s13107_s5 + $0x34] ss:$8 sps:$4 sm:$0xff]   ;;  %v9095_v52 = vld [vmem:[%s13107_s5 + $0x30] ss:$8 sps:$4 sm:$0xff]  }
  0x1d   : > { %625 = vperm.xlu0 %9041, %v591_v26   ;;  %630 = vperm.xlu1 %9042, %v592_v28   ;;  %v9069_v51 = vld [vmem:[%s10037_s29 + $0x10] sm:$0xff]   ;;  %v9118_v53 = vld [vmem:[%s13107_s5 + $0x100] ss:$8 sps:$4 sm:$0xff]   ;;  %v9103_v54 = vld [vmem:[%s13107_s5 + $0x24] ss:$8 sps:$4 sm:$0xff]  }
  0x1e   : > { %521 = vmatpush1.bf16.msra.mxu0 %v9057_v11  ;;  %1161 = vmatpush1.bf16.msra.mxu1 %v9088_v29  ;;  %v9122_v55 = vld [vmem:[%s13107_s5 + $0x1f4] ss:$8 sps:$4 sm:$0xff]   ;;  %v9124_v56 = vld [vmem:[%s13107_s5 + $0x1f0] ss:$8 sps:$4 sm:$0xff]   ;;  %v9101_v57 = vld [vmem:[%s13107_s5 + $0x20] ss:$8 sps:$4 sm:$0xff]  }
  0x1f   : > { %522 = vmatprep.subr.bf16.mxu0 %v9058_v12  ;;  %1162 = vmatprep.subr.bf16.mxu1 %v9092_v31  ;;  %v9128_v58 = vld [vmem:[%s13107_s5 + $0x1e4] ss:$8 sps:$4 sm:$0xff]   ;;  %v9109_v59 = vld [vmem:[%s13107_s5 + $0x14] ss:$8 sps:$4 sm:$0xff]   ;;  %v9130_v61 = vld [vmem:[%s13107_s5 + $0x1e0] ss:$8 sps:$4 sm:$0xff]  }
  0x20   : > { %v9070_v60 = vld [vmem:[%s10037_s29 + $0x18] sm:$0xff]   ;;  %v9115_v0 = vld [vmem:[%s13107_s5 + $0x4] ss:$8 sps:$4 sm:$0xff]   ;;  %v9125_v6 = vld [vmem:[%s13107_s5 + $0xe0] ss:$8 sps:$4 sm:$0xff]  }
  0x21   : > { %v9107_v62 = vld [vmem:[%s13107_s5 + $0x10] ss:$8 sps:$4 sm:$0xff]   ;;  %v9134_v63 = vld [vmem:[%s13107_s5 + $0x1d4] ss:$8 sps:$4 sm:$0xff]   ;;  %v9127_v5 = vld [vmem:[%s13107_s5 + $0xe4] ss:$8 sps:$4 sm:$0xff]  }
  0x22   : > { %523 = vmatpush1.bf16.msra.mxu0 %v9060_v15  ;;  %1163 = vmatpush1.bf16.msra.mxu1 %v9094_v34  ;;  %v9136_v1 = vld [vmem:[%s13107_s5 + $0x1d0] ss:$8 sps:$4 sm:$0xff]   ;;  %v9121_v3 = vld [vmem:[%s13107_s5 + $0xf4] ss:$8 sps:$4 sm:$0xff]   ;;  %v9139_v9 = vld [vmem:[%s13107_s5 + $0xc4] ss:$8 sps:$4 sm:$0xff]  }
  0x23   : > { %524 = vmatprep.subr.bf16.mxu0 %v9061_v16  ;;  %1164 = vmatprep.subr.bf16.mxu1 %v9098_v37  ;;  %v9119_v4 = vld [vmem:[%s13107_s5 + $0xf0] ss:$8 sps:$4 sm:$0xff]   ;;  %v9133_v7 = vld [vmem:[%s13107_s5 + $0xd4] ss:$8 sps:$4 sm:$0xff]   ;;  %v9137_v10 = vld [vmem:[%s13107_s5 + $0xc0] ss:$8 sps:$4 sm:$0xff]  }
  0x24   : > { %v9131_v8 = vld [vmem:[%s13107_s5 + $0xd0] ss:$8 sps:$4 sm:$0xff]   ;;  %v9140_v11 = vld [vmem:[%s13107_s5 + $0x1c4] ss:$8 sps:$4 sm:$0xff]   ;;  %v9142_v12 = vld [vmem:[%s13107_s5 + $0x1c0] ss:$8 sps:$4 sm:$0xff]  }
  0x25   : > { %v9145_v13 = vld [vmem:[%s13107_s5 + $0xb4] ss:$8 sps:$4 sm:$0xff]   ;;  %v10236_v14 = vld [vmem:[%s13107_s5 + $0xb0] ss:$8 sps:$4 sm:$0xff]   ;;  %v9947_v15 = vmov 0.0  }
  0x26   : > { %525 = vmatpush1.bf16.msra.mxu0 %v9063_v21  ;;  %1165 = vmatpush1.bf16.msra.mxu1 %v9100_v38  ;;  %653 = vst [vmem:[#allocation2 + $0x120] sm:$0xff] %v9947_v15  ;;  %655 = vst [vmem:[#allocation2 + $0xf8] sm:$0x3] %v9947_v15  ;;  %v9146_v16 = vld [vmem:[%s13107_s5 + $0x1b4] ss:$8 sps:$4 sm:$0xff]  }
  0x27   : > { %526 = vmatprep.subr.bf16.mxu0 %v9064_v25  ;;  %1166 = vmatprep.subr.bf16.mxu1 %v9104_v40  ;;  %649 = vst [vmem:[#allocation2 + $0xb0] sm:$0xff] %v9947_v15  ;;  %650 = vst [vmem:[#allocation2 + $0xd0] sm:$0xff] %v9947_v15  ;;  %v9148_v17 = vld [vmem:[%s13107_s5 + $0x1b0] ss:$8 sps:$4 sm:$0xff]   ;;  %v9151_v18 = vld [vmem:[%s13107_s5 + $0xa4] ss:$8 sps:$4 sm:$0xff]  }
  0x28   : > { %651 = vst [vmem:[#allocation2 + $0x10] sm:$0x3] %v9947_v15  ;;  %652 = vst [vmem:[#allocation2 + $0x48] sm:$0x3] %v9947_v15  ;;  %v9149_v19 = vld [vmem:[%s13107_s5 + $0xa0] ss:$8 sps:$4 sm:$0xff]  }
  0x29   : > { %654 = vst [vmem:[#allocation2 + $0x38] sm:$0xff] %v9947_v15  ;;  %656 = vst [vmem:[#allocation2 + $0x100] sm:$0x3] %v9947_v15  ;;  %v9152_v20 = vld [vmem:[%s13107_s5 + $0x1a4] ss:$8 sps:$4 sm:$0xff]  }
  0x2a   : > { %527 = vmatpush1.bf16.msra.mxu0 %v9066_v30  ;;  %1167 = vmatpush1.bf16.msra.mxu1 %v9106_v43  ;;  %657 = vst [vmem:[#allocation2 + $0x80] sm:$0xff] %v9947_v15  ;;  %658 = vst [vmem:[#allocation2 + $0x108] sm:$0xff] %v9947_v15  ;;  %v9154_v21 = vld [vmem:[%s13107_s5 + $0x1a0] ss:$8 sps:$4 sm:$0xff]   ;;  %v9157_v22 = vld [vmem:[%s13107_s5 + $0x94] ss:$8 sps:$4 sm:$0xff]  }
  0x2b   : > { %1389 = vmatprep.subr.bf16.mxu0 %v9073_v32  ;;  %1168 = vmatprep.subr.bf16.mxu1 %v9110_v46  ;;  %659 = vst [vmem:[#allocation2 + $0x138] sm:$0x3] %v9947_v15  ;;  %660 = vst [vmem:[#allocation2 + $0xf0] sm:$0x3] %v9947_v15  ;;  %v9155_v23 = vld [vmem:[%s13107_s5 + $0x90] ss:$8 sps:$4 sm:$0xff]   ;;  %v398_v32 = vlaneseq }
  0x2c   : > { %661 = vst [vmem:[#allocation2 + $0x18] sm:$0xff] %v9947_v15  ;;  %662 = vst [vmem:[#allocation2 + $0xc8] sm:$0xff] %v9947_v15  ;;  %v9158_v24 = vld [vmem:[%s13107_s5 + $0x194] ss:$8 sps:$4 sm:$0xff]   ;;  %v9160_v25 = vld [vmem:[%s13107_s5 + $0x190] ss:$8 sps:$4 sm:$0xff]  }
  0x2d   : > { %545 = vmatmul.mubr.bf16.vlgmr.msra.gmra.mxu0 %v9067_v33  ;;  %663 = vst [vmem:[#allocation2 + $0x70] sm:$0x3] %v9947_v15  ;;  %664 = vst [vmem:[#allocation2 + $0x20] sm:$0x3] %v9947_v15  ;;  %v9163_v26 = vld [vmem:[%s13107_s5 + $0x84] ss:$8 sps:$4 sm:$0xff]  }
  0x2e   : > { %554 = vmatprep.mubr.bf16.mxu0 %v9946_v2  ;;  %1390 = vmatpush1.bf16.msra.mxu0 %v9071_v35  ;;  %665 = vst [vmem:[#allocation2 + $0x128] sm:$0xff] %v9947_v15  ;;  %666 = vst [vmem:[#allocation2 + $0x110] sm:$0xff] %v9947_v15  ;;  %v9161_v27 = vld [vmem:[%s13107_s5 + $0x80] ss:$8 sps:$4 sm:$0xff]   ;;  %v9164_v28 = vld [vmem:[%s13107_s5 + $0x184] ss:$8 sps:$4 sm:$0xff]  }
  0x2f   : > { %1391 = vmatprep.subr.bf16.mxu0 %v9079_v36  ;;  %1169 = vmatpush1.bf16.msra.mxu1 %v9112_v47  ;;  %667 = vst [vmem:[#allocation2 + $0x8] sm:$0x3] %v9947_v15  ;;  %668 = vst [vmem:[#allocation2 + $0x98] sm:$0x3] %v9947_v15  ;;  %v9166_v29 = vld [vmem:[%s13107_s5 + $0x180] ss:$8 sps:$4 sm:$0xff]  }
  0x30   : > { %1170 = vmatprep.subr.bf16.mxu1 %v9116_v49  ;;  %669 = vst [vmem:[#allocation2 + $0xa8] sm:$0xff] %v9947_v15  ;;  %670 = vst [vmem:[#allocation2 + $0x90] sm:$0xff] %v9947_v15  ;;  %v9169_v30 = vld [vmem:[%s13107_s5 + $0x374] ss:$8 sps:$4 sm:$0xff]   ;;  %v399_v33 = vshrl.u32 %v398_v32, 7 }
  0x31   : > { %671 = vst [vmem:[#allocation2 + $0xe0] sm:$0x3] %v9947_v15  ;;  %672 = vst [vmem:[#allocation2 + $0x88] sm:$0x3] %v9947_v15  ;;  %v9172_v31 = vld [vmem:[%s13107_s5 + $0x274] ss:$8 sps:$4 sm:$0xff]  }
  0x32   : > { %1392 = vmatpush1.bf16.msra.mxu0 %v9077_v39  ;;  %673 = vst [vmem:[#allocation2 + $0xc0] sm:$0xff] %v9947_v15  ;;  %674 = vst [vmem:[#allocation2 + $0x118] sm:$0xff] %v9947_v15  ;;  %v10367_v34 = vsub.s32 0, %v399_v33  ;;  %v396_v35 = vld [vmem:[%s13106_s4] sm:$0x3]  ;;  %v10372_v36 = vsub.s32 1, %v399_v33 }
  0x33   : > { %1393 = vmatprep.subr.bf16.mxu0 %v9085_v41  ;;  %1171 = vmatpush1.bf16.msra.mxu1 %v9118_v53  ;;  %675 = vst [vmem:[#allocation2 + $0xd8] sm:$0x3] %v9947_v15  ;;  %676 = vst [vmem:[#allocation2 + $0xa0] sm:$0x3] %v9947_v15 }
  0x34   : > { %1172 = vmatprep.subr.bf16.mxu1 %v9122_v55  ;;  %677 = vst [vmem:[#allocation2 + $0x68] sm:$0xff] %v9947_v15  ;;  %678 = vst [vmem:[#allocation2 + $0x130] sm:$0xff] %v9947_v15  ;;  %v10375_v37 = vrot.slane %v396_v35, %v10367_v34  ;;  %v10378_v38 = vrot.slane %v396_v35, %v10372_v36 }
  0x35   : > { %555 = vmatmul.mubr.bf16.gmra.mxu0 %v9068_v42  ;;  %679 = vst [vmem:[#allocation2 + $0x50] sm:$0x3] %v9947_v15  ;;  %680 = vst [vmem:[#allocation2 + $0xe8] sm:$0x3] %v9947_v15 }
  0x36   : > { %564 = vmatprep.mubr.bf16.mxu0 %v9946_v2  ;;  %1394 = vmatpush1.bf16.msra.mxu0 %v9083_v44  ;;  %681 = vst [vmem:[#allocation2 + $0x58] sm:$0xff] %v9947_v15  ;;  %682 = vst [vmem:[#allocation2 + $0x78] sm:$0xff] %v9947_v15 }
  0x37   : > { %1395 = vmatprep.subr.bf16.mxu0 %v9091_v45  ;;  %1173 = vmatpush2.bf16.msra.mxu1 %v9124_v56  ;;  %683 = vst [vmem:[#allocation2 + $0x30] sm:$0x3] %v9947_v15  ;;  %684 = vst [vmem:[#allocation2 + $0x40] sm:$0x3] %v9947_v15 }
  0x38   : > { %1174 = vmatprep.subr.bf16.mxu1 %v9128_v58  ;;  %685 = vst [vmem:[#allocation2 + $0x28] sm:$0xff] %v9947_v15  ;;  %686 = vst [vmem:[#allocation2] sm:$0xff] %v9947_v15 }
  0x39   : > { %687 = vst [vmem:[#allocation2 + $0xb8] sm:$0x3] %v9947_v15  ;;  %688 = vst [vmem:[#allocation2 + $0x60] sm:$0x3] %v9947_v15 }
  0x3a   : > { %1396 = vmatpush1.bf16.msra.mxu0 %v9089_v48  ;;  %4210 = vst [vmem:[#allocation3 + $0xa8] sm:$0xff] %v9947_v15  ;;  %4211 = vst [vmem:[#allocation3 + $0x130] sm:$0xff] %v9947_v15 }
  0x3b   : > { %1397 = vmatprep.subr.bf16.mxu0 %v9097_v50  ;;  %1175 = vmatpush2.bf16.msra.mxu1 %v9130_v61  ;;  %4212 = vst [vmem:[#allocation3 + $0x68] sm:$0x3] %v9947_v15  ;;  %4213 = vst [vmem:[#allocation3 + $0x90] sm:$0x3] %v9947_v15 }
  0x3c   : > { %1176 = vmatprep.subr.bf16.mxu1 %v9134_v63  ;;  %4214 = vst [vmem:[#allocation3 + $0xa0] sm:$0xff] %v9947_v15  ;;  %4215 = vst [vmem:[#allocation3 + $0xd8] sm:$0xff] %v9947_v15  ;;  %v828_v63 = vld [vmem:[#allocation2 + $0x10] sm:$0x1] }
  0x3d   : > { %565 = vmatmul.mubr.bf16.gmra.mxu0 %v9069_v51  ;;  %4216 = vst [vmem:[#allocation3 + $0xe8] sm:$0x3] %v9947_v15  ;;  %4217 = vst [vmem:[#allocation3 + $0xb0] sm:$0x3] %v9947_v15 }
  0x3e   : > { %574 = vmatprep.mubr.bf16.mxu0 %v9946_v2  ;;  %1398 = vmatpush1.bf16.msra.mxu0 %v9095_v52  ;;  %v9113_v2 = vld [vmem:[%s13107_s5] ss:$8 sps:$4 sm:$0xff]   ;;  %4218 = vst [vmem:[#allocation3 + $0x8] sm:$0xff] %v9947_v15  ;;  %4219 = vst [vmem:[#allocation3 + $0x40] sm:$0xff] %v9947_v15 }
  0x3f   : > { %1399 = vmatprep.subr.bf16.mxu0 %v9103_v54  ;;  %1177 = vmatpush2.bf16.msra.mxu1 %v9136_v1  ;;  %4220 = vst [vmem:[#allocation3 + $0x58] sm:$0x3] %v9947_v15  ;;  %4221 = vst [vmem:[#allocation3 + $0xc0] sm:$0x3] %v9947_v15 }
  0x40   : > { %1178 = vmatprep.subr.bf16.mxu1 %v9140_v11  ;;  %4222 = vst [vmem:[#allocation3 + $0x138] sm:$0xff] %v9947_v15  ;;  %4223 = vst [vmem:[#allocation3 + $0x80] sm:$0xff] %v9947_v15 }
  0x41   : > { %4224 = vst [vmem:[#allocation3 + $0xf8] sm:$0x3] %v9947_v15  ;;  %4225 = vst [vmem:[#allocation3 + $0x38] sm:$0x3] %v9947_v15 }
  0x42   : > { %1400 = vmatpush1.bf16.msra.mxu0 %v9101_v57  ;;  %4226 = vst [vmem:[#allocation3 + $0x30] sm:$0xff] %v9947_v15  ;;  %4227 = vst [vmem:[#allocation3 + $0xe0] sm:$0xff] %v9947_v15 }
  0x43   : > { %1401 = vmatprep.subr.bf16.mxu0 %v9109_v59  ;;  %1179 = vmatpush2.bf16.msra.mxu1 %v9142_v12  ;;  %4228 = vst [vmem:[#allocation3 + $0xb8] sm:$0x3] %v9947_v15  ;;  %4229 = vst [vmem:[#allocation3 + $0x48] sm:$0x3] %v9947_v15  ;;  %v827_v59 = vld [vmem:[#allocation2 + $0xd0] sm:$0xfe] }
  0x44   : > { %4230 = vst [vmem:[#allocation3 + $0x28] sm:$0xff] %v9947_v15  ;;  %4231 = vst [vmem:[#allocation3 + $0x128] sm:$0xff] %v9947_v15  ;;  %1180 = vmatprep.subr.bf16.mxu1 %v9146_v16 }
  0x45   : > { %575 = vmatmul.mubr.bf16.gmra.mxu0 %v9070_v60  ;;  %4232 = vst [vmem:[#allocation3 + $0x118] sm:$0x3] %v9947_v15  ;;  %4233 = vst [vmem:[#allocation3 + $0x100] sm:$0x3] %v9947_v15  ;;  %v829_v60 = vld [vmem:[#allocation2 + $0x48] sm:$0x1] }
  0x46   : > { %1402 = vmatpush1.bf16.msra.mxu0 %v9107_v62  ;;  %4234 = vst [vmem:[#allocation3 + $0x98] sm:$0xff] %v9947_v15  ;;  %4235 = vst [vmem:[#allocation3] sm:$0xff] %v9947_v15  ;;  %v826_v62 = vld [vmem:[#allocation2 + $0xb0] sm:$0xfe] }
  0x47   : > { %1403 = vmatprep.subr.bf16.mxu0 %v9115_v0  ;;  %4236 = vst [vmem:[#allocation3 + $0x78] sm:$0x3] %v9947_v15  ;;  %4237 = vst [vmem:[#allocation3 + $0x108] sm:$0x3] %v9947_v15  ;;  %1181 = vmatpush2.bf16.msra.mxu1 %v9148_v17  ;;  %v891_v12 = vrot.slane %v826_v62, 1 }
  0x48   : > { %4238 = vst [vmem:[#allocation3 + $0x110] sm:$0xff] %v9947_v15  ;;  %4239 = vst [vmem:[#allocation3 + $0xd0] sm:$0xff] %v9947_v15  ;;  %1182 = vmatprep.subr.bf16.mxu1 %v9152_v20 }
  0x49   : > { %4240 = vst [vmem:[#allocation3 + $0x10] sm:$0x3] %v9947_v15  ;;  %4241 = vst [vmem:[#allocation3 + $0x18] sm:$0x3] %v9947_v15 }
  0x4a   : > { %1404 = vmatpush1.bf16.msra.mxu0 %v9113_v2  ;;  %4242 = vst [vmem:[#allocation3 + $0x20] sm:$0xff] %v9947_v15  ;;  %4243 = vst [vmem:[#allocation3 + $0xc8] sm:$0xff] %v9947_v15 }
  0x4b   : > { %1405 = vmatprep.subr.bf16.mxu0 %v9121_v3  ;;  %4244 = vst [vmem:[#allocation3 + $0x70] sm:$0x3] %v9947_v15  ;;  %4245 = vst [vmem:[#allocation3 + $0x120] sm:$0x3] %v9947_v15  ;;  %1183 = vmatpush2.bf16.msra.mxu1 %v9154_v21 }
  0x4c   : > { %4246 = vst [vmem:[#allocation3 + $0x50] sm:$0xff] %v9947_v15  ;;  %4247 = vst [vmem:[#allocation3 + $0xf0] sm:$0xff] %v9947_v15  ;;  %1184 = vmatprep.subr.bf16.mxu1 %v9158_v24 }
  0x4d   : > { %4248 = vst [vmem:[#allocation3 + $0x60] sm:$0x3] %v9947_v15  ;;  %4249 = vst [vmem:[#allocation3 + $0x88] sm:$0x3] %v9947_v15 }
  0x4e   : > { %1406 = vmatpush2.bf16.msra.mxu0 %v9119_v4  ;;  %13114 = vst [vmem:[#allocation4_spill] sm:$0xff] %v10372_v36 }
  0x4f   : > { %1407 = vmatprep.subr.bf16.mxu0 %v9127_v5  ;;  %1185 = vmatpush2.bf16.msra.mxu1 %v9160_v25  ;;  %v894_v5 = vrot.slane %v827_v59, 1  ;;  %v9178_v59 = vld [vmem:[%s13107_s5 + $0x264] ss:$8 sps:$4 sm:$0xff]  }
  0x50   : > { %1186 = vmatprep.subr.bf16.mxu1 %v9164_v28 }
  0x52   : > { %1408 = vmatpush2.bf16.msra.mxu0 %v9125_v6  ;;  %v895_v6 = vrot.slane %v829_v60, 1  ;;  %v9181_v60 = vld [vmem:[%s13107_s5 + $0x354] ss:$8 sps:$4 sm:$0xff]  }
  0x53   : > { %1409 = vmatprep.subr.bf16.mxu0 %v9133_v7  ;;  %1187 = vmatpush2.bf16.msra.mxu1 %v9166_v29 }
  0x54   : > { %1792 = vmatprep.subr.bf16.mxu1 %v9172_v31  ;;  %v896_v24 = vsel %vm890_vm0, %v894_v5, %v895_v6  ;;  %v9176_v6 = vld [vmem:[%s13107_s5 + $0x260] ss:$8 sps:$4 sm:$0xff]  }
  0x56   : > { %1410 = vmatpush2.bf16.msra.mxu0 %v9131_v8 }
  0x57   : > { %1411 = vmatprep.subr.bf16.mxu0 %v9139_v9 }
  0x5a   : > { %1412 = vmatpush2.bf16.msra.mxu0 %v9137_v10 }
  0x5b   : > { %1413 = vmatprep.subr.bf16.mxu0 %v9145_v13  ;;  %v892_v13 = vrot.slane %v828_v63, 1 }
  0x5e   : > { %1414 = vmatpush2.bf16.msra.mxu0 %v10236_v14 }
  0x5f   : > { %1415 = vmatprep.subr.bf16.mxu0 %v9151_v18 }
  0x62   : > { %1416 = vmatpush2.bf16.msra.mxu0 %v9149_v19 }
  0x63   : > { %1417 = vmatprep.subr.bf16.mxu0 %v9157_v22 }
  0x66   : > { %1418 = vmatpush2.bf16.msra.mxu0 %v9155_v23 }
  0x67   : > { %1419 = vmatprep.subr.bf16.mxu0 %v9163_v26 }
  0x6a   : > { %1420 = vmatpush2.bf16.msra.mxu0 %v9161_v27 }
  0x6b   : > { %2098 = vmatprep.subr.bf16.mxu0 %v9169_v30  ;;  %v9167_v30 = vld [vmem:[%s13107_s5 + $0x370] ss:$8 sps:$4 sm:$0xff]  }
  0x8c   : > { %v596_v39 = vpop.permute.xlu0 %595  ;;  %v606_v55 = vpop.permute.xlu1 %605 }
  0x90   : > { %v601_v49 = vpop.permute.xlu0 %600  ;;  %v611_v4 = vpop.permute.xlu1 %610 }
  0x94   : > { %v616_v31 = vpop.permute.xlu0 %615 }
  0xed   : > { %v546_v40 = vpop.f32.mrf.mxu0 }
  0xee   : > { %v547_v41 = vadd.f32 %v546_v40, %v10375_v37 }
  0xef   : > { %v548_v42 = vpop.f32.mrf.mxu0 }
  0xf0   : > { %v633_v43 = vmul.f32 %v596_v39, %v547_v41  ;;  %v549_v44 = vadd.f32 %v548_v42, %v10378_v38  ;;  %v9175_v41 = vld [vmem:[%s13107_s5 + $0x364] ss:$8 sps:$4 sm:$0xff]  }
  0xf1   : > { %v550_v45 = vpop.f32.mrf.mxu0 }
  0xf2   : > { %v705_v46 = vrot.slane %v633_v43, 7  ;;  %v634_v47 = vmul.f32 %v596_v39, %v549_v44  ;;  %v551_v48 = vadd.f32 %v550_v45, %v10375_v37  ;;  %v9170_v45 = vld [vmem:[%s13107_s5 + $0x270] ss:$8 sps:$4 sm:$0xff]  }
  0xf3   : > { %v552_v50 = vpop.f32.mrf.mxu0 }
  0xf4   : > { %738 = vst [vmem:[#allocation2 + $0x120] sm:$0xfe] %v705_v46  ;;  %740 = vst [vmem:[#allocation2 + $0xf8] sm:$0x1] %v705_v46  ;;  %v706_v51 = vrot.slane %v634_v47, 7  ;;  %v635_v52 = vmul.f32 %v601_v49, %v551_v48  ;;  %v553_v53 = vadd.f32 %v552_v50, %v10378_v38 }
  0xf5   : > { %v556_v54 = vpop.f32.mrf.mxu0 }
  0xf6   : > { %739 = vst [vmem:[#allocation2 + $0x38] sm:$0xfe] %v706_v51  ;;  %741 = vst [vmem:[#allocation2 + $0x100] sm:$0x1] %v706_v51  ;;  %v707_v56 = vrot.slane %v635_v52, 7  ;;  %v636_v57 = vmul.f32 %v601_v49, %v553_v53  ;;  %v557_v58 = vadd.f32 %v556_v54, %v10375_v37  ;;  %v621_v49 = vpop.permute.xlu1 %620 }
  0xf7   : > { %v558_v61 = vpop.f32.mrf.mxu0  ;;  %v9173_v52 = vld [vmem:[%s13107_s5 + $0x360] ss:$8 sps:$4 sm:$0xff]  }
  0xf8   : > { %742 = vst [vmem:[#allocation2 + $0x80] sm:$0xfe] %v707_v56  ;;  %744 = vst [vmem:[#allocation2 + $0x138] sm:$0x1] %v707_v56  ;;  %v708_v0 = vrot.slane %v636_v57, 7  ;;  %v637_v1 = vmul.f32 %v606_v55, %v557_v58  ;;  %v559_v2 = vadd.f32 %v558_v61, %v10378_v38 }
  0xf9   : > { %v560_v3 = vpop.f32.mrf.mxu0 }
  0xfa   : > { %743 = vst [vmem:[#allocation2 + $0x108] sm:$0xfe] %v708_v0  ;;  %745 = vst [vmem:[#allocation2 + $0xf0] sm:$0x1] %v708_v0  ;;  %v709_v7 = vrot.slane %v637_v1, 7  ;;  %v638_v8 = vmul.f32 %v606_v55, %v559_v2  ;;  %v561_v9 = vadd.f32 %v560_v3, %v10375_v37 }
  0xfb   : > { %v562_v10 = vpop.f32.mrf.mxu0  ;;  %v830_v11 = vld [vmem:[#allocation2 + $0x120] sm:$0xfe]  ;;  %v832_v19 = vld [vmem:[#allocation2 + $0xf8] sm:$0x1] }
  0xfc   : > { %746 = vst [vmem:[#allocation2 + $0x18] sm:$0xfe] %v709_v7  ;;  %748 = vst [vmem:[#allocation2 + $0x70] sm:$0x1] %v709_v7  ;;  %v710_v14 = vrot.slane %v638_v8, 7  ;;  %v563_v16 = vadd.f32 %v562_v10, %v10378_v38  ;;  %v639_v17 = vmul.f32 %v611_v4, %v561_v9  ;;  %v10388_v18 = vld [vmem:[#allocation2 + $0x120] sm:$0xff] }
  0xfd   : > { %v566_v20 = vpop.f32.mrf.mxu0  ;;  %v10390_v21 = vld [vmem:[#allocation2 + $0x38] sm:$0xff]  ;;  %v833_v23 = vld [vmem:[#allocation2 + $0x100] sm:$0x1]  ;;  %v897_v25 = vrot.slane %v830_v11, 1  ;;  %v786_v33 = vpack.c.bf16 %v10388_v18, %v9947_v15  ;;  %v898_v40 = vrot.slane %v832_v19, 1 }
  0xfe   : > { %v831_v22 = vld [vmem:[#allocation2 + $0x38] sm:$0xfe]  ;;  %747 = vst [vmem:[#allocation2 + $0xc8] sm:$0xfe] %v710_v14  ;;  %749 = vst [vmem:[#allocation2 + $0x20] sm:$0x1] %v710_v14  ;;  %v567_v26 = vadd.f32 %v566_v20, %v10375_v37  ;;  %v640_v27 = vmul.f32 %v611_v4, %v563_v16  ;;  %v787_v29 = vpack.c.bf16 %v10390_v21, %v9947_v15 }
  0xff   : > { %v711_v28 = vrot.slane %v639_v17, 7  ;;  %v568_v32 = vpop.f32.mrf.mxu0  ;;  %v900_v35 = vrot.slane %v831_v22, 1  ;;  %v901_v39 = vrot.slane %v833_v23, 1  ;;  %v893_v15 = vsel %vm890_vm0, %v891_v12, %v892_v13  ;;  %v10409_v46 = vld [vmem:[#allocation2 + $0x80] sm:$0xfe] }
 0x100   : > { %v641_v42 = vmul.f32 %v616_v31, %v567_v26  ;;  %v712_v43 = vrot.slane %v640_v27, 7  ;;  %v569_v44 = vadd.f32 %v568_v32, %v10378_v38  ;;  %1421 = vmatprep.mubr.bf16.mxu0 %v787_v29  ;;  %v10411_v47 = vld [vmem:[#allocation2 + $0x138] sm:$0x1]  ;;  %v899_v51 = vsel %vm890_vm0, %v897_v25, %v898_v40  ;;  %v9184_v25 = vld [vmem:[%s13107_s5 + $0x254] ss:$8 sps:$4 sm:$0xff]   ;;  %v626_v26 = vpop.permute.xlu0 %625 }
 0x101   : > { %750 = vst [vmem:[#allocation2 + $0x128] sm:$0xfe] %v711_v28  ;;  %752 = vst [vmem:[#allocation2 + $0x8] sm:$0x1] %v711_v28  ;;  %v570_v48 = vpop.f32.mrf.mxu0  ;;  %1422 = vmatmul.mubr.bf16.vlgmr.msra.gmra.mxu0 %v786_v33  ;;  %v902_v50 = vsel %vm890_vm0, %v900_v35, %v901_v39  ;;  %v10418_v53 = vld [vmem:[#allocation2 + $0x108] sm:$0xfe]  ;;  %v955_v62 = vpack.c.bf16 %v899_v51, %v893_v15 }
 0x102   : > { %v10420_v54 = vld [vmem:[#allocation2 + $0xf0] sm:$0x1]  ;;  %v713_v55 = vrot.slane %v641_v42, 7  ;;  %751 = vst [vmem:[#allocation2 + $0x110] sm:$0xfe] %v712_v43  ;;  %v642_v56 = vmul.f32 %v616_v31, %v569_v44  ;;  %v571_v57 = vadd.f32 %v570_v48, %v10375_v37  ;;  %2099 = vmatpush1.bf16.msra.mxu0 %v9167_v30  ;;  %v956_v58 = vpack.c.bf16 %v902_v50, %v896_v24  ;;  %v10436_v7 = vld [vmem:[#allocation2 + $0x108] sm:$0xff]  ;;  %v631_v44 = vpop.permute.xlu1 %630 }
 0x103   : > { %753 = vst [vmem:[#allocation2 + $0x98] sm:$0x1] %v712_v43  ;;  %v572_v61 = vpop.f32.mrf.mxu0  ;;  %2100 = vmatprep.subr.bf16.mxu0 %v9175_v41  ;;  %v906_v63 = vrot.slane %v10418_v53, 1  ;;  %v838_v0 = vld [vmem:[#allocation2 + $0x18] sm:$0xfe]  ;;  %v903_v1 = vrot.slane %v10409_v46, 1 }
 0x104   : > { %v904_v2 = vrot.slane %v10411_v47, 1  ;;  %754 = vst [vmem:[#allocation2 + $0xa8] sm:$0xfe] %v713_v55  ;;  %756 = vst [vmem:[#allocation2 + $0xe0] sm:$0x1] %v713_v55  ;;  %v714_v3 = vrot.slane %v642_v56, 7  ;;  %v643_v4 = vmul.f32 %v621_v49, %v571_v57  ;;  %v573_v5 = vadd.f32 %v572_v61, %v10378_v38  ;;  %1188 = vmatprep.mubr.bf16.mxu1 %v956_v58 }
 0x105   : > { %v10438_v8 = vld [vmem:[#allocation2 + $0x18] sm:$0xff]  ;;  %v907_v9 = vrot.slane %v10420_v54, 1  ;;  %v840_v10 = vld [vmem:[#allocation2 + $0x70] sm:$0x1]  ;;  %1189 = vmatmul.mubr.bf16.vlgmr.msra.gmra.mxu1 %v955_v62  ;;  %v576_v11 = vpop.f32.mrf.mxu0  ;;  %v10441_v12 = vld [vmem:[#allocation2 + $0xc8] sm:$0xff]  ;;  %v909_v16 = vrot.slane %v838_v0, 1 }
 0x106   : > { %v839_v13 = vld [vmem:[#allocation2 + $0xc8] sm:$0xfe]  ;;  %v841_v14 = vld [vmem:[#allocation2 + $0x20] sm:$0x1]  ;;  %755 = vst [vmem:[#allocation2 + $0x90] sm:$0xfe] %v714_v3  ;;  %v644_v19 = vmul.f32 %v621_v49, %v573_v5  ;;  %1793 = vmatpush1.bf16.msra.mxu1 %v9170_v45  ;;  %v577_v20 = vadd.f32 %v576_v11, %v10375_v37  ;;  %2101 = vmatpush1.bf16.msra.mxu0 %v9173_v52 }
 0x107   : > { %757 = vst [vmem:[#allocation2 + $0x88] sm:$0x1] %v714_v3  ;;  %v715_v17 = vrot.slane %v643_v4, 7  ;;  %v789_v22 = vpack.c.bf16 %v10441_v12, %v10436_v7  ;;  %v9179_v23 = vld [vmem:[%s13107_s5 + $0x350] ss:$8 sps:$4 sm:$0xff]   ;;  %v10449_v24 = vld [vmem:[#allocation2 + $0x80] sm:$0xff]  ;;  %v578_v27 = vpop.f32.mrf.mxu0  ;;  %1794 = vmatprep.subr.bf16.mxu1 %v9178_v59  ;;  %2102 = vmatprep.subr.bf16.mxu0 %v9181_v60  ;;  %v908_v45 = vsel %vm890_vm0, %v906_v63, %v907_v9 }
 0x108   : > { %v788_v28 = vpack.c.bf16 %v10438_v8, %v10449_v24  ;;  %v912_v29 = vrot.slane %v839_v13, 1  ;;  %v913_v30 = vrot.slane %v841_v14, 1  ;;  %v910_v31 = vrot.slane %v840_v10, 1  ;;  %v9187_v32 = vld [vmem:[%s13107_s5 + $0x344] ss:$8 sps:$4 sm:$0xff]  }
 0x109   : > { %758 = vst [vmem:[#allocation2 + $0xc0] sm:$0xfe] %v715_v17  ;;  %760 = vst [vmem:[#allocation2 + $0xd8] sm:$0x1] %v715_v17  ;;  %v716_v33 = vrot.slane %v644_v19, 7  ;;  %v645_v35 = vmul.f32 %v626_v26, %v577_v20  ;;  %v579_v39 = vadd.f32 %v578_v27, %v10378_v38  ;;  %1431 = vmatprep.mubr.bf16.mxu0 %v789_v22  ;;  %v580_v43 = vpop.f32.mrf.mxu0  ;;  %v10479_v59 = vld [vmem:[#allocation2 + $0x110] sm:$0xff] }
 0x10a   : > { %v9182_v40 = vld [vmem:[%s13107_s5 + $0x250] ss:$8 sps:$4 sm:$0xff]   ;;  %v9185_v41 = vld [vmem:[%s13107_s5 + $0x340] ss:$8 sps:$4 sm:$0xff]   ;;  %1432 = vmatmul.mubr.bf16.gmra.mxu0 %v788_v28  ;;  %v914_v15 = vsel %vm890_vm0, %v912_v29, %v913_v30  ;;  %v905_v46 = vsel %vm890_vm0, %v903_v1, %v904_v2  ;;  %v911_v47 = vsel %vm890_vm0, %v909_v16, %v910_v31  ;;  %1795 = vmatpush1.bf16.msra.mxu1 %v9176_v6  ;;  %v9190_v55 = vld [vmem:[%s13107_s5 + $0x244] ss:$8 sps:$4 sm:$0xff]  }
 0x10b   : > { %v10466_v42 = vld [vmem:[#allocation2 + $0x128] sm:$0xfe]  ;;  %v843_v48 = vld [vmem:[#allocation2 + $0x110] sm:$0xfe]  ;;  %v845_v49 = vld [vmem:[#allocation2 + $0x98] sm:$0x1]  ;;  %v646_v52 = vmul.f32 %v626_v26, %v579_v39  ;;  %v581_v53 = vadd.f32 %v580_v43, %v10375_v37  ;;  %2103 = vmatpush1.bf16.msra.mxu0 %v9179_v23  ;;  %v958_v54 = vpack.c.bf16 %v914_v15, %v908_v45  ;;  %v582_v57 = vpop.f32.mrf.mxu0  ;;  %1796 = vmatprep.subr.bf16.mxu1 %v9184_v25 }
 0x10c   : > { %v844_v50 = vld [vmem:[#allocation2 + $0x8] sm:$0x1]  ;;  %759 = vst [vmem:[#allocation2 + $0x118] sm:$0xfe] %v716_v33  ;;  %761 = vst [vmem:[#allocation2 + $0xa0] sm:$0x1] %v716_v33  ;;  %v957_v58 = vpack.c.bf16 %v911_v47, %v905_v46  ;;  %2104 = vmatprep.subr.bf16.mxu0 %v9187_v32  ;;  %v583_v2 = vadd.f32 %v582_v57, %v10378_v38 }
 0x10d   : > { %v717_v51 = vrot.slane %v645_v35, 7  ;;  %v9193_v56 = vld [vmem:[%s13107_s5 + $0x334] ss:$8 sps:$4 sm:$0xff]   ;;  %v918_v60 = vrot.slane %v843_v48, 1  ;;  %v919_v61 = vrot.slane %v845_v49, 1  ;;  %v915_v37 = vrot.slane %v10466_v42, 1  ;;  %1198 = vmatprep.mubr.bf16.mxu1 %v958_v54 }
 0x10e   : > { %v846_v62 = vld [vmem:[#allocation2 + $0xa8] sm:$0xfe]  ;;  %v10482_v63 = vld [vmem:[#allocation2 + $0xd0] sm:$0xfc]  ;;  %v718_v0 = vrot.slane %v646_v52, 7  ;;  %v647_v1 = vmul.f32 %v631_v44, %v581_v53  ;;  %v916_v6 = vrot.slane %v844_v50, 1  ;;  %1199 = vmatmul.mubr.bf16.gmra.mxu1 %v957_v58  ;;  %v648_v16 = vmul.f32 %v631_v44, %v583_v2 }
 0x10f   : > { %762 = vst [vmem:[#allocation2 + $0x68] sm:$0xfe] %v717_v51  ;;  %764 = vst [vmem:[#allocation2 + $0x50] sm:$0x1] %v717_v51  ;;  %v10485_v3 = vld [vmem:[#allocation2 + $0x128] sm:$0xff]  ;;  %v10489_v9 = vld [vmem:[#allocation2 + $0x90] sm:$0xff]  ;;  %1797 = vmatpush1.bf16.msra.mxu1 %v9182_v40  ;;  %2105 = vmatpush1.bf16.msra.mxu0 %v9185_v41  ;;  %v920_v25 = vsel %vm890_vm0, %v918_v60, %v919_v61 }
 0x110   : > { %v10487_v4 = vld [vmem:[#allocation2 + $0xa8] sm:$0xff]  ;;  %v848_v5 = vld [vmem:[#allocation2 + $0xe0] sm:$0x1]  ;;  %v847_v10 = vld [vmem:[#allocation2 + $0x90] sm:$0xfe]  ;;  %v921_v13 = vrot.slane %v846_v62, 1  ;;  %v791_v17 = vpack.c.bf16 %v10489_v9, %v10479_v59  ;;  %1798 = vmatprep.subr.bf16.mxu1 %v9190_v55  ;;  %2106 = vmatprep.subr.bf16.mxu0 %v9193_v56  ;;  %v917_v32 = vsel %vm890_vm0, %v915_v37, %v916_v6 }
 0x111   : > { %v849_v11 = vld [vmem:[#allocation2 + $0x88] sm:$0x1]  ;;  %763 = vst [vmem:[#allocation2 + $0x130] sm:$0xfe] %v718_v0  ;;  %765 = vst [vmem:[#allocation2 + $0xe8] sm:$0x1] %v718_v0  ;;  %v790_v23 = vpack.c.bf16 %v10487_v4, %v10485_v3 }
 0x112   : > { %v719_v14 = vrot.slane %v647_v1, 7  ;;  %v9188_v38 = vld [vmem:[%s13107_s5 + $0x240] ss:$8 sps:$4 sm:$0xff]   ;;  %v9191_v19 = vld [vmem:[%s13107_s5 + $0x330] ss:$8 sps:$4 sm:$0xff]   ;;  %v924_v20 = vrot.slane %v847_v10, 1  ;;  %1441 = vmatprep.mubr.bf16.mxu0 %v791_v17 }
 0x113   : > { %v10499_v22 = vld [vmem:[#allocation2 + $0x48] sm:$0x3]  ;;  %v925_v26 = vrot.slane %v849_v11, 1  ;;  %v9196_v27 = vld [vmem:[%s13107_s5 + $0x234] ss:$8 sps:$4 sm:$0xff]   ;;  %v922_v28 = vrot.slane %v848_v5, 1  ;;  %1442 = vmatmul.mubr.bf16.gmra.mxu0 %v790_v23  ;;  %1799 = vmatpush1.bf16.msra.mxu1 %v9188_v38  ;;  %v1898_v23 = vpack.c.bf16 %v10436_v7, %v10390_v21 }
 0x114   : > { %v9199_v29 = vld [vmem:[%s13107_s5 + $0x324] ss:$8 sps:$4 sm:$0xff]   ;;  %766 = vst [vmem:[#allocation2 + $0x58] sm:$0xfe] %v719_v14  ;;  %768 = vst [vmem:[#allocation2 + $0x30] sm:$0x1] %v719_v14  ;;  %2107 = vmatpush1.bf16.msra.mxu0 %v9191_v19  ;;  %1800 = vmatprep.subr.bf16.mxu1 %v9196_v27 }
 0x115   : > { %v720_v30 = vrot.slane %v648_v16, 7  ;;  %v9194_v31 = vld [vmem:[%s13107_s5 + $0x230] ss:$8 sps:$4 sm:$0xff]   ;;  %v9197_v33 = vld [vmem:[%s13107_s5 + $0x320] ss:$8 sps:$4 sm:$0xff]   ;;  %v1530_v40 = vrot.slane %v10482_v63, 2  ;;  %v926_v41 = vsel %vm890_vm0, %v924_v20, %v925_v26  ;;  %v923_v42 = vsel %vm890_vm0, %v921_v13, %v922_v28  ;;  %2108 = vmatprep.subr.bf16.mxu0 %v9199_v29 }
 0x116   : > { %v850_v35 = vld [vmem:[#allocation2 + $0xc0] sm:$0xfe]  ;;  %v1467_v39 = vld [vmem:[#allocation2 + $0x38] sm:$0xfc]  ;;  %v853_v45 = vld [vmem:[#allocation2 + $0xa0] sm:$0x1]  ;;  %v960_v46 = vpack.c.bf16 %v926_v41, %v920_v25  ;;  %v959_v51 = vpack.c.bf16 %v923_v42, %v917_v32 }
 0x117   : > { %v9202_v43 = vld [vmem:[%s13107_s5 + $0x224] ss:$8 sps:$4 sm:$0xff]   ;;  %v851_v44 = vld [vmem:[#allocation2 + $0x118] sm:$0xfe]  ;;  %v852_v15 = vld [vmem:[#allocation2 + $0xd8] sm:$0x1]  ;;  %1801 = vmatpush1.bf16.msra.mxu1 %v9194_v31 }
 0x118   : > { %767 = vst [vmem:[#allocation2 + $0x78] sm:$0xfe] %v720_v30  ;;  %769 = vst [vmem:[#allocation2 + $0x40] sm:$0x1] %v720_v30  ;;  %v9205_v47 = vld [vmem:[%s13107_s5 + $0x314] ss:$8 sps:$4 sm:$0xff]   ;;  %1208 = vmatprep.mubr.bf16.mxu1 %v960_v46  ;;  %2109 = vmatpush1.bf16.msra.mxu0 %v9197_v33 }
 0x119   : > { %v930_v48 = vrot.slane %v851_v44, 1  ;;  %v931_v49 = vrot.slane %v853_v45, 1  ;;  %v1469_v50 = vld [vmem:[#allocation2 + $0x100] sm:$0x3]  ;;  %v854_v52 = vld [vmem:[#allocation2 + $0x68] sm:$0xfe]  ;;  %1209 = vmatmul.mubr.bf16.gmra.mxu1 %v959_v51  ;;  %1802 = vmatprep.subr.bf16.mxu1 %v9202_v43 }
 0x11a   : > { %v856_v53 = vld [vmem:[#allocation2 + $0x50] sm:$0x1]  ;;  %v1531_v54 = vrot.slane %v10499_v22, 2  ;;  %v1536_v55 = vrot.slane %v1467_v39, 2  ;;  %v9200_v56 = vld [vmem:[%s13107_s5 + $0x220] ss:$8 sps:$4 sm:$0xff]   ;;  %2110 = vmatprep.subr.bf16.mxu0 %v9205_v47 }
 0x11b   : > { %v10530_v57 = vld [vmem:[#allocation2 + $0x118] sm:$0xff]  ;;  %v10532_v58 = vld [vmem:[#allocation2 + $0x68] sm:$0xff]  ;;  %v927_v60 = vrot.slane %v850_v35, 1  ;;  %v928_v61 = vrot.slane %v852_v15, 1  ;;  %v933_v62 = vrot.slane %v854_v52, 1  ;;  %v934_v37 = vrot.slane %v856_v53, 1  ;;  %1803 = vmatpush1.bf16.msra.mxu1 %v9200_v56 }
 0x11c   : > { %v10534_v63 = vld [vmem:[#allocation2 + $0x130] sm:$0xff]  ;;  %v857_v1 = vld [vmem:[#allocation2 + $0xe8] sm:$0x1]  ;;  %v1537_v2 = vrot.slane %v1469_v50, 2  ;;  %v10541_v10 = vld [vmem:[#allocation2 + $0xc0] sm:$0xff]  ;;  %v932_v11 = vsel %vm890_vm0, %v930_v48, %v931_v49  ;;  %v1532_v26 = vsel %vm1526_vm1, %v1530_v40, %v1531_v54 }
 0x11d   : > { %v855_v0 = vld [vmem:[#allocation2 + $0x130] sm:$0xfe]  ;;  %v793_v5 = vpack.c.bf16 %v10534_v63, %v10530_v57  ;;  %v937_v14 = vrot.slane %v857_v1, 1  ;;  %v792_v16 = vpack.c.bf16 %v10532_v58, %v10541_v10  ;;  %v929_v19 = vsel %vm890_vm0, %v927_v60, %v928_v61  ;;  %v9211_v22 = vld [vmem:[%s13107_s5 + $0x304] ss:$8 sps:$4 sm:$0xff]  }
 0x11e   : > { %v9203_v6 = vld [vmem:[%s13107_s5 + $0x310] ss:$8 sps:$4 sm:$0xff]   ;;  %v936_v13 = vrot.slane %v855_v0, 1  ;;  %v9208_v17 = vld [vmem:[%s13107_s5 + $0x214] ss:$8 sps:$4 sm:$0xff]   ;;  %v935_v20 = vsel %vm890_vm0, %v933_v62, %v934_v37  ;;  %v1538_v27 = vsel %vm1526_vm1, %v1536_v55, %v1537_v2 }
 0x11f   : > { %1451 = vmatprep.mubr.bf16.mxu0 %v793_v5  ;;  %2111 = vmatpush1.bf16.msra.mxu0 %v9203_v6  ;;  %v9206_v28 = vld [vmem:[%s13107_s5 + $0x210] ss:$8 sps:$4 sm:$0xff]   ;;  %v961_v29 = vpack.c.bf16 %v935_v20, %v929_v19  ;;  %v9209_v30 = vld [vmem:[%s13107_s5 + $0x300] ss:$8 sps:$4 sm:$0xff]   ;;  %v9214_v21 = vld [vmem:[%s13107_s5 + $0x204] ss:$8 sps:$4 sm:$0xff]   ;;  %v1592_v7 = vpack.c.bf16 %v1538_v27, %v1532_v26 }
 0x120   : > { %v938_v38 = vsel %vm890_vm0, %v936_v13, %v937_v14  ;;  %1452 = vmatmul.mubr.bf16.gmra.mxu0 %v792_v16  ;;  %1804 = vmatprep.subr.bf16.mxu1 %v9208_v17  ;;  %v9217_v31 = vld [vmem:[%s13107_s5 + $0x3f4] ss:$8 sps:$4 sm:$0xff]   ;;  %v9212_v32 = vld [vmem:[%s13107_s5 + $0x200] ss:$8 sps:$4 sm:$0xff]   ;;  %v9215_v33 = vld [vmem:[%s13107_s5 + $0x3f0] ss:$8 sps:$4 sm:$0xff]  }
 0x121   : > { %v962_v25 = vpack.c.bf16 %v938_v38, %v932_v11  ;;  %2130 = vmatprep.mubr.bf16.mxu0 %v1898_v23  ;;  %2112 = vmatprep.subr.bf16.mxu0 %v9211_v22  ;;  %v9220_v35 = vld [vmem:[%s13107_s5 + $0x2f4] ss:$8 sps:$4 sm:$0xff]   ;;  %v9223_v39 = vld [vmem:[%s13107_s5 + $0x3e4] ss:$8 sps:$4 sm:$0xff]   ;;  %v9218_v40 = vld [vmem:[%s13107_s5 + $0x2f0] ss:$8 sps:$4 sm:$0xff]  }
 0x122   : > { %1805 = vmatpush1.bf16.msra.mxu1 %v9206_v28  ;;  %v9221_v41 = vld [vmem:[%s13107_s5 + $0x3e0] ss:$8 sps:$4 sm:$0xff]   ;;  %v9226_v42 = vld [vmem:[%s13107_s5 + $0x2e4] ss:$8 sps:$4 sm:$0xff]   ;;  %v9229_v43 = vld [vmem:[%s13107_s5 + $0x3d4] ss:$8 sps:$4 sm:$0xff]  }
 0x123   : > { %1218 = vmatprep.mubr.bf16.mxu1 %v962_v25  ;;  %2113 = vmatpush1.bf16.msra.mxu0 %v9209_v30  ;;  %v9224_v44 = vld [vmem:[%s13107_s5 + $0x2e0] ss:$8 sps:$4 sm:$0xff]   ;;  %v9227_v45 = vld [vmem:[%s13107_s5 + $0x3d0] ss:$8 sps:$4 sm:$0xff]   ;;  %v9232_v15 = vld [vmem:[%s13107_s5 + $0x2d4] ss:$8 sps:$4 sm:$0xff]  }
 0x124   : > { %1219 = vmatmul.mubr.bf16.gmra.mxu1 %v961_v29  ;;  %1806 = vmatprep.subr.bf16.mxu1 %v9214_v21  ;;  %v9235_v46 = vld [vmem:[%s13107_s5 + $0x3c4] ss:$8 sps:$4 sm:$0xff]   ;;  %v9230_v47 = vld [vmem:[%s13107_s5 + $0x2d0] ss:$8 sps:$4 sm:$0xff]   ;;  %v9233_v48 = vld [vmem:[%s13107_s5 + $0x3c0] ss:$8 sps:$4 sm:$0xff]  }
 0x125   : > { %1824 = vmatprep.mubr.bf16.mxu1 %v1592_v7  ;;  %2114 = vmatprep.subr.bf16.mxu0 %v9217_v31  ;;  %v9238_v49 = vld [vmem:[%s13107_s5 + $0x2c4] ss:$8 sps:$4 sm:$0xff]   ;;  %v9241_v50 = vld [vmem:[%s13107_s5 + $0x3b4] ss:$8 sps:$4 sm:$0xff]   ;;  %v9236_v51 = vld [vmem:[%s13107_s5 + $0x2c0] ss:$8 sps:$4 sm:$0xff]  }
 0x126   : > { %1807 = vmatpush1.bf16.msra.mxu1 %v9212_v32  ;;  %v9239_v52 = vld [vmem:[%s13107_s5 + $0x3b0] ss:$8 sps:$4 sm:$0xff]   ;;  %v9244_v53 = vld [vmem:[%s13107_s5 + $0x2b4] ss:$8 sps:$4 sm:$0xff]   ;;  %v9247_v54 = vld [vmem:[%s13107_s5 + $0x3a4] ss:$8 sps:$4 sm:$0xff]   ;;  %v1897_v32 = vpack.c.bf16 %v10449_v24, %v10388_v18  ;;  %v1900_v18 = vpack.c.bf16 %v10479_v59, %v10441_v12 }
 0x127   : > { %2115 = vmatpush2.bf16.msra.mxu0 %v9215_v33  ;;  %1808 = vmatprep.subr.bf16.mxu1 %v9220_v35  ;;  %v9242_v55 = vld [vmem:[%s13107_s5 + $0x2b0] ss:$8 sps:$4 sm:$0xff]   ;;  %v9245_v56 = vld [vmem:[%s13107_s5 + $0x3a0] ss:$8 sps:$4 sm:$0xff]   ;;  %v9250_v60 = vld [vmem:[%s13107_s5 + $0x2a4] ss:$8 sps:$4 sm:$0xff]  }
 0x128   : > { %2116 = vmatprep.subr.bf16.mxu0 %v9223_v39  ;;  %v9253_v61 = vld [vmem:[%s13107_s5 + $0x394] ss:$8 sps:$4 sm:$0xff]   ;;  %v9248_v62 = vld [vmem:[%s13107_s5 + $0x2a0] ss:$8 sps:$4 sm:$0xff]   ;;  %v1464_v0 = vld [vmem:[#allocation2 + $0x10] sm:$0x3] }
 0x129   : > { %v1462_v37 = vld [vmem:[#allocation2 + $0xb0] sm:$0xfc]  ;;  %v9259_v6 = vld [vmem:[%s13107_s5 + $0x384] ss:$8 sps:$4 sm:$0xff]   ;;  %v1468_v13 = vld [vmem:[#allocation2 + $0xf8] sm:$0x3] }
 0x12a   : > { %1809 = vmatpush2.bf16.msra.mxu1 %v9218_v40  ;;  %v9251_v1 = vld [vmem:[%s13107_s5 + $0x390] ss:$8 sps:$4 sm:$0xff]   ;;  %v9256_v2 = vld [vmem:[%s13107_s5 + $0x294] ss:$8 sps:$4 sm:$0xff]   ;;  %v1466_v11 = vld [vmem:[#allocation2 + $0x120] sm:$0xfc] }
 0x12b   : > { %2117 = vmatpush2.bf16.msra.mxu0 %v9221_v41  ;;  %1810 = vmatprep.subr.bf16.mxu1 %v9226_v42  ;;  %v9254_v5 = vld [vmem:[%s13107_s5 + $0x290] ss:$8 sps:$4 sm:$0xff]   ;;  %v1527_v14 = vrot.slane %v1462_v37, 2  ;;  %v1528_v16 = vrot.slane %v1464_v0, 2  ;;  %v1475_v38 = vld [vmem:[#allocation2 + $0xc8] sm:$0xfc] }
 0x12c   : > { %2118 = vmatprep.subr.bf16.mxu0 %v9229_v43  ;;  %v1477_v17 = vld [vmem:[#allocation2 + $0x20] sm:$0x3]  ;;  %v9262_v20 = vld [vmem:[%s13107_s5 + $0x284] ss:$8 sps:$4 sm:$0xff]   ;;  %v9265_v22 = vld [vmem:[%s13107_s5 + $0x574] ss:$8 sps:$4 sm:$0xff]  }
 0x12d   : > { %v9257_v19 = vld [vmem:[%s13107_s5 + $0x380] ss:$8 sps:$4 sm:$0xff]   ;;  %v1533_v23 = vrot.slane %v1466_v11, 2  ;;  %v1534_v25 = vrot.slane %v1468_v13, 2  ;;  %v1473_v27 = vld [vmem:[#allocation2 + $0xf0] sm:$0x3]  ;;  %v1529_v33 = vsel %vm1526_vm1, %v1527_v14, %v1528_v16  ;;  %v1899_v11 = vpack.c.bf16 %v10485_v3, %v10438_v8 }
 0x12e   : > { %1811 = vmatpush2.bf16.msra.mxu1 %v9224_v44  ;;  %v1471_v26 = vld [vmem:[#allocation2 + $0x108] sm:$0xfc]  ;;  %v1548_v28 = vrot.slane %v1475_v38, 2  ;;  %v1549_v29 = vrot.slane %v1477_v17, 2  ;;  %v9263_v21 = vld [vmem:[%s13107_s5 + $0x570] ss:$8 sps:$4 sm:$0xff]   ;;  %v1902_v17 = vpack.c.bf16 %v10530_v57, %v10489_v9 }
 0x12f   : > { %2119 = vmatpush2.bf16.msra.mxu0 %v9227_v45  ;;  %1812 = vmatprep.subr.bf16.mxu1 %v9232_v15  ;;  %v9260_v30 = vld [vmem:[%s13107_s5 + $0x280] ss:$8 sps:$4 sm:$0xff]   ;;  %v1542_v7 = vrot.slane %v1471_v26, 2  ;;  %v1543_v31 = vrot.slane %v1473_v27, 2  ;;  %v1535_v35 = vsel %vm1526_vm1, %v1533_v23, %v1534_v25  ;;  %v9266_v39 = vld [vmem:[%s13107_s5 + $0x470] ss:$8 sps:$4 sm:$0xff]  }
 0x130   : > { %2120 = vmatprep.subr.bf16.mxu0 %v9235_v46  ;;  %v9268_v40 = vld [vmem:[%s13107_s5 + $0x474] ss:$8 sps:$4 sm:$0xff]   ;;  %v9271_v41 = vld [vmem:[%s13107_s5 + $0x564] ss:$8 sps:$4 sm:$0xff]   ;;  %v1550_v24 = vsel %vm1526_vm1, %v1548_v28, %v1549_v29  ;;  %v9269_v42 = vld [vmem:[%s13107_s5 + $0x560] ss:$8 sps:$4 sm:$0xff]  }
 0x131   : > { %v1474_v43 = vld [vmem:[#allocation2 + $0x18] sm:$0xfc]  ;;  %v1476_v44 = vld [vmem:[#allocation2 + $0x70] sm:$0x3]  ;;  %v1479_v45 = vld [vmem:[#allocation2 + $0x110] sm:$0xfc] }
 0x132   : > { %1813 = vmatpush2.bf16.msra.mxu1 %v9230_v47  ;;  %v1481_v15 = vld [vmem:[#allocation2 + $0x98] sm:$0x3]  ;;  %v1483_v46 = vld [vmem:[#allocation2 + $0x90] sm:$0xfc]  ;;  %v1485_v47 = vld [vmem:[#allocation2 + $0x88] sm:$0x3] }
 0x133   : > { %2121 = vmatpush2.bf16.msra.mxu0 %v9233_v48  ;;  %1814 = vmatprep.subr.bf16.mxu1 %v9238_v49  ;;  %v1591_v48 = vpack.c.bf16 %v1535_v35, %v1529_v33  ;;  %v1544_v49 = vsel %vm1526_vm1, %v1542_v7, %v1543_v31  ;;  %v9274_v12 = vld [vmem:[%s13107_s5 + $0x464] ss:$8 sps:$4 sm:$0xff]   ;;  %v9275_v37 = vld [vmem:[%s13107_s5 + $0x550] ss:$8 sps:$4 sm:$0xff]   ;;  %v1480_v16 = vld [vmem:[#allocation2 + $0x8] sm:$0x3] }
 0x134   : > { %2122 = vmatprep.subr.bf16.mxu0 %v9241_v50  ;;  %v1470_v59 = vld [vmem:[#allocation2 + $0x80] sm:$0xfc]  ;;  %v1472_v50 = vld [vmem:[#allocation2 + $0x138] sm:$0x3]  ;;  %v1482_v38 = vld [vmem:[#allocation2 + $0xa8] sm:$0xfc] }
 0x135   : > { %v1539_v0 = vrot.slane %v1470_v59, 2  ;;  %v9278_v14 = vld [vmem:[%s13107_s5 + $0x450] ss:$8 sps:$4 sm:$0xff]   ;;  %v1489_v3 = vld [vmem:[#allocation2 + $0xa0] sm:$0x3]  ;;  %v1552_v7 = vrot.slane %v1480_v16, 2 }
 0x136   : > { %1815 = vmatpush2.bf16.msra.mxu1 %v9236_v51  ;;  %v1594_v51 = vpack.c.bf16 %v1550_v24, %v1544_v49  ;;  %v1487_v23 = vld [vmem:[#allocation2 + $0x118] sm:$0xfc]  ;;  %v1491_v25 = vld [vmem:[#allocation2 + $0x130] sm:$0xfc]  ;;  %v1493_v26 = vld [vmem:[#allocation2 + $0xe8] sm:$0x3] }
 0x137   : > { %2123 = vmatpush2.bf16.msra.mxu0 %v9239_v52  ;;  %1816 = vmatprep.subr.bf16.mxu1 %v9244_v53  ;;  %v9277_v52 = vld [vmem:[%s13107_s5 + $0x554] ss:$8 sps:$4 sm:$0xff]   ;;  %v1545_v53 = vrot.slane %v1474_v43, 2  ;;  %v9281_v9 = vld [vmem:[%s13107_s5 + $0x540] ss:$8 sps:$4 sm:$0xff]   ;;  %v1557_v31 = vrot.slane %v1482_v38, 2 }
 0x138   : > { %2124 = vmatprep.subr.bf16.mxu0 %v9247_v54  ;;  %v1546_v54 = vrot.slane %v1476_v44, 2  ;;  %v9286_v57 = vld [vmem:[%s13107_s5 + $0x444] ss:$8 sps:$4 sm:$0xff]   ;;  %v9287_v33 = vld [vmem:[%s13107_s5 + $0x530] ss:$8 sps:$4 sm:$0xff]   ;;  %v1566_v35 = vrot.slane %v1487_v23, 2 }
 0x139   : > { %v9292_v24 = vld [vmem:[%s13107_s5 + $0x434] ss:$8 sps:$4 sm:$0xff]   ;;  %v2610_v43 = vld [vmem:[#allocation2 + $0x108] sm:$0xfc]  ;;  %v2612_v44 = vld [vmem:[#allocation2 + $0xf0] sm:$0x3] }
 0x13a   : > { %1817 = vmatpush2.bf16.msra.mxu1 %v9242_v55  ;;  %v1554_v55 = vrot.slane %v1479_v45, 2  ;;  %v1547_v13 = vsel %vm1526_vm1, %v1545_v53, %v1546_v54  ;;  %v1901_v45 = vpack.c.bf16 %v10541_v10, %v10487_v4  ;;  %v2608_v49 = vld [vmem:[#allocation2 + $0x100] sm:$0x3]  ;;  %v9298_v10 = vld [vmem:[%s13107_s5 + $0x424] ss:$8 sps:$4 sm:$0xff]   ;;  %v1895_v16 = vld [vmem:[#allocation2 + $0x58] sm:$0xff] }
 0x13b   : > { %2125 = vmatpush2.bf16.msra.mxu0 %v9245_v56  ;;  %1818 = vmatprep.subr.bf16.mxu1 %v9250_v60  ;;  %v1555_v56 = vrot.slane %v1481_v15, 2  ;;  %v1560_v60 = vrot.slane %v1483_v46, 2  ;;  %v9293_v4 = vld [vmem:[%s13107_s5 + $0x520] ss:$8 sps:$4 sm:$0xff]   ;;  %v1492_v54 = vld [vmem:[#allocation2 + $0x50] sm:$0x3] }
 0x13c   : > { %2126 = vmatprep.subr.bf16.mxu0 %v9253_v61  ;;  %v1561_v61 = vrot.slane %v1485_v47, 2  ;;  %v9290_v47 = vld [vmem:[%s13107_s5 + $0x430] ss:$8 sps:$4 sm:$0xff]   ;;  %v1490_v53 = vld [vmem:[#allocation2 + $0x68] sm:$0xfc] }
 0x13e   : > { %1819 = vmatpush2.bf16.msra.mxu1 %v9248_v62  ;;  %v9272_v62 = vld [vmem:[%s13107_s5 + $0x460] ss:$8 sps:$4 sm:$0xff]  }
 0x13f   : > { %2127 = vmatpush2.bf16.msra.mxu0 %v9251_v1  ;;  %1820 = vmatprep.subr.bf16.mxu1 %v9256_v2  ;;  %v1540_v1 = vrot.slane %v1472_v50, 2  ;;  %v9280_v2 = vld [vmem:[%s13107_s5 + $0x454] ss:$8 sps:$4 sm:$0xff]  }
 0x140   : > { %2128 = vmatprep.subr.bf16.mxu0 %v9259_v6  ;;  %v1478_v6 = vld [vmem:[#allocation2 + $0x128] sm:$0xfc] }
 0x141   : > { %v1541_v8 = vsel %vm1526_vm1, %v1539_v0, %v1540_v1  ;;  %v1551_v28 = vrot.slane %v1478_v6, 2  ;;  %v2673_v0 = vrot.slane %v2608_v49, 2  ;;  %v9334_v49 = vld [vmem:[%s13107_s5 + $0x4c4] ss:$8 sps:$4 sm:$0xff]  }
 0x142   : > { %1821 = vmatpush2.bf16.msra.mxu1 %v9254_v5  ;;  %v9283_v5 = vld [vmem:[%s13107_s5 + $0x544] ss:$8 sps:$4 sm:$0xff]   ;;  %v1593_v27 = vpack.c.bf16 %v1547_v13, %v1541_v8  ;;  %v1570_v13 = vrot.slane %v1492_v54, 2 }
 0x143   : > { %2129 = vmatpush2.bf16.msra.mxu0 %v9257_v19  ;;  %1822 = vmatprep.subr.bf16.mxu1 %v9262_v20  ;;  %v1556_v19 = vsel %vm1526_vm1, %v1554_v55, %v1555_v56  ;;  %v1562_v20 = vsel %vm1526_vm1, %v1560_v60, %v1561_v61  ;;  %v1553_v15 = vsel %vm1526_vm1, %v1551_v28, %v1552_v7  ;;  %v2678_v55 = vrot.slane %v2610_v43, 2  ;;  %v2192_v60 = vld [vmem:[#allocation2 + $0x108] sm:$0xfe]  ;;  %v2194_v61 = vld [vmem:[#allocation2 + $0xf0] sm:$0x1] }
 0x144   : > { %2934 = vmatprep.subr.bf16.mxu0 %v9265_v22  ;;  %v1484_v22 = vld [vmem:[#allocation2 + $0xe0] sm:$0x3]  ;;  %v1596_v29 = vpack.c.bf16 %v1562_v20, %v1556_v19  ;;  %v2679_v56 = vrot.slane %v2612_v44, 2  ;;  %v2260_v38 = vrot.slane %v2192_v60, 1  ;;  %v9325_v43 = vld [vmem:[%s13107_s5 + $0x5d4] ss:$8 sps:$4 sm:$0xff]  }
 0x145   : > { %v9296_v19 = vld [vmem:[%s13107_s5 + $0x420] ss:$8 sps:$4 sm:$0xff]  }
 0x146   : > { %1823 = vmatpush2.bf16.msra.mxu1 %v9260_v30  ;;  %2131 = vmatmul.mubr.bf16.vlgmr.msra.gmra.mxu0 %v1897_v32  ;;  %v9284_v30 = vld [vmem:[%s13107_s5 + $0x440] ss:$8 sps:$4 sm:$0xff]   ;;  %v1558_v32 = vrot.slane %v1484_v22, 2  ;;  %v2680_v20 = vsel %vm1526_vm1, %v2678_v55, %v2679_v56  ;;  %v9299_v22 = vld [vmem:[%s13107_s5 + $0x510] ss:$8 sps:$4 sm:$0xff]  }
 0x147   : > { %2140 = vmatprep.mubr.bf16.mxu0 %v1900_v18  ;;  %2935 = vmatpush1.bf16.msra.mxu0 %v9263_v21  ;;  %v9289_v21 = vld [vmem:[%s13107_s5 + $0x534] ss:$8 sps:$4 sm:$0xff]   ;;  %v9305_v7 = vld [vmem:[%s13107_s5 + $0x500] ss:$8 sps:$4 sm:$0xff]   ;;  %v2620_v56 = vld [vmem:[#allocation2 + $0x98] sm:$0x3] }
 0x148   : > { %2516 = vmatprep.subr.bf16.mxu1 %v9268_v40  ;;  %2936 = vmatprep.subr.bf16.mxu0 %v9271_v41  ;;  %v1572_v40 = vrot.slane %v1491_v25, 2  ;;  %v1573_v41 = vrot.slane %v1493_v26, 2  ;;  %v1896_v18 = vld [vmem:[#allocation2 + $0x78] sm:$0xff]  ;;  %v1559_v46 = vsel %vm1526_vm1, %v1557_v31, %v1558_v32  ;;  %v9310_v31 = vld [vmem:[%s13107_s5 + $0x404] ss:$8 sps:$4 sm:$0xff]  }
 0x149   : > { %1825 = vmatmul.mubr.bf16.vlgmr.msra.gmra.mxu1 %v1591_v48  ;;  %v2606_v48 = vld [vmem:[#allocation2 + $0x38] sm:$0xfc]  ;;  %v1904_v59 = vpack.c.bf16 %v1896_v18, %v10534_v63  ;;  %v9320_v44 = vld [vmem:[%s13107_s5 + $0x4e0] ss:$8 sps:$4 sm:$0xff]   ;;  %v2618_v55 = vld [vmem:[#allocation2 + $0x110] sm:$0xfc] }
 0x14a   : > { %1834 = vmatprep.mubr.bf16.mxu1 %v1594_v51  ;;  %2517 = vmatpush1.bf16.msra.mxu1 %v9266_v39  ;;  %v1567_v39 = vrot.slane %v1489_v3, 2  ;;  %v1574_v51 = vsel %vm1526_vm1, %v1572_v40, %v1573_v41  ;;  %v9301_v63 = vld [vmem:[%s13107_s5 + $0x514] ss:$8 sps:$4 sm:$0xff]   ;;  %v1903_v3 = vpack.c.bf16 %v1895_v16, %v10532_v58  ;;  %v9302_v58 = vld [vmem:[%s13107_s5 + $0x410] ss:$8 sps:$4 sm:$0xff]   ;;  %v2690_v16 = vrot.slane %v2618_v55, 2 }
 0x14b   : > { %2937 = vmatpush1.bf16.msra.mxu0 %v9269_v42  ;;  %2518 = vmatprep.subr.bf16.mxu1 %v9274_v12  ;;  %v9295_v42 = vld [vmem:[%s13107_s5 + $0x524] ss:$8 sps:$4 sm:$0xff]   ;;  %v9316_v40 = vld [vmem:[%s13107_s5 + $0x4f4] ss:$8 sps:$4 sm:$0xff]   ;;  %v9314_v18 = vld [vmem:[%s13107_s5 + $0x4f0] ss:$8 sps:$4 sm:$0xff]  }
 0x14c   : > { %2938 = vmatprep.subr.bf16.mxu0 %v9277_v52  ;;  %v1486_v12 = vld [vmem:[#allocation2 + $0xc0] sm:$0xfc]  ;;  %v1568_v50 = vsel %vm1526_vm1, %v1566_v35, %v1567_v39  ;;  %v1488_v52 = vld [vmem:[#allocation2 + $0xd8] sm:$0x3]  ;;  %v2614_v54 = vld [vmem:[#allocation2 + $0xc8] sm:$0xfc] }
 0x14d   : > { %v1563_v1 = vrot.slane %v1486_v12, 2  ;;  %v1564_v6 = vrot.slane %v1488_v52, 2  ;;  %v9308_v35 = vld [vmem:[%s13107_s5 + $0x400] ss:$8 sps:$4 sm:$0xff]   ;;  %v9311_v39 = vld [vmem:[%s13107_s5 + $0x5f0] ss:$8 sps:$4 sm:$0xff]  }
 0x14e   : > { %2141 = vmatmul.mubr.bf16.gmra.mxu0 %v1899_v11  ;;  %2519 = vmatpush1.bf16.msra.mxu1 %v9272_v62  ;;  %v1595_v62 = vpack.c.bf16 %v1559_v46, %v1553_v15  ;;  %v1569_v11 = vrot.slane %v1490_v53, 2  ;;  %v9319_v41 = vld [vmem:[%s13107_s5 + $0x5e4] ss:$8 sps:$4 sm:$0xff]   ;;  %v9328_v15 = vld [vmem:[%s13107_s5 + $0x4d4] ss:$8 sps:$4 sm:$0xff]  }
 0x14f   : > { %2150 = vmatprep.mubr.bf16.mxu0 %v1902_v17  ;;  %2939 = vmatpush1.bf16.msra.mxu0 %v9275_v37  ;;  %v2672_v37 = vrot.slane %v2606_v48, 2  ;;  %v2261_v17 = vrot.slane %v2194_v61, 1  ;;  %v1565_v26 = vsel %vm1526_vm1, %v1563_v1, %v1564_v6  ;;  %v9331_v46 = vld [vmem:[%s13107_s5 + $0x5c4] ss:$8 sps:$4 sm:$0xff]   ;;  %v9329_v48 = vld [vmem:[%s13107_s5 + $0x5c0] ss:$8 sps:$4 sm:$0xff]  }
 0x150   : > { %2520 = vmatprep.subr.bf16.mxu1 %v9280_v2  ;;  %2940 = vmatprep.subr.bf16.mxu0 %v9283_v5  ;;  %v2188_v2 = vld [vmem:[#allocation2 + $0x38] sm:$0xfe]  ;;  %v1598_v5 = vpack.c.bf16 %v1574_v51, %v1568_v50  ;;  %v2609_v52 = vld [vmem:[#allocation2 + $0x80] sm:$0xfc] }
 0x151   : > { %1835 = vmatmul.mubr.bf16.gmra.mxu1 %v1593_v27  ;;  %v2254_v23 = vrot.slane %v2188_v2, 1  ;;  %v2674_v25 = vsel %vm1526_vm1, %v2672_v37, %v2673_v0  ;;  %v1571_v27 = vsel %vm1526_vm1, %v1569_v11, %v1570_v13  ;;  %v9337_v12 = vld [vmem:[%s13107_s5 + $0x5b4] ss:$8 sps:$4 sm:$0xff]   ;;  %v9335_v50 = vld [vmem:[%s13107_s5 + $0x5b0] ss:$8 sps:$4 sm:$0xff]   ;;  %v2675_v1 = vrot.slane %v2609_v52, 2 }
 0x152   : > { %1844 = vmatprep.mubr.bf16.mxu1 %v1596_v29  ;;  %2521 = vmatpush1.bf16.msra.mxu1 %v9278_v14  ;;  %v2190_v14 = vld [vmem:[#allocation2 + $0x100] sm:$0x1]  ;;  %v2734_v28 = vpack.c.bf16 %v2680_v20, %v2674_v25  ;;  %v2262_v29 = vsel %vm890_vm0, %v2260_v38, %v2261_v17  ;;  %v9340_v51 = vld [vmem:[%s13107_s5 + $0x4b4] ss:$8 sps:$4 sm:$0xff]   ;;  %v2611_v53 = vld [vmem:[#allocation2 + $0x138] sm:$0x3] }
 0x153   : > { %2941 = vmatpush1.bf16.msra.mxu0 %v9281_v9  ;;  %2522 = vmatprep.subr.bf16.mxu1 %v9286_v57  ;;  %v2255_v8 = vrot.slane %v2190_v14, 1  ;;  %v9304_v9 = vld [vmem:[%s13107_s5 + $0x414] ss:$8 sps:$4 sm:$0xff]   ;;  %v9307_v57 = vld [vmem:[%s13107_s5 + $0x504] ss:$8 sps:$4 sm:$0xff]   ;;  %v2676_v2 = vrot.slane %v2611_v53, 2 }
 0x154   : > { %2942 = vmatprep.subr.bf16.mxu0 %v9289_v21  ;;  %v9341_v60 = vld [vmem:[%s13107_s5 + $0x5a0] ss:$8 sps:$4 sm:$0xff]   ;;  %v9346_v61 = vld [vmem:[%s13107_s5 + $0x4a4] ss:$8 sps:$4 sm:$0xff]   ;;  %v9349_v37 = vld [vmem:[%s13107_s5 + $0x594] ss:$8 sps:$4 sm:$0xff]  }
 0x155   : > { %v2256_v21 = vsel %vm890_vm0, %v2254_v23, %v2255_v8  ;;  %v2605_v0 = vld [vmem:[#allocation2 + $0x120] sm:$0xfc]  ;;  %v9352_v6 = vld [vmem:[%s13107_s5 + $0x494] ss:$8 sps:$4 sm:$0xff]   ;;  %v2607_v11 = vld [vmem:[#allocation2 + $0xf8] sm:$0x3] }
 0x156   : > { %2151 = vmatmul.mubr.bf16.gmra.mxu0 %v1901_v45  ;;  %2523 = vmatpush1.bf16.msra.mxu1 %v9284_v30  ;;  %v1597_v30 = vpack.c.bf16 %v1571_v27, %v1565_v26  ;;  %v2316_v32 = vpack.c.bf16 %v2262_v29, %v2256_v21  ;;  %v9323_v45 = vld [vmem:[%s13107_s5 + $0x5d0] ss:$8 sps:$4 sm:$0xff]   ;;  %v2684_v13 = vrot.slane %v2614_v54, 2  ;;  %v2691_v38 = vrot.slane %v2620_v56, 2  ;;  %v10874_v17 = vld [vmem:[#allocation2 + $0x120] sm:$0xfe] }
 0x157   : > { %2160 = vmatprep.mubr.bf16.mxu0 %v1904_v59  ;;  %2943 = vmatpush1.bf16.msra.mxu0 %v9287_v33  ;;  %v9313_v33 = vld [vmem:[%s13107_s5 + $0x5f4] ss:$8 sps:$4 sm:$0xff]   ;;  %v9332_v59 = vld [vmem:[%s13107_s5 + $0x4c0] ss:$8 sps:$4 sm:$0xff]   ;;  %v2193_v20 = vld [vmem:[#allocation2 + $0x138] sm:$0x1] }
 0x158   : > { %2524 = vmatprep.subr.bf16.mxu1 %v9292_v24  ;;  %2944 = vmatprep.subr.bf16.mxu0 %v9295_v42  ;;  %v9317_v24 = vld [vmem:[%s13107_s5 + $0x5e0] ss:$8 sps:$4 sm:$0xff]   ;;  %v9322_v42 = vld [vmem:[%s13107_s5 + $0x4e4] ss:$8 sps:$4 sm:$0xff]   ;;  %v2200_v8 = vld [vmem:[#allocation2 + $0x110] sm:$0xfe] }
 0x159   : > { %1845 = vmatmul.mubr.bf16.gmra.mxu1 %v1595_v62  ;;  %v9344_v62 = vld [vmem:[%s13107_s5 + $0x4a0] ss:$8 sps:$4 sm:$0xff]   ;;  %v9355_v25 = vld [vmem:[%s13107_s5 + $0x584] ss:$8 sps:$4 sm:$0xff]   ;;  %v2669_v26 = vrot.slane %v2605_v0, 2 }
 0x15a   : > { %1854 = vmatprep.mubr.bf16.mxu1 %v1598_v5  ;;  %2525 = vmatpush1.bf16.msra.mxu1 %v9290_v47  ;;  %v9326_v47 = vld [vmem:[%s13107_s5 + $0x4d0] ss:$8 sps:$4 sm:$0xff]   ;;  %v2198_v23 = vld [vmem:[#allocation2 + $0x20] sm:$0x1]  ;;  %v9361_v21 = vld [vmem:[%s13107_s5 + $0x774] ss:$8 sps:$4 sm:$0xff]  }
 0x15b   : > { %2945 = vmatpush1.bf16.msra.mxu0 %v9293_v4  ;;  %2526 = vmatprep.subr.bf16.mxu1 %v9298_v10  ;;  %v9338_v4 = vld [vmem:[%s13107_s5 + $0x4b0] ss:$8 sps:$4 sm:$0xff]   ;;  %v9343_v10 = vld [vmem:[%s13107_s5 + $0x5a4] ss:$8 sps:$4 sm:$0xff]  }
 0x15c   : > { %2946 = vmatprep.subr.bf16.mxu0 %v9301_v63  ;;  %v2616_v63 = vld [vmem:[#allocation2 + $0x20] sm:$0x3]  ;;  %v9347_v5 = vld [vmem:[%s13107_s5 + $0x590] ss:$8 sps:$4 sm:$0xff]  }
 0x15d   : > { %v2685_v14 = vrot.slane %v2616_v63, 2  ;;  %v2202_v27 = vld [vmem:[#allocation2 + $0x98] sm:$0x1]  ;;  %v10919_v52 = vld [vmem:[#allocation2 + $0x18] sm:$0xfe] }
 0x15e   : > { %2161 = vmatmul.mubr.bf16.gmra.mxu0 %v1903_v3  ;;  %2527 = vmatpush1.bf16.msra.mxu1 %v9296_v19  ;;  %v2191_v19 = vld [vmem:[#allocation2 + $0x80] sm:$0xfe]  ;;  %v9350_v3 = vld [vmem:[%s13107_s5 + $0x490] ss:$8 sps:$4 sm:$0xff]  }
 0x15f   : > { %2947 = vmatpush1.bf16.msra.mxu0 %v9299_v22  ;;  %2966 = vmatprep.mubr.bf16.mxu0 %v2734_v28  ;;  %v2196_v22 = vld [vmem:[#allocation2 + $0xc8] sm:$0xfe]  ;;  %v2670_v28 = vrot.slane %v2607_v11, 2  ;;  %v2189_v29 = vld [vmem:[#allocation2 + $0xf8] sm:$0x1] }
 0x160   : > { %2528 = vmatprep.subr.bf16.mxu1 %v9304_v9  ;;  %2948 = vmatprep.subr.bf16.mxu0 %v9307_v57  ;;  %v9353_v9 = vld [vmem:[%s13107_s5 + $0x580] ss:$8 sps:$4 sm:$0xff]   ;;  %v9358_v57 = vld [vmem:[%s13107_s5 + $0x484] ss:$8 sps:$4 sm:$0xff]   ;;  %v10921_v53 = vld [vmem:[#allocation2 + $0x70] sm:$0x1] }
 0x161   : > { %1855 = vmatmul.mubr.bf16.gmra.mxu1 %v1597_v30  ;;  %v2257_v30 = vrot.slane %v2191_v19, 1 }
 0x162   : > { %2529 = vmatpush1.bf16.msra.mxu1 %v9302_v58  ;;  %2548 = vmatprep.mubr.bf16.mxu1 %v2316_v32  ;;  %v2251_v58 = vrot.slane %v10874_v17, 1  ;;  %v2267_v32 = vrot.slane %v2198_v23, 1  ;;  %v9373_v17 = vld [vmem:[%s13107_s5 + $0x754] ss:$8 sps:$4 sm:$0xff]   ;;  %v2210_v23 = vld [vmem:[#allocation2 + $0xa0] sm:$0x1] }
 0x163   : > { %2949 = vmatpush1.bf16.msra.mxu0 %v9305_v7  ;;  %2530 = vmatprep.subr.bf16.mxu1 %v9310_v31  ;;  %v2258_v7 = vrot.slane %v2193_v20, 1  ;;  %v2266_v31 = vrot.slane %v2196_v22, 1  ;;  %v2208_v22 = vld [vmem:[#allocation2 + $0x118] sm:$0xfe] }
 0x164   : > { %2950 = vmatprep.subr.bf16.mxu0 %v9313_v33  ;;  %v2272_v33 = vrot.slane %v2200_v8, 1 }
 0x165   : > { %v2268_v54 = vsel %vm890_vm0, %v2266_v31, %v2267_v32  ;;  %v2285_v31 = vrot.slane %v2210_v23, 1  ;;  %v10961_v32 = vld [vmem:[#allocation2 + $0xa8] sm:$0xfc] }
 0x166   : > { %2531 = vmatpush1.bf16.msra.mxu1 %v9308_v35  ;;  %v2677_v35 = vsel %vm1526_vm1, %v2675_v1, %v2676_v2 }
 0x167   : > { %2951 = vmatpush2.bf16.msra.mxu0 %v9311_v39  ;;  %2532 = vmatprep.subr.bf16.mxu1 %v9316_v40  ;;  %v2686_v39 = vsel %vm1526_vm1, %v2684_v13, %v2685_v14  ;;  %v2692_v40 = vsel %vm1526_vm1, %v2690_v16, %v2691_v38  ;;  %v2263_v14 = vrot.slane %v10919_v52, 1  ;;  %v2264_v16 = vrot.slane %v10921_v53, 1  ;;  %v9377_v53 = vld [vmem:[%s13107_s5 + $0x740] ss:$8 sps:$4 sm:$0xff]  }
 0x168   : > { %2952 = vmatprep.subr.bf16.mxu0 %v9319_v41  ;;  %v2273_v41 = vrot.slane %v2202_v27, 1 }
 0x16a   : > { %2533 = vmatpush2.bf16.msra.mxu1 %v9314_v18  ;;  %v10895_v18 = vld [vmem:[#allocation2 + $0x18] sm:$0xfc]  ;;  %v2274_v63 = vsel %vm890_vm0, %v2272_v33, %v2273_v41  ;;  %v10963_v33 = vld [vmem:[#allocation2 + $0xe0] sm:$0x3]  ;;  %v9379_v41 = vld [vmem:[%s13107_s5 + $0x744] ss:$8 sps:$4 sm:$0xff]  }
 0x16b   : > { %2953 = vmatpush2.bf16.msra.mxu0 %v9317_v24  ;;  %2534 = vmatprep.subr.bf16.mxu1 %v9322_v42  ;;  %v10897_v24 = vld [vmem:[#allocation2 + $0x70] sm:$0x3]  ;;  %v9356_v42 = vld [vmem:[%s13107_s5 + $0x480] ss:$8 sps:$4 sm:$0xff]   ;;  %v2681_v55 = vrot.slane %v10895_v18, 2  ;;  %v2318_v27 = vpack.c.bf16 %v2274_v63, %v2268_v54 }
 0x16c   : > { %2954 = vmatprep.subr.bf16.mxu0 %v9325_v43  ;;  %v2252_v43 = vrot.slane %v2189_v29, 1  ;;  %v2682_v56 = vrot.slane %v10897_v24, 2  ;;  %v10954_v29 = vld [vmem:[#allocation2 + $0x40] sm:$0x3]  ;;  %v10974_v18 = vld [vmem:[#allocation2 + $0xe8] sm:$0x3] }
 0x16d   : > { %v10976_v24 = vld [vmem:[#allocation2 + $0xc0] sm:$0xfe] }
 0x16e   : > { %2535 = vmatpush2.bf16.msra.mxu1 %v9320_v44  ;;  %v2617_v44 = vld [vmem:[#allocation2 + $0x128] sm:$0xfc]  ;;  %v2253_v38 = vsel %vm890_vm0, %v2251_v58, %v2252_v43  ;;  %v2683_v58 = vsel %vm1526_vm1, %v2681_v55, %v2682_v56  ;;  %v2265_v43 = vsel %vm890_vm0, %v2263_v14, %v2264_v16  ;;  %v2715_v55 = vrot.slane %v10954_v29, 2  ;;  %v2631_v29 = vld [vmem:[#allocation2 + $0x50] sm:$0x3] }
 0x16f   : > { %2955 = vmatpush2.bf16.msra.mxu0 %v9323_v45  ;;  %2536 = vmatprep.subr.bf16.mxu1 %v9328_v15  ;;  %v2619_v45 = vld [vmem:[#allocation2 + $0x8] sm:$0x3]  ;;  %v2671_v15 = vsel %vm1526_vm1, %v2669_v26, %v2670_v28  ;;  %v10945_v26 = vld [vmem:[#allocation2 + $0xc0] sm:$0xfc]  ;;  %v10952_v28 = vld [vmem:[#allocation2 + $0x78] sm:$0xfc] }
 0x170   : > { %2956 = vmatprep.subr.bf16.mxu0 %v9331_v46  ;;  %v9359_v46 = vld [vmem:[%s13107_s5 + $0x770] ss:$8 sps:$4 sm:$0xff]   ;;  %v2688_v0 = vrot.slane %v2619_v45, 2  ;;  %v9382_v54 = vld [vmem:[%s13107_s5 + $0x644] ss:$8 sps:$4 sm:$0xff]   ;;  %v2714_v63 = vrot.slane %v10952_v28, 2 }
 0x171   : > { %v9380_v14 = vld [vmem:[%s13107_s5 + $0x640] ss:$8 sps:$4 sm:$0xff]  }
 0x172   : > { %2537 = vmatpush2.bf16.msra.mxu1 %v9326_v47  ;;  %v10906_v47 = vld [vmem:[#allocation2 + $0x90] sm:$0xfc]  ;;  %v2629_v28 = vld [vmem:[#allocation2 + $0x68] sm:$0xfc] }
 0x173   : > { %2957 = vmatpush2.bf16.msra.mxu0 %v9329_v48  ;;  %2538 = vmatprep.subr.bf16.mxu1 %v9334_v49  ;;  %v10908_v48 = vld [vmem:[#allocation2 + $0x88] sm:$0x3]  ;;  %v10910_v49 = vld [vmem:[#allocation2 + $0x118] sm:$0xfc]  ;;  %v2696_v1 = vrot.slane %v10906_v47, 2 }
 0x174   : > { %2958 = vmatprep.subr.bf16.mxu0 %v9337_v12  ;;  %v2733_v12 = vpack.c.bf16 %v2677_v35, %v2671_v15  ;;  %v2697_v2 = vrot.slane %v10908_v48, 2  ;;  %v2702_v11 = vrot.slane %v10910_v49, 2  ;;  %v10965_v35 = vld [vmem:[#allocation2 + $0x130] sm:$0xfc] }
 0x175   : > { %v9374_v49 = vld [vmem:[%s13107_s5 + $0x650] ss:$8 sps:$4 sm:$0xff]  }
 0x176   : > { %2539 = vmatpush2.bf16.msra.mxu1 %v9332_v59  ;;  %v2736_v59 = vpack.c.bf16 %v2692_v40, %v2686_v39  ;;  %v9376_v40 = vld [vmem:[%s13107_s5 + $0x654] ss:$8 sps:$4 sm:$0xff]   ;;  %v2698_v48 = vsel %vm1526_vm1, %v2696_v1, %v2697_v2  ;;  %v2214_v1 = vld [vmem:[#allocation2 + $0xe8] sm:$0x1] }
 0x177   : > { %2959 = vmatpush2.bf16.msra.mxu0 %v9335_v50  ;;  %2540 = vmatprep.subr.bf16.mxu1 %v9340_v51  ;;  %v2259_v50 = vsel %vm890_vm0, %v2257_v30, %v2258_v7  ;;  %v9364_v51 = vld [vmem:[%s13107_s5 + $0x674] ss:$8 sps:$4 sm:$0xff]   ;;  %v2284_v7 = vrot.slane %v2208_v22, 1  ;;  %v2716_v22 = vsel %vm1526_vm1, %v2714_v63, %v2715_v55 }
 0x178   : > { %2960 = vmatprep.subr.bf16.mxu0 %v9343_v10  ;;  %v2628_v10 = vld [vmem:[#allocation2 + $0xa0] sm:$0x3]  ;;  %v2315_v8 = vpack.c.bf16 %v2259_v50, %v2253_v38 }
 0x179   : > { %v2703_v13 = vrot.slane %v2628_v10, 2  ;;  %v10990_v50 = vld [vmem:[#allocation2 + $0xe0] sm:$0x1]  ;;  %v2286_v52 = vsel %vm890_vm0, %v2284_v7, %v2285_v31  ;;  %v2291_v31 = vrot.slane %v2214_v1, 1 }
 0x17a   : > { %2541 = vmatpush2.bf16.msra.mxu1 %v9338_v4  ;;  %v9367_v4 = vld [vmem:[%s13107_s5 + $0x764] ss:$8 sps:$4 sm:$0xff]   ;;  %v2276_v23 = vrot.slane %v10990_v50, 1  ;;  %v2705_v50 = vrot.slane %v2629_v28, 2  ;;  %v9421_v28 = vld [vmem:[%s13107_s5 + $0x7d4] ss:$8 sps:$4 sm:$0xff]  }
 0x17b   : > { %2961 = vmatpush2.bf16.msra.mxu0 %v9341_v60  ;;  %2542 = vmatprep.subr.bf16.mxu1 %v9346_v61  ;;  %v2199_v60 = vld [vmem:[#allocation2 + $0x128] sm:$0xfe]  ;;  %v2201_v61 = vld [vmem:[#allocation2 + $0x8] sm:$0x1]  ;;  %v2704_v39 = vsel %vm1526_vm1, %v2702_v11, %v2703_v13 }
 0x17c   : > { %2962 = vmatprep.subr.bf16.mxu0 %v9349_v37  ;;  %v2687_v37 = vrot.slane %v2617_v44, 2  ;;  %v2269_v19 = vrot.slane %v2199_v60, 1  ;;  %v2270_v20 = vrot.slane %v2201_v61, 1  ;;  %v2738_v10 = vpack.c.bf16 %v2704_v39, %v2698_v48  ;;  %v9397_v48 = vld [vmem:[%s13107_s5 + $0x714] ss:$8 sps:$4 sm:$0xff]  }
 0x17d   : > { %v2693_v60 = vrot.slane %v10961_v32, 2  ;;  %v2694_v61 = vrot.slane %v10963_v33, 2  ;;  %v3333_v32 = vld [vmem:[#allocation2 + $0xf0] sm:$0x1]  ;;  %v2215_v33 = vld [vmem:[#allocation2 + $0x58] sm:$0xfe] }
 0x17e   : > { %2543 = vmatpush2.bf16.msra.mxu1 %v9344_v62  ;;  %v9362_v62 = vld [vmem:[%s13107_s5 + $0x670] ss:$8 sps:$4 sm:$0xff]   ;;  %v2689_v30 = vsel %vm1526_vm1, %v2687_v37, %v2688_v0  ;;  %v2271_v44 = vsel %vm890_vm0, %v2269_v19, %v2270_v20  ;;  %v2708_v37 = vrot.slane %v10965_v35, 2 }
 0x17f   : > { %2963 = vmatpush2.bf16.msra.mxu0 %v9347_v5  ;;  %2544 = vmatprep.subr.bf16.mxu1 %v9352_v6  ;;  %v9365_v5 = vld [vmem:[%s13107_s5 + $0x760] ss:$8 sps:$4 sm:$0xff]   ;;  %v9370_v6 = vld [vmem:[%s13107_s5 + $0x664] ss:$8 sps:$4 sm:$0xff]   ;;  %v2735_v47 = vpack.c.bf16 %v2689_v30, %v2683_v58  ;;  %v2317_v56 = vpack.c.bf16 %v2271_v44, %v2265_v43  ;;  %v11009_v0 = vld [vmem:[#allocation2 + $0x130] sm:$0xfe] }
 0x180   : > { %2964 = vmatprep.subr.bf16.mxu0 %v9355_v25  ;;  %v2206_v25 = vld [vmem:[#allocation2 + $0x88] sm:$0x1]  ;;  %v2635_v19 = vld [vmem:[#allocation2 + $0x30] sm:$0x3]  ;;  %v3331_v58 = vld [vmem:[#allocation2 + $0x108] sm:$0xfe] }
 0x181   : > { %v2279_v15 = vrot.slane %v2206_v25, 1  ;;  %v9383_v20 = vld [vmem:[%s13107_s5 + $0x730] ss:$8 sps:$4 sm:$0xff]   ;;  %v3335_v25 = vld [vmem:[#allocation2 + $0xc8] sm:$0xfe]  ;;  %v2290_v7 = vrot.slane %v11009_v0, 1 }
 0x182   : > { %2545 = vmatpush2.bf16.msra.mxu1 %v9350_v3  ;;  %v2204_v3 = vld [vmem:[#allocation2 + $0x90] sm:$0xfe]  ;;  %v2217_v35 = vld [vmem:[#allocation2 + $0x30] sm:$0x1]  ;;  %v9394_v43 = vld [vmem:[%s13107_s5 + $0x624] ss:$8 sps:$4 sm:$0xff]  }
 0x183   : > { %2965 = vmatpush2.bf16.msra.mxu0 %v9353_v9  ;;  %2546 = vmatprep.subr.bf16.mxu1 %v9358_v57  ;;  %v9368_v9 = vld [vmem:[%s13107_s5 + $0x660] ss:$8 sps:$4 sm:$0xff]   ;;  %v10950_v57 = vld [vmem:[#allocation2 + $0xd8] sm:$0x3]  ;;  %v2278_v45 = vrot.slane %v2204_v3, 1  ;;  %v2294_v63 = vrot.slane %v2217_v35, 1 }
 0x184   : > { %3659 = vmatprep.subr.bf16.mxu0 %v9361_v21  ;;  %v9371_v21 = vld [vmem:[%s13107_s5 + $0x750] ss:$8 sps:$4 sm:$0xff]   ;;  %v9403_v0 = vld [vmem:[%s13107_s5 + $0x704] ss:$8 sps:$4 sm:$0xff]   ;;  %v9428_v35 = vld [vmem:[%s13107_s5 + $0x6c0] ss:$8 sps:$4 sm:$0xff]  }
 0x185   : > { %v2280_v2 = vsel %vm890_vm0, %v2278_v45, %v2279_v15  ;;  %v2712_v45 = vrot.slane %v2635_v19, 2  ;;  %v2211_v15 = vld [vmem:[#allocation2 + $0x68] sm:$0xfe] }
 0x186   : > { %2547 = vmatpush2.bf16.msra.mxu1 %v9356_v42  ;;  %2967 = vmatmul.mubr.bf16.vlgmr.msra.gmra.mxu0 %v2733_v12  ;;  %v10978_v42 = vld [vmem:[#allocation2 + $0xd8] sm:$0x1]  ;;  %v2699_v12 = vrot.slane %v10945_v26, 2  ;;  %v2320_v13 = vpack.c.bf16 %v2286_v52, %v2280_v2  ;;  %v3337_v26 = vld [vmem:[#allocation2 + $0x20] sm:$0x1]  ;;  %v3027_v2 = vld [vmem:[#allocation2 + $0xc8] sm:$0xff] }
 0x187   : > { %2976 = vmatprep.mubr.bf16.mxu0 %v2736_v59  ;;  %3660 = vmatpush1.bf16.msra.mxu0 %v9359_v46  ;;  %v10982_v46 = vld [vmem:[#allocation2 + $0xa8] sm:$0xfe]  ;;  %v2700_v59 = vrot.slane %v10950_v57, 2  ;;  %v2282_v11 = vrot.slane %v10978_v42, 1 }
 0x188   : > { %3241 = vmatprep.subr.bf16.mxu1 %v9364_v51  ;;  %3661 = vmatprep.subr.bf16.mxu0 %v9367_v4  ;;  %v10992_v51 = vld [vmem:[#allocation2 + $0x78] sm:$0xfe]  ;;  %v2218_v4 = vld [vmem:[#allocation2 + $0x40] sm:$0x1]  ;;  %v2275_v38 = vrot.slane %v10982_v46, 1 }
 0x189   : > { %2549 = vmatmul.mubr.bf16.vlgmr.msra.gmra.mxu1 %v2315_v8  ;;  %v2701_v16 = vsel %vm1526_vm1, %v2699_v12, %v2700_v59  ;;  %v2296_v8 = vrot.slane %v10992_v51, 1  ;;  %v2297_v3 = vrot.slane %v2218_v4, 1  ;;  %v9391_v57 = vld [vmem:[%s13107_s5 + $0x724] ss:$8 sps:$4 sm:$0xff]   ;;  %v9389_v42 = vld [vmem:[%s13107_s5 + $0x720] ss:$8 sps:$4 sm:$0xff]   ;;  %v2292_v59 = vsel %vm890_vm0, %v2290_v7, %v2291_v31 }
 0x18a   : > { %2558 = vmatprep.mubr.bf16.mxu1 %v2318_v27  ;;  %3242 = vmatpush1.bf16.msra.mxu1 %v9362_v62  ;;  %v9385_v62 = vld [vmem:[%s13107_s5 + $0x734] ss:$8 sps:$4 sm:$0xff]   ;;  %v2695_v27 = vsel %vm1526_vm1, %v2693_v60, %v2694_v61  ;;  %v2213_v46 = vld [vmem:[#allocation2 + $0x50] sm:$0x1]  ;;  %v3404_v12 = vrot.slane %v3337_v26, 1  ;;  %v2706_v51 = vrot.slane %v2631_v29, 2 }
 0x18b   : > { %3662 = vmatpush1.bf16.msra.mxu0 %v9365_v5  ;;  %3243 = vmatprep.subr.bf16.mxu1 %v9370_v6  ;;  %v2709_v5 = vrot.slane %v10974_v18, 2  ;;  %v2281_v6 = vrot.slane %v10976_v24, 1  ;;  %v2737_v39 = vpack.c.bf16 %v2701_v16, %v2695_v27  ;;  %v2277_v18 = vsel %vm890_vm0, %v2275_v38, %v2276_v23  ;;  %v9392_v52 = vld [vmem:[%s13107_s5 + $0x620] ss:$8 sps:$4 sm:$0xff]   ;;  %v9415_v26 = vld [vmem:[%s13107_s5 + $0x7e4] ss:$8 sps:$4 sm:$0xff]  }
 0x18c   : > { %3663 = vmatprep.subr.bf16.mxu0 %v9373_v17  ;;  %v2633_v17 = vld [vmem:[#allocation2 + $0x58] sm:$0xfc]  ;;  %v2298_v24 = vsel %vm890_vm0, %v2296_v8, %v2297_v3  ;;  %v3397_v4 = vrot.slane %v3331_v58, 1  ;;  %v2287_v61 = vrot.slane %v2211_v15, 1  ;;  %v2707_v1 = vsel %vm1526_vm1, %v2705_v50, %v2706_v51  ;;  %v3025_v16 = vld [vmem:[#allocation2 + $0x108] sm:$0xff] }
 0x18d   : > { %v2710_v30 = vsel %vm1526_vm1, %v2708_v37, %v2709_v5  ;;  %v2711_v44 = vrot.slane %v2633_v17, 2  ;;  %v9400_v37 = vld [vmem:[%s13107_s5 + $0x614] ss:$8 sps:$4 sm:$0xff]   ;;  %v9401_v38 = vld [vmem:[%s13107_s5 + $0x700] ss:$8 sps:$4 sm:$0xff]   ;;  %v3041_v23 = vpack.c.bf16 %v3027_v2, %v3025_v16 }
 0x18e   : > { %2977 = vmatmul.mubr.bf16.gmra.mxu0 %v2735_v47  ;;  %3244 = vmatpush1.bf16.msra.mxu1 %v9368_v9  ;;  %v9388_v9 = vld [vmem:[%s13107_s5 + $0x634] ss:$8 sps:$4 sm:$0xff]   ;;  %v9406_v17 = vld [vmem:[%s13107_s5 + $0x604] ss:$8 sps:$4 sm:$0xff]   ;;  %v9404_v8 = vld [vmem:[%s13107_s5 + $0x600] ss:$8 sps:$4 sm:$0xff]  }
 0x18f   : > { %2986 = vmatprep.mubr.bf16.mxu0 %v2738_v10  ;;  %3664 = vmatpush1.bf16.msra.mxu0 %v9371_v21  ;;  %v2283_v21 = vsel %vm890_vm0, %v2281_v6, %v2282_v11  ;;  %v2322_v10 = vpack.c.bf16 %v2298_v24, %v2292_v59  ;;  %v2713_v55 = vsel %vm1526_vm1, %v2711_v44, %v2712_v45  ;;  %v9407_v3 = vld [vmem:[%s13107_s5 + $0x7f0] ss:$8 sps:$4 sm:$0xff]   ;;  %v9416_v29 = vld [vmem:[%s13107_s5 + $0x6e0] ss:$8 sps:$4 sm:$0xff]   ;;  %v9445_v44 = vld [vmem:[%s13107_s5 + $0x794] ss:$8 sps:$4 sm:$0xff]  }
 0x190   : > { %3245 = vmatprep.subr.bf16.mxu1 %v9376_v40  ;;  %3665 = vmatprep.subr.bf16.mxu0 %v9379_v41  ;;  %v2740_v40 = vpack.c.bf16 %v2716_v22, %v2710_v30  ;;  %v9386_v41 = vld [vmem:[%s13107_s5 + $0x630] ss:$8 sps:$4 sm:$0xff]   ;;  %v2319_v47 = vpack.c.bf16 %v2283_v21, %v2277_v18  ;;  %v2739_v5 = vpack.c.bf16 %v2713_v55, %v2707_v1  ;;  %v9424_v30 = vld [vmem:[%s13107_s5 + $0x6d4] ss:$8 sps:$4 sm:$0xff]   ;;  %v9427_v21 = vld [vmem:[%s13107_s5 + $0x7c4] ss:$8 sps:$4 sm:$0xff]  }
 0x191   : > { %2559 = vmatmul.mubr.bf16.gmra.mxu1 %v2317_v56  ;;  %v9395_v56 = vld [vmem:[%s13107_s5 + $0x710] ss:$8 sps:$4 sm:$0xff]   ;;  %v9425_v31 = vld [vmem:[%s13107_s5 + $0x7c0] ss:$8 sps:$4 sm:$0xff]   ;;  %v9448_v59 = vld [vmem:[%s13107_s5 + $0x694] ss:$8 sps:$4 sm:$0xff]  }
 0x192   : > { %2568 = vmatprep.mubr.bf16.mxu1 %v2320_v13  ;;  %3246 = vmatpush1.bf16.msra.mxu1 %v9374_v49  ;;  %v3403_v49 = vrot.slane %v3335_v25, 1  ;;  %v9398_v13 = vld [vmem:[%s13107_s5 + $0x610] ss:$8 sps:$4 sm:$0xff]   ;;  %v9412_v25 = vld [vmem:[%s13107_s5 + $0x6f4] ss:$8 sps:$4 sm:$0xff]  }
 0x193   : > { %3666 = vmatpush1.bf16.msra.mxu0 %v9377_v53  ;;  %3247 = vmatprep.subr.bf16.mxu1 %v9382_v54  ;;  %v3398_v53 = vrot.slane %v3333_v32, 1  ;;  %v2293_v54 = vrot.slane %v2215_v33, 1  ;;  %v9410_v27 = vld [vmem:[%s13107_s5 + $0x6f0] ss:$8 sps:$4 sm:$0xff]   ;;  %v9430_v32 = vld [vmem:[%s13107_s5 + $0x6c4] ss:$8 sps:$4 sm:$0xff]  }
 0x194   : > { %3667 = vmatprep.subr.bf16.mxu0 %v9385_v62  ;;  %v3405_v60 = vsel %vm890_vm0, %v3403_v49, %v3404_v12  ;;  %v2288_v62 = vrot.slane %v2213_v46, 1  ;;  %v9419_v58 = vld [vmem:[%s13107_s5 + $0x7d0] ss:$8 sps:$4 sm:$0xff]   ;;  %v9433_v33 = vld [vmem:[%s13107_s5 + $0x7b4] ss:$8 sps:$4 sm:$0xff]  }
 0x195   : > { %v3399_v6 = vsel %vm890_vm0, %v3397_v4, %v3398_v53  ;;  %v2295_v11 = vsel %vm890_vm0, %v2293_v54, %v2294_v63  ;;  %v9422_v7 = vld [vmem:[%s13107_s5 + $0x6d0] ss:$8 sps:$4 sm:$0xff]   ;;  %v9437_v24 = vld [vmem:[%s13107_s5 + $0x7a0] ss:$8 sps:$4 sm:$0xff]   ;;  %v9451_v4 = vld [vmem:[%s13107_s5 + $0x784] ss:$8 sps:$4 sm:$0xff]  }
 0x196   : > { %2987 = vmatmul.mubr.bf16.gmra.mxu0 %v2737_v39  ;;  %3248 = vmatpush1.bf16.msra.mxu1 %v9380_v14  ;;  %v3459_v14 = vpack.c.bf16 %v3405_v60, %v3399_v6  ;;  %v2289_v19 = vsel %vm890_vm0, %v2287_v61, %v2288_v62  ;;  %v9431_v39 = vld [vmem:[%s13107_s5 + $0x7b0] ss:$8 sps:$4 sm:$0xff]   ;;  %v3345_v12 = vld [vmem:[#allocation2 + $0x88] sm:$0x1]  ;;  %v3330_v50 = vld [vmem:[#allocation2 + $0x80] sm:$0xfe] }
 0x197   : > { %2996 = vmatprep.mubr.bf16.mxu0 %v2740_v40  ;;  %3668 = vmatpush1.bf16.msra.mxu0 %v9383_v20  ;;  %v9409_v20 = vld [vmem:[%s13107_s5 + $0x7f4] ss:$8 sps:$4 sm:$0xff]   ;;  %v2321_v22 = vpack.c.bf16 %v2295_v11, %v2289_v19  ;;  %v9434_v18 = vld [vmem:[%s13107_s5 + $0x6b0] ss:$8 sps:$4 sm:$0xff]   ;;  %v3416_v55 = vrot.slane %v3345_v12, 1  ;;  %v3394_v60 = vrot.slane %v3330_v50, 1 }
 0x198   : > { %3249 = vmatprep.subr.bf16.mxu1 %v9388_v9  ;;  %3669 = vmatprep.subr.bf16.mxu0 %v9391_v57  ;;  %v9413_v9 = vld [vmem:[%s13107_s5 + $0x7e0] ss:$8 sps:$4 sm:$0xff]   ;;  %v9418_v57 = vld [vmem:[%s13107_s5 + $0x6e4] ss:$8 sps:$4 sm:$0xff]   ;;  %v9436_v40 = vld [vmem:[%s13107_s5 + $0x6b4] ss:$8 sps:$4 sm:$0xff]  }
 0x199   : > { %2569 = vmatmul.mubr.bf16.gmra.mxu1 %v2319_v47  ;;  %v9443_v45 = vld [vmem:[%s13107_s5 + $0x790] ss:$8 sps:$4 sm:$0xff]   ;;  %v9449_v62 = vld [vmem:[%s13107_s5 + $0x780] ss:$8 sps:$4 sm:$0xff]  }
 0x19a   : > { %2578 = vmatprep.mubr.bf16.mxu1 %v2322_v10  ;;  %3250 = vmatpush1.bf16.msra.mxu1 %v9386_v41  ;;  %v9439_v41 = vld [vmem:[%s13107_s5 + $0x7a4] ss:$8 sps:$4 sm:$0xff]   ;;  %v3334_v15 = vld [vmem:[#allocation2 + $0x18] sm:$0xfe]  ;;  %v3336_v46 = vld [vmem:[#allocation2 + $0x70] sm:$0x1] }
 0x19b   : > { %3670 = vmatpush1.bf16.msra.mxu0 %v9389_v42  ;;  %3251 = vmatprep.subr.bf16.mxu1 %v9394_v43  ;;  %v9442_v42 = vld [vmem:[%s13107_s5 + $0x6a4] ss:$8 sps:$4 sm:$0xff]   ;;  %v9440_v43 = vld [vmem:[%s13107_s5 + $0x6a0] ss:$8 sps:$4 sm:$0xff]   ;;  %v3339_v47 = vld [vmem:[#allocation2 + $0x110] sm:$0xfe] }
 0x19c   : > { %3671 = vmatprep.subr.bf16.mxu0 %v9397_v48  ;;  %v3341_v48 = vld [vmem:[#allocation2 + $0x98] sm:$0x1]  ;;  %v3343_v49 = vld [vmem:[#allocation2 + $0x90] sm:$0xfe]  ;;  %v3400_v10 = vrot.slane %v3334_v15, 1  ;;  %v3409_v53 = vrot.slane %v3339_v47, 1 }
 0x19d   : > { %v3332_v51 = vld [vmem:[#allocation2 + $0x138] sm:$0x1]  ;;  %v3410_v54 = vrot.slane %v3341_v48, 1  ;;  %v3415_v63 = vrot.slane %v3343_v49, 1  ;;  %v3338_v2 = vld [vmem:[#allocation2 + $0x128] sm:$0xfe] }
 0x19e   : > { %2997 = vmatmul.mubr.bf16.gmra.mxu0 %v2739_v5  ;;  %3252 = vmatpush1.bf16.msra.mxu1 %v9392_v52  ;;  %v3401_v52 = vrot.slane %v3336_v46, 1  ;;  %v3395_v61 = vrot.slane %v3332_v51, 1  ;;  %v3340_v5 = vld [vmem:[#allocation2 + $0x8] sm:$0x1]  ;;  %v3347_v16 = vld [vmem:[#allocation2 + $0x118] sm:$0xfe] }
 0x19f   : > { %3672 = vmatpush1.bf16.msra.mxu0 %v9395_v56  ;;  %3691 = vmatprep.mubr.bf16.mxu0 %v3459_v14  ;;  %v9446_v56 = vld [vmem:[%s13107_s5 + $0x690] ss:$8 sps:$4 sm:$0xff]   ;;  %v3411_v6 = vsel %vm890_vm0, %v3409_v53, %v3410_v54  ;;  %v3417_v11 = vsel %vm890_vm0, %v3415_v63, %v3416_v55  ;;  %v3344_v14 = vld [vmem:[#allocation2 + $0xe0] sm:$0x1]  ;;  %v9463_v15 = vld [vmem:[%s13107_s5 + $0x854] ss:$8 sps:$4 sm:$0xff]  }
 0x1a0   : > { %3253 = vmatprep.subr.bf16.mxu1 %v9400_v37  ;;  %3673 = vmatprep.subr.bf16.mxu0 %v9403_v0  ;;  %v9454_v37 = vld [vmem:[%s13107_s5 + $0x684] ss:$8 sps:$4 sm:$0xff]   ;;  %v9452_v0 = vld [vmem:[%s13107_s5 + $0x680] ss:$8 sps:$4 sm:$0xff]   ;;  %v3402_v1 = vsel %vm890_vm0, %v3400_v10, %v3401_v52  ;;  %v3351_v19 = vld [vmem:[#allocation2 + $0x130] sm:$0xfe] }
 0x1a1   : > { %2579 = vmatmul.mubr.bf16.gmra.mxu1 %v2321_v22  ;;  %v3346_v46 = vld [vmem:[#allocation2 + $0xc0] sm:$0xfe]  ;;  %v3348_v47 = vld [vmem:[#allocation2 + $0xd8] sm:$0x1]  ;;  %v3350_v49 = vld [vmem:[#allocation2 + $0x68] sm:$0xfe] }
 0x1a2   : > { %3254 = vmatpush1.bf16.msra.mxu1 %v9398_v13  ;;  %3273 = vmatprep.mubr.bf16.mxu1 %v3041_v23  ;;  %v3342_v13 = vld [vmem:[#allocation2 + $0xa8] sm:$0xfe]  ;;  %v9457_v23 = vld [vmem:[%s13107_s5 + $0x874] ss:$8 sps:$4 sm:$0xff]   ;;  %v3352_v12 = vld [vmem:[#allocation2 + $0x50] sm:$0x1] }
 0x1a3   : > { %3674 = vmatpush1.bf16.msra.mxu0 %v9401_v38  ;;  %3255 = vmatprep.subr.bf16.mxu1 %v9406_v17  ;;  %v3396_v38 = vsel %vm890_vm0, %v3394_v60, %v3395_v61  ;;  %v3349_v17 = vld [vmem:[#allocation2 + $0xa0] sm:$0x1]  ;;  %v3359_v10 = vld [vmem:[#allocation2] sm:$0xfe]  ;;  %v3028_v55 = vld [vmem:[#allocation2 + $0x128] sm:$0xff]  ;;  %v3418_v60 = vrot.slane %v3346_v46, 1 }
 0x1a4   : > { %3675 = vmatprep.subr.bf16.mxu0 %v9409_v20  ;;  %v3353_v20 = vld [vmem:[#allocation2 + $0xe8] sm:$0x1]  ;;  %v3458_v22 = vpack.c.bf16 %v3402_v1, %v3396_v38  ;;  %v3361_v52 = vld [vmem:[#allocation2 + $0x60] sm:$0x1]  ;;  %v3419_v1 = vrot.slane %v3348_v47, 1 }
 0x1a5   : > { %v3440_v38 = vrot.slane %v3361_v52, 1  ;;  %v9467_v47 = vld [vmem:[%s13107_s5 + $0x830] ss:$8 sps:$4 sm:$0xff]  }
 0x1a6   : > { %3256 = vmatpush1.bf16.msra.mxu1 %v9404_v8  ;;  %v3406_v8 = vrot.slane %v3338_v2, 1  ;;  %v3424_v2 = vrot.slane %v3350_v49, 1  ;;  %v3753_v49 = vld [vmem:[#allocation2 + $0xc8] sm:$0xfc]  ;;  %v9935_v52 = vld [vmem:[#allocation2 + $0xb0] sm:$0xff] }
 0x1a7   : > { %3676 = vmatpush2.bf16.msra.mxu0 %v9407_v3  ;;  %3257 = vmatprep.subr.bf16.mxu1 %v9412_v25  ;;  %v3461_v3 = vpack.c.bf16 %v3417_v11, %v3411_v6  ;;  %v3026_v25 = vld [vmem:[#allocation2 + $0x18] sm:$0xff] }
 0x1a8   : > { %3677 = vmatprep.subr.bf16.mxu0 %v9415_v26  ;;  %v3407_v26 = vrot.slane %v3340_v5, 1  ;;  %v3425_v5 = vrot.slane %v3352_v12, 1  ;;  %v3755_v12 = vld [vmem:[#allocation2 + $0x20] sm:$0x3] }
 0x1aa   : > { %3258 = vmatpush2.bf16.msra.mxu1 %v9410_v27  ;;  %v3412_v27 = vrot.slane %v3342_v13, 1  ;;  %v9461_v13 = vld [vmem:[%s13107_s5 + $0x850] ss:$8 sps:$4 sm:$0xff]  }
 0x1ab   : > { %3678 = vmatpush2.bf16.msra.mxu0 %v9413_v9  ;;  %3259 = vmatprep.subr.bf16.mxu1 %v9418_v57  ;;  %v3413_v9 = vrot.slane %v3344_v14, 1 }
 0x1ac   : > { %3679 = vmatprep.subr.bf16.mxu0 %v9421_v28  ;;  %v3029_v28 = vld [vmem:[#allocation2 + $0x110] sm:$0xff] }
 0x1ae   : > { %3260 = vmatpush2.bf16.msra.mxu1 %v9416_v29  ;;  %v3031_v29 = vld [vmem:[#allocation2 + $0x90] sm:$0xff] }
 0x1af   : > { %3680 = vmatpush2.bf16.msra.mxu0 %v9419_v58  ;;  %3261 = vmatprep.subr.bf16.mxu1 %v9424_v30  ;;  %v3421_v58 = vrot.slane %v3347_v16, 1  ;;  %v3422_v30 = vrot.slane %v3349_v17, 1  ;;  %v3439_v16 = vrot.slane %v3359_v10, 1  ;;  %v9472_v10 = vld [vmem:[%s13107_s5 + $0x824] ss:$8 sps:$4 sm:$0xff]  }
 0x1b0   : > { %3681 = vmatprep.subr.bf16.mxu0 %v9427_v21  ;;  %v3427_v21 = vrot.slane %v3351_v19, 1 }
 0x1b2   : > { %3262 = vmatpush2.bf16.msra.mxu1 %v9422_v7  ;;  %v3428_v7 = vrot.slane %v3353_v20, 1 }
 0x1b3   : > { %3682 = vmatpush2.bf16.msra.mxu0 %v9425_v31  ;;  %3263 = vmatprep.subr.bf16.mxu1 %v9430_v32  ;;  %v3024_v31 = vld [vmem:[#allocation2 + $0x80] sm:$0xff]  ;;  %v9455_v32 = vld [vmem:[%s13107_s5 + $0x870] ss:$8 sps:$4 sm:$0xff]  }
 0x1b4   : > { %3683 = vmatprep.subr.bf16.mxu0 %v9433_v33 }
 0x1b6   : > { %3264 = vmatpush2.bf16.msra.mxu1 %v9428_v35  ;;  %v3040_v35 = vpack.c.bf16 %v3026_v25, %v3024_v31  ;;  %v9464_v25 = vld [vmem:[%s13107_s5 + $0x840] ss:$8 sps:$4 sm:$0xff]  }
 0x1b7   : > { %3684 = vmatpush2.bf16.msra.mxu0 %v9431_v39  ;;  %3265 = vmatprep.subr.bf16.mxu1 %v9436_v40  ;;  %v9460_v39 = vld [vmem:[%s13107_s5 + $0x864] ss:$8 sps:$4 sm:$0xff]   ;;  %v3043_v40 = vpack.c.bf16 %v3031_v29, %v3029_v28  ;;  %v3441_v29 = vsel %vm890_vm0, %v3439_v16, %v3440_v38 }
 0x1b8   : > { %3685 = vmatprep.subr.bf16.mxu0 %v9439_v41  ;;  %v9458_v41 = vld [vmem:[%s13107_s5 + $0x860] ss:$8 sps:$4 sm:$0xff]  }
 0x1ba   : > { %3266 = vmatpush2.bf16.msra.mxu1 %v9434_v18 }
 0x1bb   : > { %3686 = vmatpush2.bf16.msra.mxu0 %v9437_v24  ;;  %3267 = vmatprep.subr.bf16.mxu1 %v9442_v42  ;;  %v3408_v42 = vsel %vm890_vm0, %v3406_v8, %v3407_v26  ;;  %v3420_v26 = vsel %vm890_vm0, %v3418_v60, %v3419_v1 }
 0x1bc   : > { %3687 = vmatprep.subr.bf16.mxu0 %v9445_v44  ;;  %v3423_v44 = vsel %vm890_vm0, %v3421_v58, %v3422_v30  ;;  %v3356_v58 = vld [vmem:[#allocation2 + $0x30] sm:$0x1]  ;;  %v3358_v30 = vld [vmem:[#allocation2 + $0x28] sm:$0xfe] }
 0x1be   : > { %3268 = vmatpush2.bf16.msra.mxu1 %v9440_v43  ;;  %v3414_v43 = vsel %vm890_vm0, %v3412_v27, %v3413_v9  ;;  %v3426_v27 = vsel %vm890_vm0, %v3424_v2, %v3425_v5  ;;  %v3354_v9 = vld [vmem:[#allocation2 + $0x58] sm:$0xfe]  ;;  %v9470_v2 = vld [vmem:[%s13107_s5 + $0x820] ss:$8 sps:$4 sm:$0xff]  }
 0x1bf   : > { %3688 = vmatpush2.bf16.msra.mxu0 %v9443_v45  ;;  %3269 = vmatprep.subr.bf16.mxu1 %v9448_v59  ;;  %v3429_v45 = vsel %vm890_vm0, %v3427_v21, %v3428_v7  ;;  %v3355_v59 = vld [vmem:[#allocation2 + $0x78] sm:$0xfe]  ;;  %v3460_v54 = vpack.c.bf16 %v3414_v43, %v3408_v42  ;;  %v3360_v21 = vld [vmem:[#allocation2 + $0xb8] sm:$0x1] }
 0x1c0   : > { %3689 = vmatprep.subr.bf16.mxu0 %v9451_v4  ;;  %v3357_v4 = vld [vmem:[#allocation2 + $0x40] sm:$0x1]  ;;  %v3463_v63 = vpack.c.bf16 %v3429_v45, %v3423_v44  ;;  %v3433_v6 = vrot.slane %v3355_v59, 1  ;;  %v3037_v43 = vld [vmem:[#allocation2 + $0x78] sm:$0xff]  ;;  %v3431_v44 = vrot.slane %v3356_v58, 1  ;;  %v3436_v45 = vrot.slane %v3358_v30, 1 }
 0x1c1   : > { %v1423_v57 = vpop.f32.mrf.mxu0  ;;  %v3434_v14 = vrot.slane %v3357_v4, 1 }
 0x1c2   : > { %3270 = vmatpush2.bf16.msra.mxu1 %v9446_v56  ;;  %v3030_v56 = vld [vmem:[#allocation2 + $0xa8] sm:$0xff] }
 0x1c3   : > { %3690 = vmatpush2.bf16.msra.mxu0 %v9449_v62  ;;  %3271 = vmatprep.subr.bf16.mxu1 %v9454_v37  ;;  %v1425_v33 = vpop.f32.mrf.mxu0  ;;  %v3033_v37 = vld [vmem:[#allocation2 + $0x118] sm:$0xff]  ;;  %v3042_v20 = vpack.c.bf16 %v3030_v56, %v3028_v55  ;;  %v3435_v28 = vsel %vm890_vm0, %v3433_v6, %v3434_v14  ;;  %v3751_v55 = vld [vmem:[#allocation2 + $0xf0] sm:$0x3] }
 0x1c4   : > { %v3465_v42 = vpack.c.bf16 %v3441_v29, %v3435_v28  ;;  %v3816_v16 = vrot.slane %v3751_v55, 2  ;;  %v9478_v28 = vld [vmem:[%s13107_s5 + $0x804] ss:$8 sps:$4 sm:$0xff]   ;;  %v3759_v55 = vld [vmem:[#allocation2 + $0x98] sm:$0x3] }
 0x1c5   : > { %v1190_v18 = vpop.f32.mrf.mxu1  ;;  %v1427_v24 = vpop.f32.mrf.mxu0 }
 0x1c6   : > { %3272 = vmatpush2.bf16.msra.mxu1 %v9452_v0  ;;  %3692 = vmatmul.mubr.bf16.vlgmr.msra.gmra.mxu0 %v3458_v22  ;;  %v11200_v48 = vadd.f32 %v1423_v57, %v1190_v18  ;;  %v3035_v0 = vld [vmem:[#allocation2 + $0x130] sm:$0xff]  ;;  %v9466_v22 = vld [vmem:[%s13107_s5 + $0x844] ss:$8 sps:$4 sm:$0xff]  }
 0x1c7   : > { %3701 = vmatprep.mubr.bf16.mxu0 %v3461_v3  ;;  %4077 = vmatprep.subr.bf16.mxu1 %v9457_v23  ;;  %v1192_v50 = vpop.f32.mrf.mxu1  ;;  %v11202_v51 = vpop.f32.mrf.mxu0  ;;  %v3045_v23 = vpack.c.bf16 %v3035_v0, %v3033_v37  ;;  %v3821_v37 = vrot.slane %v3753_v49, 2  ;;  %v3822_v0 = vrot.slane %v3755_v12, 2  ;;  %v9493_v49 = vld [vmem:[%s13107_s5 + $0x8b4] ss:$8 sps:$4 sm:$0xff]   ;;  %v9491_v12 = vld [vmem:[%s13107_s5 + $0x8b0] ss:$8 sps:$4 sm:$0xff]  }
 0x1c8   : > { %v11204_v53 = vadd.f32 %v1425_v33, %v1192_v50 }
 0x1c9   : > { %3274 = vmatmul.mubr.bf16.vlgmr.msra.gmra.mxu1 %v3040_v35  ;;  %v1194_v61 = vpop.f32.mrf.mxu1  ;;  %v3462_v35 = vpack.c.bf16 %v3426_v27, %v3420_v26 }
 0x1ca   : > { %3283 = vmatprep.mubr.bf16.mxu1 %v3043_v40  ;;  %4078 = vmatpush1.bf16.msra.mxu1 %v9455_v32  ;;  %v1433_v62 = vpop.f32.mrf.mxu0  ;;  %v11206_v11 = vadd.f32 %v1427_v24, %v1194_v61  ;;  %v9469_v32 = vld [vmem:[%s13107_s5 + $0x834] ss:$8 sps:$4 sm:$0xff]   ;;  %v3034_v40 = vld [vmem:[#allocation2 + $0x68] sm:$0xff] }
 0x1cb   : > { %4079 = vmatprep.subr.bf16.mxu1 %v9460_v39  ;;  %v11211_v17 = vpop.f32.mrf.mxu1  ;;  %v3032_v39 = vld [vmem:[#allocation2 + $0xc0] sm:$0xff] }
 0x1cc   : > { %v1435_v19 = vpop.f32.mrf.mxu0  ;;  %v3044_v4 = vpack.c.bf16 %v3034_v40, %v3032_v39 }
 0x1ce   : > { %3702 = vmatmul.mubr.bf16.gmra.mxu0 %v3460_v54  ;;  %4080 = vmatpush1.bf16.msra.mxu1 %v9458_v41  ;;  %v1200_v8 = vpop.f32.mrf.mxu1  ;;  %v1437_v3 = vpop.f32.mrf.mxu0  ;;  %v3430_v41 = vrot.slane %v3354_v9, 1  ;;  %v3047_v54 = vpack.c.bf16 %v9935_v52, %v3037_v43  ;;  %v9482_v43 = vld [vmem:[%s13107_s5 + $0x8e0] ss:$8 sps:$4 sm:$0xff]  }
 0x1cf   : > { %3711 = vmatprep.mubr.bf16.mxu0 %v3463_v63  ;;  %4081 = vmatprep.subr.bf16.mxu1 %v9463_v15  ;;  %v11221_v57 = vadd.f32 %v1433_v62, %v1200_v8  ;;  %v3437_v15 = vrot.slane %v3360_v21, 1  ;;  %v3749_v63 = vld [vmem:[#allocation2 + $0x108] sm:$0xfc]  ;;  %v3823_v8 = vsel %vm1526_vm1, %v3821_v37, %v3822_v0  ;;  %v3748_v37 = vld [vmem:[#allocation2 + $0x80] sm:$0xfc] }
 0x1d0   : > { %v1202_v7 = vpop.f32.mrf.mxu1  ;;  %v11225_v31 = vpop.f32.mrf.mxu0  ;;  %v3432_v61 = vsel %vm890_vm0, %v3430_v41, %v3431_v44  ;;  %v3815_v14 = vrot.slane %v3749_v63, 2  ;;  %v9487_v44 = vld [vmem:[%s13107_s5 + $0x8d4] ss:$8 sps:$4 sm:$0xff]   ;;  %v3750_v0 = vld [vmem:[#allocation2 + $0x138] sm:$0x3] }
 0x1d1   : > { %3284 = vmatmul.mubr.bf16.gmra.mxu1 %v3042_v20  ;;  %v11230_v33 = vadd.f32 %v1435_v19, %v1202_v7  ;;  %v3438_v62 = vsel %vm890_vm0, %v3436_v45, %v3437_v15  ;;  %v3036_v20 = vld [vmem:[#allocation2 + $0x58] sm:$0xff]  ;;  %v9476_v7 = vld [vmem:[%s13107_s5 + $0x800] ss:$8 sps:$4 sm:$0xff]   ;;  %v9490_v15 = vld [vmem:[%s13107_s5 + $0x8c4] ss:$8 sps:$4 sm:$0xff]  }
 0x1d2   : > { %3293 = vmatprep.mubr.bf16.mxu1 %v3045_v23  ;;  %4082 = vmatpush1.bf16.msra.mxu1 %v9461_v13  ;;  %v1204_v18 = vpop.f32.mrf.mxu1  ;;  %v9475_v13 = vld [vmem:[%s13107_s5 + $0x814] ss:$8 sps:$4 sm:$0xff]   ;;  %v3464_v19 = vpack.c.bf16 %v3438_v62, %v3432_v61  ;;  %v3046_v27 = vpack.c.bf16 %v9935_v52, %v3036_v20  ;;  %v3817_v9 = vsel %vm1526_vm1, %v3815_v14, %v3816_v16  ;;  %v9485_v45 = vld [vmem:[%s13107_s5 + $0x8d0] ss:$8 sps:$4 sm:$0xff]   ;;  %v3763_v61 = vld [vmem:[#allocation2 + $0x88] sm:$0x3] }
 0x1d3   : > { %4083 = vmatprep.subr.bf16.mxu1 %v9466_v22  ;;  %v1443_v24 = vpop.f32.mrf.mxu0  ;;  %v11232_v46 = vadd.f32 %v1437_v3, %v1204_v18  ;;  %v3877_v29 = vpack.c.bf16 %v3823_v8, %v3817_v9  ;;  %v3752_v52 = vld [vmem:[#allocation2 + $0x18] sm:$0xfc]  ;;  %v3757_v63 = vld [vmem:[#allocation2 + $0x110] sm:$0xfc]  ;;  %v9502_v62 = vld [vmem:[%s13107_s5 + $0x884] ss:$8 sps:$4 sm:$0xff]  }
 0x1d4   : > { %v11237_v59 = vpop.f32.mrf.mxu1  ;;  %v3828_v14 = vrot.slane %v3759_v55, 2  ;;  %v9500_v20 = vld [vmem:[%s13107_s5 + $0x880] ss:$8 sps:$4 sm:$0xff]  }
 0x1d5   : > { %v1445_v50 = vpop.f32.mrf.mxu0 }
 0x1d6   : > { %3712 = vmatmul.mubr.bf16.gmra.mxu0 %v3462_v35  ;;  %4084 = vmatpush1.bf16.msra.mxu1 %v9464_v25  ;;  %v9473_v25 = vld [vmem:[%s13107_s5 + $0x810] ss:$8 sps:$4 sm:$0xff]   ;;  %v9481_v35 = vld [vmem:[%s13107_s5 + $0x8f4] ss:$8 sps:$4 sm:$0xff]  }
 0x1d7   : > { %3721 = vmatprep.mubr.bf16.mxu0 %v3465_v42  ;;  %4085 = vmatprep.subr.bf16.mxu1 %v9469_v32  ;;  %v1447_v60 = vpop.f32.mrf.mxu0  ;;  %v9484_v42 = vld [vmem:[%s13107_s5 + $0x8e4] ss:$8 sps:$4 sm:$0xff]  }
 0x1d9   : > { %3294 = vmatmul.mubr.bf16.gmra.mxu1 %v3044_v4  ;;  %v1210_v56 = vpop.f32.mrf.mxu1  ;;  %v11249_v6 = vpop.f32.mrf.mxu0  ;;  %v9494_v4 = vld [vmem:[%s13107_s5 + $0x8a0] ss:$8 sps:$4 sm:$0xff]  }
 0x1da   : > { %v11244_v1 = vadd.f32 %v1443_v24, %v1210_v56  ;;  %3303 = vmatprep.mubr.bf16.mxu1 %v3047_v54  ;;  %4086 = vmatpush1.bf16.msra.mxu1 %v9467_v47  ;;  %v9479_v24 = vld [vmem:[%s13107_s5 + $0x8f0] ss:$8 sps:$4 sm:$0xff]   ;;  %v9488_v47 = vld [vmem:[%s13107_s5 + $0x8c0] ss:$8 sps:$4 sm:$0xff]  }
 0x1db   : > { %v1212_v5 = vpop.f32.mrf.mxu1  ;;  %4087 = vmatprep.subr.bf16.mxu1 %v9472_v10  ;;  %v9499_v10 = vld [vmem:[%s13107_s5 + $0x894] ss:$8 sps:$4 sm:$0xff]   ;;  %v3754_v54 = vld [vmem:[#allocation2 + $0x70] sm:$0x3] }
 0x1dc   : > { %v11254_v38 = vadd.f32 %v1445_v50, %v1212_v5  ;;  %v9496_v50 = vld [vmem:[%s13107_s5 + $0x8a4] ss:$8 sps:$4 sm:$0xff]   ;;  %v9497_v56 = vld [vmem:[%s13107_s5 + $0x890] ss:$8 sps:$4 sm:$0xff]   ;;  %v3819_v5 = vrot.slane %v3754_v54, 2 }
 0x1dd   : > { %v1214_v22 = vpop.f32.mrf.mxu1 }
 0x1de   : > { %v11257_v3 = vadd.f32 %v1447_v60, %v1214_v22  ;;  %3722 = vmatmul.mubr.bf16.gmra.mxu0 %v3464_v19  ;;  %4088 = vmatpush1.bf16.msra.mxu1 %v9470_v2  ;;  %v3761_v60 = vld [vmem:[#allocation2 + $0x90] sm:$0xfc]  ;;  %v3818_v2 = vrot.slane %v3752_v52, 2  ;;  %v3834_v19 = vrot.slane %v3763_v61, 2  ;;  %v3812_v22 = vrot.slane %v3748_v37, 2 }
 0x1df   : > { %v11262_v26 = vpop.f32.mrf.mxu1  ;;  %4089 = vmatprep.subr.bf16.mxu1 %v9475_v13  ;;  %v3827_v13 = vrot.slane %v3757_v63, 2  ;;  %v3833_v16 = vrot.slane %v3761_v60, 2  ;;  %v3766_v60 = vld [vmem:[#allocation2 + $0xd8] sm:$0x3] }
 0x1e0   : > { %v1453_v23 = vpop.f32.mrf.mxu0  ;;  %v3820_v8 = vsel %vm1526_vm1, %v3818_v2, %v3819_v5  ;;  %v3770_v2 = vld [vmem:[#allocation2 + $0x50] sm:$0x3] }
 0x1e1   : > { %3304 = vmatmul.mubr.bf16.gmra.mxu1 %v3046_v27  ;;  %v3758_v27 = vld [vmem:[#allocation2 + $0x8] sm:$0x3]  ;;  %v3829_v9 = vsel %vm1526_vm1, %v3827_v13, %v3828_v14  ;;  %v3775_v13 = vld [vmem:[#allocation2 + $0x40] sm:$0x3] }
 0x1e2   : > { %v1455_v58 = vpop.f32.mrf.mxu0  ;;  %4090 = vmatpush1.bf16.msra.mxu1 %v9473_v25  ;;  %4109 = vmatprep.mubr.bf16.mxu1 %v3877_v29  ;;  %v3756_v25 = vld [vmem:[#allocation2 + $0x128] sm:$0xfc]  ;;  %v3779_v14 = vld [vmem:[#allocation2 + $0x60] sm:$0x3] }
 0x1e3   : > { %4091 = vmatprep.subr.bf16.mxu1 %v9478_v28  ;;  %v3835_v28 = vsel %vm1526_vm1, %v3833_v16, %v3834_v19  ;;  %v3760_v29 = vld [vmem:[#allocation2 + $0xa8] sm:$0xfc] }
 0x1e4   : > { %v1220_v30 = vpop.f32.mrf.mxu1  ;;  %v1457_v40 = vpop.f32.mrf.mxu0 }
 0x1e5   : > { %v11268_v21 = vadd.f32 %v1453_v23, %v1220_v30  ;;  %v3813_v23 = vrot.slane %v3750_v0, 2  ;;  %v3765_v30 = vld [vmem:[#allocation2 + $0x118] sm:$0xfc]  ;;  %v3768_v0 = vld [vmem:[#allocation2 + $0x68] sm:$0xfc] }
 0x1e6   : > { %v1222_v32 = vpop.f32.mrf.mxu1  ;;  %4092 = vmatpush1.bf16.msra.mxu1 %v9476_v7 }
 0x1e7   : > { %v11276_v39 = vadd.f32 %v1455_v58, %v1222_v32  ;;  %4093 = vmatprep.subr.bf16.mxu1 %v9481_v35  ;;  %v3762_v58 = vld [vmem:[#allocation2 + $0xe0] sm:$0x3]  ;;  %v3814_v7 = vsel %vm1526_vm1, %v3812_v22, %v3813_v23  ;;  %v3769_v35 = vld [vmem:[#allocation2 + $0x130] sm:$0xfc]  ;;  %v3837_v23 = vrot.slane %v3766_v60, 2 }
 0x1e8   : > { %v1224_v41 = vpop.f32.mrf.mxu1  ;;  %v3767_v32 = vld [vmem:[#allocation2 + $0xa0] sm:$0x3] }
 0x1e9   : > { %v11278_v18 = vadd.f32 %v1457_v40, %v1224_v41  ;;  %v3771_v40 = vld [vmem:[#allocation2 + $0xe8] sm:$0x3] }
 0x1ea   : > { %4094 = vmatpush2.bf16.msra.mxu1 %v9479_v24  ;;  %v11329_v41 = vpop.f32.mrf.mxu1  ;;  %v3876_v24 = vpack.c.bf16 %v3820_v8, %v3814_v7  ;;  %v3842_v8 = vrot.slane %v3768_v0, 2  ;;  %v9503_v0 = vld [vmem:[%s13109_s7 + $0x70] ss:$8 sps:$4 sm:$0xff]  }
 0x1eb   : > { %4095 = vmatprep.subr.bf16.mxu1 %v9484_v42  ;;  %v3824_v42 = vrot.slane %v3756_v25, 2  ;;  %v3843_v25 = vrot.slane %v3770_v2, 2 }
 0x1ee   : > { %4096 = vmatpush2.bf16.msra.mxu1 %v9482_v43  ;;  %v3879_v43 = vpack.c.bf16 %v3835_v28, %v3829_v9  ;;  %v3852_v28 = vrot.slane %v3775_v13, 2 }
 0x1ef   : > { %4097 = vmatprep.subr.bf16.mxu1 %v9487_v44  ;;  %v3825_v44 = vrot.slane %v3758_v27, 2 }
 0x1f1   : > { %v3826_v63 = vsel %vm1526_vm1, %v3824_v42, %v3825_v44  ;;  %v3774_v44 = vld [vmem:[#allocation2 + $0x30] sm:$0x3] }
 0x1f2   : > { %4098 = vmatpush2.bf16.msra.mxu1 %v9485_v45  ;;  %v3830_v45 = vrot.slane %v3760_v29, 2 }
 0x1f3   : > { %4099 = vmatprep.subr.bf16.mxu1 %v9490_v15  ;;  %v3831_v15 = vrot.slane %v3762_v58, 2  ;;  %v3858_v58 = vrot.slane %v3779_v14, 2  ;;  %v9509_v14 = vld [vmem:[%s13109_s7 + $0x60] ss:$8 sps:$4 sm:$0xff]  }
 0x1f5   : > { %v3832_v55 = vsel %vm1526_vm1, %v3830_v45, %v3831_v15  ;;  %v3776_v45 = vld [vmem:[#allocation2 + $0x28] sm:$0xfc]  ;;  %v3778_v15 = vld [vmem:[#allocation2 + $0xb8] sm:$0x3] }
 0x1f6   : > { %4100 = vmatpush2.bf16.msra.mxu1 %v9488_v47  ;;  %v3878_v19 = vpack.c.bf16 %v3832_v55, %v3826_v63 }
 0x1f7   : > { %4101 = vmatprep.subr.bf16.mxu1 %v9493_v49  ;;  %v3839_v49 = vrot.slane %v3765_v30, 2 }
 0x1fa   : > { %4102 = vmatpush2.bf16.msra.mxu1 %v9491_v12  ;;  %v3840_v12 = vrot.slane %v3767_v32, 2 }
 0x1fb   : > { %4103 = vmatprep.subr.bf16.mxu1 %v9496_v50  ;;  %v3845_v50 = vrot.slane %v3769_v35, 2  ;;  %v3844_v35 = vsel %vm1526_vm1, %v3842_v8, %v3843_v25  ;;  %v9512_v8 = vld [vmem:[%s13109_s7 + $0x160] ss:$8 sps:$4 sm:$0xff]   ;;  %v9514_v25 = vld [vmem:[%s13109_s7 + $0x164] ss:$8 sps:$4 sm:$0xff]  }
 0x1fe   : > { %4104 = vmatpush2.bf16.msra.mxu1 %v9494_v4  ;;  %v3846_v4 = vrot.slane %v3771_v40, 2  ;;  %v3772_v40 = vld [vmem:[#allocation2 + $0x58] sm:$0xfc] }
 0x1ff   : > { %4105 = vmatprep.subr.bf16.mxu1 %v9499_v10 }
 0x200   : > { %v3847_v37 = vsel %vm1526_vm1, %v3845_v50, %v3846_v4  ;;  %v3849_v50 = vrot.slane %v3774_v44, 2  ;;  %v3854_v4 = vrot.slane %v3776_v45, 2  ;;  %v9535_v44 = vld [vmem:[%s13109_s7 + $0x24] ss:$8 sps:$4 sm:$0xff]   ;;  %v9530_v45 = vld [vmem:[%s13109_s7 + $0x130] ss:$8 sps:$4 sm:$0xff]  }
 0x202   : > { %4106 = vmatpush2.bf16.msra.mxu1 %v9497_v56  ;;  %v3764_v56 = vld [vmem:[#allocation2 + $0xc0] sm:$0xfc] }
 0x203   : > { %4107 = vmatprep.subr.bf16.mxu1 %v9502_v62  ;;  %v3841_v62 = vsel %vm1526_vm1, %v3839_v49, %v3840_v12  ;;  %v3848_v49 = vrot.slane %v3772_v40, 2  ;;  %v9524_v40 = vld [vmem:[%s13109_s7 + $0x140] ss:$8 sps:$4 sm:$0xff]  }
 0x204   : > { %v3881_v22 = vpack.c.bf16 %v3847_v37, %v3841_v62 }
 0x206   : > { %4108 = vmatpush2.bf16.msra.mxu1 %v9500_v20  ;;  %v3836_v20 = vrot.slane %v3764_v56, 2 }
 0x208   : > { %v3838_v32 = vsel %vm1526_vm1, %v3836_v20, %v3837_v23  ;;  %v9511_v20 = vld [vmem:[%s13109_s7 + $0x64] ss:$8 sps:$4 sm:$0xff]  }
 0x209   : > { %v1826_v47 = vpop.f32.mrf.mxu1  ;;  %4110 = vmatmul.mubr.bf16.vlgmr.msra.gmra.mxu1 %v3876_v24 }
 0x20a   : > { %v11332_v10 = vadd.f32 %v1826_v47, %v11200_v48  ;;  %4119 = vmatprep.mubr.bf16.mxu1 %v3879_v43  ;;  %v3773_v48 = vld [vmem:[#allocation2 + $0x78] sm:$0xfc] }
 0x20b   : > { %v1828_v52 = vpop.f32.mrf.mxu1  ;;  %v3851_v9 = vrot.slane %v3773_v48, 2 }
 0x20c   : > { %v11335_v54 = vadd.f32 %v1828_v52, %v11204_v53  ;;  %v3777_v53 = vld [vmem:[#allocation2] sm:$0xfc]  ;;  %v3855_v52 = vrot.slane %v3778_v15, 2 }
 0x20d   : > { %v1830_v61 = vpop.f32.mrf.mxu1  ;;  %v3857_v29 = vrot.slane %v3777_v53, 2  ;;  %v3853_v42 = vsel %vm1526_vm1, %v3851_v9, %v3852_v28  ;;  %v9508_v53 = vld [vmem:[%s13109_s7 + $0x174] ss:$8 sps:$4 sm:$0xff]   ;;  %v11413_v9 = vpop.f32.mrf.mxu0  ;;  %v9518_v28 = vld [vmem:[%s13109_s7 + $0x150] ss:$8 sps:$4 sm:$0xff]  }
 0x20e   : > { %v11342_v5 = vadd.f32 %v1830_v61, %v11206_v11  ;;  %v3856_v61 = vsel %vm1526_vm1, %v3854_v4, %v3855_v52  ;;  %4716 = vmatprep.subr.bf16.mxu0 %v9508_v53  ;;  %v9539_v52 = vld [vmem:[%s13109_s7 + $0x10] ss:$8 sps:$4 sm:$0xff]   ;;  %v9556_v53 = vld [vmem:[%s13109_s7 + $0x1f4] ss:$8 sps:$4 sm:$0xff]  }
 0x20f   : > { %v11344_v16 = vpop.f32.mrf.mxu1  ;;  %v3859_v43 = vsel %vm1526_vm1, %v3857_v29, %v3858_v58  ;;  %v9523_v29 = vld [vmem:[%s13109_s7 + $0x44] ss:$8 sps:$4 sm:$0xff]   ;;  %v11424_v58 = vpop.f32.mrf.mxu0 }
 0x210   : > { %v3883_v12 = vpack.c.bf16 %v3859_v43, %v3853_v42  ;;  %v9527_v42 = vld [vmem:[%s13109_s7 + $0x30] ss:$8 sps:$4 sm:$0xff]   ;;  %v9532_v43 = vld [vmem:[%s13109_s7 + $0x134] ss:$8 sps:$4 sm:$0xff]  }
 0x211   : > { %v1836_v27 = vpop.f32.mrf.mxu1  ;;  %4120 = vmatmul.mubr.bf16.gmra.mxu1 %v3878_v19 }
 0x212   : > { %v11347_v11 = vadd.f32 %v1836_v27, %v11221_v57  ;;  %4129 = vmatprep.mubr.bf16.mxu1 %v3881_v22  ;;  %v9517_v27 = vld [vmem:[%s13109_s7 + $0x54] ss:$8 sps:$4 sm:$0xff]  }
 0x213   : > { %v1838_v30 = vpop.f32.mrf.mxu1 }
 0x214   : > { %v11350_v7 = vadd.f32 %v1838_v30, %v11230_v33  ;;  %v3880_v33 = vpack.c.bf16 %v3844_v35, %v3838_v32  ;;  %v9521_v30 = vld [vmem:[%s13109_s7 + $0x40] ss:$8 sps:$4 sm:$0xff]   ;;  %v9526_v32 = vld [vmem:[%s13109_s7 + $0x144] ss:$8 sps:$4 sm:$0xff]   ;;  %v9529_v35 = vld [vmem:[%s13109_s7 + $0x34] ss:$8 sps:$4 sm:$0xff]  }
 0x215   : > { %v1840_v24 = vpop.f32.mrf.mxu1 }
 0x216   : > { %v11357_v57 = vadd.f32 %v1840_v24, %v11232_v46  ;;  %v3850_v46 = vsel %vm1526_vm1, %v3848_v49, %v3849_v50  ;;  %v11438_v24 = vpop.f32.mrf.mxu0  ;;  %v9538_v49 = vld [vmem:[%s13109_s7 + $0x124] ss:$8 sps:$4 sm:$0xff]   ;;  %v9536_v50 = vld [vmem:[%s13109_s7 + $0x120] ss:$8 sps:$4 sm:$0xff]  }
 0x217   : > { %v11359_v47 = vpop.f32.mrf.mxu1 }
 0x218   : > { %v11452_v15 = vpop.f32.mrf.mxu0 }
 0x219   : > { %v1846_v63 = vpop.f32.mrf.mxu1  ;;  %4130 = vmatmul.mubr.bf16.gmra.mxu1 %v3880_v33  ;;  %v9533_v33 = vld [vmem:[%s13109_s7 + $0x20] ss:$8 sps:$4 sm:$0xff]  }
 0x21a   : > { %v11362_v55 = vadd.f32 %v1846_v63, %v11244_v1  ;;  %4139 = vmatprep.mubr.bf16.mxu1 %v3883_v12  ;;  %v9505_v1 = vld [vmem:[%s13109_s7 + $0x74] ss:$8 sps:$4 sm:$0xff]   ;;  %v11466_v4 = vpop.f32.mrf.mxu0 }
 0x21b   : > { %v1848_v56 = vpop.f32.mrf.mxu1  ;;  %4949 = vmatprep.subr.bf16.mxu1 %v9505_v1  ;;  %v9541_v12 = vld [vmem:[%s13109_s7 + $0x14] ss:$8 sps:$4 sm:$0xff]  }
 0x21c   : > { %v11365_v60 = vadd.f32 %v1848_v56, %v11254_v38  ;;  %v3882_v38 = vpack.c.bf16 %v3856_v61, %v3850_v46  ;;  %4950 = vmatpush1.bf16.msra.mxu1 %v9503_v0  ;;  %v9544_v63 = vld [vmem:[%s13109_s7 + $0x114] ss:$8 sps:$4 sm:$0xff]   ;;  %v9547_v56 = vld [vmem:[%s13109_s7 + $0x4] ss:$8 sps:$4 sm:$0xff]   ;;  %v9542_v46 = vld [vmem:[%s13109_s7 + $0x110] ss:$8 sps:$4 sm:$0xff]   ;;  %v11480_v61 = vpop.f32.mrf.mxu0 }
 0x21d   : > { %v1850_v62 = vpop.f32.mrf.mxu1  ;;  %4951 = vmatprep.subr.bf16.mxu1 %v9511_v20  ;;  %v9550_v0 = vld [vmem:[%s13109_s7 + $0x104] ss:$8 sps:$4 sm:$0xff]   ;;  %v9553_v1 = vld [vmem:[%s13109_s7 + $0xf4] ss:$8 sps:$4 sm:$0xff]  }
 0x21e   : > { %v11370_v37 = vadd.f32 %v1850_v62, %v11257_v3  ;;  %v9506_v3 = vld [vmem:[%s13109_s7 + $0x170] ss:$8 sps:$4 sm:$0xff]   ;;  %v9545_v62 = vld [vmem:[%s13109_s7] ss:$8 sps:$4 sm:$0xff]  }
 0x21f   : > { %v11378_v2 = vpop.f32.mrf.mxu1  ;;  %4717 = vmatpush1.bf16.msra.mxu0 %v9506_v3  ;;  %v9551_v3 = vld [vmem:[%s13109_s7 + $0xf0] ss:$8 sps:$4 sm:$0xff]  }
 0x220   : > { %4952 = vmatpush1.bf16.msra.mxu1 %v9509_v14  ;;  %4718 = vmatprep.subr.bf16.mxu0 %v9514_v25  ;;  %v9559_v14 = vld [vmem:[%s13109_s7 + $0xe4] ss:$8 sps:$4 sm:$0xff]   ;;  %v9565_v25 = vld [vmem:[%s13109_s7 + $0xd4] ss:$8 sps:$4 sm:$0xff]  }
 0x221   : > { %v1856_v48 = vpop.f32.mrf.mxu1  ;;  %4140 = vmatmul.mubr.bf16.gmra.mxu1 %v3882_v38  ;;  %4953 = vmatprep.subr.bf16.mxu1 %v9517_v27  ;;  %v9548_v38 = vld [vmem:[%s13109_s7 + $0x100] ss:$8 sps:$4 sm:$0xff]  }
 0x222   : > { %v11381_v13 = vadd.f32 %v1856_v48, %v11268_v21  ;;  %v11494_v48 = vpop.f32.mrf.mxu0 }
 0x223   : > { %v1858_v19 = vpop.f32.mrf.mxu1  ;;  %4719 = vmatpush1.bf16.msra.mxu0 %v9512_v8  ;;  %v9562_v8 = vld [vmem:[%s13109_s7 + $0x1e4] ss:$8 sps:$4 sm:$0xff]  }
 0x224   : > { %v11396_v21 = vadd.f32 %v1858_v19, %v11276_v39  ;;  %v9515_v39 = vld [vmem:[%s13109_s7 + $0x50] ss:$8 sps:$4 sm:$0xff]   ;;  %v11508_v20 = vpop.f32.mrf.mxu0 }
 0x225   : > { %v1860_v22 = vpop.f32.mrf.mxu1  ;;  %4954 = vmatpush1.bf16.msra.mxu1 %v9515_v39  ;;  %v9554_v19 = vld [vmem:[%s13109_s7 + $0x1f0] ss:$8 sps:$4 sm:$0xff]   ;;  %v9560_v39 = vld [vmem:[%s13109_s7 + $0x1e0] ss:$8 sps:$4 sm:$0xff]  }
 0x226   : > { %v11399_v23 = vadd.f32 %v1860_v22, %v11278_v18  ;;  %v9520_v18 = vld [vmem:[%s13109_s7 + $0x154] ss:$8 sps:$4 sm:$0xff]   ;;  %4955 = vmatprep.subr.bf16.mxu1 %v9523_v29  ;;  %v9557_v22 = vld [vmem:[%s13109_s7 + $0xe0] ss:$8 sps:$4 sm:$0xff]   ;;  %v11522_v27 = vpop.f32.mrf.mxu0 }
 0x227   : > { %4720 = vmatprep.subr.bf16.mxu0 %v9520_v18  ;;  %v9563_v18 = vld [vmem:[%s13109_s7 + $0xd0] ss:$8 sps:$4 sm:$0xff]   ;;  %v11529_v29 = vpop.f32.mrf.mxu1 }
 0x228   : > { %4721 = vmatpush1.bf16.msra.mxu0 %v9518_v28  ;;  %v11527_v28 = vpop.f32.mrf.mxu0 }
 0x229   : > { %4956 = vmatpush1.bf16.msra.mxu1 %v9521_v30  ;;  %4722 = vmatprep.subr.bf16.mxu0 %v9526_v32 }
 0x22a   : > { %4957 = vmatprep.subr.bf16.mxu1 %v9529_v35  ;;  %v11533_v32 = vpop.f32.mrf.mxu0 }
 0x22c   : > { %4723 = vmatpush1.bf16.msra.mxu0 %v9524_v40  ;;  %v11537_v40 = vpop.f32.mrf.mxu0 }
 0x22d   : > { %4958 = vmatpush1.bf16.msra.mxu1 %v9527_v42  ;;  %4724 = vmatprep.subr.bf16.mxu0 %v9532_v43  ;;  %v9566_v42 = vld [vmem:[%s13109_s7 + $0x1d0] ss:$8 sps:$4 sm:$0xff]   ;;  %v9568_v43 = vld [vmem:[%s13109_s7 + $0x1d4] ss:$8 sps:$4 sm:$0xff]  }
 0x22e   : > { %4959 = vmatprep.subr.bf16.mxu1 %v9535_v44  ;;  %v9569_v44 = vld [vmem:[%s13109_s7 + $0xc0] ss:$8 sps:$4 sm:$0xff]  }
 0x230   : > { %4725 = vmatpush1.bf16.msra.mxu0 %v9530_v45  ;;  %v9571_v45 = vld [vmem:[%s13109_s7 + $0xc4] ss:$8 sps:$4 sm:$0xff]  }
 0x231   : > { %4960 = vmatpush1.bf16.msra.mxu1 %v9533_v33  ;;  %4726 = vmatprep.subr.bf16.mxu0 %v9538_v49  ;;  %v11553_v49 = vpop.f32.mrf.mxu0 }
 0x232   : > { %4961 = vmatprep.subr.bf16.mxu1 %v9541_v12  ;;  %v9572_v12 = vld [vmem:[%s13109_s7 + $0x1c0] ss:$8 sps:$4 sm:$0xff]  }
 0x234   : > { %4727 = vmatpush1.bf16.msra.mxu0 %v9536_v50  ;;  %v9574_v50 = vld [vmem:[%s13109_s7 + $0x1c4] ss:$8 sps:$4 sm:$0xff]  }
 0x235   : > { %4962 = vmatpush1.bf16.msra.mxu1 %v9539_v52  ;;  %4728 = vmatprep.subr.bf16.mxu0 %v9544_v63  ;;  %v9575_v52 = vld [vmem:[%s13109_s7 + $0xb0] ss:$8 sps:$4 sm:$0xff]   ;;  %v9577_v63 = vld [vmem:[%s13109_s7 + $0xb4] ss:$8 sps:$4 sm:$0xff]  }
 0x236   : > { %4963 = vmatprep.subr.bf16.mxu1 %v9547_v56 }
 0x238   : > { %4729 = vmatpush1.bf16.msra.mxu0 %v9542_v46  ;;  %v11569_v46 = vpop.f32.mrf.mxu0 }
 0x239   : > { %4964 = vmatpush1.bf16.msra.mxu1 %v9545_v62  ;;  %4730 = vmatprep.subr.bf16.mxu0 %v9550_v0  ;;  %v9578_v62 = vld [vmem:[%s13109_s7 + $0x1b0] ss:$8 sps:$4 sm:$0xff]   ;;  %v9580_v0 = vld [vmem:[%s13109_s7 + $0x1b4] ss:$8 sps:$4 sm:$0xff]  }
 0x23a   : > { %4965 = vmatprep.subr.bf16.mxu1 %v9553_v1  ;;  %v9581_v1 = vld [vmem:[%s13109_s7 + $0xa0] ss:$8 sps:$4 sm:$0xff]  }
 0x23c   : > { %4731 = vmatpush1.bf16.msra.mxu0 %v9548_v38  ;;  %v9583_v38 = vld [vmem:[%s13109_s7 + $0xa4] ss:$8 sps:$4 sm:$0xff]  }
 0x23d   : > { %4966 = vmatpush2.bf16.msra.mxu1 %v9551_v3  ;;  %4732 = vmatprep.subr.bf16.mxu0 %v9556_v53  ;;  %v11585_v53 = vpop.f32.mrf.mxu0 }
 0x23e   : > { %4967 = vmatprep.subr.bf16.mxu1 %v9559_v14  ;;  %v9584_v14 = vld [vmem:[%s13109_s7 + $0x1a0] ss:$8 sps:$4 sm:$0xff]  }
 0x240   : > { %4733 = vmatpush2.bf16.msra.mxu0 %v9554_v19  ;;  %v9586_v19 = vld [vmem:[%s13109_s7 + $0x1a4] ss:$8 sps:$4 sm:$0xff]  }
 0x241   : > { %4968 = vmatpush2.bf16.msra.mxu1 %v9557_v22  ;;  %4734 = vmatprep.subr.bf16.mxu0 %v9562_v8  ;;  %v9587_v22 = vld [vmem:[%s13109_s7 + $0x90] ss:$8 sps:$4 sm:$0xff]   ;;  %v9589_v8 = vld [vmem:[%s13109_s7 + $0x94] ss:$8 sps:$4 sm:$0xff]  }
 0x242   : > { %4969 = vmatprep.subr.bf16.mxu1 %v9565_v25 }
 0x244   : > { %4735 = vmatpush2.bf16.msra.mxu0 %v9560_v39  ;;  %v11601_v39 = vpop.f32.mrf.mxu0 }
 0x245   : > { %4970 = vmatpush2.bf16.msra.mxu1 %v9563_v18  ;;  %4736 = vmatprep.subr.bf16.mxu0 %v9568_v43  ;;  %v9590_v18 = vld [vmem:[%s13109_s7 + $0x190] ss:$8 sps:$4 sm:$0xff]   ;;  %v9593_v43 = vld [vmem:[%s13109_s7 + $0x80] ss:$8 sps:$4 sm:$0xff]  }
 0x246   : > { %4971 = vmatprep.subr.bf16.mxu1 %v9571_v45 }
 0x248   : > { %4737 = vmatpush2.bf16.msra.mxu0 %v9566_v42  ;;  %v9592_v42 = vld [vmem:[%s13109_s7 + $0x194] ss:$8 sps:$4 sm:$0xff]  }
 0x249   : > { %v11531_v30 = vpop.f32.mrf.mxu1  ;;  %4972 = vmatpush2.bf16.msra.mxu1 %v9569_v44  ;;  %4738 = vmatprep.subr.bf16.mxu0 %v9574_v50  ;;  %v9595_v44 = vld [vmem:[%s13109_s7 + $0x84] ss:$8 sps:$4 sm:$0xff]   ;;  %v9596_v50 = vld [vmem:[%s13109_s7 + $0x180] ss:$8 sps:$4 sm:$0xff]  }
 0x24a   : > { %4973 = vmatprep.subr.bf16.mxu1 %v9577_v63  ;;  %v9601_v63 = vld [vmem:[%s13109_s7 + $0x374] ss:$8 sps:$4 sm:$0xff]  }
 0x24b   : > { %v11535_v35 = vpop.f32.mrf.mxu1 }
 0x24c   : > { %4739 = vmatpush2.bf16.msra.mxu0 %v9572_v12  ;;  %v11617_v12 = vpop.f32.mrf.mxu0 }
 0x24d   : > { %v11551_v33 = vpop.f32.mrf.mxu1  ;;  %4974 = vmatpush2.bf16.msra.mxu1 %v9575_v52  ;;  %4740 = vmatprep.subr.bf16.mxu0 %v9580_v0  ;;  %v9598_v52 = vld [vmem:[%s13109_s7 + $0x184] ss:$8 sps:$4 sm:$0xff]  }
 0x24e   : > { %4975 = vmatprep.subr.bf16.mxu1 %v9583_v38 }
 0x24f   : > { %v11567_v56 = vpop.f32.mrf.mxu1 }
 0x250   : > { %4741 = vmatpush2.bf16.msra.mxu0 %v9578_v62  ;;  %v11628_v62 = vpop.f32.mrf.mxu0 }
 0x251   : > { %v11583_v3 = vpop.f32.mrf.mxu1  ;;  %4976 = vmatpush2.bf16.msra.mxu1 %v9581_v1  ;;  %4742 = vmatprep.subr.bf16.mxu0 %v9586_v19  ;;  %v9604_v1 = vld [vmem:[%s13109_s7 + $0x274] ss:$8 sps:$4 sm:$0xff]  }
 0x252   : > { %4977 = vmatprep.subr.bf16.mxu1 %v9589_v8  ;;  %v11635_v38 = vpop.f32.mrf.mxu0 }
 0x253   : > { %v11599_v25 = vpop.f32.mrf.mxu1 }
 0x254   : > { %4743 = vmatpush2.bf16.msra.mxu0 %v9584_v14  ;;  %v11639_v19 = vpop.f32.mrf.mxu0 }
 0x255   : > { %4978 = vmatpush2.bf16.msra.mxu1 %v9587_v22  ;;  %4744 = vmatprep.subr.bf16.mxu0 %v9592_v42  ;;  %v11615_v45 = vpop.f32.mrf.mxu1 }
 0x256   : > { %4979 = vmatprep.subr.bf16.mxu1 %v9595_v44  ;;  %v11643_v8 = vpop.f32.mrf.mxu0 }
 0x257   : > { %v11630_v0 = vpop.f32.mrf.mxu1  ;;  %13117 = vst [vmem:[#allocation7_spill] sm:$0xff] %v11643_v8 }
 0x258   : > { %4745 = vmatpush2.bf16.msra.mxu0 %v9590_v18  ;;  %v11647_v42 = vpop.f32.mrf.mxu0 }
 0x259   : > { %4980 = vmatpush2.bf16.msra.mxu1 %v9593_v43  ;;  %4746 = vmatprep.subr.bf16.mxu0 %v9598_v52  ;;  %v11637_v14 = vpop.f32.mrf.mxu1  ;;  %13119 = vst [vmem:[#allocation9_spill] sm:$0xff] %v11647_v42 }
 0x25a   : > { %5657 = vmatprep.subr.bf16.mxu1 %v9601_v63  ;;  %13115 = vst [vmem:[#allocation5_spill] sm:$0xff] %v11637_v14  ;;  %v11651_v44 = vpop.f32.mrf.mxu0 }
 0x25b   : > { %v11641_v22 = vpop.f32.mrf.mxu1  ;;  %13121 = vst [vmem:[#allocation11_spill] sm:$0xff] %v11651_v44 }
 0x25c   : > { %4747 = vmatpush2.bf16.msra.mxu0 %v9596_v50  ;;  %13116 = vst [vmem:[#allocation6_spill] sm:$0xff] %v11641_v22  ;;  %v11655_v52 = vpop.f32.mrf.mxu0 }
 0x25d   : > { %5351 = vmatprep.subr.bf16.mxu0 %v9604_v1  ;;  %v11645_v18 = vpop.f32.mrf.mxu1  ;;  %13123 = vst [vmem:[#allocation13_spill] sm:$0xff] %v11655_v52 }
 0x25e   : > { %13118 = vst [vmem:[#allocation8_spill] sm:$0xff] %v11645_v18  ;;  %v11659_v1 = vpop.f32.mrf.mxu0 }
 0x25f   : > { %v11649_v43 = vpop.f32.mrf.mxu1  ;;  %13125 = vst [vmem:[#allocation15_spill] sm:$0xff] %v11659_v1 }
 0x260   : > { %13120 = vst [vmem:[#allocation10_spill] sm:$0xff] %v11649_v43  ;;  %v11663_v22 = vpop.f32.mrf.mxu0 }
 0x261   : > { %v11653_v50 = vpop.f32.mrf.mxu1  ;;  %13127 = vst [vmem:[#allocation17_spill] sm:$0xff] %v11663_v22 }
 0x262   : > { %13122 = vst [vmem:[#allocation12_spill] sm:$0xff] %v11653_v50  ;;  %v11667_v42 = vpop.f32.mrf.mxu0 }
 0x263   : > { %v11657_v63 = vpop.f32.mrf.mxu1  ;;  %13129 = vst [vmem:[#allocation19_spill] sm:$0xff] %v11667_v42 }
 0x264   : > { %13124 = vst [vmem:[#allocation14_spill] sm:$0xff] %v11657_v63  ;;  %v11671_v44 = vpop.f32.mrf.mxu0 }
 0x265   : > { %v11661_v36 = vpop.f32.mrf.mxu1  ;;  %13131 = vst [vmem:[#allocation21_spill] sm:$0xff] %v11671_v44 }
 0x266   : > { %13126 = vst [vmem:[#allocation16_spill] sm:$0xff] %v11661_v36  ;;  %v11675_v52 = vpop.f32.mrf.mxu0 }
 0x267   : > { %v11665_v8 = vpop.f32.mrf.mxu1  ;;  %13133 = vst [vmem:[#allocation23_spill] sm:$0xff] %v11675_v52 }
 0x268   : > { %13128 = vst [vmem:[#allocation18_spill] sm:$0xff] %v11665_v8  ;;  %v11679_v1 = vpop.f32.mrf.mxu0 }
 0x269   : > { %13135 = vst [vmem:[#allocation25_spill] sm:$0xff] %v11679_v1 }
 0x26a   : > { %v11683_v22 = vpop.f32.mrf.mxu0 }
 0x26b   : > { %13137 = vst [vmem:[#allocation27_spill] sm:$0xff] %v11683_v22 }
 0x26c   : > { %v11687_v14 = vpop.f32.mrf.mxu0 }
 0x26d   : > { %13139 = vst [vmem:[#allocation29_spill] sm:$0xff] %v11687_v14 }
 0x289   : > { %v3275_v18 = vpop.f32.mrf.mxu1 }
 0x28b   : > { %v11669_v43 = vpop.f32.mrf.mxu1 }
 0x28c   : > { %13130 = vst [vmem:[#allocation20_spill] sm:$0xff] %v11669_v43  ;;  %v11691_v43 = vpop.f32.mrf.mxu0 }
 0x28d   : > { %v11673_v50 = vpop.f32.mrf.mxu1  ;;  %13141 = vst [vmem:[#allocation31_spill] sm:$0xff] %v11691_v43  ;;  %v1430_v43 = vadd.f32 %v11202_v51, %v11211_v17  ;;  %v2172_v17 = vadd.f32 %v11438_v24, %v11335_v54  ;;  %v2176_v54 = vadd.f32 %v11494_v48, %v11350_v7  ;;  %v2181_v7 = vadd.f32 %v11537_v40, %v11370_v37 }
 0x28e   : > { %13132 = vst [vmem:[#allocation22_spill] sm:$0xff] %v11673_v50  ;;  %v11693_v44 = vpop.f32.mrf.mxu0  ;;  %v2184_v37 = vadd.f32 %v11585_v53, %v11396_v21  ;;  %v13150_v21 = vld [vmem:[#allocation5_spill] sm:$0xff] }
 0x28f   : > { %v11677_v63 = vpop.f32.mrf.mxu1 }
 0x290   : > { %13134 = vst [vmem:[#allocation24_spill] sm:$0xff] %v11677_v63  ;;  %v11697_v52 = vpop.f32.mrf.mxu0 }
 0x291   : > { %v11681_v36 = vpop.f32.mrf.mxu1  ;;  %13143 = vst [vmem:[#allocation33_spill] sm:$0xff] %v11697_v52 }
 0x292   : > { %13136 = vst [vmem:[#allocation26_spill] sm:$0xff] %v11681_v36  ;;  %v11701_v1 = vpop.f32.mrf.mxu0 }
 0x293   : > { %v11685_v8 = vpop.f32.mrf.mxu1  ;;  %13145 = vst [vmem:[#allocation35_spill] sm:$0xff] %v11701_v1 }
 0x294   : > { %13138 = vst [vmem:[#allocation28_spill] sm:$0xff] %v11685_v8  ;;  %v11705_v22 = vpop.f32.mrf.mxu0 }
 0x295   : > { %v11689_v42 = vpop.f32.mrf.mxu1 }
 0x296   : > { %13140 = vst [vmem:[#allocation30_spill] sm:$0xff] %v11689_v42  ;;  %v11709_v14 = vpop.f32.mrf.mxu0 }
 0x297   : > { %v11695_v50 = vpop.f32.mrf.mxu1  ;;  %13148 = vst [vmem:[#allocation38_spill] sm:$0xff] %v11709_v14 }
 0x298   : > { %13142 = vst [vmem:[#allocation32_spill] sm:$0xff] %v11695_v50  ;;  %v1440_v50 = vadd.f32 %v11225_v31, %v11237_v59  ;;  %v11717_v52 = vpop.f32.mrf.mxu0  ;;  %v1460_v59 = vadd.f32 %v11413_v9, %v11329_v41  ;;  %v2179_v9 = vadd.f32 %v11527_v28, %v11362_v55 }
 0x299   : > { %v11699_v63 = vpop.f32.mrf.mxu1 }
 0x29a   : > { %13144 = vst [vmem:[#allocation34_spill] sm:$0xff] %v11699_v63  ;;  %v1868_v63 = vadd.f32 %v11344_v16, %v1430_v43  ;;  %v11731_v31 = vpop.f32.mrf.mxu0  ;;  %v2597_v40 = vadd.f32 %v13150_v21, %v2179_v9 }
 0x29b   : > { %v11703_v36 = vpop.f32.mrf.mxu1 }
 0x29c   : > { %13146 = vst [vmem:[#allocation36_spill] sm:$0xff] %v11703_v36  ;;  %v1450_v36 = vadd.f32 %v11249_v6, %v11262_v26  ;;  %v2173_v6 = vadd.f32 %v11452_v15, %v11342_v5  ;;  %v2174_v26 = vadd.f32 %v11466_v4, %v1868_v63  ;;  %v11759_v15 = vpop.f32.mrf.mxu0  ;;  %v4166_v4 = vld [vmem:[%s13108_s6] sm:$0x3] }
 0x29d   : > { %v11707_v8 = vpop.f32.mrf.mxu1 }
 0x29e   : > { %13147 = vst [vmem:[#allocation37_spill] sm:$0xff] %v11707_v8  ;;  %v1872_v8 = vadd.f32 %v11359_v47, %v1440_v50  ;;  %v1876_v14 = vadd.f32 %v11378_v2, %v1450_v36  ;;  %v2590_v36 = vadd.f32 %v11535_v35, %v2172_v17  ;;  %v2177_v47 = vadd.f32 %v11508_v20, %v11357_v57  ;;  %v13160_v50 = vld [vmem:[#allocation13_spill] sm:$0xff]  ;;  %v13161_v17 = vld [vmem:[#allocation12_spill] sm:$0xff] }
 0x29f   : > { %v11711_v42 = vpop.f32.mrf.mxu1  ;;  %v1880_v2 = vadd.f32 %v11529_v29, %v1460_v59  ;;  %v2591_v5 = vadd.f32 %v11551_v33, %v2173_v6  ;;  %v13151_v33 = vld [vmem:[#allocation20_spill] sm:$0xff]  ;;  %v13162_v6 = vld [vmem:[#allocation14_spill] sm:$0xff] }
 0x2a0   : > { %13149 = vst [vmem:[#allocation39_spill] sm:$0xff] %v11711_v42  ;;  %v2171_v42 = vadd.f32 %v11424_v58, %v11332_v10  ;;  %v2175_v10 = vadd.f32 %v11480_v61, %v11347_v11  ;;  %v2178_v41 = vadd.f32 %v11522_v27, %v1872_v8  ;;  %v2180_v11 = vadd.f32 %v11533_v32, %v11365_v60  ;;  %v13158_v8 = vld [vmem:[#allocation10_spill] sm:$0xff] }
 0x2a1   : > { %v11720_v1 = vpop.f32.mrf.mxu1  ;;  %v2592_v58 = vadd.f32 %v11567_v56, %v2174_v26  ;;  %v2182_v24 = vadd.f32 %v11553_v49, %v1876_v14  ;;  %v2594_v61 = vadd.f32 %v11599_v25, %v2176_v54  ;;  %v2183_v60 = vadd.f32 %v11569_v46, %v11381_v13  ;;  %v13152_v56 = vld [vmem:[#allocation7_spill] sm:$0xff]  ;;  %v13154_v25 = vld [vmem:[#allocation6_spill] sm:$0xff] }
 0x2a2   : > { %v2589_v51 = vadd.f32 %v11531_v30, %v2171_v42  ;;  %v2593_v55 = vadd.f32 %v11583_v3, %v2175_v10  ;;  %v2595_v20 = vadd.f32 %v11615_v45, %v2177_v47  ;;  %v2185_v27 = vadd.f32 %v11601_v39, %v11399_v23  ;;  %v11785_v3 = vpop.f32.mrf.mxu0  ;;  %v13153_v23 = vld [vmem:[#allocation4_spill] sm:$0xff]  ;;  %v13159_v42 = vld [vmem:[#allocation22_spill] sm:$0xff]  ;;  %v13164_v54 = vld [vmem:[#allocation15_spill] sm:$0xff] }
 0x2a3   : > { %v11740_v16 = vpop.f32.mrf.mxu1  ;;  %v3008_v29 = vadd.f32 %v11635_v38, %v2590_v36  ;;  %v2596_v30 = vadd.f32 %v11630_v0, %v2178_v41  ;;  %v2186_v32 = vadd.f32 %v11617_v12, %v1880_v2  ;;  %v3009_v35 = vadd.f32 %v11639_v19, %v2591_v5  ;;  %v13155_v45 = vld [vmem:[#allocation8_spill] sm:$0xff]  ;;  %v13157_v38 = vld [vmem:[#allocation11_spill] sm:$0xff] }
 0x2a4   : > { %v3007_v57 = vadd.f32 %v11628_v62, %v2589_v51  ;;  %v11780_v13 = vrot.slane %v4166_v4, %v10367_v34  ;;  %v3010_v46 = vadd.f32 %v13152_v56, %v2592_v58  ;;  %v11788_v53 = vrot.slane %v4166_v4, %v13153_v23  ;;  %v13156_v62 = vld [vmem:[#allocation9_spill] sm:$0xff]  ;;  %v13163_v10 = vld [vmem:[#allocation16_spill] sm:$0xff]  ;;  %v11805_v9 = vpop.f32.mrf.mxu0  ;;  %v13168_v4 = vld [vmem:[#allocation18_spill] sm:$0xff] }
 0x2a5   : > { %v11770_v48 = vpop.f32.mrf.mxu1  ;;  %v3315_v49 = vadd.f32 %v13151_v33, %v3008_v29  ;;  %v2598_v39 = vadd.f32 %v13154_v25, %v2180_v11  ;;  %v2599_v12 = vadd.f32 %v13155_v45, %v2181_v7  ;;  %v3011_v0 = vadd.f32 %v13156_v62, %v2593_v55  ;;  %v13165_v2 = vld [vmem:[#allocation24_spill] sm:$0xff]  ;;  %v13166_v11 = vld [vmem:[#allocation17_spill] sm:$0xff]  ;;  %v13169_v55 = vld [vmem:[#allocation26_spill] sm:$0xff] }
 0x2a6   : > { %v3314_v28 = vadd.f32 %v3275_v18, %v3007_v57  ;;  %v3012_v14 = vadd.f32 %v13157_v38, %v2594_v61  ;;  %v2600_v18 = vadd.f32 %v13158_v8, %v2182_v24  ;;  %v3316_v43 = vadd.f32 %v13159_v42, %v3009_v35  ;;  %v13167_v24 = vld [vmem:[#allocation33_spill] sm:$0xff]  ;;  %v13172_v29 = vld [vmem:[#allocation23_spill] sm:$0xff]  ;;  %v4388_v38 = vld [vmem:[#allocation3 + $0x130] sm:$0xfe] }
 0x2a7   : > { %v11794_v19 = vpop.f32.mrf.mxu1  ;;  %v3013_v63 = vadd.f32 %v13160_v50, %v2595_v20  ;;  %v2601_v59 = vadd.f32 %v13161_v17, %v2183_v60  ;;  %v2602_v26 = vadd.f32 %v13162_v6, %v2184_v37  ;;  %v2603_v36 = vadd.f32 %v13163_v10, %v2185_v27  ;;  %v13170_v60 = vld [vmem:[#allocation19_spill] sm:$0xff]  ;;  %v13171_v20 = vld [vmem:[#allocation21_spill] sm:$0xff] }
 0x2a8   : > { %v3732_v51 = vadd.f32 %v11693_v44, %v3314_v28  ;;  %v3014_v47 = vadd.f32 %v13164_v54, %v2596_v30  ;;  %v3317_v5 = vadd.f32 %v13165_v2, %v3010_v46  ;;  %v3015_v58 = vadd.f32 %v13166_v11, %v2597_v40  ;;  %v13173_v33 = vld [vmem:[#allocation35_spill] sm:$0xff]  ;;  %v13174_v40 = vld [vmem:[#allocation28_spill] sm:$0xff]  ;;  %v13175_v25 = vld [vmem:[#allocation25_spill] sm:$0xff] }
 0x2a9   : > { %v3733_v57 = vadd.f32 %v13167_v24, %v3315_v49  ;;  %v2604_v44 = vadd.f32 %v13168_v4, %v2186_v32  ;;  %v3318_v61 = vadd.f32 %v13169_v55, %v3011_v0  ;;  %v3016_v37 = vadd.f32 %v13170_v60, %v2598_v39  ;;  %v13176_v45 = vld [vmem:[#allocation27_spill] sm:$0xff]  ;;  %v13177_v62 = vld [vmem:[#allocation29_spill] sm:$0xff]  ;;  %v13181_v54 = vld [vmem:[#allocation38_spill] sm:$0xff] }
 0x2aa   : > { %v3017_v27 = vadd.f32 %v13171_v20, %v2599_v12  ;;  %v3018_v30 = vadd.f32 %v13172_v29, %v2600_v18  ;;  %v3734_v56 = vadd.f32 %v13173_v33, %v3316_v43  ;;  %v3319_v46 = vadd.f32 %v13174_v40, %v3012_v14  ;;  %v11822_v12 = vpop.f32.mrf.mxu0  ;;  %v4390_v43 = vld [vmem:[#allocation3 + $0x90] sm:$0x1] }
 0x2ab   : > { %v3019_v49 = vadd.f32 %v13175_v25, %v2601_v59  ;;  %v3020_v32 = vadd.f32 %v13176_v45, %v2602_v26  ;;  %v11820_v0 = vadd.f32 %v13177_v62, %v2603_v36  ;;  %v3735_v50 = vadd.f32 %v11705_v22, %v3317_v5  ;;  %v13178_v14 = vld [vmem:[#allocation30_spill] sm:$0xff]  ;;  %v13179_v59 = vld [vmem:[#allocation32_spill] sm:$0xff]  ;;  %v13180_v26 = vld [vmem:[#allocation31_spill] sm:$0xff] }
 0x2ac   : > { %v3320_v17 = vadd.f32 %v13178_v14, %v3013_v63  ;;  %v3321_v6 = vadd.f32 %v13179_v59, %v3014_v47  ;;  %v11829_v10 = vadd.f32 %v13180_v26, %v2604_v44  ;;  %v3737_v22 = vadd.f32 %v11717_v52, %v3319_v46  ;;  %v3719_v60 = vpop.f32.mrf.mxu0  ;;  %v13183_v45 = vld [vmem:[#allocation36_spill] sm:$0xff] }
 0x2ad   : > { %v4454_v5 = vrot.slane %v4388_v38, 1  ;;  %v4455_v55 = vrot.slane %v4390_v43, 1  ;;  %v3323_v62 = vadd.f32 %v13183_v45, %v3016_v37  ;;  %v3327_v14 = vadd.f32 %v11740_v16, %v3020_v32 }
 0x2ae   : > { %v3739_v33 = vadd.f32 %v11759_v15, %v3321_v6 }
 0x2c9   : > { %v4111_v41 = vpop.f32.mrf.mxu1 }
 0x2ca   : > { %v4150_v7 = vadd.f32 %v4111_v41, %v3732_v51  ;;  %v4387_v51 = vld [vmem:[#allocation3 + $0xa8] sm:$0xfe]  ;;  %v3736_v41 = vadd.f32 %v13181_v54, %v3318_v61 }
 0x2cb   : > { %v4113_v28 = vpop.f32.mrf.mxu1  ;;  %v4451_v63 = vrot.slane %v4387_v51, 1 }
 0x2cc   : > { %v4178_v35 = vadd.f32 %v11780_v13, %v4150_v7  ;;  %v4151_v21 = vadd.f32 %v4113_v28, %v3733_v57  ;;  %v4389_v57 = vld [vmem:[#allocation3 + $0x68] sm:$0x1]  ;;  %v13182_v28 = vld [vmem:[#allocation34_spill] sm:$0xff] }
 0x2cd   : > { %v4115_v39 = vpop.f32.mrf.mxu1  ;;  %v3322_v29 = vadd.f32 %v13182_v28, %v3015_v58  ;;  %v3326_v58 = vadd.f32 %v11720_v1, %v3019_v49 }
 0x2ce   : > { %v4194_v8 = vmax.f32 %v4178_v35, 0.0  ;;  %v4179_v18 = vadd.f32 %v11788_v53, %v4151_v21  ;;  %v4152_v42 = vadd.f32 %v4115_v39, %v3734_v56  ;;  %v3738_v21 = vadd.f32 %v11731_v31, %v3320_v17  ;;  %v13184_v39 = vld [vmem:[#allocation37_spill] sm:$0xff]  ;;  %v3723_v31 = vpop.f32.mrf.mxu0 }
 0x2cf   : > { %v4117_v36 = vpop.f32.mrf.mxu1  ;;  %v4452_v56 = vrot.slane %v4389_v57, 1  ;;  %v3324_v38 = vadd.f32 %v13184_v39, %v3017_v27  ;;  %v3740_v37 = vadd.f32 %v11785_v3, %v3322_v29  ;;  %v11847_v27 = vsel %vm890_vm0, %v4454_v5, %v4455_v55  ;;  %v9936_v5 = vld [vmem:[#allocation2 + $0xb0] sm:$0xff]  ;;  %v9607_v39 = vld [vmem:[%s13109_s7 + $0x364] ss:$8 sps:$4 sm:$0xff]  }
 0x2d0   : > { %v4266_v2 = vrot.slane %v4194_v8, 7  ;;  %v4195_v11 = vmax.f32 %v4179_v18, 0.0  ;;  %v4180_v7 = vadd.f32 %v11780_v13, %v4152_v42  ;;  %v4153_v24 = vadd.f32 %v4117_v36, %v3735_v50  ;;  %v13185_v8 = vld [vmem:[#allocation39_spill] sm:$0xff] }
 0x2d1   : > { %v4121_v4 = vpop.f32.mrf.mxu1  ;;  %v3325_v18 = vadd.f32 %v13185_v8, %v3018_v30  ;;  %v11850_v30 = vsel %vm890_vm0, %v4451_v63, %v4452_v56  ;;  %v3741_v36 = vadd.f32 %v11805_v9, %v3323_v62  ;;  %v3742_v16 = vadd.f32 %v11822_v12, %v3324_v38 }
 0x2d2   : > { %4299 = vst [vmem:[#allocation3 + $0xa0] sm:$0xfe] %v4266_v2  ;;  %4301 = vst [vmem:[#allocation3 + $0xe8] sm:$0x1] %v4266_v2  ;;  %v4267_v47 = vrot.slane %v4195_v11, 7  ;;  %v4196_v44 = vmax.f32 %v4180_v7, 0.0  ;;  %v4181_v20 = vadd.f32 %v11788_v53, %v4153_v24  ;;  %v4154_v61 = vadd.f32 %v4121_v4, %v3736_v41  ;;  %v3725_v2 = vpop.f32.mrf.mxu0 }
 0x2d3   : > { %v4123_v35 = vpop.f32.mrf.mxu1  ;;  %v3743_v32 = vadd.f32 %v3719_v60, %v3325_v18  ;;  %v11857_v54 = vadd.f32 %v3723_v31, %v3326_v58  ;;  %v11862_v9 = vadd.f32 %v11770_v48, %v11820_v0  ;;  %v9599_v48 = vld [vmem:[%s13109_s7 + $0x370] ss:$8 sps:$4 sm:$0xff]   ;;  %v3329_v38 = vadd.f32 %v11794_v19, %v11829_v10 }
 0x2d4   : > { %4300 = vst [vmem:[#allocation3 + $0xd8] sm:$0xfe] %v4267_v47  ;;  %4302 = vst [vmem:[#allocation3 + $0xb0] sm:$0x1] %v4267_v47  ;;  %v4268_v52 = vrot.slane %v4196_v44, 7  ;;  %v4197_v40 = vmax.f32 %v4181_v20, 0.0  ;;  %v4182_v46 = vadd.f32 %v11780_v13, %v4154_v61  ;;  %v4155_v25 = vadd.f32 %v4123_v35, %v3737_v22 }
 0x2d5   : > { %v4125_v42 = vpop.f32.mrf.mxu1  ;;  %v11867_v44 = vadd.f32 %v3725_v2, %v3327_v14  ;;  %v9602_v58 = vld [vmem:[%s13109_s7 + $0x270] ss:$8 sps:$4 sm:$0xff]   ;;  %v9605_v14 = vld [vmem:[%s13109_s7 + $0x360] ss:$8 sps:$4 sm:$0xff]  }
 0x2d6   : > { %4303 = vst [vmem:[#allocation3 + $0x8] sm:$0xfe] %v4268_v52  ;;  %4305 = vst [vmem:[#allocation3 + $0x58] sm:$0x1] %v4268_v52  ;;  %v4269_v15 = vrot.slane %v4197_v40, 7  ;;  %v4198_v50 = vmax.f32 %v4182_v46, 0.0  ;;  %v4183_v43 = vadd.f32 %v11788_v53, %v4155_v25  ;;  %v4156_v51 = vadd.f32 %v4125_v42, %v3738_v21  ;;  %v3727_v40 = vpop.f32.mrf.mxu0 }
 0x2d7   : > { %v4127_v17 = vpop.f32.mrf.mxu1 }
 0x2d8   : > { %4304 = vst [vmem:[#allocation3 + $0x40] sm:$0xfe] %v4269_v15  ;;  %4306 = vst [vmem:[#allocation3 + $0xc0] sm:$0x1] %v4269_v15  ;;  %v4270_v1 = vrot.slane %v4198_v50, 7  ;;  %v4199_v49 = vmax.f32 %v4183_v43, 0.0  ;;  %v4184_v59 = vadd.f32 %v11780_v13, %v4156_v51  ;;  %v4157_v6 = vadd.f32 %v4127_v17, %v3739_v33 }
 0x2d9   : > { %v4131_v26 = vpop.f32.mrf.mxu1  ;;  %v11855_v3 = vld [vmem:[#allocation3 + $0xa0] sm:$0xff]  ;;  %v4393_v4 = vld [vmem:[#allocation3 + $0xe8] sm:$0x1] }
 0x2da   : > { %v4391_v41 = vld [vmem:[#allocation3 + $0xa0] sm:$0xfe]  ;;  %4307 = vst [vmem:[#allocation3 + $0x138] sm:$0xfe] %v4270_v1  ;;  %4309 = vst [vmem:[#allocation3 + $0xf8] sm:$0x1] %v4270_v1  ;;  %v4185_v24 = vadd.f32 %v11788_v53, %v4157_v6  ;;  %v4158_v57 = vadd.f32 %v4131_v26, %v3740_v37  ;;  %v4347_v55 = vpack.c.bf16 %v11855_v3, %v9936_v5 }
 0x2db   : > { %v4271_v11 = vrot.slane %v4199_v49, 7  ;;  %v4200_v7 = vmax.f32 %v4184_v59, 0.0  ;;  %v4133_v12 = vpop.f32.mrf.mxu1  ;;  %v11864_v22 = vld [vmem:[#allocation3 + $0xd8] sm:$0xff]  ;;  %v4394_v60 = vld [vmem:[#allocation3 + $0xb0] sm:$0x1]  ;;  %v4457_v47 = vrot.slane %v4391_v41, 1 }
 0x2dc   : > { %v4392_v63 = vld [vmem:[#allocation3 + $0xd8] sm:$0xfe]  ;;  %v4201_v61 = vmax.f32 %v4185_v24, 0.0  ;;  %v4186_v28 = vadd.f32 %v11780_v13, %v4158_v57  ;;  %v4159_v29 = vadd.f32 %v4133_v12, %v3741_v36  ;;  %v4348_v35 = vpack.c.bf16 %v11864_v22, %v9936_v5  ;;  %v9610_v59 = vld [vmem:[%s13109_s7 + $0x264] ss:$8 sps:$4 sm:$0xff]  }
 0x2dd   : > { %4308 = vst [vmem:[#allocation3 + $0x80] sm:$0xfe] %v4271_v11  ;;  %4310 = vst [vmem:[#allocation3 + $0x38] sm:$0x1] %v4271_v11  ;;  %v4272_v20 = vrot.slane %v4200_v7, 7  ;;  %v4135_v0 = vpop.f32.mrf.mxu1  ;;  %v4460_v21 = vrot.slane %v4392_v63, 1  ;;  %v3746_v57 = vadd.f32 %v3727_v40, %v11862_v9 }
 0x2de   : > { %v4461_v33 = vrot.slane %v4394_v60, 1  ;;  %v4458_v56 = vrot.slane %v4393_v4, 1  ;;  %v11874_v52 = vld [vmem:[#allocation3 + $0x8] sm:$0xfe]  ;;  %v4273_v46 = vrot.slane %v4201_v61, 7  ;;  %v4202_v25 = vmax.f32 %v4186_v28, 0.0  ;;  %4981 = vmatprep.mubr.bf16.mxu1 %v4348_v35 }
 0x2df   : > { %4311 = vst [vmem:[#allocation3 + $0x30] sm:$0xfe] %v4272_v20  ;;  %4313 = vst [vmem:[#allocation3 + $0xb8] sm:$0x1] %v4272_v20  ;;  %v4187_v45 = vadd.f32 %v11788_v53, %v4159_v29  ;;  %v4160_v62 = vadd.f32 %v4135_v0, %v3742_v16  ;;  %v4137_v8 = vpop.f32.mrf.mxu1  ;;  %v4396_v31 = vld [vmem:[#allocation3 + $0x40] sm:$0xfe]  ;;  %4982 = vmatmul.mubr.bf16.vlgmr.msra.gmra.mxu1 %v4347_v55  ;;  %v3729_v16 = vpop.f32.mrf.mxu0 }
 0x2e0   : > { %v4462_v18 = vsel %vm890_vm0, %v4460_v21, %v4461_v33  ;;  %v4459_v42 = vsel %vm890_vm0, %v4457_v47, %v4458_v56  ;;  %v4398_v15 = vld [vmem:[#allocation3 + $0xc0] sm:$0x1]  ;;  %v4463_v50 = vrot.slane %v11874_v52, 1  ;;  %4312 = vst [vmem:[#allocation3 + $0xe0] sm:$0xfe] %v4273_v46  ;;  %v4274_v43 = vrot.slane %v4202_v25, 7  ;;  %5658 = vmatpush1.bf16.msra.mxu1 %v9599_v48 }
 0x2e1   : > { %4314 = vst [vmem:[#allocation3 + $0x48] sm:$0x1] %v4273_v46  ;;  %v4203_v51 = vmax.f32 %v4187_v45, 0.0  ;;  %v4188_v19 = vadd.f32 %v11780_v13, %v4160_v62  ;;  %v4161_v10 = vadd.f32 %v4137_v8, %v3743_v32  ;;  %v11892_v17 = vld [vmem:[#allocation3 + $0x58] sm:$0x1]  ;;  %v4141_v37 = vpop.f32.mrf.mxu1  ;;  %v4516_v1 = vpack.c.bf16 %v4462_v18, %v11847_v27  ;;  %5659 = vmatprep.subr.bf16.mxu1 %v9607_v39  ;;  %v11903_v27 = vld [vmem:[#allocation3 + $0x40] sm:$0xff] }
 0x2e2   : > { %v4515_v49 = vpack.c.bf16 %v4459_v42, %v11850_v30  ;;  %v11899_v6 = vld [vmem:[#allocation3 + $0x138] sm:$0xff]  ;;  %v4466_v26 = vrot.slane %v4396_v31, 1  ;;  %v4467_v36 = vrot.slane %v4398_v15, 1  ;;  %4315 = vst [vmem:[#allocation3 + $0x28] sm:$0xfe] %v4274_v43  ;;  %v4162_v11 = vadd.f32 %v4141_v37, %v11857_v54  ;;  %v11908_v7 = vld [vmem:[#allocation3 + $0x8] sm:$0xff] }
 0x2e3   : > { %4317 = vst [vmem:[#allocation3 + $0x118] sm:$0x1] %v4274_v43  ;;  %v4275_v32 = vrot.slane %v4203_v51, 7  ;;  %v4204_v41 = vmax.f32 %v4188_v19, 0.0  ;;  %v4189_v2 = vadd.f32 %v11788_v53, %v4161_v10  ;;  %v9613_v30 = vld [vmem:[%s13109_s7 + $0x354] ss:$8 sps:$4 sm:$0xff]   ;;  %4748 = vmatprep.mubr.bf16.mxu0 %v4516_v1  ;;  %v4143_v24 = vpop.f32.mrf.mxu1  ;;  %v3747_v54 = vadd.f32 %v3729_v16, %v3329_v38 }
 0x2e4   : > { %v9608_v4 = vld [vmem:[%s13109_s7 + $0x260] ss:$8 sps:$4 sm:$0xff]   ;;  %v4349_v5 = vpack.c.bf16 %v11899_v6, %v11908_v7  ;;  %v4402_v63 = vld [vmem:[#allocation3 + $0x38] sm:$0x1]  ;;  %v4464_v60 = vrot.slane %v11892_v17, 1  ;;  %v4190_v9 = vadd.f32 %v11780_v13, %v4162_v11  ;;  %4749 = vmatmul.mubr.bf16.vlgmr.msra.gmra.mxu0 %v4515_v49  ;;  %v4163_v61 = vadd.f32 %v4143_v24, %v11867_v44  ;;  %5660 = vmatpush1.bf16.msra.mxu1 %v9605_v14 }
 0x2e5   : > { %v11914_v12 = vld [vmem:[#allocation3 + $0x80] sm:$0xff]  ;;  %4316 = vst [vmem:[#allocation3 + $0x128] sm:$0xfe] %v4275_v32  ;;  %4318 = vst [vmem:[#allocation3 + $0x100] sm:$0x1] %v4275_v32  ;;  %v4276_v47 = vrot.slane %v4204_v41, 7  ;;  %5352 = vmatpush1.bf16.msra.mxu0 %v9602_v58  ;;  %v4145_v48 = vpop.f32.mrf.mxu1  ;;  %v4468_v21 = vsel %vm890_vm0, %v4466_v26, %v4467_v36  ;;  %5661 = vmatprep.subr.bf16.mxu1 %v9613_v30 }
 0x2e6   : > { %v4400_v55 = vld [vmem:[#allocation3 + $0x80] sm:$0xfe]  ;;  %v4205_v20 = vmax.f32 %v4189_v2, 0.0  ;;  %v4399_v28 = vld [vmem:[#allocation3 + $0x138] sm:$0xfe]  ;;  %v4350_v0 = vpack.c.bf16 %v11914_v12, %v11903_v27  ;;  %v4473_v56 = vrot.slane %v4402_v63, 1  ;;  %v4191_v25 = vadd.f32 %v11788_v53, %v4163_v61  ;;  %5353 = vmatprep.subr.bf16.mxu0 %v9610_v59 }
 0x2e7   : > { %v4401_v29 = vld [vmem:[#allocation3 + $0xf8] sm:$0x1]  ;;  %v4472_v33 = vrot.slane %v4400_v55, 1  ;;  %v9616_v44 = vld [vmem:[%s13109_s7 + $0x254] ss:$8 sps:$4 sm:$0xff]   ;;  %v4206_v46 = vmax.f32 %v4190_v9, 0.0  ;;  %v4164_v45 = vadd.f32 %v4145_v48, %v3746_v57  ;;  %v4147_v38 = vpop.f32.mrf.mxu1  ;;  %v4465_v58 = vsel %vm890_vm0, %v4463_v50, %v4464_v60 }
 0x2e8   : > { %v9611_v35 = vld [vmem:[%s13109_s7 + $0x350] ss:$8 sps:$4 sm:$0xff]   ;;  %4319 = vst [vmem:[#allocation3 + $0x98] sm:$0xfe] %v4276_v47  ;;  %4321 = vst [vmem:[#allocation3 + $0x78] sm:$0x1] %v4276_v47  ;;  %4991 = vmatprep.mubr.bf16.mxu1 %v4350_v0  ;;  %v4165_v14 = vadd.f32 %v4147_v38, %v3747_v54 }
 0x2e9   : > { %v4277_v40 = vrot.slane %v4205_v20, 7  ;;  %v9619_v62 = vld [vmem:[%s13109_s7 + $0x344] ss:$8 sps:$4 sm:$0xff]   ;;  %v11934_v39 = vld [vmem:[#allocation3 + $0x30] sm:$0xfe]  ;;  %v4474_v8 = vsel %vm890_vm0, %v4472_v33, %v4473_v56  ;;  %v4469_v42 = vrot.slane %v4399_v28, 1  ;;  %v4192_v10 = vadd.f32 %v11780_v13, %v4164_v45  ;;  %4992 = vmatmul.mubr.bf16.gmra.mxu1 %v4349_v5  ;;  %5354 = vmatpush1.bf16.msra.mxu0 %v9608_v4 }
 0x2ea   : > { %v9614_v18 = vld [vmem:[%s13109_s7 + $0x250] ss:$8 sps:$4 sm:$0xff]   ;;  %v4470_v31 = vrot.slane %v4401_v29, 1  ;;  %v9617_v15 = vld [vmem:[%s13109_s7 + $0x340] ss:$8 sps:$4 sm:$0xff]   ;;  %v4278_v51 = vrot.slane %v4206_v46, 7  ;;  %5662 = vmatpush1.bf16.msra.mxu1 %v9611_v35  ;;  %v4518_v17 = vpack.c.bf16 %v4474_v8, %v4468_v21  ;;  %v4193_v41 = vadd.f32 %v11788_v53, %v4165_v14  ;;  %5355 = vmatprep.subr.bf16.mxu0 %v9616_v44 }
 0x2eb   : > { %v11946_v43 = vld [vmem:[#allocation3 + $0xe0] sm:$0xfe]  ;;  %4320 = vst [vmem:[#allocation3] sm:$0xfe] %v4277_v40  ;;  %4322 = vst [vmem:[#allocation3 + $0x108] sm:$0x1] %v4277_v40  ;;  %5663 = vmatprep.subr.bf16.mxu1 %v9619_v62 }
 0x2ec   : > { %v4207_v19 = vmax.f32 %v4191_v25, 0.0  ;;  %v9622_v52 = vld [vmem:[%s13109_s7 + $0x244] ss:$8 sps:$4 sm:$0xff]   ;;  %v4406_v50 = vld [vmem:[#allocation3 + $0x48] sm:$0x1]  ;;  %v4471_v37 = vsel %vm890_vm0, %v4469_v42, %v4470_v31  ;;  %v4478_v13 = vrot.slane %v11946_v43, 1  ;;  %4758 = vmatprep.mubr.bf16.mxu0 %v4518_v17 }
 0x2ed   : > { %v11953_v1 = vld [vmem:[#allocation3 + $0xe0] sm:$0xff]  ;;  %v9625_v49 = vld [vmem:[%s13109_s7 + $0x334] ss:$8 sps:$4 sm:$0xff]   ;;  %v11958_v59 = vld [vmem:[#allocation3 + $0x28] sm:$0xff]  ;;  %v4475_v36 = vrot.slane %v11934_v39, 1  ;;  %v4208_v32 = vmax.f32 %v4192_v10, 0.0  ;;  %v4517_v2 = vpack.c.bf16 %v4471_v37, %v4465_v58  ;;  %5356 = vmatpush1.bf16.msra.mxu0 %v9614_v18 }
 0x2ee   : > { %v11961_v26 = vld [vmem:[#allocation3 + $0xb8] sm:$0x1]  ;;  %4323 = vst [vmem:[#allocation3 + $0x110] sm:$0xfe] %v4278_v51  ;;  %4325 = vst [vmem:[#allocation3 + $0x10] sm:$0x1] %v4278_v51  ;;  %5664 = vmatpush1.bf16.msra.mxu1 %v9617_v15  ;;  %5357 = vmatprep.subr.bf16.mxu0 %v9622_v52 }
 0x2ef   : > { %v4279_v16 = vrot.slane %v4207_v19, 7  ;;  %v4407_v11 = vld [vmem:[#allocation3 + $0x28] sm:$0xfe]  ;;  %v4409_v30 = vld [vmem:[#allocation3 + $0x118] sm:$0x1]  ;;  %v4479_v55 = vrot.slane %v4406_v50, 1  ;;  %4759 = vmatmul.mubr.bf16.gmra.mxu0 %v4517_v2  ;;  %5665 = vmatprep.subr.bf16.mxu1 %v9625_v49 }
 0x2f0   : > { %v9620_v24 = vld [vmem:[%s13109_s7 + $0x240] ss:$8 sps:$4 sm:$0xff]   ;;  %v9623_v4 = vld [vmem:[%s13109_s7 + $0x330] ss:$8 sps:$4 sm:$0xff]   ;;  %v4280_v53 = vrot.slane %v4208_v32, 7  ;;  %v4209_v63 = vmax.f32 %v4193_v41, 0.0 }
 0x2f1   : > { %v11968_v57 = vld [vmem:[#allocation3 + $0x128] sm:$0xff]  ;;  %v4410_v5 = vld [vmem:[#allocation3 + $0x100] sm:$0x1]  ;;  %4324 = vst [vmem:[#allocation3 + $0xd0] sm:$0xfe] %v4279_v16  ;;  %v11980_v61 = vld [vmem:[#allocation3 + $0x30] sm:$0xff]  ;;  %v4480_v40 = vsel %vm890_vm0, %v4478_v13, %v4479_v55  ;;  %5358 = vmatpush1.bf16.msra.mxu0 %v9620_v24 }
 0x2f2   : > { %v4408_v54 = vld [vmem:[#allocation3 + $0x128] sm:$0xfe]  ;;  %4326 = vst [vmem:[#allocation3 + $0x18] sm:$0x1] %v4279_v16  ;;  %v4352_v60 = vpack.c.bf16 %v11968_v57, %v11953_v1  ;;  %v9628_v20 = vld [vmem:[%s13109_s7 + $0x234] ss:$8 sps:$4 sm:$0xff]   ;;  %v4351_v33 = vpack.c.bf16 %v11958_v59, %v11980_v61  ;;  %5666 = vmatpush1.bf16.msra.mxu1 %v9623_v4 }
 0x2f3   : > { %v4484_v47 = vrot.slane %v4408_v54, 1  ;;  %v11978_v9 = vld [vmem:[#allocation3 + $0x130] sm:$0xfc]  ;;  %v4485_v28 = vrot.slane %v4410_v5, 1  ;;  %v4476_v29 = vrot.slane %v11961_v26, 1  ;;  %v4481_v48 = vrot.slane %v4407_v11, 1  ;;  %5359 = vmatprep.subr.bf16.mxu0 %v9628_v20 }
 0x2f4   : > { %v4482_v0 = vrot.slane %v4409_v30, 1  ;;  %v9631_v35 = vld [vmem:[%s13109_s7 + $0x324] ss:$8 sps:$4 sm:$0xff]   ;;  %4327 = vst [vmem:[#allocation3 + $0x20] sm:$0xfe] %v4280_v53  ;;  %v4281_v21 = vrot.slane %v4209_v63, 7  ;;  %5001 = vmatprep.mubr.bf16.mxu1 %v4352_v60 }
 0x2f5   : > { %4329 = vst [vmem:[#allocation3 + $0x70] sm:$0x1] %v4280_v53  ;;  %v11988_v56 = vld [vmem:[#allocation3 + $0x90] sm:$0x3]  ;;  %v11990_v44 = vld [vmem:[#allocation3 + $0xd8] sm:$0xfc]  ;;  %v4486_v46 = vsel %vm890_vm0, %v4484_v47, %v4485_v28  ;;  %5002 = vmatmul.mubr.bf16.gmra.mxu1 %v4351_v33  ;;  %v4477_v51 = vsel %vm890_vm0, %v4475_v36, %v4476_v29  ;;  %5667 = vmatprep.subr.bf16.mxu1 %v9631_v35 }
 0x2f6   : > { %v9626_v25 = vld [vmem:[%s13109_s7 + $0x230] ss:$8 sps:$4 sm:$0xff]   ;;  %v4483_v45 = vsel %vm890_vm0, %v4481_v48, %v4482_v0  ;;  %v9629_v62 = vld [vmem:[%s13109_s7 + $0x320] ss:$8 sps:$4 sm:$0xff]   ;;  %v5089_v18 = vrot.slane %v11978_v9, 2  ;;  %v4520_v58 = vpack.c.bf16 %v4486_v46, %v4480_v40  ;;  %v5090_v52 = vrot.slane %v11988_v56, 2 }
 0x2f7   : > { %v4412_v38 = vld [vmem:[#allocation3] sm:$0xfe]  ;;  %v4414_v8 = vld [vmem:[#allocation3 + $0x108] sm:$0x1]  ;;  %4328 = vst [vmem:[#allocation3 + $0xc8] sm:$0xfe] %v4281_v21  ;;  %v4519_v17 = vpack.c.bf16 %v4483_v45, %v4477_v51  ;;  %5360 = vmatpush1.bf16.msra.mxu0 %v9626_v25  ;;  %5668 = vmatpush1.bf16.msra.mxu1 %v9629_v62  ;;  %v5457_v48 = vpack.c.bf16 %v11903_v27, %v11864_v22 }
 0x2f8   : > { %4330 = vst [vmem:[#allocation3 + $0x120] sm:$0x1] %v4281_v21  ;;  %v9634_v42 = vld [vmem:[%s13109_s7 + $0x224] ss:$8 sps:$4 sm:$0xff]   ;;  %v4411_v31 = vld [vmem:[#allocation3 + $0x98] sm:$0xfe]  ;;  %4768 = vmatprep.mubr.bf16.mxu0 %v4520_v58  ;;  %v5091_v0 = vsel %vm1526_vm1, %v5089_v18, %v5090_v52 }
 0x2f9   : > { %v4413_v15 = vld [vmem:[#allocation3 + $0x78] sm:$0x1]  ;;  %v5029_v43 = vld [vmem:[#allocation3 + $0xb0] sm:$0x3]  ;;  %v9637_v19 = vld [vmem:[%s13109_s7 + $0x314] ss:$8 sps:$4 sm:$0xff]   ;;  %4769 = vmatmul.mubr.bf16.gmra.mxu0 %v4519_v17  ;;  %5361 = vmatprep.subr.bf16.mxu0 %v9634_v42 }
 0x2fa   : > { %v4415_v10 = vld [vmem:[#allocation3 + $0x110] sm:$0xfe]  ;;  %v4417_v14 = vld [vmem:[#allocation3 + $0x10] sm:$0x1]  ;;  %v5095_v50 = vrot.slane %v11990_v44, 2  ;;  %v12013_v37 = vld [vmem:[#allocation3] sm:$0xff]  ;;  %5669 = vmatprep.subr.bf16.mxu1 %v9637_v19 }
 0x2fb   : > { %v12015_v49 = vld [vmem:[#allocation3 + $0x110] sm:$0xff]  ;;  %v4490_v39 = vrot.slane %v4412_v38, 1  ;;  %v4491_v13 = vrot.slane %v4414_v8, 1  ;;  %v4493_v26 = vrot.slane %v4415_v10, 1  ;;  %v4418_v32 = vld [vmem:[#allocation3 + $0x18] sm:$0x1] }
 0x2fc   : > { %v12017_v36 = vld [vmem:[#allocation3 + $0xd0] sm:$0xff]  ;;  %v4494_v41 = vrot.slane %v4417_v14, 1  ;;  %v9632_v2 = vld [vmem:[%s13109_s7 + $0x220] ss:$8 sps:$4 sm:$0xff]   ;;  %v4497_v24 = vrot.slane %v4418_v32, 1  ;;  %v5096_v4 = vrot.slane %v5029_v43, 2 }
 0x2fd   : > { %v4416_v16 = vld [vmem:[#allocation3 + $0xd0] sm:$0xfe]  ;;  %v4354_v11 = vpack.c.bf16 %v12017_v36, %v12013_v37  ;;  %v12027_v5 = vld [vmem:[#allocation3 + $0x98] sm:$0xff]  ;;  %v4487_v55 = vrot.slane %v4411_v31, 1  ;;  %v4488_v53 = vrot.slane %v4413_v15, 1  ;;  %v4492_v60 = vsel %vm890_vm0, %v4490_v39, %v4491_v13  ;;  %5362 = vmatpush1.bf16.msra.mxu0 %v9632_v2 }
 0x2fe   : > { %v4496_v30 = vrot.slane %v4416_v16, 1  ;;  %v9635_v54 = vld [vmem:[%s13109_s7 + $0x310] ss:$8 sps:$4 sm:$0xff]   ;;  %v4353_v63 = vpack.c.bf16 %v12015_v49, %v12027_v5  ;;  %v9640_v9 = vld [vmem:[%s13109_s7 + $0x214] ss:$8 sps:$4 sm:$0xff]   ;;  %v4495_v28 = vsel %vm890_vm0, %v4493_v26, %v4494_v41  ;;  %v5097_v35 = vsel %vm1526_vm1, %v5095_v50, %v5096_v4 }
 0x2ff   : > { %5011 = vmatprep.mubr.bf16.mxu1 %v4354_v11  ;;  %v9643_v29 = vld [vmem:[%s13109_s7 + $0x304] ss:$8 sps:$4 sm:$0xff]   ;;  %5670 = vmatpush1.bf16.msra.mxu1 %v9635_v54  ;;  %v9638_v21 = vld [vmem:[%s13109_s7 + $0x210] ss:$8 sps:$4 sm:$0xff]   ;;  %v4489_v33 = vsel %vm890_vm0, %v4487_v55, %v4488_v53  ;;  %v9641_v44 = vld [vmem:[%s13109_s7 + $0x300] ss:$8 sps:$4 sm:$0xff]   ;;  %v5151_v27 = vpack.c.bf16 %v5097_v35, %v5091_v0 }
 0x300   : > { %v4498_v47 = vsel %vm890_vm0, %v4496_v30, %v4497_v24  ;;  %5012 = vmatmul.mubr.bf16.gmra.mxu1 %v4353_v63  ;;  %v4521_v56 = vpack.c.bf16 %v4495_v28, %v4489_v33  ;;  %v9646_v22 = vld [vmem:[%s13109_s7 + $0x204] ss:$8 sps:$4 sm:$0xff]   ;;  %5363 = vmatprep.subr.bf16.mxu0 %v9640_v9  ;;  %v9649_v40 = vld [vmem:[%s13109_s7 + $0x3f4] ss:$8 sps:$4 sm:$0xff]   ;;  %v9644_v46 = vld [vmem:[%s13109_s7 + $0x200] ss:$8 sps:$4 sm:$0xff]  }
 0x301   : > { %v4522_v20 = vpack.c.bf16 %v4498_v47, %v4492_v60  ;;  %5689 = vmatprep.mubr.bf16.mxu1 %v5457_v48  ;;  %5671 = vmatprep.subr.bf16.mxu1 %v9643_v29  ;;  %v9647_v25 = vld [vmem:[%s13109_s7 + $0x3f0] ss:$8 sps:$4 sm:$0xff]   ;;  %v9652_v45 = vld [vmem:[%s13109_s7 + $0x2f4] ss:$8 sps:$4 sm:$0xff]   ;;  %v9655_v62 = vld [vmem:[%s13109_s7 + $0x3e4] ss:$8 sps:$4 sm:$0xff]  }
 0x302   : > { %5364 = vmatpush1.bf16.msra.mxu0 %v9638_v21  ;;  %v9650_v38 = vld [vmem:[%s13109_s7 + $0x2f0] ss:$8 sps:$4 sm:$0xff]   ;;  %v9653_v8 = vld [vmem:[%s13109_s7 + $0x3e0] ss:$8 sps:$4 sm:$0xff]   ;;  %v9658_v18 = vld [vmem:[%s13109_s7 + $0x2e4] ss:$8 sps:$4 sm:$0xff]  }
 0x303   : > { %4778 = vmatprep.mubr.bf16.mxu0 %v4522_v20  ;;  %5672 = vmatpush1.bf16.msra.mxu1 %v9641_v44  ;;  %v9661_v58 = vld [vmem:[%s13109_s7 + $0x3d4] ss:$8 sps:$4 sm:$0xff]   ;;  %v9656_v42 = vld [vmem:[%s13109_s7 + $0x2e0] ss:$8 sps:$4 sm:$0xff]   ;;  %v9659_v31 = vld [vmem:[%s13109_s7 + $0x3d0] ss:$8 sps:$4 sm:$0xff]  }
 0x304   : > { %4779 = vmatmul.mubr.bf16.gmra.mxu0 %v4521_v56  ;;  %5365 = vmatprep.subr.bf16.mxu0 %v9646_v22  ;;  %v9664_v15 = vld [vmem:[%s13109_s7 + $0x2d4] ss:$8 sps:$4 sm:$0xff]   ;;  %v9667_v43 = vld [vmem:[%s13109_s7 + $0x3c4] ss:$8 sps:$4 sm:$0xff]   ;;  %v9662_v51 = vld [vmem:[%s13109_s7 + $0x2d0] ss:$8 sps:$4 sm:$0xff]  }
 0x305   : > { %5383 = vmatprep.mubr.bf16.mxu0 %v5151_v27  ;;  %5673 = vmatprep.subr.bf16.mxu1 %v9649_v40  ;;  %v9665_v19 = vld [vmem:[%s13109_s7 + $0x3c0] ss:$8 sps:$4 sm:$0xff]   ;;  %v9670_v10 = vld [vmem:[%s13109_s7 + $0x2c4] ss:$8 sps:$4 sm:$0xff]   ;;  %v9673_v14 = vld [vmem:[%s13109_s7 + $0x3b4] ss:$8 sps:$4 sm:$0xff]  }
 0x306   : > { %5366 = vmatpush1.bf16.msra.mxu0 %v9644_v46  ;;  %v9668_v52 = vld [vmem:[%s13109_s7 + $0x2c0] ss:$8 sps:$4 sm:$0xff]   ;;  %v9671_v50 = vld [vmem:[%s13109_s7 + $0x3b0] ss:$8 sps:$4 sm:$0xff]   ;;  %v9676_v17 = vld [vmem:[%s13109_s7 + $0x2b4] ss:$8 sps:$4 sm:$0xff]   ;;  %v5456_v46 = vpack.c.bf16 %v11908_v7, %v11855_v3  ;;  %v5459_v3 = vpack.c.bf16 %v11953_v1, %v11914_v12 }
 0x307   : > { %5674 = vmatpush2.bf16.msra.mxu1 %v9647_v25  ;;  %5367 = vmatprep.subr.bf16.mxu0 %v9652_v45  ;;  %v9679_v39 = vld [vmem:[%s13109_s7 + $0x3a4] ss:$8 sps:$4 sm:$0xff]   ;;  %v9674_v13 = vld [vmem:[%s13109_s7 + $0x2b0] ss:$8 sps:$4 sm:$0xff]   ;;  %v9677_v26 = vld [vmem:[%s13109_s7 + $0x3a0] ss:$8 sps:$4 sm:$0xff]  }
 0x308   : > { %5675 = vmatprep.subr.bf16.mxu1 %v9655_v62  ;;  %v9682_v16 = vld [vmem:[%s13109_s7 + $0x2a4] ss:$8 sps:$4 sm:$0xff]   ;;  %v9685_v32 = vld [vmem:[%s13109_s7 + $0x394] ss:$8 sps:$4 sm:$0xff]   ;;  %v9680_v41 = vld [vmem:[%s13109_s7 + $0x2a0] ss:$8 sps:$4 sm:$0xff]  }
 0x309   : > { %v9683_v2 = vld [vmem:[%s13109_s7 + $0x390] ss:$8 sps:$4 sm:$0xff]   ;;  %v9688_v11 = vld [vmem:[%s13109_s7 + $0x294] ss:$8 sps:$4 sm:$0xff]   ;;  %v9691_v30 = vld [vmem:[%s13109_s7 + $0x384] ss:$8 sps:$4 sm:$0xff]  }
 0x30a   : > { %5368 = vmatpush2.bf16.msra.mxu0 %v9650_v38  ;;  %v5022_v24 = vld [vmem:[#allocation3 + $0xa8] sm:$0xfc]  ;;  %v5024_v4 = vld [vmem:[#allocation3 + $0x68] sm:$0x3]  ;;  %v9686_v54 = vld [vmem:[%s13109_s7 + $0x290] ss:$8 sps:$4 sm:$0xff]  }
 0x30b   : > { %5676 = vmatpush2.bf16.msra.mxu1 %v9653_v8  ;;  %5369 = vmatprep.subr.bf16.mxu0 %v9658_v18  ;;  %v5026_v55 = vld [vmem:[#allocation3 + $0xa0] sm:$0xfc]  ;;  %v5028_v53 = vld [vmem:[#allocation3 + $0xe8] sm:$0x3]  ;;  %v5037_v47 = vld [vmem:[#allocation3 + $0x38] sm:$0x3] }
 0x30c   : > { %5677 = vmatprep.subr.bf16.mxu1 %v9661_v58  ;;  %v9689_v63 = vld [vmem:[%s13109_s7 + $0x380] ss:$8 sps:$4 sm:$0xff]   ;;  %v9694_v20 = vld [vmem:[%s13109_s7 + $0x284] ss:$8 sps:$4 sm:$0xff]   ;;  %v9697_v9 = vld [vmem:[%s13109_s7 + $0x574] ss:$8 sps:$4 sm:$0xff]  }
 0x30d   : > { %v5035_v60 = vld [vmem:[#allocation3 + $0x80] sm:$0xfc]  ;;  %v5086_v28 = vrot.slane %v5022_v24, 2  ;;  %v5087_v29 = vrot.slane %v5024_v4, 2  ;;  %v5092_v48 = vrot.slane %v5026_v55, 2  ;;  %v5093_v0 = vrot.slane %v5028_v53, 2 }
 0x30e   : > { %5370 = vmatpush2.bf16.msra.mxu0 %v9656_v42  ;;  %v5031_v35 = vld [vmem:[#allocation3 + $0x40] sm:$0xfc]  ;;  %v5033_v21 = vld [vmem:[#allocation3 + $0xc0] sm:$0x3]  ;;  %v5107_v33 = vrot.slane %v5035_v60, 2  ;;  %v5108_v56 = vrot.slane %v5037_v47, 2  ;;  %v5458_v24 = vpack.c.bf16 %v11980_v61, %v11899_v6 }
 0x30f   : > { %5678 = vmatpush2.bf16.msra.mxu1 %v9659_v31  ;;  %5371 = vmatprep.subr.bf16.mxu0 %v9664_v15  ;;  %v9692_v44 = vld [vmem:[%s13109_s7 + $0x280] ss:$8 sps:$4 sm:$0xff]   ;;  %v9695_v22 = vld [vmem:[%s13109_s7 + $0x570] ss:$8 sps:$4 sm:$0xff]   ;;  %v5101_v27 = vrot.slane %v5031_v35, 2  ;;  %v5102_v40 = vrot.slane %v5033_v21, 2  ;;  %v5088_v25 = vsel %vm1526_vm1, %v5086_v28, %v5087_v29  ;;  %v5094_v45 = vsel %vm1526_vm1, %v5092_v48, %v5093_v0 }
 0x310   : > { %5679 = vmatprep.subr.bf16.mxu1 %v9667_v43  ;;  %v9698_v62 = vld [vmem:[%s13109_s7 + $0x470] ss:$8 sps:$4 sm:$0xff]   ;;  %v9700_v38 = vld [vmem:[%s13109_s7 + $0x474] ss:$8 sps:$4 sm:$0xff]   ;;  %v9703_v8 = vld [vmem:[%s13109_s7 + $0x564] ss:$8 sps:$4 sm:$0xff]   ;;  %v5109_v7 = vsel %vm1526_vm1, %v5107_v33, %v5108_v56 }
 0x311   : > { %v9701_v18 = vld [vmem:[%s13109_s7 + $0x560] ss:$8 sps:$4 sm:$0xff]   ;;  %v5034_v58 = vld [vmem:[#allocation3 + $0x138] sm:$0xfc]  ;;  %v5036_v42 = vld [vmem:[#allocation3 + $0xf8] sm:$0x3]  ;;  %v5103_v12 = vsel %vm1526_vm1, %v5101_v27, %v5102_v40 }
 0x312   : > { %5372 = vmatpush2.bf16.msra.mxu0 %v9662_v51  ;;  %v9706_v31 = vld [vmem:[%s13109_s7 + $0x464] ss:$8 sps:$4 sm:$0xff]   ;;  %v5045_v43 = vld [vmem:[#allocation3 + $0x100] sm:$0x3]  ;;  %v5150_v51 = vpack.c.bf16 %v5094_v45, %v5088_v25  ;;  %v9709_v1 = vld [vmem:[%s13109_s7 + $0x554] ss:$8 sps:$4 sm:$0xff]  }
 0x313   : > { %5680 = vmatpush2.bf16.msra.mxu1 %v9665_v19  ;;  %5373 = vmatprep.subr.bf16.mxu0 %v9670_v10  ;;  %v5043_v15 = vld [vmem:[#allocation3 + $0x128] sm:$0xfc]  ;;  %v5032_v10 = vld [vmem:[#allocation3 + $0x58] sm:$0x3]  ;;  %v9712_v55 = vld [vmem:[%s13109_s7 + $0x454] ss:$8 sps:$4 sm:$0xff]  }
 0x314   : > { %5681 = vmatprep.subr.bf16.mxu1 %v9673_v14  ;;  %v5030_v19 = vld [vmem:[#allocation3 + $0x8] sm:$0xfc]  ;;  %v5153_v14 = vpack.c.bf16 %v5109_v7, %v5103_v12  ;;  %v5044_v47 = vld [vmem:[#allocation3 + $0x118] sm:$0x3]  ;;  %v5051_v28 = vld [vmem:[#allocation3 + $0xd0] sm:$0xfc] }
 0x315   : > { %v9715_v53 = vld [vmem:[%s13109_s7 + $0x544] ss:$8 sps:$4 sm:$0xff]   ;;  %v9713_v61 = vld [vmem:[%s13109_s7 + $0x540] ss:$8 sps:$4 sm:$0xff]   ;;  %v5053_v29 = vld [vmem:[#allocation3 + $0x18] sm:$0x3] }
 0x316   : > { %5374 = vmatpush2.bf16.msra.mxu0 %v9668_v52  ;;  %v5104_v52 = vrot.slane %v5034_v58, 2  ;;  %v5042_v60 = vld [vmem:[#allocation3 + $0x28] sm:$0xfc]  ;;  %v9721_v48 = vld [vmem:[%s13109_s7 + $0x534] ss:$8 sps:$4 sm:$0xff]   ;;  %v5117_v56 = vrot.slane %v5044_v47, 2 }
 0x317   : > { %5682 = vmatpush2.bf16.msra.mxu1 %v9671_v50  ;;  %5375 = vmatprep.subr.bf16.mxu0 %v9676_v17  ;;  %v5105_v50 = vrot.slane %v5036_v42, 2  ;;  %v5039_v17 = vld [vmem:[#allocation3 + $0xe0] sm:$0xfc]  ;;  %v5038_v0 = vld [vmem:[#allocation3 + $0x30] sm:$0xfc]  ;;  %v5116_v33 = vrot.slane %v5042_v60, 2  ;;  %v5460_v42 = vpack.c.bf16 %v12027_v5, %v11958_v59 }
 0x318   : > { %5683 = vmatprep.subr.bf16.mxu1 %v9679_v39  ;;  %v5041_v39 = vld [vmem:[#allocation3 + $0x48] sm:$0x3]  ;;  %v5040_v35 = vld [vmem:[#allocation3 + $0xb8] sm:$0x3]  ;;  %v5132_v25 = vrot.slane %v5053_v29, 2 }
 0x319   : > { %v5106_v4 = vsel %vm1526_vm1, %v5104_v52, %v5105_v50  ;;  %v9716_v27 = vld [vmem:[%s13109_s7 + $0x440] ss:$8 sps:$4 sm:$0xff]   ;;  %v9719_v40 = vld [vmem:[%s13109_s7 + $0x530] ss:$8 sps:$4 sm:$0xff]   ;;  %v9730_v5 = vld [vmem:[%s13109_s7 + $0x424] ss:$8 sps:$4 sm:$0xff]  }
 0x31a   : > { %5376 = vmatpush2.bf16.msra.mxu0 %v9674_v13  ;;  %v5119_v13 = vrot.slane %v5043_v15, 2  ;;  %v5455_v45 = vld [vmem:[#allocation3 + $0xc8] sm:$0xff]  ;;  %v6171_v58 = vld [vmem:[#allocation3 + $0xc0] sm:$0x3]  ;;  %v9722_v15 = vld [vmem:[%s13109_s7 + $0x430] ss:$8 sps:$4 sm:$0xff]  }
 0x31b   : > { %5684 = vmatpush2.bf16.msra.mxu1 %v9677_v26  ;;  %5377 = vmatprep.subr.bf16.mxu0 %v9682_v16  ;;  %v5120_v26 = vrot.slane %v5045_v43, 2  ;;  %v9704_v16 = vld [vmem:[%s13109_s7 + $0x460] ss:$8 sps:$4 sm:$0xff]   ;;  %v9727_v43 = vld [vmem:[%s13109_s7 + $0x524] ss:$8 sps:$4 sm:$0xff]  }
 0x31c   : > { %5685 = vmatprep.subr.bf16.mxu1 %v9685_v32  ;;  %v5098_v32 = vrot.slane %v5030_v19, 2  ;;  %v6167_v12 = vld [vmem:[#allocation3 + $0xb0] sm:$0x3]  ;;  %v9725_v59 = vld [vmem:[%s13109_s7 + $0x520] ss:$8 sps:$4 sm:$0xff]  }
 0x31d   : > { %v5121_v6 = vsel %vm1526_vm1, %v5119_v13, %v5120_v26  ;;  %v5052_v52 = vld [vmem:[#allocation3 + $0x10] sm:$0x3]  ;;  %v5751_v13 = vld [vmem:[#allocation3 + $0x40] sm:$0xfe]  ;;  %v5753_v26 = vld [vmem:[#allocation3 + $0xc0] sm:$0x1] }
 0x31e   : > { %5378 = vmatpush2.bf16.msra.mxu0 %v9680_v41  ;;  %v5099_v41 = vrot.slane %v5032_v10, 2  ;;  %v5046_v10 = vld [vmem:[#allocation3 + $0x98] sm:$0xfc] }
 0x31f   : > { %5686 = vmatpush2.bf16.msra.mxu1 %v9683_v2  ;;  %5379 = vmatprep.subr.bf16.mxu0 %v9688_v11  ;;  %v9707_v2 = vld [vmem:[%s13109_s7 + $0x550] ss:$8 sps:$4 sm:$0xff]   ;;  %v5113_v11 = vrot.slane %v5039_v17, 2  ;;  %v5122_v47 = vrot.slane %v5046_v10, 2  ;;  %v9772_v10 = vld [vmem:[%s13109_s7 + $0x4b4] ss:$8 sps:$4 sm:$0xff]  }
 0x320   : > { %5687 = vmatprep.subr.bf16.mxu1 %v9691_v30  ;;  %v5114_v30 = vrot.slane %v5041_v39, 2  ;;  %v6238_v39 = vrot.slane %v6171_v58, 2  ;;  %v9757_v58 = vld [vmem:[%s13109_s7 + $0x5d4] ss:$8 sps:$4 sm:$0xff]  }
 0x322   : > { %5380 = vmatpush2.bf16.msra.mxu0 %v9686_v54  ;;  %v9710_v54 = vld [vmem:[%s13109_s7 + $0x450] ss:$8 sps:$4 sm:$0xff]  }
 0x323   : > { %5688 = vmatpush2.bf16.msra.mxu1 %v9689_v63  ;;  %5381 = vmatprep.subr.bf16.mxu0 %v9694_v20  ;;  %v5461_v63 = vpack.c.bf16 %v12013_v37, %v11968_v57  ;;  %v5100_v20 = vsel %vm1526_vm1, %v5098_v32, %v5099_v41  ;;  %v5115_v37 = vsel %vm1526_vm1, %v5113_v11, %v5114_v30  ;;  %v5747_v11 = vld [vmem:[#allocation3 + $0xd8] sm:$0xfe] }
 0x324   : > { %6493 = vmatprep.subr.bf16.mxu1 %v9697_v9  ;;  %v9718_v9 = vld [vmem:[%s13109_s7 + $0x444] ss:$8 sps:$4 sm:$0xff]   ;;  %v5152_v57 = vpack.c.bf16 %v5106_v4, %v5100_v20  ;;  %v5155_v21 = vpack.c.bf16 %v5121_v6, %v5115_v37  ;;  %v5820_v6 = vrot.slane %v5753_v26, 1  ;;  %v9776_v26 = vld [vmem:[%s13109_s7 + $0x4a0] ss:$8 sps:$4 sm:$0xff]  }
 0x326   : > { %5382 = vmatpush2.bf16.msra.mxu0 %v9692_v44  ;;  %5690 = vmatmul.mubr.bf16.vlgmr.msra.gmra.mxu1 %v5456_v46  ;;  %v5047_v44 = vld [vmem:[#allocation3] sm:$0xfc]  ;;  %v5131_v46 = vrot.slane %v5051_v28, 2  ;;  %v5813_v28 = vrot.slane %v5747_v11, 1  ;;  %v9779_v11 = vld [vmem:[%s13109_s7 + $0x590] ss:$8 sps:$4 sm:$0xff]  }
 0x327   : > { %5699 = vmatprep.mubr.bf16.mxu1 %v5459_v3  ;;  %6494 = vmatpush1.bf16.msra.mxu1 %v9695_v22  ;;  %v5049_v22 = vld [vmem:[#allocation3 + $0x108] sm:$0x3]  ;;  %v5125_v3 = vrot.slane %v5047_v44, 2 }
 0x328   : > { %6075 = vmatprep.subr.bf16.mxu0 %v9700_v38  ;;  %6495 = vmatprep.subr.bf16.mxu1 %v9703_v8  ;;  %v5111_v38 = vrot.slane %v5040_v35, 2  ;;  %v9724_v8 = vld [vmem:[%s13109_s7 + $0x434] ss:$8 sps:$4 sm:$0xff]   ;;  %v5126_v7 = vrot.slane %v5049_v22, 2  ;;  %v5133_v19 = vsel %vm1526_vm1, %v5131_v46, %v5132_v25  ;;  %v9739_v35 = vld [vmem:[%s13109_s7 + $0x504] ss:$8 sps:$4 sm:$0xff]  }
 0x329   : > { %5384 = vmatmul.mubr.bf16.vlgmr.msra.gmra.mxu0 %v5150_v51  ;;  %v6165_v51 = vld [vmem:[#allocation3 + $0xd8] sm:$0xfc] }
 0x32a   : > { %5393 = vmatprep.mubr.bf16.mxu0 %v5153_v14  ;;  %6076 = vmatpush1.bf16.msra.mxu0 %v9698_v62  ;;  %v5110_v62 = vrot.slane %v5038_v0, 2  ;;  %v5050_v14 = vld [vmem:[#allocation3 + $0x110] sm:$0xfc]  ;;  %v5127_v32 = vsel %vm1526_vm1, %v5125_v3, %v5126_v7  ;;  %v6231_v41 = vrot.slane %v6165_v51, 2  ;;  %v9749_v7 = vld [vmem:[%s13109_s7 + $0x5e0] ss:$8 sps:$4 sm:$0xff]  }
 0x32b   : > { %6496 = vmatpush1.bf16.msra.mxu1 %v9701_v18  ;;  %6077 = vmatprep.subr.bf16.mxu0 %v9706_v31  ;;  %v6169_v18 = vld [vmem:[#allocation3 + $0x40] sm:$0xfc]  ;;  %v5118_v31 = vsel %vm1526_vm1, %v5116_v33, %v5117_v56  ;;  %v5157_v30 = vpack.c.bf16 %v5133_v19, %v5127_v32  ;;  %v5128_v4 = vrot.slane %v5050_v14, 2  ;;  %v9736_v0 = vld [vmem:[%s13109_s7 + $0x414] ss:$8 sps:$4 sm:$0xff]  }
 0x32c   : > { %6497 = vmatprep.subr.bf16.mxu1 %v9709_v1  ;;  %v5463_v1 = vpack.c.bf16 %v5455_v45, %v12017_v36  ;;  %v5112_v50 = vsel %vm1526_vm1, %v5110_v62, %v5111_v38  ;;  %v9733_v36 = vld [vmem:[%s13109_s7 + $0x514] ss:$8 sps:$4 sm:$0xff]   ;;  %v6237_v17 = vrot.slane %v6169_v18, 2  ;;  %v9734_v56 = vld [vmem:[%s13109_s7 + $0x410] ss:$8 sps:$4 sm:$0xff]  }
 0x32d   : > { %v9745_v25 = vld [vmem:[%s13109_s7 + $0x5f4] ss:$8 sps:$4 sm:$0xff]   ;;  %v9740_v45 = vld [vmem:[%s13109_s7 + $0x400] ss:$8 sps:$4 sm:$0xff]   ;;  %v9743_v62 = vld [vmem:[%s13109_s7 + $0x5f0] ss:$8 sps:$4 sm:$0xff]  }
 0x32e   : > { %5700 = vmatmul.mubr.bf16.gmra.mxu1 %v5458_v24  ;;  %6078 = vmatpush1.bf16.msra.mxu0 %v9704_v16  ;;  %v5154_v16 = vpack.c.bf16 %v5118_v31, %v5112_v50  ;;  %v6232_v24 = vrot.slane %v6167_v12, 2  ;;  %v6239_v60 = vsel %vm1526_vm1, %v6237_v17, %v6238_v39  ;;  %v9748_v38 = vld [vmem:[%s13109_s7 + $0x4f4] ss:$8 sps:$4 sm:$0xff]   ;;  %v9746_v3 = vld [vmem:[%s13109_s7 + $0x4f0] ss:$8 sps:$4 sm:$0xff]  }
 0x32f   : > { %5709 = vmatprep.mubr.bf16.mxu1 %v5461_v63  ;;  %6498 = vmatpush1.bf16.msra.mxu1 %v9707_v2  ;;  %v5048_v2 = vld [vmem:[#allocation3 + $0x78] sm:$0x3]  ;;  %v5819_v63 = vrot.slane %v5751_v13, 1  ;;  %v9754_v18 = vld [vmem:[%s13109_s7 + $0x4e4] ss:$8 sps:$4 sm:$0xff]  }
 0x330   : > { %6079 = vmatprep.subr.bf16.mxu0 %v9712_v55  ;;  %6499 = vmatprep.subr.bf16.mxu1 %v9715_v53  ;;  %v5749_v55 = vld [vmem:[#allocation3 + $0xb0] sm:$0x1]  ;;  %v5454_v53 = vld [vmem:[#allocation3 + $0x20] sm:$0xff]  ;;  %v5123_v20 = vrot.slane %v5048_v2, 2  ;;  %v6233_v37 = vsel %vm1526_vm1, %v6231_v41, %v6232_v24  ;;  %v9769_v19 = vld [vmem:[%s13109_s7 + $0x5b4] ss:$8 sps:$4 sm:$0xff]  }
 0x331   : > { %5394 = vmatmul.mubr.bf16.gmra.mxu0 %v5152_v57  ;;  %v5814_v29 = vrot.slane %v5749_v55, 1  ;;  %v5462_v57 = vpack.c.bf16 %v5454_v53, %v12015_v49  ;;  %v5821_v33 = vsel %vm890_vm0, %v5819_v63, %v5820_v6  ;;  %v9755_v31 = vld [vmem:[%s13109_s7 + $0x5d0] ss:$8 sps:$4 sm:$0xff]   ;;  %v9761_v12 = vld [vmem:[%s13109_s7 + $0x5c0] ss:$8 sps:$4 sm:$0xff]  }
 0x332   : > { %5403 = vmatprep.mubr.bf16.mxu0 %v5155_v21  ;;  %6080 = vmatpush1.bf16.msra.mxu0 %v9710_v54  ;;  %v5129_v54 = vrot.slane %v5052_v52, 2  ;;  %v6293_v21 = vpack.c.bf16 %v6239_v60, %v6233_v37  ;;  %v5124_v49 = vsel %vm1526_vm1, %v5122_v47, %v5123_v20  ;;  %v9758_v51 = vld [vmem:[%s13109_s7 + $0x4d0] ss:$8 sps:$4 sm:$0xff]   ;;  %v9775_v14 = vld [vmem:[%s13109_s7 + $0x5a4] ss:$8 sps:$4 sm:$0xff]  }
 0x333   : > { %6500 = vmatpush1.bf16.msra.mxu1 %v9713_v61  ;;  %6081 = vmatprep.subr.bf16.mxu0 %v9718_v9  ;;  %v9728_v61 = vld [vmem:[%s13109_s7 + $0x420] ss:$8 sps:$4 sm:$0xff]   ;;  %v9731_v9 = vld [vmem:[%s13109_s7 + $0x510] ss:$8 sps:$4 sm:$0xff]   ;;  %v5815_v22 = vsel %vm890_vm0, %v5813_v28, %v5814_v29  ;;  %v9778_v39 = vld [vmem:[%s13109_s7 + $0x4a4] ss:$8 sps:$4 sm:$0xff]  }
 0x334   : > { %6501 = vmatprep.subr.bf16.mxu1 %v9721_v48  ;;  %v5130_v48 = vsel %vm1526_vm1, %v5128_v4, %v5129_v54  ;;  %v5875_v46 = vpack.c.bf16 %v5821_v33, %v5815_v22  ;;  %v6168_v52 = vld [vmem:[#allocation3 + $0x8] sm:$0xfc]  ;;  %v6170_v50 = vld [vmem:[#allocation3 + $0x58] sm:$0x3]  ;;  %v9781_v13 = vld [vmem:[%s13109_s7 + $0x594] ss:$8 sps:$4 sm:$0xff]  }
 0x335   : > { %v5156_v44 = vpack.c.bf16 %v5130_v48, %v5124_v49  ;;  %v9773_v17 = vld [vmem:[%s13109_s7 + $0x5a0] ss:$8 sps:$4 sm:$0xff]   ;;  %v6234_v41 = vrot.slane %v6168_v52, 2  ;;  %v6235_v2 = vrot.slane %v6170_v50, 2  ;;  %v6175_v4 = vld [vmem:[#allocation3 + $0x38] sm:$0x3] }
 0x336   : > { %5710 = vmatmul.mubr.bf16.gmra.mxu1 %v5460_v42  ;;  %6082 = vmatpush1.bf16.msra.mxu0 %v9716_v27  ;;  %v9737_v27 = vld [vmem:[%s13109_s7 + $0x500] ss:$8 sps:$4 sm:$0xff]   ;;  %v9787_v55 = vld [vmem:[%s13109_s7 + $0x584] ss:$8 sps:$4 sm:$0xff]   ;;  %v5752_v20 = vld [vmem:[#allocation3 + $0x58] sm:$0x1] }
 0x337   : > { %5719 = vmatprep.mubr.bf16.mxu1 %v5463_v1  ;;  %6502 = vmatpush1.bf16.msra.mxu1 %v9719_v40  ;;  %v9742_v40 = vld [vmem:[%s13109_s7 + $0x404] ss:$8 sps:$4 sm:$0xff]   ;;  %v9752_v42 = vld [vmem:[%s13109_s7 + $0x4e0] ss:$8 sps:$4 sm:$0xff]   ;;  %v6244_v29 = vrot.slane %v6175_v4, 2 }
 0x338   : > { %6083 = vmatprep.subr.bf16.mxu0 %v9724_v8  ;;  %6503 = vmatprep.subr.bf16.mxu1 %v9727_v43  ;;  %v9751_v8 = vld [vmem:[%s13109_s7 + $0x5e4] ss:$8 sps:$4 sm:$0xff]   ;;  %v6166_v32 = vld [vmem:[#allocation3 + $0xe8] sm:$0x3] }
 0x339   : > { %5404 = vmatmul.mubr.bf16.gmra.mxu0 %v5154_v16  ;;  %v9763_v43 = vld [vmem:[%s13109_s7 + $0x5c4] ss:$8 sps:$4 sm:$0xff]   ;;  %v6179_v53 = vld [vmem:[#allocation3 + $0x48] sm:$0x3]  ;;  %v6229_v60 = vrot.slane %v6166_v32, 2 }
 0x33a   : > { %5413 = vmatprep.mubr.bf16.mxu0 %v5157_v30  ;;  %6084 = vmatpush1.bf16.msra.mxu0 %v9722_v15  ;;  %v9760_v15 = vld [vmem:[%s13109_s7 + $0x4d4] ss:$8 sps:$4 sm:$0xff]   ;;  %v9766_v1 = vld [vmem:[%s13109_s7 + $0x4c4] ss:$8 sps:$4 sm:$0xff]   ;;  %v12365_v6 = vld [vmem:[#allocation3 + $0xe8] sm:$0x1] }
 0x33b   : > { %6504 = vmatpush1.bf16.msra.mxu1 %v9725_v59  ;;  %6085 = vmatprep.subr.bf16.mxu0 %v9730_v5  ;;  %v9764_v59 = vld [vmem:[%s13109_s7 + $0x4c0] ss:$8 sps:$4 sm:$0xff]   ;;  %v9767_v5 = vld [vmem:[%s13109_s7 + $0x5b0] ss:$8 sps:$4 sm:$0xff]   ;;  %v9784_v30 = vld [vmem:[%s13109_s7 + $0x494] ss:$8 sps:$4 sm:$0xff]  }
 0x33c   : > { %6505 = vmatprep.subr.bf16.mxu1 %v9733_v36  ;;  %v9770_v36 = vld [vmem:[%s13109_s7 + $0x4b0] ss:$8 sps:$4 sm:$0xff]   ;;  %v6164_v16 = vld [vmem:[#allocation3 + $0xa0] sm:$0xfc]  ;;  %v5750_v47 = vld [vmem:[#allocation3 + $0x8] sm:$0xfe] }
 0x33d   : > { %v6173_v24 = vld [vmem:[#allocation3 + $0x80] sm:$0xfc]  ;;  %v5761_v37 = vld [vmem:[#allocation3 + $0x48] sm:$0x1]  ;;  %v5811_v49 = vrot.slane %v12365_v6, 1  ;;  %v5816_v22 = vrot.slane %v5750_v47, 1 }
 0x33e   : > { %5720 = vmatmul.mubr.bf16.gmra.mxu1 %v5462_v57  ;;  %6086 = vmatpush1.bf16.msra.mxu0 %v9728_v61  ;;  %v6177_v54 = vld [vmem:[#allocation3 + $0xe0] sm:$0xfc]  ;;  %v6228_v61 = vrot.slane %v6164_v16, 2  ;;  %v6243_v28 = vrot.slane %v6173_v24, 2  ;;  %v9805_v6 = vld [vmem:[%s13109_s7 + $0x754] ss:$8 sps:$4 sm:$0xff]  }
 0x33f   : > { %6506 = vmatpush1.bf16.msra.mxu1 %v9731_v9  ;;  %6525 = vmatprep.mubr.bf16.mxu1 %v6293_v21  ;;  %v12363_v63 = vld [vmem:[#allocation3 + $0xa0] sm:$0xfe]  ;;  %v9782_v9 = vld [vmem:[%s13109_s7 + $0x490] ss:$8 sps:$4 sm:$0xff]   ;;  %v6250_v21 = vrot.slane %v6179_v53, 2 }
 0x340   : > { %6087 = vmatprep.subr.bf16.mxu0 %v9736_v0  ;;  %6507 = vmatprep.subr.bf16.mxu1 %v9739_v35  ;;  %v5759_v57 = vld [vmem:[#allocation3 + $0xe0] sm:$0xfe]  ;;  %v6249_v35 = vrot.slane %v6177_v54, 2  ;;  %v5810_v33 = vrot.slane %v12363_v63, 1  ;;  %v5754_v54 = vld [vmem:[#allocation3 + $0x138] sm:$0xfe] }
 0x341   : > { %5414 = vmatmul.mubr.bf16.gmra.mxu0 %v5156_v44  ;;  %v9785_v48 = vld [vmem:[%s13109_s7 + $0x580] ss:$8 sps:$4 sm:$0xff]   ;;  %v9790_v0 = vld [vmem:[%s13109_s7 + $0x484] ss:$8 sps:$4 sm:$0xff]   ;;  %v9793_v44 = vld [vmem:[%s13109_s7 + $0x774] ss:$8 sps:$4 sm:$0xff]  }
 0x342   : > { %6088 = vmatpush1.bf16.msra.mxu0 %v9734_v56  ;;  %6107 = vmatprep.mubr.bf16.mxu0 %v5875_v46  ;;  %v6236_v56 = vsel %vm1526_vm1, %v6234_v41, %v6235_v2  ;;  %v5757_v46 = vld [vmem:[#allocation3 + $0x38] sm:$0x1]  ;;  %v9797_v24 = vld [vmem:[%s13109_s7 + $0x760] ss:$8 sps:$4 sm:$0xff]   ;;  %v9802_v4 = vld [vmem:[%s13109_s7 + $0x664] ss:$8 sps:$4 sm:$0xff]   ;;  %v5812_v63 = vsel %vm890_vm0, %v5810_v33, %v5811_v49 }
 0x343   : > { %6508 = vmatpush1.bf16.msra.mxu1 %v9737_v27  ;;  %6089 = vmatprep.subr.bf16.mxu0 %v9742_v40  ;;  %v5817_v27 = vrot.slane %v5752_v20, 1  ;;  %v5755_v40 = vld [vmem:[#allocation3 + $0x80] sm:$0xfe]  ;;  %v5769_v53 = vld [vmem:[#allocation3 + $0x108] sm:$0x1] }
 0x344   : > { %6509 = vmatprep.subr.bf16.mxu1 %v9745_v25  ;;  %v5831_v25 = vrot.slane %v5759_v57, 1  ;;  %v5763_v20 = vld [vmem:[#allocation3 + $0x128] sm:$0xfe]  ;;  %v6186_v33 = vld [vmem:[#allocation3 + $0x78] sm:$0x3] }
 0x345   : > { %v5818_v52 = vsel %vm890_vm0, %v5816_v22, %v5817_v27  ;;  %v12428_v57 = vld [vmem:[#allocation3 + $0x28] sm:$0xfc]  ;;  %v5822_v27 = vrot.slane %v5754_v54, 1  ;;  %v5773_v54 = vld [vmem:[#allocation3 + $0x18] sm:$0x1] }
 0x346   : > { %6090 = vmatpush1.bf16.msra.mxu0 %v9740_v45  ;;  %v5832_v45 = vrot.slane %v5761_v37, 1  ;;  %v12430_v37 = vld [vmem:[#allocation3 + $0x118] sm:$0x3]  ;;  %v9800_v49 = vld [vmem:[%s13109_s7 + $0x660] ss:$8 sps:$4 sm:$0xff]  }
 0x347   : > { %6510 = vmatpush2.bf16.msra.mxu1 %v9743_v62  ;;  %6091 = vmatprep.subr.bf16.mxu0 %v9748_v38  ;;  %v12382_v62 = vld [vmem:[#allocation3 + $0x138] sm:$0xfc]  ;;  %v12384_v38 = vld [vmem:[#allocation3 + $0xf8] sm:$0x3] }
 0x348   : > { %6511 = vmatprep.subr.bf16.mxu1 %v9751_v8  ;;  %v9788_v8 = vld [vmem:[%s13109_s7 + $0x480] ss:$8 sps:$4 sm:$0xff]  }
 0x34a   : > { %6092 = vmatpush2.bf16.msra.mxu0 %v9746_v3  ;;  %v6230_v3 = vsel %vm1526_vm1, %v6228_v61, %v6229_v60  ;;  %v5756_v61 = vld [vmem:[#allocation3 + $0xf8] sm:$0x1] }
 0x34b   : > { %6512 = vmatpush2.bf16.msra.mxu1 %v9749_v7  ;;  %6093 = vmatprep.subr.bf16.mxu0 %v9754_v18  ;;  %v12390_v7 = vld [vmem:[#allocation3 + $0x30] sm:$0xfc]  ;;  %v6178_v18 = vld [vmem:[#allocation3 + $0xb8] sm:$0x3] }
 0x34c   : > { %6513 = vmatprep.subr.bf16.mxu1 %v9757_v58  ;;  %v12392_v58 = vld [vmem:[#allocation3 + $0x128] sm:$0xfc]  ;;  %v6246_v50 = vrot.slane %v12390_v7, 2  ;;  %v6253_v7 = vrot.slane %v12430_v37, 2 }
 0x34d   : > { %v6255_v16 = vrot.slane %v12392_v58, 2 }
 0x34e   : > { %6094 = vmatpush2.bf16.msra.mxu0 %v9752_v42  ;;  %v6292_v42 = vpack.c.bf16 %v6236_v56, %v6230_v3  ;;  %v6252_v3 = vrot.slane %v12428_v57, 2 }
 0x34f   : > { %6514 = vmatpush2.bf16.msra.mxu1 %v9755_v31  ;;  %6095 = vmatprep.subr.bf16.mxu0 %v9760_v15  ;;  %v9791_v31 = vld [vmem:[%s13109_s7 + $0x770] ss:$8 sps:$4 sm:$0xff]   ;;  %v6251_v15 = vsel %vm1526_vm1, %v6249_v35, %v6250_v21  ;;  %v5844_v35 = vrot.slane %v5769_v53, 1  ;;  %v9817_v53 = vld [vmem:[%s13109_s7 + $0x734] ss:$8 sps:$4 sm:$0xff]  }
 0x350   : > { %6515 = vmatprep.subr.bf16.mxu1 %v9763_v43  ;;  %v12398_v43 = vld [vmem:[#allocation3 + $0x100] sm:$0x3]  ;;  %v6184_v21 = vld [vmem:[#allocation3 + $0x98] sm:$0xfc]  ;;  %v6254_v57 = vsel %vm1526_vm1, %v6252_v3, %v6253_v7 }
 0x351   : > { %v6256_v32 = vrot.slane %v12398_v43, 2  ;;  %v6195_v43 = vld [vmem:[#allocation3 + $0x120] sm:$0x3] }
 0x352   : > { %6096 = vmatpush2.bf16.msra.mxu0 %v9758_v51  ;;  %v6185_v51 = vld [vmem:[#allocation3] sm:$0xfc] }
 0x353   : > { %6516 = vmatpush2.bf16.msra.mxu1 %v9761_v12  ;;  %6097 = vmatprep.subr.bf16.mxu0 %v9766_v1  ;;  %v6187_v12 = vld [vmem:[#allocation3 + $0x108] sm:$0x3]  ;;  %v9796_v1 = vld [vmem:[%s13109_s7 + $0x674] ss:$8 sps:$4 sm:$0xff]   ;;  %v6261_v41 = vrot.slane %v6185_v51, 2 }
 0x354   : > { %6517 = vmatprep.subr.bf16.mxu1 %v9769_v19  ;;  %v5825_v19 = vrot.slane %v5755_v40, 1  ;;  %v6262_v2 = vrot.slane %v6187_v12, 2  ;;  %v5823_v40 = vrot.slane %v5756_v61, 1  ;;  %v6257_v12 = vsel %vm1526_vm1, %v6255_v16, %v6256_v32  ;;  %v5762_v32 = vld [vmem:[#allocation3 + $0x28] sm:$0xfe] }
 0x355   : > { %v6274_v16 = vrot.slane %v6195_v43, 2  ;;  %v6890_v3 = vld [vmem:[#allocation3 + $0x40] sm:$0xfe] }
 0x356   : > { %6098 = vmatpush2.bf16.msra.mxu0 %v9764_v59  ;;  %v5826_v59 = vrot.slane %v5757_v46, 1  ;;  %v6263_v22 = vsel %vm1526_vm1, %v6261_v41, %v6262_v2  ;;  %v9808_v46 = vld [vmem:[%s13109_s7 + $0x654] ss:$8 sps:$4 sm:$0xff]   ;;  %v5764_v41 = vld [vmem:[#allocation3 + $0x118] sm:$0x1] }
 0x357   : > { %6518 = vmatpush2.bf16.msra.mxu1 %v9767_v5  ;;  %6099 = vmatprep.subr.bf16.mxu0 %v9772_v10  ;;  %v6240_v5 = vrot.slane %v12382_v62, 2  ;;  %v6241_v10 = vrot.slane %v12384_v38, 2  ;;  %v6191_v62 = vld [vmem:[#allocation3 + $0x18] sm:$0x3]  ;;  %v9821_v43 = vld [vmem:[%s13109_s7 + $0x720] ss:$8 sps:$4 sm:$0xff]  }
 0x358   : > { %6519 = vmatprep.subr.bf16.mxu1 %v9775_v14  ;;  %v6245_v14 = vsel %vm1526_vm1, %v6243_v28, %v6244_v29  ;;  %v5827_v28 = vsel %vm890_vm0, %v5825_v19, %v5826_v59  ;;  %v5765_v29 = vld [vmem:[#allocation3 + $0x100] sm:$0x1]  ;;  %v6189_v19 = vld [vmem:[#allocation3 + $0xd0] sm:$0xfc]  ;;  %v5766_v59 = vld [vmem:[#allocation3 + $0x98] sm:$0xfe] }
 0x35a   : > { %6100 = vmatpush2.bf16.msra.mxu0 %v9770_v36  ;;  %v6247_v36 = vrot.slane %v6178_v18, 2  ;;  %v6242_v18 = vsel %vm1526_vm1, %v6240_v5, %v6241_v10  ;;  %v6297_v5 = vpack.c.bf16 %v6263_v22, %v6257_v12  ;;  %v5824_v10 = vsel %vm890_vm0, %v5822_v27, %v5823_v40  ;;  %v6896_v22 = vld [vmem:[#allocation3 + $0x38] sm:$0x1] }
 0x35b   : > { %6520 = vmatpush2.bf16.msra.mxu1 %v9773_v17  ;;  %6101 = vmatprep.subr.bf16.mxu0 %v9778_v39  ;;  %v5758_v17 = vld [vmem:[#allocation3 + $0x30] sm:$0xfe]  ;;  %v5760_v39 = vld [vmem:[#allocation3 + $0xb8] sm:$0x1] }
 0x35c   : > { %6521 = vmatprep.subr.bf16.mxu1 %v9781_v13  ;;  %v9794_v13 = vld [vmem:[%s13109_s7 + $0x670] ss:$8 sps:$4 sm:$0xff]   ;;  %v5828_v60 = vrot.slane %v5758_v17, 1  ;;  %v5829_v47 = vrot.slane %v5760_v39, 1  ;;  %v6248_v56 = vsel %vm1526_vm1, %v6246_v50, %v6247_v36  ;;  %v5775_v36 = vld [vmem:[#allocation3 + $0xc8] sm:$0xfe] }
 0x35d   : > { %v6294_v51 = vpack.c.bf16 %v6248_v56, %v6242_v18  ;;  %v5768_v50 = vld [vmem:[#allocation3 + $0x78] sm:$0x1]  ;;  %v5777_v17 = vld [vmem:[#allocation3 + $0x120] sm:$0x1]  ;;  %v5855_v61 = vrot.slane %v5775_v36, 1 }
 0x35e   : > { %6102 = vmatpush2.bf16.msra.mxu0 %v9776_v26  ;;  %v9799_v26 = vld [vmem:[%s13109_s7 + $0x764] ss:$8 sps:$4 sm:$0xff]   ;;  %v5830_v58 = vsel %vm890_vm0, %v5828_v60, %v5829_v47  ;;  %v5856_v60 = vrot.slane %v5777_v17, 1  ;;  %v9815_v47 = vld [vmem:[%s13109_s7 + $0x730] ss:$8 sps:$4 sm:$0xff]  }
 0x35f   : > { %6522 = vmatpush2.bf16.msra.mxu1 %v9779_v11  ;;  %6103 = vmatprep.subr.bf16.mxu0 %v9784_v30  ;;  %v6295_v11 = vpack.c.bf16 %v6251_v15, %v6245_v14  ;;  %v5833_v30 = vsel %vm890_vm0, %v5831_v25, %v5832_v45  ;;  %v5837_v25 = vrot.slane %v5763_v20, 1  ;;  %v5838_v45 = vrot.slane %v5765_v29, 1  ;;  %v6193_v15 = vld [vmem:[#allocation3 + $0xc8] sm:$0xfc]  ;;  %v6194_v29 = vld [vmem:[#allocation3 + $0x70] sm:$0x3] }
 0x360   : > { %6523 = vmatprep.subr.bf16.mxu1 %v9787_v55  ;;  %v5767_v55 = vld [vmem:[#allocation3] sm:$0xfe]  ;;  %v5876_v39 = vpack.c.bf16 %v5830_v58, %v5824_v10  ;;  %v5834_v20 = vrot.slane %v5762_v32, 1  ;;  %v6188_v56 = vld [vmem:[#allocation3 + $0x110] sm:$0xfc] }
 0x361   : > { %v9809_v14 = vld [vmem:[%s13109_s7 + $0x740] ss:$8 sps:$4 sm:$0xff]   ;;  %v9818_v40 = vld [vmem:[%s13109_s7 + $0x630] ss:$8 sps:$4 sm:$0xff]  }
 0x362   : > { %6104 = vmatpush2.bf16.msra.mxu0 %v9782_v9  ;;  %v5874_v9 = vpack.c.bf16 %v5818_v52, %v5812_v63  ;;  %v9814_v52 = vld [vmem:[%s13109_s7 + $0x644] ss:$8 sps:$4 sm:$0xff]   ;;  %v5840_v63 = vrot.slane %v5766_v59, 1  ;;  %v6892_v18 = vld [vmem:[#allocation3 + $0xc0] sm:$0x1] }
 0x363   : > { %6524 = vmatpush2.bf16.msra.mxu1 %v9785_v48  ;;  %6105 = vmatprep.subr.bf16.mxu0 %v9790_v0  ;;  %v5877_v48 = vpack.c.bf16 %v5833_v30, %v5827_v28  ;;  %v5843_v0 = vrot.slane %v5767_v55, 1  ;;  %v6267_v30 = vrot.slane %v6189_v19, 2  ;;  %v9812_v55 = vld [vmem:[%s13109_s7 + $0x640] ss:$8 sps:$4 sm:$0xff]   ;;  %v5772_v10 = vld [vmem:[#allocation3 + $0x10] sm:$0x1] }
 0x364   : > { %7218 = vmatprep.subr.bf16.mxu1 %v9793_v44  ;;  %v9803_v44 = vld [vmem:[%s13109_s7 + $0x750] ss:$8 sps:$4 sm:$0xff]   ;;  %v6192_v28 = vld [vmem:[#allocation3 + $0x20] sm:$0xfc]  ;;  %v5847_v32 = vrot.slane %v5772_v10, 1 }
 0x365   : > { %v5845_v38 = vsel %vm890_vm0, %v5843_v0, %v5844_v35  ;;  %v5850_v35 = vrot.slane %v5773_v54, 1  ;;  %v5774_v58 = vld [vmem:[#allocation3 + $0x20] sm:$0xfe] }
 0x366   : > { %6106 = vmatpush2.bf16.msra.mxu0 %v9788_v8  ;;  %6526 = vmatmul.mubr.bf16.vlgmr.msra.gmra.mxu1 %v6292_v42  ;;  %v9811_v8 = vld [vmem:[%s13109_s7 + $0x744] ss:$8 sps:$4 sm:$0xff]   ;;  %v6258_v42 = vrot.slane %v6184_v21, 2  ;;  %v5852_v36 = vrot.slane %v5774_v58, 1  ;;  %v9869_v58 = vld [vmem:[%s13109_s7 + $0x7a0] ss:$8 sps:$4 sm:$0xff]  }
 0x367   : > { %6535 = vmatprep.mubr.bf16.mxu1 %v6295_v11  ;;  %7219 = vmatpush1.bf16.msra.mxu1 %v9791_v31  ;;  %v6259_v31 = vrot.slane %v6186_v33, 2  ;;  %v9823_v21 = vld [vmem:[%s13109_s7 + $0x724] ss:$8 sps:$4 sm:$0xff]  }
 0x368   : > { %6800 = vmatprep.subr.bf16.mxu0 %v9796_v1  ;;  %7220 = vmatprep.subr.bf16.mxu1 %v9799_v26  ;;  %v9806_v1 = vld [vmem:[%s13109_s7 + $0x650] ss:$8 sps:$4 sm:$0xff]   ;;  %v6273_v26 = vrot.slane %v6193_v15, 2  ;;  %v9835_v54 = vld [vmem:[%s13109_s7 + $0x704] ss:$8 sps:$4 sm:$0xff]  }
 0x369   : > { %6108 = vmatmul.mubr.bf16.vlgmr.msra.gmra.mxu0 %v5874_v9  ;;  %v6260_v11 = vsel %vm1526_vm1, %v6258_v42, %v6259_v31  ;;  %v5835_v9 = vrot.slane %v5764_v41, 1  ;;  %v5776_v42 = vld [vmem:[#allocation3 + $0x70] sm:$0x1] }
 0x36a   : > { %6117 = vmatprep.mubr.bf16.mxu0 %v5877_v48  ;;  %6801 = vmatpush1.bf16.msra.mxu0 %v9794_v13  ;;  %v5839_v13 = vsel %vm890_vm0, %v5837_v25, %v5838_v45  ;;  %v6275_v37 = vsel %vm1526_vm1, %v6273_v26, %v6274_v16  ;;  %v9820_v48 = vld [vmem:[%s13109_s7 + $0x634] ss:$8 sps:$4 sm:$0xff]   ;;  %v6296_v33 = vpack.c.bf16 %v6260_v11, %v6254_v57  ;;  %v6190_v25 = vld [vmem:[#allocation3 + $0x10] sm:$0x3]  ;;  %v6270_v45 = vrot.slane %v6192_v28, 2 }
 0x36b   : > { %7221 = vmatpush1.bf16.msra.mxu1 %v9797_v24  ;;  %6802 = vmatprep.subr.bf16.mxu0 %v9802_v4  ;;  %v5879_v2 = vpack.c.bf16 %v5845_v38, %v5839_v13  ;;  %v6268_v24 = vrot.slane %v6191_v62, 2  ;;  %v5771_v4 = vld [vmem:[#allocation3 + $0xd0] sm:$0xfe]  ;;  %v5836_v31 = vsel %vm890_vm0, %v5834_v20, %v5835_v9  ;;  %v6264_v62 = vrot.slane %v6188_v56, 2  ;;  %v9824_v13 = vld [vmem:[%s13109_s7 + $0x620] ss:$8 sps:$4 sm:$0xff]  }
 0x36c   : > { %7222 = vmatprep.subr.bf16.mxu1 %v9805_v6  ;;  %v5841_v6 = vrot.slane %v5768_v50, 1  ;;  %v5849_v0 = vrot.slane %v5771_v4, 1  ;;  %v6265_v59 = vrot.slane %v6190_v25, 2  ;;  %v6957_v50 = vrot.slane %v6892_v18, 1  ;;  %v9832_v4 = vld [vmem:[%s13109_s7 + $0x614] ss:$8 sps:$4 sm:$0xff]  }
 0x36d   : > { %v5853_v17 = vrot.slane %v5776_v42, 1  ;;  %v9838_v20 = vld [vmem:[%s13109_s7 + $0x604] ss:$8 sps:$4 sm:$0xff]   ;;  %v9841_v28 = vld [vmem:[%s13109_s7 + $0x7f4] ss:$8 sps:$4 sm:$0xff]  }
 0x36e   : > { %6536 = vmatmul.mubr.bf16.gmra.mxu1 %v6294_v51  ;;  %6803 = vmatpush1.bf16.msra.mxu0 %v9800_v49  ;;  %v6269_v49 = vsel %vm1526_vm1, %v6267_v30, %v6268_v24  ;;  %v5842_v27 = vsel %vm890_vm0, %v5840_v63, %v5841_v6  ;;  %v5851_v15 = vsel %vm890_vm0, %v5849_v0, %v5850_v35  ;;  %v9826_v51 = vld [vmem:[%s13109_s7 + $0x624] ss:$8 sps:$4 sm:$0xff]   ;;  %v9830_v6 = vld [vmem:[%s13109_s7 + $0x610] ss:$8 sps:$4 sm:$0xff]   ;;  %v9845_v35 = vld [vmem:[%s13109_s7 + $0x7e0] ss:$8 sps:$4 sm:$0xff]  }
 0x36f   : > { %6545 = vmatprep.mubr.bf16.mxu1 %v6297_v5  ;;  %7223 = vmatpush1.bf16.msra.mxu1 %v9803_v44  ;;  %v6894_v44 = vld [vmem:[#allocation3 + $0x80] sm:$0xfe]  ;;  %v6299_v7 = vpack.c.bf16 %v6275_v37, %v6269_v49  ;;  %v5878_v38 = vpack.c.bf16 %v5842_v27, %v5836_v31  ;;  %v5770_v5 = vld [vmem:[#allocation3 + $0x110] sm:$0xfe]  ;;  %v6266_v41 = vsel %vm1526_vm1, %v6264_v62, %v6265_v59  ;;  %v6889_v59 = vld [vmem:[#allocation3 + $0x8] sm:$0xfe] }
 0x370   : > { %6804 = vmatprep.subr.bf16.mxu0 %v9808_v46  ;;  %7224 = vmatprep.subr.bf16.mxu1 %v9811_v8  ;;  %v5857_v46 = vsel %vm890_vm0, %v5855_v61, %v5856_v60  ;;  %v6271_v8 = vrot.slane %v6194_v29, 2  ;;  %v6962_v12 = vrot.slane %v6894_v44, 1  ;;  %v5846_v16 = vrot.slane %v5770_v5, 1  ;;  %v6584_v60 = vld [vmem:[#allocation3 + $0x40] sm:$0xff]  ;;  %v9839_v57 = vld [vmem:[%s13109_s7 + $0x7f0] ss:$8 sps:$4 sm:$0xff]  }
 0x371   : > { %6118 = vmatmul.mubr.bf16.gmra.mxu0 %v5876_v39  ;;  %v5881_v19 = vpack.c.bf16 %v5857_v46, %v5851_v15  ;;  %v5854_v24 = vsel %vm890_vm0, %v5852_v36, %v5853_v17  ;;  %v9836_v29 = vld [vmem:[%s13109_s7 + $0x600] ss:$8 sps:$4 sm:$0xff]   ;;  %v9844_v37 = vld [vmem:[%s13109_s7 + $0x6f4] ss:$8 sps:$4 sm:$0xff]   ;;  %v9842_v0 = vld [vmem:[%s13109_s7 + $0x6f0] ss:$8 sps:$4 sm:$0xff]  }
 0x372   : > { %6127 = vmatprep.mubr.bf16.mxu0 %v5879_v2  ;;  %6805 = vmatpush1.bf16.msra.mxu0 %v9806_v1  ;;  %v6963_v1 = vrot.slane %v6896_v22, 1  ;;  %v6272_v39 = vsel %vm1526_vm1, %v6270_v45, %v6271_v8  ;;  %v9827_v2 = vld [vmem:[%s13109_s7 + $0x710] ss:$8 sps:$4 sm:$0xff]   ;;  %v5848_v63 = vsel %vm890_vm0, %v5846_v16, %v5847_v32  ;;  %v9848_v49 = vld [vmem:[%s13109_s7 + $0x6e0] ss:$8 sps:$4 sm:$0xff]   ;;  %v6953_v16 = vrot.slane %v6889_v59, 1 }
 0x373   : > { %7225 = vmatpush1.bf16.msra.mxu1 %v9809_v14  ;;  %6806 = vmatprep.subr.bf16.mxu0 %v9814_v52  ;;  %v9829_v14 = vld [vmem:[%s13109_s7 + $0x714] ss:$8 sps:$4 sm:$0xff]   ;;  %v6956_v52 = vrot.slane %v6890_v3, 1  ;;  %v6298_v11 = vpack.c.bf16 %v6272_v39, %v6266_v41  ;;  %v5880_v61 = vpack.c.bf16 %v5854_v24, %v5848_v63  ;;  %v9851_v56 = vld [vmem:[%s13109_s7 + $0x7d0] ss:$8 sps:$4 sm:$0xff]  }
 0x374   : > { %7226 = vmatprep.subr.bf16.mxu1 %v9817_v53  ;;  %v6964_v26 = vsel %vm890_vm0, %v6962_v12, %v6963_v1  ;;  %v6586_v53 = vld [vmem:[#allocation3 + $0x80] sm:$0xff]  ;;  %v9856_v44 = vld [vmem:[%s13109_s7 + $0x6d4] ss:$8 sps:$4 sm:$0xff]   ;;  %v9854_v27 = vld [vmem:[%s13109_s7 + $0x6d0] ss:$8 sps:$4 sm:$0xff]  }
 0x375   : > { %v6958_v30 = vsel %vm890_vm0, %v6956_v52, %v6957_v50  ;;  %v6600_v9 = vpack.c.bf16 %v6586_v53, %v6584_v60  ;;  %v9859_v22 = vld [vmem:[%s13109_s7 + $0x7c4] ss:$8 sps:$4 sm:$0xff]   ;;  %v9865_v25 = vld [vmem:[%s13109_s7 + $0x7b4] ss:$8 sps:$4 sm:$0xff]   ;;  %v9860_v45 = vld [vmem:[%s13109_s7 + $0x6c0] ss:$8 sps:$4 sm:$0xff]  }
 0x376   : > { %6546 = vmatmul.mubr.bf16.gmra.mxu1 %v6296_v33  ;;  %6807 = vmatpush1.bf16.msra.mxu0 %v9812_v55  ;;  %v7018_v55 = vpack.c.bf16 %v6964_v26, %v6958_v30  ;;  %v9853_v33 = vld [vmem:[%s13109_s7 + $0x7d4] ss:$8 sps:$4 sm:$0xff]   ;;  %v9862_v46 = vld [vmem:[%s13109_s7 + $0x6c4] ss:$8 sps:$4 sm:$0xff]   ;;  %v9863_v8 = vld [vmem:[%s13109_s7 + $0x7b0] ss:$8 sps:$4 sm:$0xff]  }
 0x377   : > { %6555 = vmatprep.mubr.bf16.mxu1 %v6299_v7  ;;  %7227 = vmatpush1.bf16.msra.mxu1 %v9815_v47  ;;  %v9833_v47 = vld [vmem:[%s13109_s7 + $0x700] ss:$8 sps:$4 sm:$0xff]   ;;  %v9868_v3 = vld [vmem:[%s13109_s7 + $0x6b4] ss:$8 sps:$4 sm:$0xff]   ;;  %v9871_v7 = vld [vmem:[%s13109_s7 + $0x7a4] ss:$8 sps:$4 sm:$0xff]  }
 0x378   : > { %6808 = vmatprep.subr.bf16.mxu0 %v9820_v48  ;;  %7228 = vmatprep.subr.bf16.mxu1 %v9823_v21  ;;  %v9847_v48 = vld [vmem:[%s13109_s7 + $0x7e4] ss:$8 sps:$4 sm:$0xff]   ;;  %v9866_v18 = vld [vmem:[%s13109_s7 + $0x6b0] ss:$8 sps:$4 sm:$0xff]   ;;  %v9877_v31 = vld [vmem:[%s13109_s7 + $0x794] ss:$8 sps:$4 sm:$0xff]  }
 0x379   : > { %6128 = vmatmul.mubr.bf16.gmra.mxu0 %v5878_v38  ;;  %v9850_v21 = vld [vmem:[%s13109_s7 + $0x6e4] ss:$8 sps:$4 sm:$0xff]   ;;  %v9872_v15 = vld [vmem:[%s13109_s7 + $0x6a0] ss:$8 sps:$4 sm:$0xff]   ;;  %v6895_v12 = vld [vmem:[#allocation3 + $0xf8] sm:$0x1] }
 0x37a   : > { %6137 = vmatprep.mubr.bf16.mxu0 %v5881_v19  ;;  %6809 = vmatpush1.bf16.msra.mxu0 %v9818_v40  ;;  %v9857_v40 = vld [vmem:[%s13109_s7 + $0x7c0] ss:$8 sps:$4 sm:$0xff]   ;;  %v9874_v42 = vld [vmem:[%s13109_s7 + $0x6a4] ss:$8 sps:$4 sm:$0xff]   ;;  %v9880_v1 = vld [vmem:[%s13109_s7 + $0x694] ss:$8 sps:$4 sm:$0xff]  }
 0x37b   : > { %7229 = vmatpush1.bf16.msra.mxu1 %v9821_v43  ;;  %6810 = vmatprep.subr.bf16.mxu0 %v9826_v51  ;;  %v9875_v43 = vld [vmem:[%s13109_s7 + $0x790] ss:$8 sps:$4 sm:$0xff]   ;;  %v6902_v38 = vld [vmem:[#allocation3 + $0x128] sm:$0xfe]  ;;  %v6904_v19 = vld [vmem:[#allocation3 + $0x100] sm:$0x1] }
 0x37c   : > { %7230 = vmatprep.subr.bf16.mxu1 %v9829_v14  ;;  %v6893_v51 = vld [vmem:[#allocation3 + $0x138] sm:$0xfe]  ;;  %v9883_v62 = vld [vmem:[%s13109_s7 + $0x784] ss:$8 sps:$4 sm:$0xff]   ;;  %v6891_v5 = vld [vmem:[#allocation3 + $0x58] sm:$0x1] }
 0x37d   : > { %v6959_v10 = vrot.slane %v6893_v51, 1  ;;  %v6960_v14 = vrot.slane %v6895_v12, 1  ;;  %v6898_v52 = vld [vmem:[#allocation3 + $0xe0] sm:$0xfe]  ;;  %v6900_v50 = vld [vmem:[#allocation3 + $0x48] sm:$0x1] }
 0x37e   : > { %6556 = vmatmul.mubr.bf16.gmra.mxu1 %v6298_v11  ;;  %6811 = vmatpush1.bf16.msra.mxu0 %v9824_v13  ;;  %v9878_v36 = vld [vmem:[%s13109_s7 + $0x690] ss:$8 sps:$4 sm:$0xff]   ;;  %v6974_v17 = vrot.slane %v6902_v38, 1  ;;  %v6975_v39 = vrot.slane %v6904_v19, 1  ;;  %v9881_v13 = vld [vmem:[%s13109_s7 + $0x780] ss:$8 sps:$4 sm:$0xff]  }
 0x37f   : > { %7231 = vmatpush1.bf16.msra.mxu1 %v9827_v2  ;;  %7250 = vmatprep.mubr.bf16.mxu1 %v7018_v55  ;;  %v9886_v26 = vld [vmem:[%s13109_s7 + $0x684] ss:$8 sps:$4 sm:$0xff]   ;;  %v6954_v32 = vrot.slane %v6891_v5, 1  ;;  %v6968_v41 = vrot.slane %v6898_v52, 1  ;;  %v6969_v2 = vrot.slane %v6900_v50, 1  ;;  %v6961_v11 = vsel %vm890_vm0, %v6959_v10, %v6960_v14  ;;  %v6585_v55 = vld [vmem:[#allocation3 + $0x138] sm:$0xff] }
 0x380   : > { %6812 = vmatprep.subr.bf16.mxu0 %v9832_v4  ;;  %7232 = vmatprep.subr.bf16.mxu1 %v9835_v54  ;;  %v6901_v30 = vld [vmem:[#allocation3 + $0x28] sm:$0xfe]  ;;  %v6903_v24 = vld [vmem:[#allocation3 + $0x118] sm:$0x1]  ;;  %v6976_v54 = vsel %vm890_vm0, %v6974_v17, %v6975_v39  ;;  %v6910_v53 = vld [vmem:[#allocation3 + $0xd0] sm:$0xfe] }
 0x381   : > { %6138 = vmatmul.mubr.bf16.gmra.mxu0 %v5880_v61  ;;  %v9884_v4 = vld [vmem:[%s13109_s7 + $0x680] ss:$8 sps:$4 sm:$0xff]   ;;  %v6912_v63 = vld [vmem:[#allocation3 + $0x18] sm:$0x1]  ;;  %v9889_v61 = vld [vmem:[%s13109_s7 + $0x874] ss:$8 sps:$4 sm:$0xff]  }
 0x382   : > { %6813 = vmatpush1.bf16.msra.mxu0 %v9830_v6  ;;  %6832 = vmatprep.mubr.bf16.mxu0 %v6600_v9  ;;  %v6955_v6 = vsel %vm890_vm0, %v6953_v16, %v6954_v32  ;;  %v6897_v60 = vld [vmem:[#allocation3 + $0x30] sm:$0xfe]  ;;  %v6970_v9 = vsel %vm890_vm0, %v6968_v41, %v6969_v2  ;;  %v6914_v51 = vld [vmem:[#allocation3 + $0xc8] sm:$0xfe]  ;;  %v6916_v38 = vld [vmem:[#allocation3 + $0x120] sm:$0x1] }
 0x383   : > { %7233 = vmatpush1.bf16.msra.mxu1 %v9833_v47  ;;  %6814 = vmatprep.subr.bf16.mxu0 %v9838_v20  ;;  %v6899_v47 = vld [vmem:[#allocation3 + $0xb8] sm:$0x1]  ;;  %v7017_v20 = vpack.c.bf16 %v6961_v11, %v6955_v6  ;;  %v6918_v19 = vld [vmem:[#allocation3 + $0xf0] sm:$0xfe]  ;;  %v6589_v52 = vld [vmem:[#allocation3 + $0x28] sm:$0xff]  ;;  %v6992_v11 = vrot.slane %v6914_v51, 1 }
 0x384   : > { %7234 = vmatprep.subr.bf16.mxu1 %v9841_v28  ;;  %v6971_v28 = vrot.slane %v6901_v30, 1  ;;  %v9895_v50 = vld [vmem:[%s13109_s7 + $0x854] ss:$8 sps:$4 sm:$0xff]   ;;  %v6993_v30 = vrot.slane %v6916_v38, 1 }
 0x385   : > { %v6905_v39 = vld [vmem:[#allocation3 + $0x98] sm:$0xfe]  ;;  %v6594_v2 = vld [vmem:[#allocation3 + $0xd0] sm:$0xff] }
 0x386   : > { %6815 = vmatpush1.bf16.msra.mxu0 %v9836_v29  ;;  %v6972_v29 = vrot.slane %v6903_v24, 1  ;;  %v6998_v24 = vrot.slane %v6918_v19, 1  ;;  %v9899_v19 = vld [vmem:[%s13109_s7 + $0x830] ss:$8 sps:$4 sm:$0xff]  }
 0x387   : > { %7235 = vmatpush2.bf16.msra.mxu1 %v9839_v57  ;;  %6816 = vmatprep.subr.bf16.mxu0 %v9844_v37  ;;  %v6906_v57 = vld [vmem:[#allocation3] sm:$0xfe]  ;;  %v6908_v37 = vld [vmem:[#allocation3 + $0x108] sm:$0x1] }
 0x388   : > { %7236 = vmatprep.subr.bf16.mxu1 %v9847_v48 }
 0x38a   : > { %6817 = vmatpush2.bf16.msra.mxu0 %v9842_v0  ;;  %v7020_v0 = vpack.c.bf16 %v6976_v54, %v6970_v9 }
 0x38b   : > { %7237 = vmatpush2.bf16.msra.mxu1 %v9845_v35  ;;  %6818 = vmatprep.subr.bf16.mxu0 %v9850_v21  ;;  %v6590_v35 = vld [vmem:[#allocation3 + $0x128] sm:$0xff]  ;;  %v6986_v21 = vrot.slane %v6910_v53, 1  ;;  %v9893_v53 = vld [vmem:[%s13109_s7 + $0x850] ss:$8 sps:$4 sm:$0xff]  }
 0x38c   : > { %7238 = vmatprep.subr.bf16.mxu1 %v9853_v33  ;;  %v6987_v33 = vrot.slane %v6912_v63, 1 }
 0x38e   : > { %6819 = vmatpush2.bf16.msra.mxu0 %v9848_v49  ;;  %v6583_v49 = vld [vmem:[#allocation3 + $0x8] sm:$0xff] }
 0x38f   : > { %7239 = vmatpush2.bf16.msra.mxu1 %v9851_v56  ;;  %6820 = vmatprep.subr.bf16.mxu0 %v9856_v44  ;;  %v9887_v56 = vld [vmem:[%s13109_s7 + $0x870] ss:$8 sps:$4 sm:$0xff]   ;;  %v6965_v44 = vrot.slane %v6897_v60, 1  ;;  %v6592_v60 = vld [vmem:[#allocation3] sm:$0xff] }
 0x390   : > { %7240 = vmatprep.subr.bf16.mxu1 %v9859_v22  ;;  %v6966_v22 = vrot.slane %v6899_v47, 1  ;;  %v9898_v47 = vld [vmem:[%s13109_s7 + $0x844] ss:$8 sps:$4 sm:$0xff]  }
 0x392   : > { %6821 = vmatpush2.bf16.msra.mxu0 %v9854_v27 }
 0x393   : > { %7241 = vmatpush2.bf16.msra.mxu1 %v9857_v40  ;;  %6822 = vmatprep.subr.bf16.mxu0 %v9862_v46  ;;  %v6599_v40 = vpack.c.bf16 %v6585_v55, %v6583_v49  ;;  %v6588_v46 = vld [vmem:[#allocation3 + $0xe0] sm:$0xff]  ;;  %v6587_v55 = vld [vmem:[#allocation3 + $0x30] sm:$0xff] }
 0x394   : > { %7242 = vmatprep.subr.bf16.mxu1 %v9865_v25  ;;  %v9892_v25 = vld [vmem:[%s13109_s7 + $0x864] ss:$8 sps:$4 sm:$0xff]  }
 0x396   : > { %6823 = vmatpush2.bf16.msra.mxu0 %v9860_v45  ;;  %v6980_v45 = vrot.slane %v6906_v57, 1 }
 0x397   : > { %7243 = vmatpush2.bf16.msra.mxu1 %v9863_v8  ;;  %6824 = vmatprep.subr.bf16.mxu0 %v9868_v3  ;;  %v6981_v8 = vrot.slane %v6908_v37, 1  ;;  %v6602_v3 = vpack.c.bf16 %v6590_v35, %v6588_v46  ;;  %v6994_v35 = vsel %vm890_vm0, %v6992_v11, %v6993_v30 }
 0x398   : > { %7244 = vmatprep.subr.bf16.mxu1 %v9871_v7  ;;  %v9890_v7 = vld [vmem:[%s13109_s7 + $0x860] ss:$8 sps:$4 sm:$0xff]  }
 0x399   : > { %v6982_v14 = vsel %vm890_vm0, %v6980_v45, %v6981_v8 }
 0x39a   : > { %6825 = vmatpush2.bf16.msra.mxu0 %v9866_v18  ;;  %v6973_v18 = vsel %vm890_vm0, %v6971_v28, %v6972_v29  ;;  %v6604_v29 = vpack.c.bf16 %v6594_v2, %v6592_v60 }
 0x39b   : > { %7245 = vmatpush2.bf16.msra.mxu1 %v9869_v58  ;;  %6826 = vmatprep.subr.bf16.mxu0 %v9874_v42 }
 0x39c   : > { %7246 = vmatprep.subr.bf16.mxu1 %v9877_v31  ;;  %v6988_v31 = vsel %vm890_vm0, %v6986_v21, %v6987_v33  ;;  %v6913_v33 = vld [vmem:[#allocation3 + $0x20] sm:$0xfe] }
 0x39d   : > { %v7022_v17 = vpack.c.bf16 %v6988_v31, %v6982_v14  ;;  %v6596_v31 = vld [vmem:[#allocation3 + $0xc8] sm:$0xff] }
 0x39e   : > { %6827 = vmatpush2.bf16.msra.mxu0 %v9872_v15  ;;  %v6909_v15 = vld [vmem:[#allocation3 + $0x110] sm:$0xfe] }
 0x39f   : > { %7247 = vmatpush2.bf16.msra.mxu1 %v9875_v43  ;;  %6828 = vmatprep.subr.bf16.mxu0 %v9880_v1  ;;  %v4983_v48 = vpop.f32.mrf.mxu1  ;;  %v6911_v43 = vld [vmem:[#allocation3 + $0x10] sm:$0x1]  ;;  %v6967_v1 = vsel %vm890_vm0, %v6965_v44, %v6966_v22  ;;  %v6917_v44 = vld [vmem:[#allocation3 + $0x50] sm:$0xfe]  ;;  %v6919_v22 = vld [vmem:[#allocation3 + $0x60] sm:$0x1] }
 0x3a0   : > { %7248 = vmatprep.subr.bf16.mxu1 %v9883_v62  ;;  %v6920_v62 = vld [vmem:[#allocation3 + $0x88] sm:$0x1]  ;;  %v7019_v10 = vpack.c.bf16 %v6973_v18, %v6967_v1  ;;  %v6984_v16 = vrot.slane %v6911_v43, 1  ;;  %v6995_v51 = vrot.slane %v6917_v44, 1  ;;  %v6996_v1 = vrot.slane %v6919_v22, 1 }
 0x3a1   : > { %v4985_v27 = vpop.f32.mrf.mxu1 }
 0x3a2   : > { %6829 = vmatpush2.bf16.msra.mxu0 %v9878_v36  ;;  %v6997_v2 = vsel %vm890_vm0, %v6995_v51, %v6996_v1  ;;  %v9914_v1 = vld [vmem:[%s13109_s7 + $0x8e0] ss:$8 sps:$4 sm:$0xff]  }
 0x3a3   : > { %7249 = vmatpush2.bf16.msra.mxu1 %v9881_v13  ;;  %6830 = vmatprep.subr.bf16.mxu0 %v9886_v26  ;;  %v4987_v42 = vpop.f32.mrf.mxu1  ;;  %v6907_v13 = vld [vmem:[#allocation3 + $0x78] sm:$0x1]  ;;  %v6983_v26 = vrot.slane %v6909_v15, 1  ;;  %v6989_v15 = vrot.slane %v6913_v33, 1 }
 0x3a4   : > { %v4750_v58 = vpop.f32.mrf.mxu0  ;;  %v6978_v9 = vrot.slane %v6907_v13, 1  ;;  %v7308_v13 = vld [vmem:[#allocation3 + $0x40] sm:$0xfc] }
 0x3a5   : > { %v12646_v12 = vadd.f32 %v4983_v48, %v4750_v58  ;;  %v4989_v5 = vpop.f32.mrf.mxu1  ;;  %v9896_v48 = vld [vmem:[%s13109_s7 + $0x840] ss:$8 sps:$4 sm:$0xff]  }
 0x3a6   : > { %6831 = vmatpush2.bf16.msra.mxu0 %v9884_v4  ;;  %7251 = vmatmul.mubr.bf16.vlgmr.msra.gmra.mxu1 %v7017_v20  ;;  %v4752_v59 = vpop.f32.mrf.mxu0  ;;  %v6999_v4 = vrot.slane %v6920_v62, 1  ;;  %v6977_v20 = vrot.slane %v6905_v39, 1  ;;  %v7312_v62 = vld [vmem:[#allocation3 + $0x80] sm:$0xfc] }
 0x3a7   : > { %7260 = vmatprep.mubr.bf16.mxu1 %v7020_v0  ;;  %7636 = vmatprep.subr.bf16.mxu0 %v9889_v61  ;;  %v12653_v36 = vadd.f32 %v4985_v27, %v4752_v59  ;;  %v6601_v61 = vpack.c.bf16 %v6589_v52, %v6587_v55  ;;  %v6985_v0 = vsel %vm890_vm0, %v6983_v26, %v6984_v16  ;;  %v7314_v59 = vld [vmem:[#allocation3 + $0x38] sm:$0x3]  ;;  %v9904_v52 = vld [vmem:[%s13109_s7 + $0x824] ss:$8 sps:$4 sm:$0xff]   ;;  %v7310_v26 = vld [vmem:[#allocation3 + $0xc0] sm:$0x3] }
 0x3a8   : > { %v4754_v32 = vpop.f32.mrf.mxu0  ;;  %v7000_v21 = vsel %vm890_vm0, %v6998_v24, %v6999_v4  ;;  %v6979_v46 = vsel %vm890_vm0, %v6977_v20, %v6978_v9  ;;  %v7380_v11 = vrot.slane %v7312_v62, 2  ;;  %v7381_v30 = vrot.slane %v7314_v59, 2  ;;  %v9902_v4 = vld [vmem:[%s13109_s7 + $0x820] ss:$8 sps:$4 sm:$0xff]   ;;  %v9917_v62 = vld [vmem:[%s13109_s7 + $0x8d0] ss:$8 sps:$4 sm:$0xff]  }
 0x3a9   : > { %6833 = vmatmul.mubr.bf16.vlgmr.msra.gmra.mxu0 %v6599_v40  ;;  %v4993_v41 = vpop.f32.mrf.mxu1  ;;  %v12655_v54 = vadd.f32 %v4987_v42, %v4754_v32  ;;  %v7021_v8 = vpack.c.bf16 %v6985_v0, %v6979_v46  ;;  %v6591_v42 = vld [vmem:[#allocation3 + $0x98] sm:$0xff]  ;;  %v6595_v20 = vld [vmem:[#allocation3 + $0x20] sm:$0xff] }
 0x3aa   : > { %6842 = vmatprep.mubr.bf16.mxu0 %v6602_v3  ;;  %7637 = vmatpush1.bf16.msra.mxu0 %v9887_v56  ;;  %v4756_v63 = vpop.f32.mrf.mxu0  ;;  %v6915_v56 = vld [vmem:[#allocation3 + $0x70] sm:$0x1]  ;;  %v7024_v3 = vpack.c.bf16 %v7000_v21, %v6994_v35  ;;  %v9908_v46 = vld [vmem:[%s13109_s7 + $0x800] ss:$8 sps:$4 sm:$0xff]   ;;  %v9922_v59 = vld [vmem:[%s13109_s7 + $0x8c4] ss:$8 sps:$4 sm:$0xff]  }
 0x3ab   : > { %7638 = vmatprep.subr.bf16.mxu0 %v9892_v25  ;;  %v4995_v6 = vpop.f32.mrf.mxu1  ;;  %v12663_v28 = vadd.f32 %v4989_v5, %v4756_v63  ;;  %v9901_v25 = vld [vmem:[%s13109_s7 + $0x834] ss:$8 sps:$4 sm:$0xff]   ;;  %v6990_v43 = vrot.slane %v6915_v56, 1  ;;  %v9910_v56 = vld [vmem:[%s13109_s7 + $0x804] ss:$8 sps:$4 sm:$0xff]  }
 0x3ac   : > { %v9907_v63 = vld [vmem:[%s13109_s7 + $0x814] ss:$8 sps:$4 sm:$0xff]  }
 0x3ad   : > { %v4997_v37 = vpop.f32.mrf.mxu1 }
 0x3ae   : > { %7261 = vmatmul.mubr.bf16.gmra.mxu1 %v7019_v10  ;;  %7639 = vmatpush1.bf16.msra.mxu0 %v9890_v7  ;;  %v6593_v7 = vld [vmem:[#allocation3 + $0x110] sm:$0xff] }
 0x3af   : > { %7270 = vmatprep.mubr.bf16.mxu1 %v7022_v17  ;;  %7640 = vmatprep.subr.bf16.mxu0 %v9895_v50  ;;  %v4760_v57 = vpop.f32.mrf.mxu0  ;;  %v4999_v40 = vpop.f32.mrf.mxu1  ;;  %v6603_v14 = vpack.c.bf16 %v6593_v7, %v6591_v42  ;;  %v9937_v17 = vld [vmem:[#allocation2 + $0xb0] sm:$0xff] }
 0x3b0   : > { %v12671_v49 = vadd.f32 %v4993_v41, %v4760_v57  ;;  %v6606_v39 = vpack.c.bf16 %v9937_v17, %v6596_v31  ;;  %v6991_v41 = vsel %vm890_vm0, %v6989_v15, %v6990_v43  ;;  %v7382_v57 = vsel %vm1526_vm1, %v7380_v11, %v7381_v30  ;;  %v9911_v42 = vld [vmem:[%s13109_s7 + $0x8f0] ss:$8 sps:$4 sm:$0xff]   ;;  %v9916_v43 = vld [vmem:[%s13109_s7 + $0x8e4] ss:$8 sps:$4 sm:$0xff]  }
 0x3b1   : > { %6843 = vmatmul.mubr.bf16.gmra.mxu0 %v6601_v61  ;;  %v4762_v27 = vpop.f32.mrf.mxu0  ;;  %v7375_v61 = vrot.slane %v7310_v26, 2  ;;  %v6605_v21 = vpack.c.bf16 %v9937_v17, %v6595_v20  ;;  %v9926_v17 = vld [vmem:[%s13109_s7 + $0x8a0] ss:$8 sps:$4 sm:$0xff]   ;;  %v7313_v26 = vld [vmem:[#allocation3 + $0xf8] sm:$0x3] }
 0x3b2   : > { %6852 = vmatprep.mubr.bf16.mxu0 %v6604_v29  ;;  %7641 = vmatpush1.bf16.msra.mxu0 %v9893_v53  ;;  %v12677_v45 = vadd.f32 %v4995_v6, %v4762_v27  ;;  %v7374_v6 = vrot.slane %v7308_v13, 2  ;;  %v7311_v13 = vld [vmem:[#allocation3 + $0x138] sm:$0xfc]  ;;  %v7307_v11 = vld [vmem:[#allocation3 + $0x8] sm:$0xfc] }
 0x3b3   : > { %7642 = vmatprep.subr.bf16.mxu0 %v9898_v47  ;;  %v4764_v18 = vpop.f32.mrf.mxu0  ;;  %v7023_v47 = vpack.c.bf16 %v6997_v2, %v6991_v41  ;;  %v7322_v41 = vld [vmem:[#allocation3 + $0x100] sm:$0x3]  ;;  %v9934_v2 = vld [vmem:[%s13109_s7 + $0x884] ss:$8 sps:$4 sm:$0xff]   ;;  %v7309_v30 = vld [vmem:[#allocation3 + $0x58] sm:$0x3] }
 0x3b4   : > { %v12679_v38 = vadd.f32 %v4997_v37, %v4764_v18  ;;  %v7376_v33 = vsel %vm1526_vm1, %v7374_v6, %v7375_v61  ;;  %v7393_v61 = vrot.slane %v7322_v41, 2  ;;  %v7371_v20 = vrot.slane %v7307_v11, 2  ;;  %v7332_v41 = vld [vmem:[#allocation3 + $0xc8] sm:$0xfc]  ;;  %v7334_v11 = vld [vmem:[#allocation3 + $0x120] sm:$0x3] }
 0x3b5   : > { %v5003_v58 = vpop.f32.mrf.mxu1  ;;  %v4766_v5 = vpop.f32.mrf.mxu0  ;;  %v7436_v22 = vpack.c.bf16 %v7382_v57, %v7376_v33 }
 0x3b6   : > { %7271 = vmatmul.mubr.bf16.gmra.mxu1 %v7021_v8  ;;  %7643 = vmatpush1.bf16.msra.mxu0 %v9896_v48  ;;  %v12687_v50 = vadd.f32 %v4999_v40, %v4766_v5  ;;  %v9905_v48 = vld [vmem:[%s13109_s7 + $0x810] ss:$8 sps:$4 sm:$0xff]   ;;  %v9920_v5 = vld [vmem:[%s13109_s7 + $0x8c0] ss:$8 sps:$4 sm:$0xff]  }
 0x3b7   : > { %7280 = vmatprep.mubr.bf16.mxu1 %v7024_v3  ;;  %v5005_v10 = vpop.f32.mrf.mxu1  ;;  %7644 = vmatprep.subr.bf16.mxu0 %v9901_v25  ;;  %v9913_v3 = vld [vmem:[%s13109_s7 + $0x8f4] ss:$8 sps:$4 sm:$0xff]  }
 0x3b9   : > { %6853 = vmatmul.mubr.bf16.gmra.mxu0 %v6603_v14  ;;  %v4770_v16 = vpop.f32.mrf.mxu0  ;;  %v5007_v32 = vpop.f32.mrf.mxu1  ;;  %v9923_v14 = vld [vmem:[%s13109_s7 + $0x8b0] ss:$8 sps:$4 sm:$0xff]  }
 0x3ba   : > { %v12691_v24 = vadd.f32 %v5003_v58, %v4770_v16  ;;  %6862 = vmatprep.mubr.bf16.mxu0 %v6606_v39  ;;  %7645 = vmatpush1.bf16.msra.mxu0 %v9899_v19  ;;  %v9919_v19 = vld [vmem:[%s13109_s7 + $0x8d4] ss:$8 sps:$4 sm:$0xff]   ;;  %v9929_v16 = vld [vmem:[%s13109_s7 + $0x890] ss:$8 sps:$4 sm:$0xff]  }
 0x3bb   : > { %v4772_v55 = vpop.f32.mrf.mxu0  ;;  %v5009_v53 = vpop.f32.mrf.mxu1  ;;  %7646 = vmatprep.subr.bf16.mxu0 %v9904_v52  ;;  %v9928_v52 = vld [vmem:[%s13109_s7 + $0x8a4] ss:$8 sps:$4 sm:$0xff]   ;;  %v9931_v39 = vld [vmem:[%s13109_s7 + $0x894] ss:$8 sps:$4 sm:$0xff]  }
 0x3bc   : > { %v12699_v60 = vadd.f32 %v5005_v10, %v4772_v55  ;;  %v9925_v10 = vld [vmem:[%s13109_s7 + $0x8b4] ss:$8 sps:$4 sm:$0xff]   ;;  %v7378_v55 = vrot.slane %v7313_v26, 2 }
 0x3bd   : > { %v4774_v9 = vpop.f32.mrf.mxu0 }
 0x3be   : > { %v12702_v37 = vadd.f32 %v5007_v32, %v4774_v9  ;;  %7281 = vmatmul.mubr.bf16.gmra.mxu1 %v7023_v47  ;;  %7647 = vmatpush1.bf16.msra.mxu0 %v9902_v4  ;;  %v7320_v32 = vld [vmem:[#allocation3 + $0x128] sm:$0xfc]  ;;  %v7377_v4 = vrot.slane %v7311_v13, 2  ;;  %v7372_v9 = vrot.slane %v7309_v30, 2  ;;  %v7336_v30 = vld [vmem:[#allocation3 + $0xf0] sm:$0xfc] }
 0x3bf   : > { %v4776_v0 = vpop.f32.mrf.mxu0  ;;  %7648 = vmatprep.subr.bf16.mxu0 %v9907_v63  ;;  %v7318_v63 = vld [vmem:[#allocation3 + $0x48] sm:$0x3]  ;;  %v7392_v6 = vrot.slane %v7320_v32, 2  ;;  %v7329_v32 = vld [vmem:[#allocation3 + $0x10] sm:$0x3] }
 0x3c0   : > { %v5013_v29 = vpop.f32.mrf.mxu1  ;;  %v12711_v44 = vadd.f32 %v5009_v53, %v4776_v0  ;;  %v7316_v53 = vld [vmem:[#allocation3 + $0xe0] sm:$0xfc]  ;;  %v7387_v57 = vrot.slane %v7318_v63, 2  ;;  %v7373_v33 = vsel %vm1526_vm1, %v7371_v20, %v7372_v9  ;;  %v7323_v63 = vld [vmem:[#allocation3 + $0x98] sm:$0xfc]  ;;  %v7402_v9 = vrot.slane %v7329_v32, 2 }
 0x3c1   : > { %6863 = vmatmul.mubr.bf16.gmra.mxu0 %v6605_v21  ;;  %v9932_v47 = vld [vmem:[%s13109_s7 + $0x880] ss:$8 sps:$4 sm:$0xff]   ;;  %v7394_v0 = vsel %vm1526_vm1, %v7392_v6, %v7393_v61  ;;  %v7321_v21 = vld [vmem:[#allocation3 + $0x118] sm:$0x3] }
 0x3c2   : > { %v5015_v35 = vpop.f32.mrf.mxu1  ;;  %7649 = vmatpush1.bf16.msra.mxu0 %v9905_v48  ;;  %7668 = vmatprep.mubr.bf16.mxu0 %v7436_v22  ;;  %v7379_v48 = vsel %vm1526_vm1, %v7377_v4, %v7378_v55  ;;  %v7330_v22 = vld [vmem:[#allocation3 + $0x18] sm:$0x3]  ;;  %v7338_v4 = vld [vmem:[#allocation3 + $0x88] sm:$0x3] }
 0x3c3   : > { %7650 = vmatprep.subr.bf16.mxu0 %v9910_v56  ;;  %v7328_v56 = vld [vmem:[#allocation3 + $0xd0] sm:$0xfc]  ;;  %v7325_v6 = vld [vmem:[#allocation3 + $0x78] sm:$0x3] }
 0x3c4   : > { %v4780_v27 = vpop.f32.mrf.mxu0  ;;  %v5017_v25 = vpop.f32.mrf.mxu1 }
 0x3c5   : > { %v12713_v40 = vadd.f32 %v5013_v29, %v4780_v27  ;;  %v7386_v29 = vrot.slane %v7316_v53, 2  ;;  %v7435_v27 = vpack.c.bf16 %v7379_v48, %v7373_v33  ;;  %v7416_v48 = vrot.slane %v7336_v30, 2 }
 0x3c6   : > { %v4782_v8 = vpop.f32.mrf.mxu0  ;;  %7651 = vmatpush1.bf16.msra.mxu0 %v9908_v46  ;;  %v5019_v31 = vpop.f32.mrf.mxu1  ;;  %v7396_v33 = vrot.slane %v7325_v6, 2 }
 0x3c7   : > { %v12721_v7 = vadd.f32 %v5015_v35, %v4782_v8  ;;  %7652 = vmatprep.subr.bf16.mxu0 %v9913_v3  ;;  %v7319_v35 = vld [vmem:[#allocation3 + $0x28] sm:$0xfc]  ;;  %v7388_v46 = vsel %vm1526_vm1, %v7386_v29, %v7387_v57  ;;  %v7317_v8 = vld [vmem:[#allocation3 + $0xb8] sm:$0x3]  ;;  %v7411_v57 = vrot.slane %v7334_v11, 2 }
 0x3c8   : > { %v4784_v18 = vpop.f32.mrf.mxu0  ;;  %v7438_v3 = vpack.c.bf16 %v7394_v0, %v7388_v46  ;;  %v7417_v0 = vrot.slane %v7338_v4, 2  ;;  %v7333_v46 = vld [vmem:[#allocation3 + $0x70] sm:$0x3] }
 0x3c9   : > { %v12723_v58 = vadd.f32 %v5017_v25, %v4784_v18  ;;  %v7315_v25 = vld [vmem:[#allocation3 + $0x30] sm:$0xfc]  ;;  %v7389_v18 = vrot.slane %v7319_v35, 2 }
 0x3ca   : > { %v4786_v15 = vpop.f32.mrf.mxu0  ;;  %7653 = vmatpush2.bf16.msra.mxu0 %v9911_v42  ;;  %v7390_v42 = vrot.slane %v7321_v21, 2  ;;  %v7395_v21 = vrot.slane %v7323_v63, 2 }
 0x3cb   : > { %v12731_v51 = vadd.f32 %v5019_v31, %v4786_v15  ;;  %7654 = vmatprep.subr.bf16.mxu0 %v9916_v43  ;;  %v7324_v31 = vld [vmem:[#allocation3] sm:$0xfc]  ;;  %v7326_v15 = vld [vmem:[#allocation3 + $0x108] sm:$0x3] }
 0x3ce   : > { %7655 = vmatpush2.bf16.msra.mxu0 %v9914_v1  ;;  %v7404_v1 = vrot.slane %v7328_v56, 2 }
 0x3cf   : > { %7656 = vmatprep.subr.bf16.mxu0 %v9919_v19  ;;  %v7405_v19 = vrot.slane %v7330_v22, 2 }
 0x3d1   : > { %v7406_v26 = vsel %vm1526_vm1, %v7404_v1, %v7405_v19  ;;  %v7408_v1 = vrot.slane %v7333_v46, 2 }
 0x3d2   : > { %7657 = vmatpush2.bf16.msra.mxu0 %v9917_v62 }
 0x3d3   : > { %7658 = vmatprep.subr.bf16.mxu0 %v9922_v59  ;;  %v7383_v59 = vrot.slane %v7315_v25, 2 }
 0x3d6   : > { %7659 = vmatpush2.bf16.msra.mxu0 %v9920_v5  ;;  %v7384_v5 = vrot.slane %v7317_v8, 2 }
 0x3d7   : > { %7660 = vmatprep.subr.bf16.mxu0 %v9925_v10 }
 0x3da   : > { %7661 = vmatpush2.bf16.msra.mxu0 %v9923_v14  ;;  %v7398_v14 = vrot.slane %v7324_v31, 2  ;;  %v7397_v31 = vsel %vm1526_vm1, %v7395_v21, %v7396_v33 }
 0x3db   : > { %7662 = vmatprep.subr.bf16.mxu0 %v9928_v52  ;;  %v7399_v52 = vrot.slane %v7326_v15, 2 }
 0x3de   : > { %7663 = vmatpush2.bf16.msra.mxu0 %v9926_v17 }
 0x3df   : > { %7664 = vmatprep.subr.bf16.mxu0 %v9931_v39  ;;  %v7391_v39 = vsel %vm1526_vm1, %v7389_v18, %v7390_v42  ;;  %v7335_v18 = vld [vmem:[#allocation3 + $0x50] sm:$0xfc]  ;;  %v7337_v42 = vld [vmem:[#allocation3 + $0x60] sm:$0x3] }
 0x3e2   : > { %7665 = vmatpush2.bf16.msra.mxu0 %v9929_v16  ;;  %v7327_v16 = vld [vmem:[#allocation3 + $0x110] sm:$0xfc] }
 0x3e3   : > { %7666 = vmatprep.subr.bf16.mxu0 %v9934_v2  ;;  %v7385_v2 = vsel %vm1526_vm1, %v7383_v59, %v7384_v5  ;;  %v7401_v20 = vrot.slane %v7327_v16, 2  ;;  %v7413_v5 = vrot.slane %v7335_v18, 2 }
 0x3e4   : > { %v7437_v53 = vpack.c.bf16 %v7391_v39, %v7385_v2 }
 0x3e6   : > { %7667 = vmatpush2.bf16.msra.mxu0 %v9932_v47 }
 0x3e9   : > { %v5385_v43 = vpop.f32.mrf.mxu0  ;;  %7669 = vmatmul.mubr.bf16.vlgmr.msra.gmra.mxu0 %v7435_v27  ;;  %v7331_v27 = vld [vmem:[#allocation3 + $0x20] sm:$0xfc] }
 0x3ea   : > { %v12777_v62 = vadd.f32 %v5385_v43, %v12646_v12  ;;  %7678 = vmatprep.mubr.bf16.mxu0 %v7438_v3  ;;  %v7418_v3 = vsel %vm1526_vm1, %v7416_v48, %v7417_v0 }
 0x3eb   : > { %v5387_v10 = vpop.f32.mrf.mxu0 }
 0x3ec   : > { %v12780_v17 = vadd.f32 %v5387_v10, %v12653_v36  ;;  %v7400_v36 = vsel %vm1526_vm1, %v7398_v14, %v7399_v52  ;;  %v7414_v10 = vrot.slane %v7337_v42, 2 }
 0x3ed   : > { %v5389_v13 = vpop.f32.mrf.mxu0  ;;  %v7440_v47 = vpack.c.bf16 %v7406_v26, %v7400_v36  ;;  %v12834_v36 = vpop.f32.mrf.mxu1 }
 0x3ee   : > { %v12785_v12 = vadd.f32 %v5389_v13, %v12655_v54  ;;  %v7410_v54 = vrot.slane %v7332_v41, 2  ;;  %v7415_v26 = vsel %vm1526_vm1, %v7413_v5, %v7414_v10 }
 0x3ef   : > { %v5391_v55 = vpop.f32.mrf.mxu0 }
 0x3f0   : > { %v12790_v61 = vadd.f32 %v5391_v55, %v12663_v28  ;;  %v7403_v28 = vsel %vm1526_vm1, %v7401_v20, %v7402_v9  ;;  %v7412_v8 = vsel %vm1526_vm1, %v7410_v54, %v7411_v57 }
 0x3f1   : > { %v5395_v29 = vpop.f32.mrf.mxu0  ;;  %7679 = vmatmul.mubr.bf16.gmra.mxu0 %v7437_v53  ;;  %v7439_v43 = vpack.c.bf16 %v7403_v28, %v7397_v31  ;;  %v7442_v59 = vpack.c.bf16 %v7418_v3, %v7412_v8 }
 0x3f2   : > { %v12793_v35 = vadd.f32 %v5395_v29, %v12671_v49  ;;  %7688 = vmatprep.mubr.bf16.mxu0 %v7440_v47 }
 0x3f3   : > { %v5397_v56 = vpop.f32.mrf.mxu0 }
 0x3f4   : > { %v12796_v22 = vadd.f32 %v5397_v56, %v12677_v45  ;;  %v7407_v45 = vrot.slane %v7331_v27, 2 }
 0x3f5   : > { %v5399_v25 = vpop.f32.mrf.mxu0 }
 0x3f6   : > { %v12802_v49 = vadd.f32 %v5399_v25, %v12679_v38  ;;  %v7409_v13 = vsel %vm1526_vm1, %v7407_v45, %v7408_v1 }
 0x3f7   : > { %v5401_v15 = vpop.f32.mrf.mxu0  ;;  %v7441_v41 = vpack.c.bf16 %v7415_v26, %v7409_v13 }
 0x3f8   : > { %v12806_v19 = vadd.f32 %v5401_v15, %v12687_v50 }
 0x3f9   : > { %v5405_v14 = vpop.f32.mrf.mxu0  ;;  %7689 = vmatmul.mubr.bf16.gmra.mxu0 %v7439_v43 }
 0x3fa   : > { %v12809_v52 = vadd.f32 %v5405_v14, %v12691_v24  ;;  %7698 = vmatprep.mubr.bf16.mxu0 %v7442_v59 }
 0x3fb   : > { %v5407_v38 = vpop.f32.mrf.mxu0 }
 0x3fc   : > { %v12812_v39 = vadd.f32 %v5407_v38, %v12699_v60 }
 0x3fd   : > { %v5409_v16 = vpop.f32.mrf.mxu0 }
 0x3fe   : > { %v12817_v50 = vadd.f32 %v5409_v16, %v12702_v37 }
 0x3ff   : > { %v5411_v32 = vpop.f32.mrf.mxu0 }
 0x400   : > { %v12820_v2 = vadd.f32 %v5411_v32, %v12711_v44  ;;  %v12836_v44 = vpop.f32.mrf.mxu1 }
 0x401   : > { %v5415_v24 = vpop.f32.mrf.mxu0  ;;  %7699 = vmatmul.mubr.bf16.gmra.mxu0 %v7441_v41 }
 0x402   : > { %v12823_v11 = vadd.f32 %v5415_v24, %v12713_v40  ;;  %v12838_v63 = vpop.f32.mrf.mxu1 }
 0x403   : > { %v5417_v60 = vpop.f32.mrf.mxu0 }
 0x404   : > { %v12826_v30 = vadd.f32 %v5417_v60, %v12721_v7  ;;  %v12840_v40 = vpop.f32.mrf.mxu1 }
 0x405   : > { %v5419_v4 = vpop.f32.mrf.mxu0 }
 0x406   : > { %v12829_v55 = vadd.f32 %v5419_v4, %v12723_v58  ;;  %v12842_v6 = vpop.f32.mrf.mxu1 }
 0x407   : > { %v5421_v37 = vpop.f32.mrf.mxu0 }
 0x408   : > { %v12832_v53 = vadd.f32 %v5421_v37, %v12731_v51  ;;  %v12844_v7 = vpop.f32.mrf.mxu1 }
 0x40a   : > { %13186 = vst [vmem:[#allocation5_spill] sm:$0xff] %v12832_v53  ;;  %v12846_v47 = vpop.f32.mrf.mxu1 }
 0x40c   : > { %v12848_v58 = vpop.f32.mrf.mxu1 }
 0x40e   : > { %v12850_v20 = vpop.f32.mrf.mxu1 }
 0x410   : > { %v12852_v9 = vpop.f32.mrf.mxu1 }
 0x412   : > { %v12854_v54 = vpop.f32.mrf.mxu1 }
 0x414   : > { %v12856_v48 = vpop.f32.mrf.mxu1 }
 0x416   : > { %v12860_v21 = vpop.f32.mrf.mxu1 }
 0x418   : > { %v12864_v56 = vpop.f32.mrf.mxu1 }
 0x41a   : > { %v12868_v27 = vpop.f32.mrf.mxu1 }
 0x41c   : > { %v12872_v25 = vpop.f32.mrf.mxu1 }
 0x41d   : > { %13187 = vst [vmem:[#allocation20_spill] sm:$0xff] %v12872_v25 }
 0x426   : > { %v6527_v3 = vpop.f32.mrf.mxu1 }
 0x428   : > { %v6529_v42 = vpop.f32.mrf.mxu1 }
 0x429   : > { %v6109_v51 = vpop.f32.mrf.mxu0 }
 0x42a   : > { %v12880_v15 = vpop.f32.mrf.mxu1 }
 0x42b   : > { %v6111_v29 = vpop.f32.mrf.mxu0 }
 0x42c   : > { %v12884_v45 = vpop.f32.mrf.mxu1 }
 0x42d   : > { %v6113_v57 = vpop.f32.mrf.mxu0 }
 0x42e   : > { %v12888_v59 = vpop.f32.mrf.mxu1 }
 0x42f   : > { %v12858_v0 = vpop.f32.mrf.mxu0 }
 0x430   : > { %v12892_v10 = vpop.f32.mrf.mxu1 }
 0x431   : > { %v12862_v33 = vpop.f32.mrf.mxu0  ;;  %13190 = vst [vmem:[#allocation6_spill] sm:$0xff] %v12892_v10 }
 0x432   : > { %v12896_v38 = vpop.f32.mrf.mxu1 }
 0x433   : > { %v12866_v28 = vpop.f32.mrf.mxu0  ;;  %13192 = vst [vmem:[#allocation9_spill] sm:$0xff] %v12896_v38 }
 0x434   : > { %v12900_v26 = vpop.f32.mrf.mxu1 }
 0x435   : > { %v12870_v46 = vpop.f32.mrf.mxu0  ;;  %13194 = vst [vmem:[#allocation10_spill] sm:$0xff] %v12900_v26 }
 0x436   : > { %v12904_v32 = vpop.f32.mrf.mxu1 }
 0x437   : > { %v12874_v8 = vpop.f32.mrf.mxu0  ;;  %13196 = vst [vmem:[#allocation13_spill] sm:$0xff] %v12904_v32 }
 0x438   : > { %v12906_v24 = vpop.f32.mrf.mxu1 }
 0x439   : > { %v12876_v18 = vpop.f32.mrf.mxu0  ;;  %13197 = vst [vmem:[#allocation12_spill] sm:$0xff] %v12906_v24 }
 0x43a   : > { %v12908_v4 = vpop.f32.mrf.mxu1 }
 0x43b   : > { %v12878_v31 = vpop.f32.mrf.mxu0  ;;  %13198 = vst [vmem:[#allocation14_spill] sm:$0xff] %v12908_v4 }
 0x43d   : > { %v12882_v43 = vpop.f32.mrf.mxu0 }
 0x43f   : > { %v12886_v1 = vpop.f32.mrf.mxu0 }
 0x440   : > { %13188 = vst [vmem:[#allocation7_spill] sm:$0xff] %v12886_v1 }
 0x441   : > { %v12890_v5 = vpop.f32.mrf.mxu0 }
 0x442   : > { %13189 = vst [vmem:[#allocation4_spill] sm:$0xff] %v12890_v5  ;;  %v12910_v5 = vpop.f32.mrf.mxu1 }
 0x443   : > { %v12894_v14 = vpop.f32.mrf.mxu0  ;;  %13199 = vst [vmem:[#allocation16_spill] sm:$0xff] %v12910_v5 }
 0x444   : > { %13191 = vst [vmem:[#allocation8_spill] sm:$0xff] %v12894_v14  ;;  %v12914_v38 = vpop.f32.mrf.mxu1 }
 0x445   : > { %v12898_v13 = vpop.f32.mrf.mxu0  ;;  %13200 = vst [vmem:[#allocation15_spill] sm:$0xff] %v12914_v38 }
 0x446   : > { %13193 = vst [vmem:[#allocation11_spill] sm:$0xff] %v12898_v13  ;;  %v12918_v26 = vpop.f32.mrf.mxu1 }
 0x447   : > { %v12902_v16 = vpop.f32.mrf.mxu0  ;;  %13202 = vst [vmem:[#allocation17_spill] sm:$0xff] %v12918_v26 }
 0x448   : > { %13195 = vst [vmem:[#allocation22_spill] sm:$0xff] %v12902_v16  ;;  %v12922_v32 = vpop.f32.mrf.mxu1 }
 0x449   : > { %13204 = vst [vmem:[#allocation18_spill] sm:$0xff] %v12922_v32 }
 0x44a   : > { %v12926_v24 = vpop.f32.mrf.mxu1 }
 0x44b   : > { %13206 = vst [vmem:[#allocation19_spill] sm:$0xff] %v12926_v24  ;;  %v5730_v24 = vadd.f32 %v12834_v36, %v12777_v62  ;;  %v5734_v36 = vadd.f32 %v12842_v6, %v12793_v35  ;;  %v5738_v35 = vadd.f32 %v12850_v20, %v12809_v52 }
 0x44d   : > { %v6152_v6 = vadd.f32 %v12862_v33, %v5734_v36 }
 0x466   : > { %v7252_v10 = vpop.f32.mrf.mxu1 }
 0x468   : > { %v7254_v25 = vpop.f32.mrf.mxu1 }
 0x469   : > { %v6834_v41 = vpop.f32.mrf.mxu0 }
 0x46a   : > { %v12934_v38 = vpop.f32.mrf.mxu1 }
 0x46b   : > { %v6836_v60 = vpop.f32.mrf.mxu0  ;;  %13210 = vst [vmem:[#allocation28_spill] sm:$0xff] %v12934_v38 }
 0x46c   : > { %v12938_v26 = vpop.f32.mrf.mxu1 }
 0x46d   : > { %v6838_v37 = vpop.f32.mrf.mxu0  ;;  %13212 = vst [vmem:[#allocation27_spill] sm:$0xff] %v12938_v26 }
 0x46e   : > { %v12942_v32 = vpop.f32.mrf.mxu1 }
 0x46f   : > { %v12912_v14 = vpop.f32.mrf.mxu0  ;;  %13214 = vst [vmem:[#allocation30_spill] sm:$0xff] %v12942_v32 }
 0x471   : > { %v12916_v13 = vpop.f32.mrf.mxu0 }
 0x472   : > { %13201 = vst [vmem:[#allocation24_spill] sm:$0xff] %v12916_v13 }
 0x473   : > { %v12920_v16 = vpop.f32.mrf.mxu0 }
 0x474   : > { %13203 = vst [vmem:[#allocation33_spill] sm:$0xff] %v12920_v16 }
 0x475   : > { %v12924_v1 = vpop.f32.mrf.mxu0 }
 0x476   : > { %13205 = vst [vmem:[#allocation26_spill] sm:$0xff] %v12924_v1 }
 0x477   : > { %v12928_v4 = vpop.f32.mrf.mxu0 }
 0x478   : > { %13207 = vst [vmem:[#allocation21_spill] sm:$0xff] %v12928_v4  ;;  %v12948_v4 = vpop.f32.mrf.mxu1 }
 0x479   : > { %v12930_v5 = vpop.f32.mrf.mxu0 }
 0x47a   : > { %13208 = vst [vmem:[#allocation23_spill] sm:$0xff] %v12930_v5  ;;  %v6148_v5 = vadd.f32 %v6109_v51, %v5730_v24  ;;  %v12956_v26 = vpop.f32.mrf.mxu1 }
 0x47b   : > { %v12932_v53 = vpop.f32.mrf.mxu0 }
 0x47c   : > { %13209 = vst [vmem:[#allocation35_spill] sm:$0xff] %v12932_v53  ;;  %v5731_v53 = vadd.f32 %v12836_v44, %v12780_v17  ;;  %v6566_v62 = vadd.f32 %v6527_v3, %v6148_v5  ;;  %v5735_v17 = vadd.f32 %v12844_v7, %v12796_v22  ;;  %v5739_v22 = vadd.f32 %v12852_v9, %v12812_v39 }
 0x47d   : > { %v12936_v13 = vpop.f32.mrf.mxu0  ;;  %v5741_v7 = vadd.f32 %v12856_v48, %v12820_v2  ;;  %v5742_v39 = vadd.f32 %v12860_v21, %v12823_v11  ;;  %v6156_v48 = vadd.f32 %v12876_v18, %v5738_v35  ;;  %v13218_v18 = vld [vmem:[#allocation6_spill] sm:$0xff] }
 0x47e   : > { %13211 = vst [vmem:[#allocation25_spill] sm:$0xff] %v12936_v13  ;;  %v6149_v13 = vadd.f32 %v6111_v29, %v5731_v53  ;;  %v12969_v29 = vpop.f32.mrf.mxu1  ;;  %v6153_v52 = vadd.f32 %v12866_v28, %v5735_v17 }
 0x47f   : > { %v12940_v16 = vpop.f32.mrf.mxu0 }
 0x480   : > { %13213 = vst [vmem:[#allocation29_spill] sm:$0xff] %v12940_v16  ;;  %v5732_v16 = vadd.f32 %v12838_v63, %v12785_v12  ;;  %v5736_v12 = vadd.f32 %v12846_v47, %v12802_v49  ;;  %v6873_v63 = vadd.f32 %v6834_v41, %v6566_v62  ;;  %v6567_v51 = vadd.f32 %v6529_v42, %v6149_v13  ;;  %v7725_v49 = vld [vmem:[%s13110_s8] sm:$0x3]  ;;  %v13221_v13 = vld [vmem:[#allocation7_spill] sm:$0xff]  ;;  %v13223_v41 = vld [vmem:[#allocation10_spill] sm:$0xff] }
 0x481   : > { %v12944_v1 = vpop.f32.mrf.mxu0  ;;  %v13013_v21 = vrot.slane %v7725_v49, %v13153_v23  ;;  %v13217_v42 = vld [vmem:[#allocation20_spill] sm:$0xff]  ;;  %v7754_v62 = vld [vmem:[%s13001_s20 + $0x8] sm:$0xff] }
 0x482   : > { %13215 = vst [vmem:[#allocation32_spill] sm:$0xff] %v12944_v1  ;;  %v6150_v32 = vadd.f32 %v6113_v57, %v5732_v16  ;;  %v5733_v1 = vadd.f32 %v12840_v40, %v12790_v61  ;;  %v5737_v61 = vadd.f32 %v12848_v58, %v12806_v19  ;;  %v5740_v40 = vadd.f32 %v12854_v54, %v12817_v50  ;;  %v13004_v54 = vpop.f32.mrf.mxu1  ;;  %v13222_v16 = vld [vmem:[#allocation9_spill] sm:$0xff] }
 0x483   : > { %v12952_v38 = vpop.f32.mrf.mxu0  ;;  %v6874_v47 = vadd.f32 %v6836_v60, %v6567_v51  ;;  %v5743_v50 = vadd.f32 %v12864_v56, %v12826_v30  ;;  %v12994_v58 = vadd.f32 %v12868_v27, %v12829_v55  ;;  %v7291_v11 = vadd.f32 %v7252_v10, %v6873_v63  ;;  %v13224_v60 = vld [vmem:[#allocation13_spill] sm:$0xff]  ;;  %v13225_v63 = vld [vmem:[#allocation27_spill] sm:$0xff] }
 0x484   : > { %v6151_v53 = vadd.f32 %v12858_v0, %v5733_v1  ;;  %v6568_v19 = vadd.f32 %v12880_v15, %v6150_v32  ;;  %v13007_v30 = vrot.slane %v7725_v49, %v10367_v34  ;;  %v6154_v55 = vadd.f32 %v12870_v46, %v5736_v12  ;;  %v13216_v46 = vld [vmem:[#allocation5_spill] sm:$0xff]  ;;  %v13219_v1 = vld [vmem:[#allocation24_spill] sm:$0xff]  ;;  %v13026_v10 = vpop.f32.mrf.mxu1 }
 0x485   : > { %v12964_v44 = vpop.f32.mrf.mxu0  ;;  %v6155_v57 = vadd.f32 %v12874_v8, %v5737_v61  ;;  %v6570_v56 = vadd.f32 %v12888_v59, %v6152_v6  ;;  %v7292_v27 = vadd.f32 %v7254_v25, %v6874_v47  ;;  %v6157_v34 = vadd.f32 %v12878_v31, %v5739_v22  ;;  %v13226_v61 = vld [vmem:[#allocation33_spill] sm:$0xff]  ;;  %v13227_v22 = vld [vmem:[#allocation26_spill] sm:$0xff]  ;;  %v13228_v49 = vld [vmem:[#allocation12_spill] sm:$0xff] }
 0x486   : > { %v6875_v2 = vadd.f32 %v6838_v37, %v6568_v19  ;;  %v6569_v9 = vadd.f32 %v12884_v45, %v6151_v53  ;;  %v6158_v3 = vadd.f32 %v12882_v43, %v5740_v40  ;;  %v13021_v8 = vadd.f32 %v13217_v42, %v13216_v46  ;;  %v7753_v45 = vld [vmem:[%s13001_s20] sm:$0xff]  ;;  %v7755_v19 = vld [vmem:[%s13001_s20 + $0x10] sm:$0xff] }
 0x487   : > { %v12996_v20 = vpop.f32.mrf.mxu0  ;;  %v6571_v15 = vadd.f32 %v13218_v18, %v6153_v52  ;;  %v6877_v5 = vadd.f32 %v13219_v1, %v6570_v56  ;;  %v6159_v43 = vadd.f32 %v13221_v13, %v5741_v7  ;;  %v6572_v32 = vadd.f32 %v13222_v16, %v6154_v55  ;;  %v13229_v7 = vld [vmem:[#allocation14_spill] sm:$0xff]  ;;  %v13232_v56 = vld [vmem:[#allocation21_spill] sm:$0xff]  ;;  %v13234_v1 = vld [vmem:[#allocation8_spill] sm:$0xff] }
 0x488   : > { %v6876_v33 = vadd.f32 %v12912_v14, %v6569_v9  ;;  %v13220_v14 = vld [vmem:[#allocation28_spill] sm:$0xff]  ;;  %v6573_v24 = vadd.f32 %v13223_v41, %v6155_v57  ;;  %v6574_v37 = vadd.f32 %v13224_v60, %v6156_v48  ;;  %v6575_v6 = vadd.f32 %v13228_v49, %v6157_v34  ;;  %v13230_v57 = vld [vmem:[#allocation30_spill] sm:$0xff]  ;;  %v7756_v34 = vld [vmem:[%s13001_s20 + $0x18] sm:$0xff] }
 0x489   : > { %v7293_v31 = vadd.f32 %v13220_v14, %v6875_v2  ;;  %v6878_v35 = vadd.f32 %v13226_v61, %v6571_v15  ;;  %v6879_v40 = vadd.f32 %v13227_v22, %v6572_v32  ;;  %v6576_v47 = vadd.f32 %v13229_v7, %v6158_v3  ;;  %v7276_v2 = vpop.f32.mrf.mxu1  ;;  %v13236_v60 = vld [vmem:[#allocation35_spill] sm:$0xff]  ;;  %v13239_v22 = vld [vmem:[#allocation25_spill] sm:$0xff] }
 0x48a   : > { %v7294_v51 = vadd.f32 %v13225_v63, %v6876_v33  ;;  %v7295_v48 = vadd.f32 %v13230_v57, %v6877_v5  ;;  %v13238_v61 = vld [vmem:[#allocation11_spill] sm:$0xff]  ;;  %v13240_v57 = vld [vmem:[#allocation29_spill] sm:$0xff] }
 0x48b   : > { %v7296_v5 = vadd.f32 %v12948_v4, %v6878_v35  ;;  %v7297_v13 = vadd.f32 %v12956_v26, %v6879_v40  ;;  %v6162_v35 = vadd.f32 %v13238_v61, %v12994_v58  ;;  %v6883_v40 = vadd.f32 %v13239_v22, %v6576_v47 }
 0x4a9   : > { %v7670_v0 = vpop.f32.mrf.mxu0 }
 0x4aa   : > { %v7709_v28 = vadd.f32 %v7670_v0, %v7291_v11  ;;  %v13231_v0 = vld [vmem:[#allocation4_spill] sm:$0xff] }
 0x4ab   : > { %v7672_v23 = vpop.f32.mrf.mxu0  ;;  %v6160_v33 = vadd.f32 %v13231_v0, %v5742_v39  ;;  %v13241_v0 = vld [vmem:[#allocation17_spill] sm:$0xff] }
 0x4ac   : > { %v7737_v59 = vadd.f32 %v13007_v30, %v7709_v28  ;;  %v7710_v25 = vadd.f32 %v7672_v23, %v7292_v27  ;;  %v6880_v28 = vadd.f32 %v13232_v56, %v6573_v24  ;;  %v13233_v27 = vld [vmem:[#allocation16_spill] sm:$0xff]  ;;  %v7760_v56 = vld [vmem:[%s13001_s20 + $0x38] sm:$0xff] }
 0x4ad   : > { %v7674_v36 = vpop.f32.mrf.mxu0  ;;  %v6577_v46 = vadd.f32 %v13233_v27, %v6159_v43  ;;  %v7278_v43 = vpop.f32.mrf.mxu1 }
 0x4ae   : > { %v7769_v17 = vsub.f32 %v7737_v59, %v7753_v45  ;;  %v7738_v53 = vadd.f32 %v13013_v21, %v7710_v25  ;;  %v7711_v12 = vadd.f32 %v7674_v36, %v7293_v31  ;;  %v6161_v59 = vadd.f32 %v13234_v1, %v5743_v50  ;;  %v13235_v25 = vld [vmem:[#allocation23_spill] sm:$0xff]  ;;  %v7757_v31 = vld [vmem:[%s13001_s20 + $0x20] sm:$0xff] }
 0x4af   : > { %v7676_v52 = vpop.f32.mrf.mxu0  ;;  %v6881_v14 = vadd.f32 %v13235_v25, %v6574_v37  ;;  %v13237_v36 = vld [vmem:[#allocation15_spill] sm:$0xff] }
 0x4b0   : > { %v7770_v9 = vsub.f32 %v7738_v53, %v7754_v62  ;;  %v7739_v11 = vadd.f32 %v13007_v30, %v7711_v12  ;;  %v7712_v55 = vadd.f32 %v7676_v52, %v7294_v51  ;;  %v7785_v42 = vmul.f32 %v7769_v17, %v7769_v17  ;;  %v7758_v51 = vld [vmem:[%s13001_s20 + $0x28] sm:$0xff]  ;;  %v7282_v52 = vpop.f32.mrf.mxu1 }
 0x4b1   : > { %v7680_v18 = vpop.f32.mrf.mxu0  ;;  %v6882_v62 = vadd.f32 %v13236_v60, %v6575_v6  ;;  %v6578_v50 = vadd.f32 %v13237_v36, %v6160_v33  ;;  %v7298_v53 = vadd.f32 %v12969_v29, %v6880_v28  ;;  %v7759_v6 = vld [vmem:[%s13001_s20 + $0x30] sm:$0xff]  ;;  %v6579_v33 = vadd.f32 %v13241_v0, %v6161_v59 }
 0x4b2   : > { %v7786_v3 = vmul.f32 %v7770_v9, %v7770_v9  ;;  %v7771_v15 = vsub.f32 %v7739_v11, %v7755_v19  ;;  %v7740_v45 = vadd.f32 %v13013_v21, %v7712_v55  ;;  %v7713_v23 = vadd.f32 %v7680_v18, %v7295_v48  ;;  %v13242_v18 = vld [vmem:[#allocation22_spill] sm:$0xff]  ;;  %v7284_v25 = vpop.f32.mrf.mxu1 }
 0x4b3   : > { %v7682_v39 = vpop.f32.mrf.mxu0  ;;  %v7299_v19 = vadd.f32 %v13004_v54, %v6881_v14  ;;  %v6884_v48 = vadd.f32 %v13240_v57, %v6577_v46  ;;  %v7300_v28 = vadd.f32 %v13026_v10, %v6882_v62  ;;  %v7761_v46 = vld [vmem:[%s13001_s20 + $0x40] sm:$0xff]  ;;  %v7301_v59 = vadd.f32 %v7276_v2, %v6883_v40  ;;  %v7764_v40 = vld [vmem:[%s13001_s20 + $0x58] sm:$0xff] }
 0x4b4   : > { %v7801_v16 = vadd.f32 %v7786_v3, %v7785_v42  ;;  %v7787_v32 = vmul.f32 %v7771_v15, %v7771_v15  ;;  %v7772_v41 = vsub.f32 %v7740_v45, %v7756_v34  ;;  %v7741_v24 = vadd.f32 %v13007_v30, %v7713_v23  ;;  %v13243_v15 = vld [vmem:[#allocation32_spill] sm:$0xff] }
 0x4b5   : > { %v7714_v17 = vadd.f32 %v7682_v39, %v7296_v5  ;;  %v7684_v37 = vpop.f32.mrf.mxu0  ;;  %v6163_v3 = vadd.f32 %v13242_v18, %v13021_v8  ;;  %v6885_v45 = vadd.f32 %v13243_v15, %v6578_v50  ;;  %v6886_v39 = vadd.f32 %v12952_v38, %v6579_v33 }
 0x4b6   : > { %v7802_v4 = vadd.f32 %v7801_v16, %v7787_v32  ;;  %v7788_v12 = vmul.f32 %v7772_v41, %v7772_v41  ;;  %v7773_v63 = vsub.f32 %v7741_v24, %v7757_v31  ;;  %v7715_v26 = vadd.f32 %v7684_v37, %v7297_v13  ;;  %v13244_v13 = vld [vmem:[#allocation18_spill] sm:$0xff]  ;;  %v7762_v41 = vld [vmem:[%s13001_s20 + $0x48] sm:$0xff] }
 0x4b7   : > { %v7742_v49 = vadd.f32 %v13013_v21, %v7714_v17  ;;  %v7686_v7 = vpop.f32.mrf.mxu0  ;;  %v6580_v16 = vadd.f32 %v13244_v13, %v6162_v35  ;;  %v7302_v24 = vadd.f32 %v7278_v43, %v6884_v48  ;;  %v13245_v17 = vld [vmem:[#allocation19_spill] sm:$0xff]  ;;  %v7303_v38 = vadd.f32 %v7282_v52, %v6885_v45 }
 0x4b8   : > { %v7803_v9 = vadd.f32 %v7802_v4, %v7788_v12  ;;  %v7789_v29 = vmul.f32 %v7773_v63, %v7773_v63  ;;  %v7743_v11 = vadd.f32 %v13007_v30, %v7715_v26  ;;  %v7716_v55 = vadd.f32 %v7686_v7, %v7298_v53  ;;  %v7763_v4 = vld [vmem:[%s13001_s20 + $0x50] sm:$0xff]  ;;  %v7286_v63 = vpop.f32.mrf.mxu1 }
 0x4b9   : > { %v7774_v58 = vsub.f32 %v7742_v49, %v7758_v51  ;;  %v7690_v47 = vpop.f32.mrf.mxu0  ;;  %v6887_v50 = vadd.f32 %v12964_v44, %v6580_v16  ;;  %v6581_v37 = vadd.f32 %v13245_v17, %v6163_v3  ;;  %v7304_v44 = vadd.f32 %v7284_v25, %v6886_v39  ;;  %v7767_v3 = vld [vmem:[%s13001_s20 + $0x70] sm:$0xff]  ;;  %v7768_v25 = vld [vmem:[%s13001_s20 + $0x78] sm:$0xff] }
 0x4ba   : > { %v7804_v27 = vadd.f32 %v7803_v9, %v7789_v29  ;;  %v7775_v42 = vsub.f32 %v7743_v11, %v7759_v6  ;;  %v7744_v54 = vadd.f32 %v13013_v21, %v7716_v55  ;;  %v7717_v34 = vadd.f32 %v7690_v47, %v7299_v19  ;;  %v7765_v29 = vld [vmem:[%s13001_s20 + $0x60] sm:$0xff]  ;;  %v7288_v57 = vpop.f32.mrf.mxu1 }
 0x4bb   : > { %v7790_v23 = vmul.f32 %v7774_v58, %v7774_v58  ;;  %v7692_v1 = vpop.f32.mrf.mxu0  ;;  %v6888_v35 = vadd.f32 %v12996_v20, %v6581_v37  ;;  %v7305_v55 = vadd.f32 %v7286_v63, %v6887_v50 }
 0x4bc   : > { %v7791_v14 = vmul.f32 %v7775_v42, %v7775_v42  ;;  %v7776_v31 = vsub.f32 %v7744_v54, %v7760_v56  ;;  %v7745_v10 = vadd.f32 %v13007_v30, %v7717_v34  ;;  %v7718_v5 = vadd.f32 %v7692_v1, %v7300_v28  ;;  %v7766_v56 = vld [vmem:[%s13001_s20 + $0x68] sm:$0xff] }
 0x4bd   : > { %v7805_v32 = vadd.f32 %v7804_v27, %v7790_v23  ;;  %v7694_v8 = vpop.f32.mrf.mxu0  ;;  %v7306_v28 = vadd.f32 %v7288_v57, %v6888_v35 }
 0x4be   : > { %v7792_v60 = vmul.f32 %v7776_v31, %v7776_v31  ;;  %v7777_v62 = vsub.f32 %v7745_v10, %v7761_v46  ;;  %v7746_v2 = vadd.f32 %v13013_v21, %v7718_v5  ;;  %v7719_v36 = vadd.f32 %v7694_v8, %v7301_v59 }
 0x4bf   : > { %v7806_v53 = vadd.f32 %v7805_v32, %v7791_v14  ;;  %v7696_v12 = vpop.f32.mrf.mxu0 }
 0x4c0   : > { %v7793_v51 = vmul.f32 %v7777_v62, %v7777_v62  ;;  %v7778_v26 = vsub.f32 %v7746_v2, %v7762_v41  ;;  %v7747_v43 = vadd.f32 %v13007_v30, %v7719_v36  ;;  %v7720_v61 = vadd.f32 %v7696_v12, %v7302_v24 }
 0x4c1   : > { %v7807_v22 = vadd.f32 %v7806_v53, %v7792_v60  ;;  %v7700_v49 = vpop.f32.mrf.mxu0 }
 0x4c2   : > { %v7794_v6 = vmul.f32 %v7778_v26, %v7778_v26  ;;  %v7779_v7 = vsub.f32 %v7747_v43, %v7763_v4  ;;  %v7748_v19 = vadd.f32 %v13013_v21, %v7720_v61  ;;  %v7721_v9 = vadd.f32 %v7700_v49, %v7303_v38 }
 0x4c3   : > { %v7808_v52 = vadd.f32 %v7807_v22, %v7793_v51  ;;  %v7702_v11 = vpop.f32.mrf.mxu0 }
 0x4c4   : > { %v7795_v48 = vmul.f32 %v7779_v7, %v7779_v7  ;;  %v7780_v0 = vsub.f32 %v7748_v19, %v7764_v40  ;;  %v7749_v20 = vadd.f32 %v13007_v30, %v7721_v9  ;;  %v7722_v33 = vadd.f32 %v7702_v11, %v7304_v44 }
 0x4c5   : > { %v7809_v58 = vadd.f32 %v7808_v52, %v7794_v6  ;;  %v7704_v47 = vpop.f32.mrf.mxu0 }
 0x4c6   : > { %v7796_v27 = vmul.f32 %v7780_v0, %v7780_v0  ;;  %v7781_v42 = vsub.f32 %v7749_v20, %v7765_v29  ;;  %v7750_v54 = vadd.f32 %v13013_v21, %v7722_v33  ;;  %v7723_v34 = vadd.f32 %v7704_v47, %v7305_v55 }
 0x4c7   : > { %v7810_v18 = vadd.f32 %v7809_v58, %v7795_v48  ;;  %v7706_v15 = vpop.f32.mrf.mxu0 }
 0x4c8   : > { %v7797_v45 = vmul.f32 %v7781_v42, %v7781_v42  ;;  %v7782_v23 = vsub.f32 %v7750_v54, %v7766_v56  ;;  %v7751_v46 = vadd.f32 %v13007_v30, %v7723_v34  ;;  %v7724_v1 = vadd.f32 %v7706_v15, %v7306_v28 }
 0x4c9   : > { %v7811_v59 = vadd.f32 %v7810_v18, %v7796_v27 }
 0x4ca   : > { %v7798_v14 = vmul.f32 %v7782_v23, %v7782_v23  ;;  %v7783_v31 = vsub.f32 %v7751_v46, %v7767_v3  ;;  %v7752_v10 = vadd.f32 %v13013_v21, %v7724_v1 }
 0x4cb   : > { %v7812_v5 = vadd.f32 %v7811_v59, %v7797_v45 }
 0x4cc   : > { %v7799_v39 = vmul.f32 %v7783_v31, %v7783_v31  ;;  %v7784_v13 = vsub.f32 %v7752_v10, %v7768_v25 }
 0x4cd   : > { %v7813_v16 = vadd.f32 %v7812_v5, %v7798_v14 }
 0x4ce   : > { %v7800_v32 = vmul.f32 %v7784_v13, %v7784_v13 }
 0x4cf   : > { %v7814_v41 = vadd.f32 %v7813_v16, %v7799_v39 }
 0x4d1   : > { %v7815_v8 = vadd.f32 %v7814_v41, %v7800_v32 }
 0x4d3   : > { %7816 = vadd.xlane.f32.xlu0 %v7815_v8 }
 0x55c   : > { %v7817_v24 = vpop.xlane.xlu0 %7816 }
 0x55d   : > { %v7818_v60 = vrot.slane %v7817_v24, 4 }
 0x55f   : > { %v7819_v62 = vadd.f32 %v7818_v60, %v7817_v24 }
 0x561   : > { %v7820_v30 = vrot.slane %v7819_v62, 2 }
 0x563   : > { %v7821_v2 = vadd.f32 %v7820_v30, %v7819_v62 }
 0x565   : > { %v7822_v36 = vrot.slane %v7821_v2, 1 }
 0x567   : > { %v7823_v50 = vadd.f32 %v7822_v36, %v7821_v2 }
 0x569   : > { %9029 = vpush %v7823_v50 }
 0x59a   : > { %s9030_s25 = spop %9029 }
 0x59b   : > { %v7825_v21 = vstv %s9030_s25 }
 0x59c   : > { %7826 = vst [vmem:[%s370_s24] sm:$0xff] %v7825_v21 }
 0x59d PF: > { %s19_s30 = sadd.s32 1, %s9944_s30  }
 0x59e   : > { %p16_p4 = scmp.ge.s32.totalorder %s19_s30, 4  }
 0x5a0   :  { %18 = sbr.rel (!%p16_p4) target bundleno = 1 (0x1), region = 112 }

</bundles_post_ra>
